<compile_context>
chip_gen: v7x
topology: tpu7x:2x2x1
jax: 0.10.0
libtpu: 0.0.40
codegen_flags: <defaults>
</compile_context>

<pallas_src>
import functools
import math

import jax
import jax.numpy as jnp
from jax.experimental import pallas as pl
from jax.experimental.pallas import tpu as pltpu


# ----------------------------------------------------------------------------
# Small helpers
# ----------------------------------------------------------------------------
def _round_up(x, m):
    return (x + m - 1) // m * m


def _channel_tile(c, target):
    """Largest multiple-of-128 divisor of c that is <= target, or c itself if small."""
    if c <= target:
        return c
    t = (target // 128) * 128
    while t >= 128:
        if c % t == 0:
            return t
        t -= 128
    return c


def _pack_factor(cin, cout):
    """Pooled rows packed per kernel row for the lane-packed (Cin < 128) conv path.

    Prefers s with s*cout a multiple of 128 (lane-dense, unmasked stores) and a
    fused-tap contraction K = 2*s*cin in the 256..1024 range."""
    step = 128 // math.gcd(cout, 128)
    if 2 * step * cin > 1024:
        return max(1, 512 // (2 * cin))
    s = step
    while s * cout < 256 and 2 * (s + step) * cin <= 1024:
        s += step
    return s


def _pick_conv_tiles(P, Cin, Cout, itemsize, budget):
    """(TP, TCo, TCi) for the general conv path minimising estimated HBM restream
    traffic  n_i * weight_bytes + n_j * input_bytes  under a VMEM budget."""
    TCi = _channel_tile(Cin, 1024)
    P8 = _round_up(max(P, 8), 8)
    best = None
    for tco_target in (512, 1024, 2048):
        TCo = _channel_tile(Cout, tco_target)
        for tp in (128, 256, 512, 1024, 2048):
            TP = min(tp, P8)
            P_pad = _round_up(P, TP)
            vmem = (2 * (3 * TP * TCi + 2 * TCi * TCo + TP * TCo) * itemsize
                    + 2 * TP * TCo * 4)
            if vmem > budget:
                continue
            cost = ((P_pad // TP) * 2 * Cin * Cout
                    + (Cout // TCo) * 3 * P_pad * Cin) * itemsize
            if best is None or cost < best[0]:
                best = (cost, TP, TCo)
    if best is None:
        return min(128, P8), _channel_tile(Cout, 256), _channel_tile(Cin, 512)
    return best[1], best[2], TCi


# ----------------------------------------------------------------------------
# Kernels
# ----------------------------------------------------------------------------
def _packed_block_kernel(xr_ref, xh_ref, we_ref, wo_ref, wh_ref, scale_ref,
                         shift_ref, o_ref):
    """Lane-packed Conv1d(k=2)+BN+ReLU+MaxPool1d(2) for Cin < 128.

    Each input row r of xr holds 2*s consecutive time steps ([x[2sr] | ... |
    x[2sr+2s-1]]).  we/wo are block-banded fused-tap weights so one matmul produces
    the s even (resp. odd) conv rows of that window; the odd stream's final tap
    (x[2s(r+1)]) comes from the small halo stream xh with weight wh."""
    xr = xr_ref[...]
    ze = jnp.dot(xr, we_ref[...], preferred_element_type=jnp.float32)
    zo = jnp.dot(xr, wo_ref[...], preferred_element_type=jnp.float32)
    zo = zo + jnp.dot(xh_ref[...], wh_ref[...], preferred_element_type=jnp.float32)
    scale = scale_ref[...]        # (1, s*Cout) f32, channel scale tiled s times
    shift = shift_ref[...]
    ze = jnp.maximum(ze * scale + shift, 0.0)
    zo = jnp.maximum(zo * scale + shift, 0.0)
    o_ref[...] = jnp.maximum(ze, zo).astype(o_ref.dtype)


def _conv_block_kernel(xe_ref, xo_ref, xe1_ref, w0_ref, w1_ref, scale_ref,
                       shift_ref, o_ref, acc_e_ref, acc_o_ref):
    """General Conv1d(k=2)+BN+ReLU+MaxPool1d(2) tile for Cin >= 128.

    For pooled row t in the tile:
      z_even[t] = x[2t]   @ w0 + x[2t+1] @ w1
      z_odd[t]  = x[2t+1] @ w0 + x[2t+2] @ w1
      out[t]    = max(relu(bn(z_even[t])), relu(bn(z_odd[t])))
    Grid axis 2 tiles Cin (reduction) and accumulates into f32 scratch."""
    k = pl.program_id(2)

    @pl.when(k == 0)
    def _():
        acc_e_ref[...] = jnp.zeros_like(acc_e_ref)
        acc_o_ref[...] = jnp.zeros_like(acc_o_ref)

    w0 = w0_ref[...]
    w1 = w1_ref[...]
    xe = xe_ref[...]
    xo = xo_ref[...]
    # Separate accumulate statements so v7x's MRB can accumulate in place.
    acc_e_ref[...] += jnp.dot(xe, w0, preferred_element_type=jnp.float32)
    acc_e_ref[...] += jnp.dot(xo, w1, preferred_element_type=jnp.float32)
    acc_o_ref[...] += jnp.dot(xo, w0, preferred_element_type=jnp.float32)
    acc_o_ref[...] += jnp.dot(xe1_ref[...], w1, preferred_element_type=jnp.float32)

    @pl.when(k == pl.num_programs(2) - 1)
    def _():
        scale = scale_ref[...]          # (1, TCo) f32: gamma / sqrt(var + eps)
        shift = shift_ref[...]          # (1, TCo) f32: beta + (bias - mean) * scale
        ze = jnp.maximum(acc_e_ref[...] * scale + shift, 0.0)
        zo = jnp.maximum(acc_o_ref[...] * scale + shift, 0.0)
        o_ref[...] = jnp.maximum(ze, zo).astype(o_ref.dtype)


def _epilogue_kernel(y_ref, wc_ref, x1_ref, wx1_ref, b_ref, o_ref, acc_ref):
    """Fused AvgPool1d(9) + flatten + concat(x1) + Linear + softmax, tiled over C.

    y_ref:   (G, 9, TC) final conv activation channel tile (channels-last, 9 time
             steps per GAP row as the sublane axis)
    wc_ref:  (K, G, TC) Linear weight columns for this channel tile (pre-permuted)
    x1_ref:  (1, F), wx1_ref: (K, 1, F), b_ref: (1, 128) zero-padded bias
    o_ref:   (1, 128) softmax probabilities (first K lanes valid)
    acc_ref: (1, 128) f32 per-class partial-logit accumulator (persists over grid).
    """
    i = pl.program_id(0)
    K = wc_ref.shape[0]
    lane = jax.lax.broadcasted_iota(jnp.int32, (1, 128), 1)

    @pl.when(i == 0)
    def _():
        x1 = x1_ref[...].astype(jnp.float32)
        part = jnp.zeros((1, 128), jnp.float32)
        for n in range(K):                              # K = 9: tiny VPU loop
            v = jnp.sum(x1 * wx1_ref[n].astype(jnp.float32))
            part = part + jnp.where(lane == n, v, 0.0)
        acc_ref[...] = part

    # AvgPool1d(9): sublane reduce of the (9, TC) minor tile, then per-class
    # multiply+reduce against the pre-permuted linear weight (K=9 classes, so an
    # MXU matmul would be <4% utilized; this stays lane-dense on the VPU).
    gap = jnp.sum(y_ref[...].astype(jnp.float32), axis=1) * (1.0 / 9.0)   # (G, TC)
    part = jnp.zeros((1, 128), jnp.float32)
    for n in range(K):
        v = jnp.sum(gap * wc_ref[n].astype(jnp.float32))
        part = part + jnp.where(lane == n, v, 0.0)
    acc_ref[...] += part

    @pl.when(i == pl.num_programs(0) - 1)
    def _():
        logits = acc_ref[...] + b_ref[...]
        logits = jnp.where(lane < K, logits, -jnp.inf)
        m = jnp.max(logits, axis=-1, keepdims=True)
        e = jnp.exp(logits - m)
        o_ref[...] = e / jnp.sum(e, axis=-1, keepdims=True)


# ----------------------------------------------------------------------------
# pallas_call wrappers
# ----------------------------------------------------------------------------
def conv_block_packed(x, blk, *, row_tile=1024):
    """Lane-packed conv block (Cin < 128).  x: (L_in, Cin) channels-last."""
    L_in, Cin = x.shape
    s = blk["s"]
    Cout = blk["cout"]
    P = (L_in - 1) // 2
    assert P >= 1, "sequence too short for this block"

    Nr = -(-P // s)                                   # packed rows actually needed
    TPr = min(row_tile, _round_up(Nr, 8))
    Nr_pad = _round_up(Nr, TPr)
    Lpad = 2 * s * Nr_pad + 1
    if L_in >= Lpad:
        xp = x[:Lpad]
    else:
        xp = jnp.pad(x, ((0, Lpad - L_in), (0, 0)))
    xr = xp[:2 * s * Nr_pad].reshape(Nr_pad, 2 * s * Cin)   # contiguous reshape
    xh = xp[2 * s::2 * s]                                   # (Nr_pad, Cin) halo rows

    out = pl.pallas_call(
        _packed_block_kernel,
        out_shape=jax.ShapeDtypeStruct((Nr_pad, s * Cout), x.dtype),
        grid=(Nr_pad // TPr,),
        in_specs=[
            pl.BlockSpec((TPr, 2 * s * Cin), lambda i: (i, 0)),     # xr
            pl.BlockSpec((TPr, Cin), lambda i: (i, 0)),             # xh
            pl.BlockSpec((2 * s * Cin, s * Cout), lambda i: (0, 0)),  # we (resident)
            pl.BlockSpec((2 * s * Cin, s * Cout), lambda i: (0, 0)),  # wo
            pl.BlockSpec((Cin, s * Cout), lambda i: (0, 0)),          # wh
            pl.BlockSpec((1, s * Cout), lambda i: (0, 0)),            # scale
            pl.BlockSpec((1, s * Cout), lambda i: (0, 0)),            # shift
        ],
        out_specs=pl.BlockSpec((TPr, s * Cout), lambda i: (i, 0)),
        compiler_params=pltpu.CompilerParams(
            dimension_semantics=("parallel",),
            vmem_limit_bytes=48 * 1024 * 1024),
    )(xr, xh, blk["we"], blk["wo"], blk["wh"], blk["scale"], blk["shift"])
    # Unpack: (Nr, s*Cout) -> (Nr*s, Cout) is contiguous; drop padded pooled rows.
    return out[:Nr].reshape(Nr * s, Cout)[:P]


def conv_block_general(x, blk, *, vmem_budget=40 * 1024 * 1024):
    """General conv block (Cin >= 128).  x: (L_in, Cin) channels-last."""
    L_in, Cin = x.shape
    Cout = blk["w0"].shape[1]
    P = (L_in - 1) // 2
    assert P >= 1, "sequence too short for this block"
    itemsize = jnp.dtype(x.dtype).itemsize

    TP, TCo, TCi = _pick_conv_tiles(P, Cin, Cout, itemsize, vmem_budget)
    P_pad = _round_up(P, TP)

    # Even / odd / shifted-even row streams (wrapper-side XLA slices) so the kernel
    # needs no halo row and MaxPool1d(2) is an elementwise max (see TODO re halo DMA).
    xp = jnp.pad(x, ((0, 2 * P_pad + 2 - L_in), (0, 0)))
    xe = xp[0:2 * P_pad:2]               # x[2t]
    xo = xp[1:2 * P_pad + 1:2]           # x[2t+1]
    xe1 = xp[2:2 * P_pad + 2:2]          # x[2t+2]

    grid = (P_pad // TP, Cout // TCo, Cin // TCi)
    out = pl.pallas_call(
        _conv_block_kernel,
        out_shape=jax.ShapeDtypeStruct((P_pad, Cout), x.dtype),
        grid=grid,
        in_specs=[
            pl.BlockSpec((TP, TCi), lambda i, j, k: (i, k)),      # xe
            pl.BlockSpec((TP, TCi), lambda i, j, k: (i, k)),      # xo
            pl.BlockSpec((TP, TCi), lambda i, j, k: (i, k)),      # xe1
            pl.BlockSpec((TCi, TCo), lambda i, j, k: (k, j)),     # w0
            pl.BlockSpec((TCi, TCo), lambda i, j, k: (k, j)),     # w1
            pl.BlockSpec((1, TCo), lambda i, j, k: (0, j)),       # scale
            pl.BlockSpec((1, TCo), lambda i, j, k: (0, j)),       # shift
        ],
        out_specs=pl.BlockSpec((TP, TCo), lambda i, j, k: (i, j)),
        scratch_shapes=[pltpu.VMEM((TP, TCo), jnp.float32),
                        pltpu.VMEM((TP, TCo), jnp.float32)],
        compiler_params=pltpu.CompilerParams(
            dimension_semantics=("parallel", "parallel", "arbitrary"),
            vmem_limit_bytes=48 * 1024 * 1024),
    )(xe, xo, xe1, blk["w0"], blk["w1"], blk["scale"], blk["shift"])
    return out[:P]


def epilogue(y, x1, wx1, wc, bias_pad):
    """Fused AvgPool1d(9) + flatten + concat + Linear + softmax, tiled over C."""
    _, C = y.shape
    K, G, _ = wc.shape
    F = x1.shape[1]
    y3 = y[:9 * G].reshape(G, 9, C)                    # contiguous reshape
    TC = _channel_tile(C, 2048)

    probs = pl.pallas_call(
        _epilogue_kernel,
        out_shape=jax.ShapeDtypeStruct((1, 128), jnp.float32),
        grid=(C // TC,),
        in_specs=[
            pl.BlockSpec((G, 9, TC), lambda i: (0, 0, i)),     # activation tile
            pl.BlockSpec((K, G, TC), lambda i: (0, 0, i)),     # linear weight tile
            pl.BlockSpec((1, F), lambda i: (0, 0)),            # x1
            pl.BlockSpec((K, 1, F), lambda i: (0, 0, 0)),      # x1 weight columns
            pl.BlockSpec((1, 128), lambda i: (0, 0)),          # padded bias
        ],
        out_specs=pl.BlockSpec((1, 128), lambda i: (0, 0)),
        scratch_shapes=[pltpu.VMEM((1, 128), jnp.float32)],
        compiler_params=pltpu.CompilerParams(
            dimension_semantics=("arbitrary",),
            vmem_limit_bytes=48 * 1024 * 1024),
    )(y3, wc, x1, wx1, bias_pad)
    return probs[:, :K]


# ----------------------------------------------------------------------------
# Parameters (deterministic synthetic init) and one-time preprocessing
# ----------------------------------------------------------------------------
def init_params(key, input_size, filters_count, x1_features, num_classes, gap_out_len):
    """Deterministic synthetic parameters mirroring the PyTorch module."""
    params = {"blocks": []}
    for i in range(filters_count):
        cin = input_size * 2 ** i
        cout = input_size * 2 ** (i + 1)
        key, kw, kb, kg, kbe, km, kv = jax.random.split(key, 7)
        params["blocks"].append(dict(
            w=jax.random.normal(kw, (cout, cin, 2), jnp.float32) / jnp.sqrt(2.0 * cin),
            b=0.05 * jax.random.normal(kb, (cout,), jnp.float32),
            gamma=1.0 + 0.1 * jax.random.normal(kg, (cout,), jnp.float32),
            beta=0.1 * jax.random.normal(kbe, (cout,), jnp.float32),
            rmean=0.1 * jax.random.normal(km, (cout,), jnp.float32),
            rvar=0.5 + jax.random.uniform(kv, (cout,), jnp.float32),
        ))
    c_final = input_size * 2 ** filters_count
    d_in = x1_features + c_final * gap_out_len
    key, kw, kb = jax.random.split(key, 3)
    params["lin_w"] = jax.random.normal(kw, (num_classes, d_in), jnp.float32) / jnp.sqrt(d_in)
    params["lin_b"] = 0.05 * jax.random.normal(kb, (num_classes,), jnp.float32)
    return params


def prepare_params(params, x1_features, dtype=jnp.bfloat16, eps=1e-5):
    """One-time parameter preprocessing hoisted out of the forward pass.

    Conv taps are transposed to (Cin, Cout) and cast to the compute dtype; for
    small-Cin blocks they are additionally packed into block-banded fused-tap
    weights for the lane-packed path.  Conv bias + BatchNorm(eval) are folded into
    an f32 affine (scale, shift).  The Linear weight is split and permuted to the
    epilogue's (class, G, C) gap layout; it is kept in f32 deliberately (streamed
    once; accuracy over a tiny HBM saving)."""
    prep = {"blocks": [], "dtype": dtype}
    for blk in params["blocks"]:
        w = blk["w"]                                  # (Cout, Cin, 2)
        cout, cin, _ = w.shape
        inv = blk["gamma"] / jnp.sqrt(blk["rvar"] + eps)
        scale = inv[None, :].astype(jnp.float32)
        shift = (blk["beta"] + (blk["b"] - blk["rmean"]) * inv)[None, :].astype(jnp.float32)
        w0 = jnp.transpose(w[:, :, 0])                # (Cin, Cout)
        w1 = jnp.transpose(w[:, :, 1])
        if cin < 128:
            s = _pack_factor(cin, cout)
            we = jnp.zeros((2 * s * cin, s * cout), jnp.float32)
            wo = jnp.zeros((2 * s * cin, s * cout), jnp.float32)
            wh = jnp.zeros((cin, s * cout), jnp.float32)
            for q in range(s):
                cs = slice(q * cout, (q + 1) * cout)
                we = we.at[2 * q * cin:(2 * q + 1) * cin, cs].set(w0)
                we = we.at[(2 * q + 1) * cin:(2 * q + 2) * cin, cs].set(w1)
                wo = wo.at[(2 * q + 1) * cin:(2 * q + 2) * cin, cs].set(w0)
                if q + 1 < s:
                    wo = wo.at[(2 * q + 2) * cin:(2 * q + 3) * cin, cs].set(w1)
            wh = wh.at[:, (s - 1) * cout:].set(w1)
            prep["blocks"].append(dict(
                kind="packed", s=s, cout=cout,
                we=we.astype(dtype), wo=wo.astype(dtype), wh=wh.astype(dtype),
                scale=jnp.tile(scale, (1, s)), shift=jnp.tile(shift, (1, s))))
        else:
            prep["blocks"].append(dict(
                kind="general",
                w0=w0.astype(dtype), w1=w1.astype(dtype),
                scale=scale, shift=shift))

    c_final = params["blocks"][-1]["w"].shape[0]
    lin_w = params["lin_w"]                           # (K, F + C*G); torch flat = c*G + g
    num_classes = lin_w.shape[0]
    gap_len = (lin_w.shape[1] - x1_features) // c_final
    prep["wx1"] = lin_w[:, :x1_features].reshape(num_classes, 1, x1_features)
    prep["wc"] = (lin_w[:, x1_features:]
                  .reshape(num_classes, c_final, gap_len)
                  .transpose(0, 2, 1))                # (K, G, C), f32
    prep["bias"] = jnp.pad(params["lin_b"][None, :], ((0, 0), (0, 128 - num_classes)))
    return prep


# ----------------------------------------------------------------------------
# Forward pass and plain-JAX reference
# ----------------------------------------------------------------------------
def explainable_nn_forward(prep, x1, x2):
    """x1: (1, F) float, x2: (1, C0, L0) NCL.  Returns (1, K) softmax probabilities."""
    x = jnp.transpose(x2[0], (1, 0)).astype(prep["dtype"])    # NCL -> (L, C)
    for blk in prep["blocks"]:
        if blk["kind"] == "packed":
            x = conv_block_packed(x, blk)
        else:
            x = conv_block_general(x, blk)
        # Dropout(0.1) is identity at inference.
    return epilogue(x, x1.astype(jnp.float32), prep["wx1"], prep["wc"], prep["bias"])


def reference_forward(params, x1, x2, dtype=jnp.float32, eps=1e-5):
    """Plain-JAX reference in PyTorch NCL layout.  `dtype` mimics the storage
    precision of the Pallas path (activations / conv weights rounded through it)."""
    f32 = jnp.float32
    q = lambda a: a.astype(dtype).astype(f32)
    x = q(x2)
    for blk in params["blocks"]:
        w = q(blk["w"])
        z = (jnp.einsum("oc,ncl->nol", w[:, :, 0], x[:, :, :-1])
             + jnp.einsum("oc,ncl->nol", w[:, :, 1], x[:, :, 1:])
             + blk["b"][None, :, None])
        z = (z - blk["rmean"][None, :, None]) / jnp.sqrt(blk["rvar"][None, :, None] + eps)
        z = z * blk["gamma"][None, :, None] + blk["beta"][None, :, None]
        z = jnp.maximum(z, 0.0)
        P = z.shape[-1] // 2
        x = q(z[:, :, :2 * P].reshape(z.shape[0], z.shape[1], P, 2).max(axis=-1))
    G = x.shape[-1] // 9
    g = x[:, :, :9 * G].reshape(x.shape[0], x.shape[1], G, 9).mean(axis=-1)
    d = jnp.concatenate([x1.astype(f32), g.reshape(1, -1)], axis=1)
    logits = jnp.dot(d, params["lin_w"].T,
                     precision=jax.lax.Precision.HIGHEST) + params["lin_b"][None, :]
    return jax.nn.softmax(logits, axis=1)


if __name__ == "__main__":
    # Small config from the same architecture family (the real module uses
    # input_size=12, filters_count=10, Linear(442372, 9), far too large for a smoke
    # test).  INPUT_SIZE=16 / FILTERS=4 exercises both the lane-packed path
    # (Cin = 16, 32, 64) and the general path (Cin = 128), plus the tiled epilogue.
    INPUT_SIZE = 16      # module: 12
    FILTERS = 4          # module: 10
    SEQ_LEN = 2048       # pooled lengths: 1023 -> 511 -> 255 -> 127, AvgPool1d(9) -> G=14
    X1_FEATURES = 4
    NUM_CLASSES = 9

    L = SEQ_LEN
    for _ in range(FILTERS):
        L = (L - 1) // 2
    G = L // 9

    key = jax.random.PRNGKey(0)
    kp, k1, k2 = jax.random.split(key, 3)
    params = init_params(kp, INPUT_SIZE, FILTERS, X1_FEATURES, NUM_CLASSES, G)
    x1 = jax.random.normal(k1, (1, X1_FEATURES), jnp.float32)
    x2 = jax.random.normal(k2, (1, INPUT_SIZE, SEQ_LEN), jnp.float32)

    # f32 path: must track the plain-JAX reference closely.
    prep_f32 = prepare_params(params, X1_FEATURES, dtype=jnp.float32)
    fwd_f32 = jax.jit(functools.partial(explainable_nn_forward, prep_f32))
    out_f32 = jax.block_until_ready(fwd_f32(x1, x2))
    ref_f32 = reference_forward(params, x1, x2, dtype=jnp.float32)
    assert out_f32.shape == (1, NUM_CLASSES)
    assert bool(jnp.all(jnp.isfinite(out_f32)))
    assert jnp.allclose(jnp.sum(out_f32), 1.0, atol=1e-4)
    assert jnp.allclose(out_f32, ref_f32, rtol=2e-3, atol=1e-4), (out_f32, ref_f32)

    # bf16 production path: activations / conv taps in bf16 with f32 accumulation,
    # compared against a reference that rounds through bf16 at the same points.
    prep_bf16 = prepare_params(params, X1_FEATURES, dtype=jnp.bfloat16)
    fwd_bf16 = jax.jit(functools.partial(explainable_nn_forward, prep_bf16))
    out_bf16 = jax.block_until_ready(fwd_bf16(x1, x2))
    ref_bf16 = reference_forward(params, x1, x2, dtype=jnp.bfloat16)
    assert out_bf16.shape == (1, NUM_CLASSES)
    assert bool(jnp.all(jnp.isfinite(out_bf16)))
    assert jnp.allclose(jnp.sum(out_bf16), 1.0, atol=1e-3)
    assert jnp.allclose(out_bf16, ref_bf16, rtol=1e-2, atol=1e-3), (out_bf16, ref_bf16)

    print("KERNEL_OK")
</pallas_src>

<mosaic_0001>
module attributes {stable_mosaic.version = 11 : i64} {
  func.func @_packed_block_kernel(%arg0: i32, %arg1: memref<128x256xf32, #tpu.memory_space<vmem>>, %arg2: memref<128x16xf32, #tpu.memory_space<vmem>>, %arg3: memref<256x256xf32, #tpu.memory_space<vmem>>, %arg4: memref<256x256xf32, #tpu.memory_space<vmem>>, %arg5: memref<16x256xf32, #tpu.memory_space<vmem>>, %arg6: memref<1x256xf32, #tpu.memory_space<vmem>>, %arg7: memref<1x256xf32, #tpu.memory_space<vmem>>, %arg8: memref<128x256xf32, #tpu.memory_space<vmem>>) attributes {dimension_semantics = [#tpu.dimension_semantics<parallel>], iteration_bounds = array<i64: 1>, scalar_prefetch = 0 : i64, scratch_operands = 0 : i64, tpu.core_type = #tpu.core_type<tc>, window_params = [{transform_indices = @transform_0, window_bounds = array<i64: 128, 256>}, {transform_indices = @transform_1, window_bounds = array<i64: 128, 16>}, {pipeline_mode = #tpu.pipeline_mode<synchronous>, transform_indices = @transform_2, window_bounds = array<i64: 256, 256>}, {pipeline_mode = #tpu.pipeline_mode<synchronous>, transform_indices = @transform_3, window_bounds = array<i64: 256, 256>}, {pipeline_mode = #tpu.pipeline_mode<synchronous>, transform_indices = @transform_4, window_bounds = array<i64: 16, 256>}, {pipeline_mode = #tpu.pipeline_mode<synchronous>, transform_indices = @transform_5, window_bounds = array<i64: 1, 256>}, {pipeline_mode = #tpu.pipeline_mode<synchronous>, transform_indices = @transform_6, window_bounds = array<i64: 1, 256>}, {transform_indices = @transform_7, window_bounds = array<i64: 128, 256>}]} {
    %c0 = arith.constant 0 : index
    %c0_0 = arith.constant 0 : index
    %0 = vector.load %arg1[%c0, %c0_0] : memref<128x256xf32, #tpu.memory_space<vmem>>, vector<128x256xf32>
    %c0_1 = arith.constant 0 : index
    %c0_2 = arith.constant 0 : index
    %1 = vector.load %arg3[%c0_1, %c0_2] : memref<256x256xf32, #tpu.memory_space<vmem>>, vector<256x256xf32>
    %cst = arith.constant dense<0.000000e+00> : vector<128x256xf32>
    %2 = tpu.matmul %0, %1, %cst {dimension_numbers = #tpu.dot_dimension_numbers<[1], [0], [0], [1], [0, 0, 1, 1], [], []>} : vector<128x256xf32>, vector<256x256xf32>, vector<128x256xf32> -> vector<128x256xf32>
    %c0_3 = arith.constant 0 : index
    %c0_4 = arith.constant 0 : index
    %3 = vector.load %arg4[%c0_3, %c0_4] : memref<256x256xf32, #tpu.memory_space<vmem>>, vector<256x256xf32>
    %cst_5 = arith.constant dense<0.000000e+00> : vector<128x256xf32>
    %4 = tpu.matmul %0, %3, %cst_5 {dimension_numbers = #tpu.dot_dimension_numbers<[1], [0], [0], [1], [0, 0, 1, 1], [], []>} : vector<128x256xf32>, vector<256x256xf32>, vector<128x256xf32> -> vector<128x256xf32>
    %c0_6 = arith.constant 0 : index
    %c0_7 = arith.constant 0 : index
    %5 = vector.load %arg2[%c0_6, %c0_7] : memref<128x16xf32, #tpu.memory_space<vmem>>, vector<128x16xf32>
    %c0_8 = arith.constant 0 : index
    %c0_9 = arith.constant 0 : index
    %6 = vector.load %arg5[%c0_8, %c0_9] : memref<16x256xf32, #tpu.memory_space<vmem>>, vector<16x256xf32>
    %cst_10 = arith.constant dense<0.000000e+00> : vector<128x256xf32>
    %7 = tpu.matmul %5, %6, %cst_10 {dimension_numbers = #tpu.dot_dimension_numbers<[1], [0], [0], [1], [0, 0, 1, 1], [], []>} : vector<128x16xf32>, vector<16x256xf32>, vector<128x256xf32> -> vector<128x256xf32>
    %8 = arith.addf %4, %7 : vector<128x256xf32>
    %c0_11 = arith.constant 0 : index
    %c0_12 = arith.constant 0 : index
    %9 = vector.load %arg6[%c0_11, %c0_12] : memref<1x256xf32, #tpu.memory_space<vmem>>, vector<1x256xf32>
    %c0_13 = arith.constant 0 : index
    %c0_14 = arith.constant 0 : index
    %10 = vector.load %arg7[%c0_13, %c0_14] : memref<1x256xf32, #tpu.memory_space<vmem>>, vector<1x256xf32>
    %11 = vector.broadcast %9 : vector<1x256xf32> to vector<128x256xf32>
    %12 = arith.mulf %2, %11 : vector<128x256xf32>
    %13 = vector.broadcast %10 : vector<1x256xf32> to vector<128x256xf32>
    %14 = arith.addf %12, %13 : vector<128x256xf32>
    %cst_15 = arith.constant 0.000000e+00 : f32
    %15 = vector.broadcast %cst_15 : f32 to vector<128x256xf32>
    %16 = arith.maximumf %14, %15 : vector<128x256xf32>
    %17 = vector.broadcast %9 : vector<1x256xf32> to vector<128x256xf32>
    %18 = arith.mulf %8, %17 : vector<128x256xf32>
    %19 = vector.broadcast %10 : vector<1x256xf32> to vector<128x256xf32>
    %20 = arith.addf %18, %19 : vector<128x256xf32>
    %cst_16 = arith.constant 0.000000e+00 : f32
    %21 = vector.broadcast %cst_16 : f32 to vector<128x256xf32>
    %22 = arith.maximumf %20, %21 : vector<128x256xf32>
    %23 = arith.maximumf %16, %22 : vector<128x256xf32>
    %c0_17 = arith.constant 0 : index
    %c0_18 = arith.constant 0 : index
    %24 = vector.load %arg8[%c0_17, %c0_18] : memref<128x256xf32, #tpu.memory_space<vmem>>, vector<128x256xf32>
    tpu.vector_store %arg8[%c0_17, %c0_18], %23 {strides = array<i32>} : memref<128x256xf32, #tpu.memory_space<vmem>>, vector<128x256xf32>,
    return
  }
  func.func @transform_0(%arg0: i32) -> (i32, i32) {
    %c0_i32 = arith.constant 0 : i32
    %c0_i32_0 = arith.constant 0 : i32
    return %arg0, %c0_i32 : i32, i32
  }
  func.func @transform_1(%arg0: i32) -> (i32, i32) {
    %c0_i32 = arith.constant 0 : i32
    %c0_i32_0 = arith.constant 0 : i32
    return %arg0, %c0_i32 : i32, i32
  }
  func.func @transform_2(%arg0: i32) -> (i32, i32) {
    %c0_i32 = arith.constant 0 : i32
    %c0_i32_0 = arith.constant 0 : i32
    %c0_i32_1 = arith.constant 0 : i32
    return %c0_i32, %c0_i32_0 : i32, i32
  }
  func.func @transform_3(%arg0: i32) -> (i32, i32) {
    %c0_i32 = arith.constant 0 : i32
    %c0_i32_0 = arith.constant 0 : i32
    %c0_i32_1 = arith.constant 0 : i32
    return %c0_i32, %c0_i32_0 : i32, i32
  }
  func.func @transform_4(%arg0: i32) -> (i32, i32) {
    %c0_i32 = arith.constant 0 : i32
    %c0_i32_0 = arith.constant 0 : i32
    %c0_i32_1 = arith.constant 0 : i32
    return %c0_i32, %c0_i32_0 : i32, i32
  }
  func.func @transform_5(%arg0: i32) -> (i32, i32) {
    %c0_i32 = arith.constant 0 : i32
    %c0_i32_0 = arith.constant 0 : i32
    %c0_i32_1 = arith.constant 0 : i32
    return %c0_i32, %c0_i32_0 : i32, i32
  }
  func.func @transform_6(%arg0: i32) -> (i32, i32) {
    %c0_i32 = arith.constant 0 : i32
    %c0_i32_0 = arith.constant 0 : i32
    %c0_i32_1 = arith.constant 0 : i32
    return %c0_i32, %c0_i32_0 : i32, i32
  }
  func.func @transform_7(%arg0: i32) -> (i32, i32) {
    %c0_i32 = arith.constant 0 : i32
    %c0_i32_0 = arith.constant 0 : i32
    return %arg0, %c0_i32 : i32, i32
  }
}

module attributes {stable_mosaic.version = 11 : i64} {
  func.func @_packed_block_kernel(%arg0: i32, %arg1: memref<128x256xf32, #tpu.memory_space<vmem>>, %arg2: memref<128x32xf32, #tpu.memory_space<vmem>>, %arg3: memref<256x256xf32, #tpu.memory_space<vmem>>, %arg4: memref<256x256xf32, #tpu.memory_space<vmem>>, %arg5: memref<32x256xf32, #tpu.memory_space<vmem>>, %arg6: memref<1x256xf32, #tpu.memory_space<vmem>>, %arg7: memref<1x256xf32, #tpu.memory_space<vmem>>, %arg8: memref<128x256xf32, #tpu.memory_space<vmem>>) attributes {dimension_semantics = [#tpu.dimension_semantics<parallel>], iteration_bounds = array<i64: 1>, scalar_prefetch = 0 : i64, scratch_operands = 0 : i64, tpu.core_type = #tpu.core_type<tc>, window_params = [{transform_indices = @transform_0, window_bounds = array<i64: 128, 256>}, {transform_indices = @transform_1, window_bounds = array<i64: 128, 32>}, {pipeline_mode = #tpu.pipeline_mode<synchronous>, transform_indices = @transform_2, window_bounds = array<i64: 256, 256>}, {pipeline_mode = #tpu.pipeline_mode<synchronous>, transform_indices = @transform_3, window_bounds = array<i64: 256, 256>}, {pipeline_mode = #tpu.pipeline_mode<synchronous>, transform_indices = @transform_4, window_bounds = array<i64: 32, 256>}, {pipeline_mode = #tpu.pipeline_mode<synchronous>, transform_indices = @transform_5, window_bounds = array<i64: 1, 256>}, {pipeline_mode = #tpu.pipeline_mode<synchronous>, transform_indices = @transform_6, window_bounds = array<i64: 1, 256>}, {transform_indices = @transform_7, window_bounds = array<i64: 128, 256>}]} {
    %c0 = arith.constant 0 : index
    %c0_0 = arith.constant 0 : index
    %0 = vector.load %arg1[%c0, %c0_0] : memref<128x256xf32, #tpu.memory_space<vmem>>, vector<128x256xf32>
    %c0_1 = arith.constant 0 : index
    %c0_2 = arith.constant 0 : index
    %1 = vector.load %arg3[%c0_1, %c0_2] : memref<256x256xf32, #tpu.memory_space<vmem>>, vector<256x256xf32>
    %cst = arith.constant dense<0.000000e+00> : vector<128x256xf32>
    %2 = tpu.matmul %0, %1, %cst {dimension_numbers = #tpu.dot_dimension_numbers<[1], [0], [0], [1], [0, 0, 1, 1], [], []>} : vector<128x256xf32>, vector<256x256xf32>, vector<128x256xf32> -> vector<128x256xf32>
    %c0_3 = arith.constant 0 : index
    %c0_4 = arith.constant 0 : index
    %3 = vector.load %arg4[%c0_3, %c0_4] : memref<256x256xf32, #tpu.memory_space<vmem>>, vector<256x256xf32>
    %cst_5 = arith.constant dense<0.000000e+00> : vector<128x256xf32>
    %4 = tpu.matmul %0, %3, %cst_5 {dimension_numbers = #tpu.dot_dimension_numbers<[1], [0], [0], [1], [0, 0, 1, 1], [], []>} : vector<128x256xf32>, vector<256x256xf32>, vector<128x256xf32> -> vector<128x256xf32>
    %c0_6 = arith.constant 0 : index
    %c0_7 = arith.constant 0 : index
    %5 = vector.load %arg2[%c0_6, %c0_7] : memref<128x32xf32, #tpu.memory_space<vmem>>, vector<128x32xf32>
    %c0_8 = arith.constant 0 : index
    %c0_9 = arith.constant 0 : index
    %6 = vector.load %arg5[%c0_8, %c0_9] : memref<32x256xf32, #tpu.memory_space<vmem>>, vector<32x256xf32>
    %cst_10 = arith.constant dense<0.000000e+00> : vector<128x256xf32>
    %7 = tpu.matmul %5, %6, %cst_10 {dimension_numbers = #tpu.dot_dimension_numbers<[1], [0], [0], [1], [0, 0, 1, 1], [], []>} : vector<128x32xf32>, vector<32x256xf32>, vector<128x256xf32> -> vector<128x256xf32>
    %8 = arith.addf %4, %7 : vector<128x256xf32>
    %c0_11 = arith.constant 0 : index
    %c0_12 = arith.constant 0 : index
    %9 = vector.load %arg6[%c0_11, %c0_12] : memref<1x256xf32, #tpu.memory_space<vmem>>, vector<1x256xf32>
    %c0_13 = arith.constant 0 : index
    %c0_14 = arith.constant 0 : index
    %10 = vector.load %arg7[%c0_13, %c0_14] : memref<1x256xf32, #tpu.memory_space<vmem>>, vector<1x256xf32>
    %11 = vector.broadcast %9 : vector<1x256xf32> to vector<128x256xf32>
    %12 = arith.mulf %2, %11 : vector<128x256xf32>
    %13 = vector.broadcast %10 : vector<1x256xf32> to vector<128x256xf32>
    %14 = arith.addf %12, %13 : vector<128x256xf32>
    %cst_15 = arith.constant 0.000000e+00 : f32
    %15 = vector.broadcast %cst_15 : f32 to vector<128x256xf32>
    %16 = arith.maximumf %14, %15 : vector<128x256xf32>
    %17 = vector.broadcast %9 : vector<1x256xf32> to vector<128x256xf32>
    %18 = arith.mulf %8, %17 : vector<128x256xf32>
    %19 = vector.broadcast %10 : vector<1x256xf32> to vector<128x256xf32>
    %20 = arith.addf %18, %19 : vector<128x256xf32>
    %cst_16 = arith.constant 0.000000e+00 : f32
    %21 = vector.broadcast %cst_16 : f32 to vector<128x256xf32>
    %22 = arith.maximumf %20, %21 : vector<128x256xf32>
    %23 = arith.maximumf %16, %22 : vector<128x256xf32>
    %c0_17 = arith.constant 0 : index
    %c0_18 = arith.constant 0 : index
    %24 = vector.load %arg8[%c0_17, %c0_18] : memref<128x256xf32, #tpu.memory_space<vmem>>, vector<128x256xf32>
    tpu.vector_store %arg8[%c0_17, %c0_18], %23 {strides = array<i32>} : memref<128x256xf32, #tpu.memory_space<vmem>>, vector<128x256xf32>,
    return
  }
  func.func @transform_0(%arg0: i32) -> (i32, i32) {
    %c0_i32 = arith.constant 0 : i32
    %c0_i32_0 = arith.constant 0 : i32
    return %arg0, %c0_i32 : i32, i32
  }
  func.func @transform_1(%arg0: i32) -> (i32, i32) {
    %c0_i32 = arith.constant 0 : i32
    %c0_i32_0 = arith.constant 0 : i32
    return %arg0, %c0_i32 : i32, i32
  }
  func.func @transform_2(%arg0: i32) -> (i32, i32) {
    %c0_i32 = arith.constant 0 : i32
    %c0_i32_0 = arith.constant 0 : i32
    %c0_i32_1 = arith.constant 0 : i32
    return %c0_i32, %c0_i32_0 : i32, i32
  }
  func.func @transform_3(%arg0: i32) -> (i32, i32) {
    %c0_i32 = arith.constant 0 : i32
    %c0_i32_0 = arith.constant 0 : i32
    %c0_i32_1 = arith.constant 0 : i32
    return %c0_i32, %c0_i32_0 : i32, i32
  }
  func.func @transform_4(%arg0: i32) -> (i32, i32) {
    %c0_i32 = arith.constant 0 : i32
    %c0_i32_0 = arith.constant 0 : i32
    %c0_i32_1 = arith.constant 0 : i32
    return %c0_i32, %c0_i32_0 : i32, i32
  }
  func.func @transform_5(%arg0: i32) -> (i32, i32) {
    %c0_i32 = arith.constant 0 : i32
    %c0_i32_0 = arith.constant 0 : i32
    %c0_i32_1 = arith.constant 0 : i32
    return %c0_i32, %c0_i32_0 : i32, i32
  }
  func.func @transform_6(%arg0: i32) -> (i32, i32) {
    %c0_i32 = arith.constant 0 : i32
    %c0_i32_0 = arith.constant 0 : i32
    %c0_i32_1 = arith.constant 0 : i32
    return %c0_i32, %c0_i32_0 : i32, i32
  }
  func.func @transform_7(%arg0: i32) -> (i32, i32) {
    %c0_i32 = arith.constant 0 : i32
    %c0_i32_0 = arith.constant 0 : i32
    return %arg0, %c0_i32 : i32, i32
  }
}

module attributes {stable_mosaic.version = 11 : i64} {
  func.func @_packed_block_kernel(%arg0: i32, %arg1: memref<128x256xf32, #tpu.memory_space<vmem>>, %arg2: memref<128x64xf32, #tpu.memory_space<vmem>>, %arg3: memref<256x256xf32, #tpu.memory_space<vmem>>, %arg4: memref<256x256xf32, #tpu.memory_space<vmem>>, %arg5: memref<64x256xf32, #tpu.memory_space<vmem>>, %arg6: memref<1x256xf32, #tpu.memory_space<vmem>>, %arg7: memref<1x256xf32, #tpu.memory_space<vmem>>, %arg8: memref<128x256xf32, #tpu.memory_space<vmem>>) attributes {dimension_semantics = [#tpu.dimension_semantics<parallel>], iteration_bounds = array<i64: 1>, scalar_prefetch = 0 : i64, scratch_operands = 0 : i64, tpu.core_type = #tpu.core_type<tc>, window_params = [{transform_indices = @transform_0, window_bounds = array<i64: 128, 256>}, {transform_indices = @transform_1, window_bounds = array<i64: 128, 64>}, {pipeline_mode = #tpu.pipeline_mode<synchronous>, transform_indices = @transform_2, window_bounds = array<i64: 256, 256>}, {pipeline_mode = #tpu.pipeline_mode<synchronous>, transform_indices = @transform_3, window_bounds = array<i64: 256, 256>}, {pipeline_mode = #tpu.pipeline_mode<synchronous>, transform_indices = @transform_4, window_bounds = array<i64: 64, 256>}, {pipeline_mode = #tpu.pipeline_mode<synchronous>, transform_indices = @transform_5, window_bounds = array<i64: 1, 256>}, {pipeline_mode = #tpu.pipeline_mode<synchronous>, transform_indices = @transform_6, window_bounds = array<i64: 1, 256>}, {transform_indices = @transform_7, window_bounds = array<i64: 128, 256>}]} {
    %c0 = arith.constant 0 : index
    %c0_0 = arith.constant 0 : index
    %0 = vector.load %arg1[%c0, %c0_0] : memref<128x256xf32, #tpu.memory_space<vmem>>, vector<128x256xf32>
    %c0_1 = arith.constant 0 : index
    %c0_2 = arith.constant 0 : index
    %1 = vector.load %arg3[%c0_1, %c0_2] : memref<256x256xf32, #tpu.memory_space<vmem>>, vector<256x256xf32>
    %cst = arith.constant dense<0.000000e+00> : vector<128x256xf32>
    %2 = tpu.matmul %0, %1, %cst {dimension_numbers = #tpu.dot_dimension_numbers<[1], [0], [0], [1], [0, 0, 1, 1], [], []>} : vector<128x256xf32>, vector<256x256xf32>, vector<128x256xf32> -> vector<128x256xf32>
    %c0_3 = arith.constant 0 : index
    %c0_4 = arith.constant 0 : index
    %3 = vector.load %arg4[%c0_3, %c0_4] : memref<256x256xf32, #tpu.memory_space<vmem>>, vector<256x256xf32>
    %cst_5 = arith.constant dense<0.000000e+00> : vector<128x256xf32>
    %4 = tpu.matmul %0, %3, %cst_5 {dimension_numbers = #tpu.dot_dimension_numbers<[1], [0], [0], [1], [0, 0, 1, 1], [], []>} : vector<128x256xf32>, vector<256x256xf32>, vector<128x256xf32> -> vector<128x256xf32>
    %c0_6 = arith.constant 0 : index
    %c0_7 = arith.constant 0 : index
    %5 = vector.load %arg2[%c0_6, %c0_7] : memref<128x64xf32, #tpu.memory_space<vmem>>, vector<128x64xf32>
    %c0_8 = arith.constant 0 : index
    %c0_9 = arith.constant 0 : index
    %6 = vector.load %arg5[%c0_8, %c0_9] : memref<64x256xf32, #tpu.memory_space<vmem>>, vector<64x256xf32>
    %cst_10 = arith.constant dense<0.000000e+00> : vector<128x256xf32>
    %7 = tpu.matmul %5, %6, %cst_10 {dimension_numbers = #tpu.dot_dimension_numbers<[1], [0], [0], [1], [0, 0, 1, 1], [], []>} : vector<128x64xf32>, vector<64x256xf32>, vector<128x256xf32> -> vector<128x256xf32>
    %8 = arith.addf %4, %7 : vector<128x256xf32>
    %c0_11 = arith.constant 0 : index
    %c0_12 = arith.constant 0 : index
    %9 = vector.load %arg6[%c0_11, %c0_12] : memref<1x256xf32, #tpu.memory_space<vmem>>, vector<1x256xf32>
    %c0_13 = arith.constant 0 : index
    %c0_14 = arith.constant 0 : index
    %10 = vector.load %arg7[%c0_13, %c0_14] : memref<1x256xf32, #tpu.memory_space<vmem>>, vector<1x256xf32>
    %11 = vector.broadcast %9 : vector<1x256xf32> to vector<128x256xf32>
    %12 = arith.mulf %2, %11 : vector<128x256xf32>
    %13 = vector.broadcast %10 : vector<1x256xf32> to vector<128x256xf32>
    %14 = arith.addf %12, %13 : vector<128x256xf32>
    %cst_15 = arith.constant 0.000000e+00 : f32
    %15 = vector.broadcast %cst_15 : f32 to vector<128x256xf32>
    %16 = arith.maximumf %14, %15 : vector<128x256xf32>
    %17 = vector.broadcast %9 : vector<1x256xf32> to vector<128x256xf32>
    %18 = arith.mulf %8, %17 : vector<128x256xf32>
    %19 = vector.broadcast %10 : vector<1x256xf32> to vector<128x256xf32>
    %20 = arith.addf %18, %19 : vector<128x256xf32>
    %cst_16 = arith.constant 0.000000e+00 : f32
    %21 = vector.broadcast %cst_16 : f32 to vector<128x256xf32>
    %22 = arith.maximumf %20, %21 : vector<128x256xf32>
    %23 = arith.maximumf %16, %22 : vector<128x256xf32>
    %c0_17 = arith.constant 0 : index
    %c0_18 = arith.constant 0 : index
    %24 = vector.load %arg8[%c0_17, %c0_18] : memref<128x256xf32, #tpu.memory_space<vmem>>, vector<128x256xf32>
    tpu.vector_store %arg8[%c0_17, %c0_18], %23 {strides = array<i32>} : memref<128x256xf32, #tpu.memory_space<vmem>>, vector<128x256xf32>,
    return
  }
  func.func @transform_0(%arg0: i32) -> (i32, i32) {
    %c0_i32 = arith.constant 0 : i32
    %c0_i32_0 = arith.constant 0 : i32
    return %arg0, %c0_i32 : i32, i32
  }
  func.func @transform_1(%arg0: i32) -> (i32, i32) {
    %c0_i32 = arith.constant 0 : i32
    %c0_i32_0 = arith.constant 0 : i32
    return %arg0, %c0_i32 : i32, i32
  }
  func.func @transform_2(%arg0: i32) -> (i32, i32) {
    %c0_i32 = arith.constant 0 : i32
    %c0_i32_0 = arith.constant 0 : i32
    %c0_i32_1 = arith.constant 0 : i32
    return %c0_i32, %c0_i32_0 : i32, i32
  }
  func.func @transform_3(%arg0: i32) -> (i32, i32) {
    %c0_i32 = arith.constant 0 : i32
    %c0_i32_0 = arith.constant 0 : i32
    %c0_i32_1 = arith.constant 0 : i32
    return %c0_i32, %c0_i32_0 : i32, i32
  }
  func.func @transform_4(%arg0: i32) -> (i32, i32) {
    %c0_i32 = arith.constant 0 : i32
    %c0_i32_0 = arith.constant 0 : i32
    %c0_i32_1 = arith.constant 0 : i32
    return %c0_i32, %c0_i32_0 : i32, i32
  }
  func.func @transform_5(%arg0: i32) -> (i32, i32) {
    %c0_i32 = arith.constant 0 : i32
    %c0_i32_0 = arith.constant 0 : i32
    %c0_i32_1 = arith.constant 0 : i32
    return %c0_i32, %c0_i32_0 : i32, i32
  }
  func.func @transform_6(%arg0: i32) -> (i32, i32) {
    %c0_i32 = arith.constant 0 : i32
    %c0_i32_0 = arith.constant 0 : i32
    %c0_i32_1 = arith.constant 0 : i32
    return %c0_i32, %c0_i32_0 : i32, i32
  }
  func.func @transform_7(%arg0: i32) -> (i32, i32) {
    %c0_i32 = arith.constant 0 : i32
    %c0_i32_0 = arith.constant 0 : i32
    return %arg0, %c0_i32 : i32, i32
  }
}

module attributes {stable_mosaic.version = 11 : i64} {
  func.func @_conv_block_kernel(%arg0: i32, %arg1: i32, %arg2: i32, %arg3: memref<128x128xf32, #tpu.memory_space<vmem>>, %arg4: memref<128x128xf32, #tpu.memory_space<vmem>>, %arg5: memref<128x128xf32, #tpu.memory_space<vmem>>, %arg6: memref<128x256xf32, #tpu.memory_space<vmem>>, %arg7: memref<128x256xf32, #tpu.memory_space<vmem>>, %arg8: memref<1x256xf32, #tpu.memory_space<vmem>>, %arg9: memref<1x256xf32, #tpu.memory_space<vmem>>, %arg10: memref<128x256xf32, #tpu.memory_space<vmem>>, %arg11: memref<128x256xf32, #tpu.memory_space<vmem>>, %arg12: memref<128x256xf32, #tpu.memory_space<vmem>>) attributes {dimension_semantics = [#tpu.dimension_semantics<parallel>, #tpu.dimension_semantics<parallel>, #tpu.dimension_semantics<arbitrary>], iteration_bounds = array<i64: 1, 1, 1>, scalar_prefetch = 0 : i64, scratch_operands = 2 : i64, tpu.core_type = #tpu.core_type<tc>, window_params = [{transform_indices = @transform_0, window_bounds = array<i64: 128, 128>}, {transform_indices = @transform_1, window_bounds = array<i64: 128, 128>}, {transform_indices = @transform_2, window_bounds = array<i64: 128, 128>}, {transform_indices = @transform_3, window_bounds = array<i64: 128, 256>}, {transform_indices = @transform_4, window_bounds = array<i64: 128, 256>}, {transform_indices = @transform_5, window_bounds = array<i64: 1, 256>}, {transform_indices = @transform_6, window_bounds = array<i64: 1, 256>}, {transform_indices = @transform_7, window_bounds = array<i64: 128, 256>}]} {
    %c0_i32 = arith.constant 0 : i32
    %0 = arith.cmpi eq, %arg2, %c0_i32 : i32
    %1 = arith.extui %0 : i1 to i32
    %c0_i32_0 = arith.constant 0 : i32
    %2 = arith.cmpi ne, %1, %c0_i32_0 : i32
    scf.if %2 {
      %cst_31 = arith.constant 0.000000e+00 : f32
      %27 = vector.broadcast %cst_31 : f32 to vector<128x256xf32>
      %c0_32 = arith.constant 0 : index
      %c0_33 = arith.constant 0 : index
      %28 = vector.load %arg11[%c0_32, %c0_33] : memref<128x256xf32, #tpu.memory_space<vmem>>, vector<128x256xf32>
      tpu.vector_store %arg11[%c0_32, %c0_33], %27 {strides = array<i32>} : memref<128x256xf32, #tpu.memory_space<vmem>>, vector<128x256xf32>,
      %cst_34 = arith.constant 0.000000e+00 : f32
      %29 = vector.broadcast %cst_34 : f32 to vector<128x256xf32>
      %c0_35 = arith.constant 0 : index
      %c0_36 = arith.constant 0 : index
      %30 = vector.load %arg12[%c0_35, %c0_36] : memref<128x256xf32, #tpu.memory_space<vmem>>, vector<128x256xf32>
      tpu.vector_store %arg12[%c0_35, %c0_36], %29 {strides = array<i32>} : memref<128x256xf32, #tpu.memory_space<vmem>>, vector<128x256xf32>,
    } else {
    }
    %c0 = arith.constant 0 : index
    %c0_1 = arith.constant 0 : index
    %3 = vector.load %arg6[%c0, %c0_1] : memref<128x256xf32, #tpu.memory_space<vmem>>, vector<128x256xf32>
    %c0_2 = arith.constant 0 : index
    %c0_3 = arith.constant 0 : index
    %4 = vector.load %arg7[%c0_2, %c0_3] : memref<128x256xf32, #tpu.memory_space<vmem>>, vector<128x256xf32>
    %c0_4 = arith.constant 0 : index
    %c0_5 = arith.constant 0 : index
    %5 = vector.load %arg3[%c0_4, %c0_5] : memref<128x128xf32, #tpu.memory_space<vmem>>, vector<128x128xf32>
    %c0_6 = arith.constant 0 : index
    %c0_7 = arith.constant 0 : index
    %6 = vector.load %arg4[%c0_6, %c0_7] : memref<128x128xf32, #tpu.memory_space<vmem>>, vector<128x128xf32>
    %c0_8 = arith.constant 0 : index
    %c0_9 = arith.constant 0 : index
    %7 = vector.load %arg11[%c0_8, %c0_9] : memref<128x256xf32, #tpu.memory_space<vmem>>, vector<128x256xf32>
    %cst = arith.constant dense<0.000000e+00> : vector<128x256xf32>
    %8 = tpu.matmul %5, %3, %cst {dimension_numbers = #tpu.dot_dimension_numbers<[1], [0], [0], [1], [0, 0, 1, 1], [], []>} : vector<128x128xf32>, vector<128x256xf32>, vector<128x256xf32> -> vector<128x256xf32>
    %9 = arith.addf %7, %8 : vector<128x256xf32>
    %c0_10 = arith.constant 0 : index
    %c0_11 = arith.constant 0 : index
    %10 = vector.load %arg11[%c0_10, %c0_11] : memref<128x256xf32, #tpu.memory_space<vmem>>, vector<128x256xf32>
    tpu.vector_store %arg11[%c0_10, %c0_11], %9 {strides = array<i32>} : memref<128x256xf32, #tpu.memory_space<vmem>>, vector<128x256xf32>,
    %c0_12 = arith.constant 0 : index
    %c0_13 = arith.constant 0 : index
    %11 = vector.load %arg11[%c0_12, %c0_13] : memref<128x256xf32, #tpu.memory_space<vmem>>, vector<128x256xf32>
    %cst_14 = arith.constant dense<0.000000e+00> : vector<128x256xf32>
    %12 = tpu.matmul %6, %4, %cst_14 {dimension_numbers = #tpu.dot_dimension_numbers<[1], [0], [0], [1], [0, 0, 1, 1], [], []>} : vector<128x128xf32>, vector<128x256xf32>, vector<128x256xf32> -> vector<128x256xf32>
    %13 = arith.addf %11, %12 : vector<128x256xf32>
    %c0_15 = arith.constant 0 : index
    %c0_16 = arith.constant 0 : index
    %14 = vector.load %arg11[%c0_15, %c0_16] : memref<128x256xf32, #tpu.memory_space<vmem>>, vector<128x256xf32>
    tpu.vector_store %arg11[%c0_15, %c0_16], %13 {strides = array<i32>} : memref<128x256xf32, #tpu.memory_space<vmem>>, vector<128x256xf32>,
    %c0_17 = arith.constant 0 : index
    %c0_18 = arith.constant 0 : index
    %15 = vector.load %arg12[%c0_17, %c0_18] : memref<128x256xf32, #tpu.memory_space<vmem>>, vector<128x256xf32>
    %cst_19 = arith.constant dense<0.000000e+00> : vector<128x256xf32>
    %16 = tpu.matmul %6, %3, %cst_19 {dimension_numbers = #tpu.dot_dimension_numbers<[1], [0], [0], [1], [0, 0, 1, 1], [], []>} : vector<128x128xf32>, vector<128x256xf32>, vector<128x256xf32> -> vector<128x256xf32>
    %17 = arith.addf %15, %16 : vector<128x256xf32>
    %c0_20 = arith.constant 0 : index
    %c0_21 = arith.constant 0 : index
    %18 = vector.load %arg12[%c0_20, %c0_21] : memref<128x256xf32, #tpu.memory_space<vmem>>, vector<128x256xf32>
    tpu.vector_store %arg12[%c0_20, %c0_21], %17 {strides = array<i32>} : memref<128x256xf32, #tpu.memory_space<vmem>>, vector<128x256xf32>,
    %c0_22 = arith.constant 0 : index
    %c0_23 = arith.constant 0 : index
    %19 = vector.load %arg12[%c0_22, %c0_23] : memref<128x256xf32, #tpu.memory_space<vmem>>, vector<128x256xf32>
    %c0_24 = arith.constant 0 : index
    %c0_25 = arith.constant 0 : index
    %20 = vector.load %arg5[%c0_24, %c0_25] : memref<128x128xf32, #tpu.memory_space<vmem>>, vector<128x128xf32>
    %cst_26 = arith.constant dense<0.000000e+00> : vector<128x256xf32>
    %21 = tpu.matmul %20, %4, %cst_26 {dimension_numbers = #tpu.dot_dimension_numbers<[1], [0], [0], [1], [0, 0, 1, 1], [], []>} : vector<128x128xf32>, vector<128x256xf32>, vector<128x256xf32> -> vector<128x256xf32>
    %22 = arith.addf %19, %21 : vector<128x256xf32>
    %c0_27 = arith.constant 0 : index
    %c0_28 = arith.constant 0 : index
    %23 = vector.load %arg12[%c0_27, %c0_28] : memref<128x256xf32, #tpu.memory_space<vmem>>, vector<128x256xf32>
    tpu.vector_store %arg12[%c0_27, %c0_28], %22 {strides = array<i32>} : memref<128x256xf32, #tpu.memory_space<vmem>>, vector<128x256xf32>,
    %c0_i32_29 = arith.constant 0 : i32
    %24 = arith.cmpi eq, %arg2, %c0_i32_29 : i32
    %25 = arith.extui %24 : i1 to i32
    %c0_i32_30 = arith.constant 0 : i32
    %26 = arith.cmpi ne, %25, %c0_i32_30 : i32
    scf.if %26 {
      %c0_31 = arith.constant 0 : index
      %c0_32 = arith.constant 0 : index
      %27 = vector.load %arg8[%c0_31, %c0_32] : memref<1x256xf32, #tpu.memory_space<vmem>>, vector<1x256xf32>
      %c0_33 = arith.constant 0 : index
      %c0_34 = arith.constant 0 : index
      %28 = vector.load %arg9[%c0_33, %c0_34] : memref<1x256xf32, #tpu.memory_space<vmem>>, vector<1x256xf32>
      %c0_35 = arith.constant 0 : index
      %c0_36 = arith.constant 0 : index
      %29 = vector.load %arg11[%c0_35, %c0_36] : memref<128x256xf32, #tpu.memory_space<vmem>>, vector<128x256xf32>
      %30 = vector.broadcast %27 : vector<1x256xf32> to vector<128x256xf32>
      %31 = arith.mulf %29, %30 : vector<128x256xf32>
      %32 = vector.broadcast %28 : vector<1x256xf32> to vector<128x256xf32>
      %33 = arith.addf %31, %32 : vector<128x256xf32>
      %cst_37 = arith.constant 0.000000e+00 : f32
      %34 = vector.broadcast %cst_37 : f32 to vector<128x256xf32>
      %35 = arith.maximumf %33, %34 : vector<128x256xf32>
      %c0_38 = arith.constant 0 : index
      %c0_39 = arith.constant 0 : index
      %36 = vector.load %arg12[%c0_38, %c0_39] : memref<128x256xf32, #tpu.memory_space<vmem>>, vector<128x256xf32>
      %37 = vector.broadcast %27 : vector<1x256xf32> to vector<128x256xf32>
      %38 = arith.mulf %36, %37 : vector<128x256xf32>
      %39 = vector.broadcast %28 : vector<1x256xf32> to vector<128x256xf32>
      %40 = arith.addf %38, %39 : vector<128x256xf32>
      %cst_40 = arith.constant 0.000000e+00 : f32
      %41 = vector.broadcast %cst_40 : f32 to vector<128x256xf32>
      %42 = arith.maximumf %40, %41 : vector<128x256xf32>
      %43 = arith.maximumf %35, %42 : vector<128x256xf32>
      %c0_41 = arith.constant 0 : index
      %c0_42 = arith.constant 0 : index
      %44 = vector.load %arg10[%c0_41, %c0_42] : memref<128x256xf32, #tpu.memory_space<vmem>>, vector<128x256xf32>
      tpu.vector_store %arg10[%c0_41, %c0_42], %43 {strides = array<i32>} : memref<128x256xf32, #tpu.memory_space<vmem>>, vector<128x256xf32>,
    } else {
    }
    return
  }
  func.func @transform_0(%arg0: i32, %arg1: i32, %arg2: i32) -> (i32, i32) {
    %c0_i32 = arith.constant 0 : i32
    return %arg0, %arg2 : i32, i32
  }
  func.func @transform_1(%arg0: i32, %arg1: i32, %arg2: i32) -> (i32, i32) {
    %c0_i32 = arith.constant 0 : i32
    return %arg0, %arg2 : i32, i32
  }
  func.func @transform_2(%arg0: i32, %arg1: i32, %arg2: i32) -> (i32, i32) {
    %c0_i32 = arith.constant 0 : i32
    return %arg0, %arg2 : i32, i32
  }
  func.func @transform_3(%arg0: i32, %arg1: i32, %arg2: i32) -> (i32, i32) {
    %c0_i32 = arith.constant 0 : i32
    return %arg2, %arg1 : i32, i32
  }
  func.func @transform_4(%arg0: i32, %arg1: i32, %arg2: i32) -> (i32, i32) {
    %c0_i32 = arith.constant 0 : i32
    return %arg2, %arg1 : i32, i32
  }
  func.func @transform_5(%arg0: i32, %arg1: i32, %arg2: i32) -> (i32, i32) {
    %c0_i32 = arith.constant 0 : i32
    %c0_i32_0 = arith.constant 0 : i32
    return %c0_i32, %arg1 : i32, i32
  }
  func.func @transform_6(%arg0: i32, %arg1: i32, %arg2: i32) -> (i32, i32) {
    %c0_i32 = arith.constant 0 : i32
    %c0_i32_0 = arith.constant 0 : i32
    return %c0_i32, %arg1 : i32, i32
  }
  func.func @transform_7(%arg0: i32, %arg1: i32, %arg2: i32) -> (i32, i32) {
    %c0_i32 = arith.constant 0 : i32
    return %arg0, %arg1 : i32, i32
  }
}

module attributes {stable_mosaic.version = 11 : i64} {
  func.func @_epilogue_kernel(%arg0: i32, %arg1: memref<14x9x256xf32, #tpu.memory_space<vmem>>, %arg2: memref<9x14x256xf32, #tpu.memory_space<vmem>>, %arg3: memref<1x4xf32, #tpu.memory_space<vmem>>, %arg4: memref<9x1x4xf32, #tpu.memory_space<vmem>>, %arg5: memref<1x128xf32, #tpu.memory_space<vmem>>, %arg6: memref<1x128xf32, #tpu.memory_space<vmem>>, %arg7: memref<1x128xf32, #tpu.memory_space<vmem>>) attributes {dimension_semantics = [#tpu.dimension_semantics<arbitrary>], iteration_bounds = array<i64: 1>, scalar_prefetch = 0 : i64, scratch_operands = 1 : i64, tpu.core_type = #tpu.core_type<tc>, window_params = [{transform_indices = @transform_0, window_bounds = array<i64: 14, 9, 256>}, {transform_indices = @transform_1, window_bounds = array<i64: 9, 14, 256>}, {pipeline_mode = #tpu.pipeline_mode<synchronous>, transform_indices = @transform_2, window_bounds = array<i64: 1, 4>}, {pipeline_mode = #tpu.pipeline_mode<synchronous>, transform_indices = @transform_3, window_bounds = array<i64: 9, 1, 4>}, {pipeline_mode = #tpu.pipeline_mode<synchronous>, transform_indices = @transform_4, window_bounds = array<i64: 1, 128>}, {pipeline_mode = #tpu.pipeline_mode<synchronous>, transform_indices = @transform_5, window_bounds = array<i64: 1, 128>}]} {
    %0 = tpu.iota {dimensions = array<i32: 1>} : vector<1x128xi32>
    %c0_i32 = arith.constant 0 : i32
    %1 = arith.cmpi eq, %arg0, %c0_i32 : i32
    %2 = arith.extui %1 : i1 to i32
    %c0_i32_0 = arith.constant 0 : i32
    %3 = arith.cmpi ne, %2, %c0_i32_0 : i32
    scf.if %3 {
      %c0_49 = arith.constant 0 : index
      %c0_50 = arith.constant 0 : index
      %132 = vector.load %arg3[%c0_49, %c0_50] : memref<1x4xf32, #tpu.memory_space<vmem>>, vector<1x4xf32>
      %cst_51 = arith.constant 0.000000e+00 : f32
      %133 = vector.broadcast %cst_51 : f32 to vector<1x128xf32>
      %c0_52 = arith.constant 0 : index
      %c0_53 = arith.constant 0 : index
      %c0_54 = arith.constant 0 : index
      %134 = vector.load %arg4[%c0_52, %c0_53, %c0_54] : memref<9x1x4xf32, #tpu.memory_space<vmem>>, vector<1x1x4xf32>
      %135 = vector.shape_cast %134 : vector<1x1x4xf32> to vector<1x4xf32>
      %136 = arith.mulf %132, %135 : vector<1x4xf32>
      %137 = vector.shape_cast %136 : vector<1x4xf32> to vector<1x1x4xf32>
      %cst_55 = arith.constant dense<0.000000e+00> : vector<1xf32>
      %138 = vector.multi_reduction <add>, %137, %cst_55 [1, 2] : vector<1x1x4xf32> to vector<1xf32>
      %139 = vector.shape_cast %138 : vector<1xf32> to vector<1x1x1xf32>
      %140 = vector.extract %139[0, 0, 0] : f32 from vector<1x1x1xf32>
      %c0_i32_56 = arith.constant 0 : i32
      %141 = vector.broadcast %c0_i32_56 : i32 to vector<1x128xi32>
      %142 = arith.cmpi eq, %0, %141 : vector<1x128xi32>
      %cst_57 = arith.constant 0.000000e+00 : f32
      %143 = vector.broadcast %140 : f32 to vector<1x128xf32>
      %144 = vector.broadcast %cst_57 : f32 to vector<1x128xf32>
      %145 = arith.select %142, %143, %144 : vector<1x128xi1>, vector<1x128xf32>
      %146 = arith.addf %133, %145 : vector<1x128xf32>
      %c1_58 = arith.constant 1 : index
      %c0_59 = arith.constant 0 : index
      %c0_60 = arith.constant 0 : index
      %147 = vector.load %arg4[%c1_58, %c0_59, %c0_60] : memref<9x1x4xf32, #tpu.memory_space<vmem>>, vector<1x1x4xf32>
      %148 = vector.shape_cast %147 : vector<1x1x4xf32> to vector<1x4xf32>
      %149 = arith.mulf %132, %148 : vector<1x4xf32>
      %150 = vector.shape_cast %149 : vector<1x4xf32> to vector<1x1x4xf32>
      %cst_61 = arith.constant dense<0.000000e+00> : vector<1xf32>
      %151 = vector.multi_reduction <add>, %150, %cst_61 [1, 2] : vector<1x1x4xf32> to vector<1xf32>
      %152 = vector.shape_cast %151 : vector<1xf32> to vector<1x1x1xf32>
      %153 = vector.extract %152[0, 0, 0] : f32 from vector<1x1x1xf32>
      %c1_i32_62 = arith.constant 1 : i32
      %154 = vector.broadcast %c1_i32_62 : i32 to vector<1x128xi32>
      %155 = arith.cmpi eq, %0, %154 : vector<1x128xi32>
      %cst_63 = arith.constant 0.000000e+00 : f32
      %156 = vector.broadcast %153 : f32 to vector<1x128xf32>
      %157 = vector.broadcast %cst_63 : f32 to vector<1x128xf32>
      %158 = arith.select %155, %156, %157 : vector<1x128xi1>, vector<1x128xf32>
      %159 = arith.addf %146, %158 : vector<1x128xf32>
      %c2_64 = arith.constant 2 : index
      %c0_65 = arith.constant 0 : index
      %c0_66 = arith.constant 0 : index
      %160 = vector.load %arg4[%c2_64, %c0_65, %c0_66] : memref<9x1x4xf32, #tpu.memory_space<vmem>>, vector<1x1x4xf32>
      %161 = vector.shape_cast %160 : vector<1x1x4xf32> to vector<1x4xf32>
      %162 = arith.mulf %132, %161 : vector<1x4xf32>
      %163 = vector.shape_cast %162 : vector<1x4xf32> to vector<1x1x4xf32>
      %cst_67 = arith.constant dense<0.000000e+00> : vector<1xf32>
      %164 = vector.multi_reduction <add>, %163, %cst_67 [1, 2] : vector<1x1x4xf32> to vector<1xf32>
      %165 = vector.shape_cast %164 : vector<1xf32> to vector<1x1x1xf32>
      %166 = vector.extract %165[0, 0, 0] : f32 from vector<1x1x1xf32>
      %c2_i32_68 = arith.constant 2 : i32
      %167 = vector.broadcast %c2_i32_68 : i32 to vector<1x128xi32>
      %168 = arith.cmpi eq, %0, %167 : vector<1x128xi32>
      %cst_69 = arith.constant 0.000000e+00 : f32
      %169 = vector.broadcast %166 : f32 to vector<1x128xf32>
      %170 = vector.broadcast %cst_69 : f32 to vector<1x128xf32>
      %171 = arith.select %168, %169, %170 : vector<1x128xi1>, vector<1x128xf32>
      %172 = arith.addf %159, %171 : vector<1x128xf32>
      %c3_70 = arith.constant 3 : index
      %c0_71 = arith.constant 0 : index
      %c0_72 = arith.constant 0 : index
      %173 = vector.load %arg4[%c3_70, %c0_71, %c0_72] : memref<9x1x4xf32, #tpu.memory_space<vmem>>, vector<1x1x4xf32>
      %174 = vector.shape_cast %173 : vector<1x1x4xf32> to vector<1x4xf32>
      %175 = arith.mulf %132, %174 : vector<1x4xf32>
      %176 = vector.shape_cast %175 : vector<1x4xf32> to vector<1x1x4xf32>
      %cst_73 = arith.constant dense<0.000000e+00> : vector<1xf32>
      %177 = vector.multi_reduction <add>, %176, %cst_73 [1, 2] : vector<1x1x4xf32> to vector<1xf32>
      %178 = vector.shape_cast %177 : vector<1xf32> to vector<1x1x1xf32>
      %179 = vector.extract %178[0, 0, 0] : f32 from vector<1x1x1xf32>
      %c3_i32_74 = arith.constant 3 : i32
      %180 = vector.broadcast %c3_i32_74 : i32 to vector<1x128xi32>
      %181 = arith.cmpi eq, %0, %180 : vector<1x128xi32>
      %cst_75 = arith.constant 0.000000e+00 : f32
      %182 = vector.broadcast %179 : f32 to vector<1x128xf32>
      %183 = vector.broadcast %cst_75 : f32 to vector<1x128xf32>
      %184 = arith.select %181, %182, %183 : vector<1x128xi1>, vector<1x128xf32>
      %185 = arith.addf %172, %184 : vector<1x128xf32>
      %c4_76 = arith.constant 4 : index
      %c0_77 = arith.constant 0 : index
      %c0_78 = arith.constant 0 : index
      %186 = vector.load %arg4[%c4_76, %c0_77, %c0_78] : memref<9x1x4xf32, #tpu.memory_space<vmem>>, vector<1x1x4xf32>
      %187 = vector.shape_cast %186 : vector<1x1x4xf32> to vector<1x4xf32>
      %188 = arith.mulf %132, %187 : vector<1x4xf32>
      %189 = vector.shape_cast %188 : vector<1x4xf32> to vector<1x1x4xf32>
      %cst_79 = arith.constant dense<0.000000e+00> : vector<1xf32>
      %190 = vector.multi_reduction <add>, %189, %cst_79 [1, 2] : vector<1x1x4xf32> to vector<1xf32>
      %191 = vector.shape_cast %190 : vector<1xf32> to vector<1x1x1xf32>
      %192 = vector.extract %191[0, 0, 0] : f32 from vector<1x1x1xf32>
      %c4_i32_80 = arith.constant 4 : i32
      %193 = vector.broadcast %c4_i32_80 : i32 to vector<1x128xi32>
      %194 = arith.cmpi eq, %0, %193 : vector<1x128xi32>
      %cst_81 = arith.constant 0.000000e+00 : f32
      %195 = vector.broadcast %192 : f32 to vector<1x128xf32>
      %196 = vector.broadcast %cst_81 : f32 to vector<1x128xf32>
      %197 = arith.select %194, %195, %196 : vector<1x128xi1>, vector<1x128xf32>
      %198 = arith.addf %185, %197 : vector<1x128xf32>
      %c5_82 = arith.constant 5 : index
      %c0_83 = arith.constant 0 : index
      %c0_84 = arith.constant 0 : index
      %199 = vector.load %arg4[%c5_82, %c0_83, %c0_84] : memref<9x1x4xf32, #tpu.memory_space<vmem>>, vector<1x1x4xf32>
      %200 = vector.shape_cast %199 : vector<1x1x4xf32> to vector<1x4xf32>
      %201 = arith.mulf %132, %200 : vector<1x4xf32>
      %202 = vector.shape_cast %201 : vector<1x4xf32> to vector<1x1x4xf32>
      %cst_85 = arith.constant dense<0.000000e+00> : vector<1xf32>
      %203 = vector.multi_reduction <add>, %202, %cst_85 [1, 2] : vector<1x1x4xf32> to vector<1xf32>
      %204 = vector.shape_cast %203 : vector<1xf32> to vector<1x1x1xf32>
      %205 = vector.extract %204[0, 0, 0] : f32 from vector<1x1x1xf32>
      %c5_i32_86 = arith.constant 5 : i32
      %206 = vector.broadcast %c5_i32_86 : i32 to vector<1x128xi32>
      %207 = arith.cmpi eq, %0, %206 : vector<1x128xi32>
      %cst_87 = arith.constant 0.000000e+00 : f32
      %208 = vector.broadcast %205 : f32 to vector<1x128xf32>
      %209 = vector.broadcast %cst_87 : f32 to vector<1x128xf32>
      %210 = arith.select %207, %208, %209 : vector<1x128xi1>, vector<1x128xf32>
      %211 = arith.addf %198, %210 : vector<1x128xf32>
      %c6_88 = arith.constant 6 : index
      %c0_89 = arith.constant 0 : index
      %c0_90 = arith.constant 0 : index
      %212 = vector.load %arg4[%c6_88, %c0_89, %c0_90] : memref<9x1x4xf32, #tpu.memory_space<vmem>>, vector<1x1x4xf32>
      %213 = vector.shape_cast %212 : vector<1x1x4xf32> to vector<1x4xf32>
      %214 = arith.mulf %132, %213 : vector<1x4xf32>
      %215 = vector.shape_cast %214 : vector<1x4xf32> to vector<1x1x4xf32>
      %cst_91 = arith.constant dense<0.000000e+00> : vector<1xf32>
      %216 = vector.multi_reduction <add>, %215, %cst_91 [1, 2] : vector<1x1x4xf32> to vector<1xf32>
      %217 = vector.shape_cast %216 : vector<1xf32> to vector<1x1x1xf32>
      %218 = vector.extract %217[0, 0, 0] : f32 from vector<1x1x1xf32>
      %c6_i32_92 = arith.constant 6 : i32
      %219 = vector.broadcast %c6_i32_92 : i32 to vector<1x128xi32>
      %220 = arith.cmpi eq, %0, %219 : vector<1x128xi32>
      %cst_93 = arith.constant 0.000000e+00 : f32
      %221 = vector.broadcast %218 : f32 to vector<1x128xf32>
      %222 = vector.broadcast %cst_93 : f32 to vector<1x128xf32>
      %223 = arith.select %220, %221, %222 : vector<1x128xi1>, vector<1x128xf32>
      %224 = arith.addf %211, %223 : vector<1x128xf32>
      %c7_94 = arith.constant 7 : index
      %c0_95 = arith.constant 0 : index
      %c0_96 = arith.constant 0 : index
      %225 = vector.load %arg4[%c7_94, %c0_95, %c0_96] : memref<9x1x4xf32, #tpu.memory_space<vmem>>, vector<1x1x4xf32>
      %226 = vector.shape_cast %225 : vector<1x1x4xf32> to vector<1x4xf32>
      %227 = arith.mulf %132, %226 : vector<1x4xf32>
      %228 = vector.shape_cast %227 : vector<1x4xf32> to vector<1x1x4xf32>
      %cst_97 = arith.constant dense<0.000000e+00> : vector<1xf32>
      %229 = vector.multi_reduction <add>, %228, %cst_97 [1, 2] : vector<1x1x4xf32> to vector<1xf32>
      %230 = vector.shape_cast %229 : vector<1xf32> to vector<1x1x1xf32>
      %231 = vector.extract %230[0, 0, 0] : f32 from vector<1x1x1xf32>
      %c7_i32_98 = arith.constant 7 : i32
      %232 = vector.broadcast %c7_i32_98 : i32 to vector<1x128xi32>
      %233 = arith.cmpi eq, %0, %232 : vector<1x128xi32>
      %cst_99 = arith.constant 0.000000e+00 : f32
      %234 = vector.broadcast %231 : f32 to vector<1x128xf32>
      %235 = vector.broadcast %cst_99 : f32 to vector<1x128xf32>
      %236 = arith.select %233, %234, %235 : vector<1x128xi1>, vector<1x128xf32>
      %237 = arith.addf %224, %236 : vector<1x128xf32>
      %c8_100 = arith.constant 8 : index
      %c0_101 = arith.constant 0 : index
      %c0_102 = arith.constant 0 : index
      %238 = vector.load %arg4[%c8_100, %c0_101, %c0_102] : memref<9x1x4xf32, #tpu.memory_space<vmem>>, vector<1x1x4xf32>
      %239 = vector.shape_cast %238 : vector<1x1x4xf32> to vector<1x4xf32>
      %240 = arith.mulf %132, %239 : vector<1x4xf32>
      %241 = vector.shape_cast %240 : vector<1x4xf32> to vector<1x1x4xf32>
      %cst_103 = arith.constant dense<0.000000e+00> : vector<1xf32>
      %242 = vector.multi_reduction <add>, %241, %cst_103 [1, 2] : vector<1x1x4xf32> to vector<1xf32>
      %243 = vector.shape_cast %242 : vector<1xf32> to vector<1x1x1xf32>
      %244 = vector.extract %243[0, 0, 0] : f32 from vector<1x1x1xf32>
      %c8_i32_104 = arith.constant 8 : i32
      %245 = vector.broadcast %c8_i32_104 : i32 to vector<1x128xi32>
      %246 = arith.cmpi eq, %0, %245 : vector<1x128xi32>
      %cst_105 = arith.constant 0.000000e+00 : f32
      %247 = vector.broadcast %244 : f32 to vector<1x128xf32>
      %248 = vector.broadcast %cst_105 : f32 to vector<1x128xf32>
      %249 = arith.select %246, %247, %248 : vector<1x128xi1>, vector<1x128xf32>
      %250 = arith.addf %237, %249 : vector<1x128xf32>
      %c0_106 = arith.constant 0 : index
      %c0_107 = arith.constant 0 : index
      %251 = vector.load %arg7[%c0_106, %c0_107] : memref<1x128xf32, #tpu.memory_space<vmem>>, vector<1x128xf32>
      tpu.vector_store %arg7[%c0_106, %c0_107], %250 {strides = array<i32>} : memref<1x128xf32, #tpu.memory_space<vmem>>, vector<1x128xf32>,
    } else {
    }
    %c0 = arith.constant 0 : index
    %c0_1 = arith.constant 0 : index
    %c0_2 = arith.constant 0 : index
    %4 = vector.load %arg1[%c0, %c0_1, %c0_2] : memref<14x9x256xf32, #tpu.memory_space<vmem>>, vector<14x9x256xf32>
    %cst = arith.constant dense<0.000000e+00> : vector<14x256xf32>
    %5 = vector.multi_reduction <add>, %4, %cst [1] : vector<14x9x256xf32> to vector<14x256xf32>
    %cst_3 = arith.constant 0.111111112 : f32
    %6 = vector.broadcast %cst_3 : f32 to vector<14x256xf32>
    %7 = arith.mulf %5, %6 : vector<14x256xf32>
    %cst_4 = arith.constant 0.000000e+00 : f32
    %8 = vector.broadcast %cst_4 : f32 to vector<1x128xf32>
    %c0_5 = arith.constant 0 : index
    %c0_6 = arith.constant 0 : index
    %c0_7 = arith.constant 0 : index
    %9 = vector.load %arg2[%c0_5, %c0_6, %c0_7] : memref<9x14x256xf32, #tpu.memory_space<vmem>>, vector<1x14x256xf32>
    %10 = vector.shape_cast %9 : vector<1x14x256xf32> to vector<14x256xf32>
    %11 = arith.mulf %7, %10 : vector<14x256xf32>
    %12 = vector.shape_cast %11 : vector<14x256xf32> to vector<1x14x256xf32>
    %cst_8 = arith.constant dense<0.000000e+00> : vector<1xf32>
    %13 = vector.multi_reduction <add>, %12, %cst_8 [1, 2] : vector<1x14x256xf32> to vector<1xf32>
    %14 = vector.shape_cast %13 : vector<1xf32> to vector<1x1x1xf32>
    %15 = vector.extract %14[0, 0, 0] : f32 from vector<1x1x1xf32>
    %c0_i32_9 = arith.constant 0 : i32
    %16 = vector.broadcast %c0_i32_9 : i32 to vector<1x128xi32>
    %17 = arith.cmpi eq, %0, %16 : vector<1x128xi32>
    %cst_10 = arith.constant 0.000000e+00 : f32
    %18 = vector.broadcast %15 : f32 to vector<1x128xf32>
    %19 = vector.broadcast %cst_10 : f32 to vector<1x128xf32>
    %20 = arith.select %17, %18, %19 : vector<1x128xi1>, vector<1x128xf32>
    %21 = arith.addf %8, %20 : vector<1x128xf32>
    %c1 = arith.constant 1 : index
    %c0_11 = arith.constant 0 : index
    %c0_12 = arith.constant 0 : index
    %22 = vector.load %arg2[%c1, %c0_11, %c0_12] : memref<9x14x256xf32, #tpu.memory_space<vmem>>, vector<1x14x256xf32>
    %23 = vector.shape_cast %22 : vector<1x14x256xf32> to vector<14x256xf32>
    %24 = arith.mulf %7, %23 : vector<14x256xf32>
    %25 = vector.shape_cast %24 : vector<14x256xf32> to vector<1x14x256xf32>
    %cst_13 = arith.constant dense<0.000000e+00> : vector<1xf32>
    %26 = vector.multi_reduction <add>, %25, %cst_13 [1, 2] : vector<1x14x256xf32> to vector<1xf32>
    %27 = vector.shape_cast %26 : vector<1xf32> to vector<1x1x1xf32>
    %28 = vector.extract %27[0, 0, 0] : f32 from vector<1x1x1xf32>
    %c1_i32 = arith.constant 1 : i32
    %29 = vector.broadcast %c1_i32 : i32 to vector<1x128xi32>
    %30 = arith.cmpi eq, %0, %29 : vector<1x128xi32>
    %cst_14 = arith.constant 0.000000e+00 : f32
    %31 = vector.broadcast %28 : f32 to vector<1x128xf32>
    %32 = vector.broadcast %cst_14 : f32 to vector<1x128xf32>
    %33 = arith.select %30, %31, %32 : vector<1x128xi1>, vector<1x128xf32>
    %34 = arith.addf %21, %33 : vector<1x128xf32>
    %c2 = arith.constant 2 : index
    %c0_15 = arith.constant 0 : index
    %c0_16 = arith.constant 0 : index
    %35 = vector.load %arg2[%c2, %c0_15, %c0_16] : memref<9x14x256xf32, #tpu.memory_space<vmem>>, vector<1x14x256xf32>
    %36 = vector.shape_cast %35 : vector<1x14x256xf32> to vector<14x256xf32>
    %37 = arith.mulf %7, %36 : vector<14x256xf32>
    %38 = vector.shape_cast %37 : vector<14x256xf32> to vector<1x14x256xf32>
    %cst_17 = arith.constant dense<0.000000e+00> : vector<1xf32>
    %39 = vector.multi_reduction <add>, %38, %cst_17 [1, 2] : vector<1x14x256xf32> to vector<1xf32>
    %40 = vector.shape_cast %39 : vector<1xf32> to vector<1x1x1xf32>
    %41 = vector.extract %40[0, 0, 0] : f32 from vector<1x1x1xf32>
    %c2_i32 = arith.constant 2 : i32
    %42 = vector.broadcast %c2_i32 : i32 to vector<1x128xi32>
    %43 = arith.cmpi eq, %0, %42 : vector<1x128xi32>
    %cst_18 = arith.constant 0.000000e+00 : f32
    %44 = vector.broadcast %41 : f32 to vector<1x128xf32>
    %45 = vector.broadcast %cst_18 : f32 to vector<1x128xf32>
    %46 = arith.select %43, %44, %45 : vector<1x128xi1>, vector<1x128xf32>
    %47 = arith.addf %34, %46 : vector<1x128xf32>
    %c3 = arith.constant 3 : index
    %c0_19 = arith.constant 0 : index
    %c0_20 = arith.constant 0 : index
    %48 = vector.load %arg2[%c3, %c0_19, %c0_20] : memref<9x14x256xf32, #tpu.memory_space<vmem>>, vector<1x14x256xf32>
    %49 = vector.shape_cast %48 : vector<1x14x256xf32> to vector<14x256xf32>
    %50 = arith.mulf %7, %49 : vector<14x256xf32>
    %51 = vector.shape_cast %50 : vector<14x256xf32> to vector<1x14x256xf32>
    %cst_21 = arith.constant dense<0.000000e+00> : vector<1xf32>
    %52 = vector.multi_reduction <add>, %51, %cst_21 [1, 2] : vector<1x14x256xf32> to vector<1xf32>
    %53 = vector.shape_cast %52 : vector<1xf32> to vector<1x1x1xf32>
    %54 = vector.extract %53[0, 0, 0] : f32 from vector<1x1x1xf32>
    %c3_i32 = arith.constant 3 : i32
    %55 = vector.broadcast %c3_i32 : i32 to vector<1x128xi32>
    %56 = arith.cmpi eq, %0, %55 : vector<1x128xi32>
    %cst_22 = arith.constant 0.000000e+00 : f32
    %57 = vector.broadcast %54 : f32 to vector<1x128xf32>
    %58 = vector.broadcast %cst_22 : f32 to vector<1x128xf32>
    %59 = arith.select %56, %57, %58 : vector<1x128xi1>, vector<1x128xf32>
    %60 = arith.addf %47, %59 : vector<1x128xf32>
    %c4 = arith.constant 4 : index
    %c0_23 = arith.constant 0 : index
    %c0_24 = arith.constant 0 : index
    %61 = vector.load %arg2[%c4, %c0_23, %c0_24] : memref<9x14x256xf32, #tpu.memory_space<vmem>>, vector<1x14x256xf32>
    %62 = vector.shape_cast %61 : vector<1x14x256xf32> to vector<14x256xf32>
    %63 = arith.mulf %7, %62 : vector<14x256xf32>
    %64 = vector.shape_cast %63 : vector<14x256xf32> to vector<1x14x256xf32>
    %cst_25 = arith.constant dense<0.000000e+00> : vector<1xf32>
    %65 = vector.multi_reduction <add>, %64, %cst_25 [1, 2] : vector<1x14x256xf32> to vector<1xf32>
    %66 = vector.shape_cast %65 : vector<1xf32> to vector<1x1x1xf32>
    %67 = vector.extract %66[0, 0, 0] : f32 from vector<1x1x1xf32>
    %c4_i32 = arith.constant 4 : i32
    %68 = vector.broadcast %c4_i32 : i32 to vector<1x128xi32>
    %69 = arith.cmpi eq, %0, %68 : vector<1x128xi32>
    %cst_26 = arith.constant 0.000000e+00 : f32
    %70 = vector.broadcast %67 : f32 to vector<1x128xf32>
    %71 = vector.broadcast %cst_26 : f32 to vector<1x128xf32>
    %72 = arith.select %69, %70, %71 : vector<1x128xi1>, vector<1x128xf32>
    %73 = arith.addf %60, %72 : vector<1x128xf32>
    %c5 = arith.constant 5 : index
    %c0_27 = arith.constant 0 : index
    %c0_28 = arith.constant 0 : index
    %74 = vector.load %arg2[%c5, %c0_27, %c0_28] : memref<9x14x256xf32, #tpu.memory_space<vmem>>, vector<1x14x256xf32>
    %75 = vector.shape_cast %74 : vector<1x14x256xf32> to vector<14x256xf32>
    %76 = arith.mulf %7, %75 : vector<14x256xf32>
    %77 = vector.shape_cast %76 : vector<14x256xf32> to vector<1x14x256xf32>
    %cst_29 = arith.constant dense<0.000000e+00> : vector<1xf32>
    %78 = vector.multi_reduction <add>, %77, %cst_29 [1, 2] : vector<1x14x256xf32> to vector<1xf32>
    %79 = vector.shape_cast %78 : vector<1xf32> to vector<1x1x1xf32>
    %80 = vector.extract %79[0, 0, 0] : f32 from vector<1x1x1xf32>
    %c5_i32 = arith.constant 5 : i32
    %81 = vector.broadcast %c5_i32 : i32 to vector<1x128xi32>
    %82 = arith.cmpi eq, %0, %81 : vector<1x128xi32>
    %cst_30 = arith.constant 0.000000e+00 : f32
    %83 = vector.broadcast %80 : f32 to vector<1x128xf32>
    %84 = vector.broadcast %cst_30 : f32 to vector<1x128xf32>
    %85 = arith.select %82, %83, %84 : vector<1x128xi1>, vector<1x128xf32>
    %86 = arith.addf %73, %85 : vector<1x128xf32>
    %c6 = arith.constant 6 : index
    %c0_31 = arith.constant 0 : index
    %c0_32 = arith.constant 0 : index
    %87 = vector.load %arg2[%c6, %c0_31, %c0_32] : memref<9x14x256xf32, #tpu.memory_space<vmem>>, vector<1x14x256xf32>
    %88 = vector.shape_cast %87 : vector<1x14x256xf32> to vector<14x256xf32>
    %89 = arith.mulf %7, %88 : vector<14x256xf32>
    %90 = vector.shape_cast %89 : vector<14x256xf32> to vector<1x14x256xf32>
    %cst_33 = arith.constant dense<0.000000e+00> : vector<1xf32>
    %91 = vector.multi_reduction <add>, %90, %cst_33 [1, 2] : vector<1x14x256xf32> to vector<1xf32>
    %92 = vector.shape_cast %91 : vector<1xf32> to vector<1x1x1xf32>
    %93 = vector.extract %92[0, 0, 0] : f32 from vector<1x1x1xf32>
    %c6_i32 = arith.constant 6 : i32
    %94 = vector.broadcast %c6_i32 : i32 to vector<1x128xi32>
    %95 = arith.cmpi eq, %0, %94 : vector<1x128xi32>
    %cst_34 = arith.constant 0.000000e+00 : f32
    %96 = vector.broadcast %93 : f32 to vector<1x128xf32>
    %97 = vector.broadcast %cst_34 : f32 to vector<1x128xf32>
    %98 = arith.select %95, %96, %97 : vector<1x128xi1>, vector<1x128xf32>
    %99 = arith.addf %86, %98 : vector<1x128xf32>
    %c7 = arith.constant 7 : index
    %c0_35 = arith.constant 0 : index
    %c0_36 = arith.constant 0 : index
    %100 = vector.load %arg2[%c7, %c0_35, %c0_36] : memref<9x14x256xf32, #tpu.memory_space<vmem>>, vector<1x14x256xf32>
    %101 = vector.shape_cast %100 : vector<1x14x256xf32> to vector<14x256xf32>
    %102 = arith.mulf %7, %101 : vector<14x256xf32>
    %103 = vector.shape_cast %102 : vector<14x256xf32> to vector<1x14x256xf32>
    %cst_37 = arith.constant dense<0.000000e+00> : vector<1xf32>
    %104 = vector.multi_reduction <add>, %103, %cst_37 [1, 2] : vector<1x14x256xf32> to vector<1xf32>
    %105 = vector.shape_cast %104 : vector<1xf32> to vector<1x1x1xf32>
    %106 = vector.extract %105[0, 0, 0] : f32 from vector<1x1x1xf32>
    %c7_i32 = arith.constant 7 : i32
    %107 = vector.broadcast %c7_i32 : i32 to vector<1x128xi32>
    %108 = arith.cmpi eq, %0, %107 : vector<1x128xi32>
    %cst_38 = arith.constant 0.000000e+00 : f32
    %109 = vector.broadcast %106 : f32 to vector<1x128xf32>
    %110 = vector.broadcast %cst_38 : f32 to vector<1x128xf32>
    %111 = arith.select %108, %109, %110 : vector<1x128xi1>, vector<1x128xf32>
    %112 = arith.addf %99, %111 : vector<1x128xf32>
    %c8 = arith.constant 8 : index
    %c0_39 = arith.constant 0 : index
    %c0_40 = arith.constant 0 : index
    %113 = vector.load %arg2[%c8, %c0_39, %c0_40] : memref<9x14x256xf32, #tpu.memory_space<vmem>>, vector<1x14x256xf32>
    %114 = vector.shape_cast %113 : vector<1x14x256xf32> to vector<14x256xf32>
    %115 = arith.mulf %7, %114 : vector<14x256xf32>
    %116 = vector.shape_cast %115 : vector<14x256xf32> to vector<1x14x256xf32>
    %cst_41 = arith.constant dense<0.000000e+00> : vector<1xf32>
    %117 = vector.multi_reduction <add>, %116, %cst_41 [1, 2] : vector<1x14x256xf32> to vector<1xf32>
    %118 = vector.shape_cast %117 : vector<1xf32> to vector<1x1x1xf32>
    %119 = vector.extract %118[0, 0, 0] : f32 from vector<1x1x1xf32>
    %c8_i32 = arith.constant 8 : i32
    %120 = vector.broadcast %c8_i32 : i32 to vector<1x128xi32>
    %121 = arith.cmpi eq, %0, %120 : vector<1x128xi32>
    %cst_42 = arith.constant 0.000000e+00 : f32
    %122 = vector.broadcast %119 : f32 to vector<1x128xf32>
    %123 = vector.broadcast %cst_42 : f32 to vector<1x128xf32>
    %124 = arith.select %121, %122, %123 : vector<1x128xi1>, vector<1x128xf32>
    %125 = arith.addf %112, %124 : vector<1x128xf32>
    %c0_43 = arith.constant 0 : index
    %c0_44 = arith.constant 0 : index
    %126 = vector.load %arg7[%c0_43, %c0_44] : memref<1x128xf32, #tpu.memory_space<vmem>>, vector<1x128xf32>
    %127 = arith.addf %126, %125 : vector<1x128xf32>
    %c0_45 = arith.constant 0 : index
    %c0_46 = arith.constant 0 : index
    %128 = vector.load %arg7[%c0_45, %c0_46] : memref<1x128xf32, #tpu.memory_space<vmem>>, vector<1x128xf32>
    tpu.vector_store %arg7[%c0_45, %c0_46], %127 {strides = array<i32>} : memref<1x128xf32, #tpu.memory_space<vmem>>, vector<1x128xf32>,
    %c0_i32_47 = arith.constant 0 : i32
    %129 = arith.cmpi eq, %arg0, %c0_i32_47 : i32
    %130 = arith.extui %129 : i1 to i32
    %c0_i32_48 = arith.constant 0 : i32
    %131 = arith.cmpi ne, %130, %c0_i32_48 : i32
    scf.if %131 {
      %c0_49 = arith.constant 0 : index
      %c0_50 = arith.constant 0 : index
      %132 = vector.load %arg7[%c0_49, %c0_50] : memref<1x128xf32, #tpu.memory_space<vmem>>, vector<1x128xf32>
      %c0_51 = arith.constant 0 : index
      %c0_52 = arith.constant 0 : index
      %133 = vector.load %arg5[%c0_51, %c0_52] : memref<1x128xf32, #tpu.memory_space<vmem>>, vector<1x128xf32>
      %134 = arith.addf %132, %133 : vector<1x128xf32>
      %c9_i32 = arith.constant 9 : i32
      %135 = vector.broadcast %c9_i32 : i32 to vector<1x128xi32>
      %136 = arith.cmpi slt, %0, %135 : vector<1x128xi32>
      %cst_53 = arith.constant 0xFF800000 : f32
      %137 = vector.broadcast %cst_53 : f32 to vector<1x128xf32>
      %138 = arith.select %136, %134, %137 : vector<1x128xi1>, vector<1x128xf32>
      %cst_54 = arith.constant dense<0xFF800000> : vector<1xf32>
      %139 = vector.multi_reduction <maximumf>, %138, %cst_54 [1] : vector<1x128xf32> to vector<1xf32>
      %140 = vector.shape_cast %139 : vector<1xf32> to vector<1x1xf32>
      %141 = vector.broadcast %140 : vector<1x1xf32> to vector<1x128xf32>
      %142 = arith.subf %138, %141 : vector<1x128xf32>
      %143 = math.exp %142 : vector<1x128xf32>
      %cst_55 = arith.constant dense<0.000000e+00> : vector<1xf32>
      %144 = vector.multi_reduction <add>, %143, %cst_55 [1] : vector<1x128xf32> to vector<1xf32>
      %145 = vector.shape_cast %144 : vector<1xf32> to vector<1x1xf32>
      %146 = vector.broadcast %145 : vector<1x1xf32> to vector<1x128xf32>
      %147 = arith.divf %143, %146 : vector<1x128xf32>
      %c0_56 = arith.constant 0 : index
      %c0_57 = arith.constant 0 : index
      %148 = vector.load %arg6[%c0_56, %c0_57] : memref<1x128xf32, #tpu.memory_space<vmem>>, vector<1x128xf32>
      tpu.vector_store %arg6[%c0_56, %c0_57], %147 {strides = array<i32>} : memref<1x128xf32, #tpu.memory_space<vmem>>, vector<1x128xf32>,
    } else {
    }
    return
  }
  func.func @transform_0(%arg0: i32) -> (i32, i32, i32) {
    %c0_i32 = arith.constant 0 : i32
    %c0_i32_0 = arith.constant 0 : i32
    %c0_i32_1 = arith.constant 0 : i32
    return %c0_i32, %c0_i32_0, %arg0 : i32, i32, i32
  }
  func.func @transform_1(%arg0: i32) -> (i32, i32, i32) {
    %c0_i32 = arith.constant 0 : i32
    %c0_i32_0 = arith.constant 0 : i32
    %c0_i32_1 = arith.constant 0 : i32
    return %c0_i32, %c0_i32_0, %arg0 : i32, i32, i32
  }
  func.func @transform_2(%arg0: i32) -> (i32, i32) {
    %c0_i32 = arith.constant 0 : i32
    %c0_i32_0 = arith.constant 0 : i32
    %c0_i32_1 = arith.constant 0 : i32
    return %c0_i32, %c0_i32_0 : i32, i32
  }
  func.func @transform_3(%arg0: i32) -> (i32, i32, i32) {
    %c0_i32 = arith.constant 0 : i32
    %c0_i32_0 = arith.constant 0 : i32
    %c0_i32_1 = arith.constant 0 : i32
    %c0_i32_2 = arith.constant 0 : i32
    return %c0_i32, %c0_i32_0, %c0_i32_1 : i32, i32, i32
  }
  func.func @transform_4(%arg0: i32) -> (i32, i32) {
    %c0_i32 = arith.constant 0 : i32
    %c0_i32_0 = arith.constant 0 : i32
    %c0_i32_1 = arith.constant 0 : i32
    return %c0_i32, %c0_i32_0 : i32, i32
  }
  func.func @transform_5(%arg0: i32) -> (i32, i32) {
    %c0_i32 = arith.constant 0 : i32
    %c0_i32_0 = arith.constant 0 : i32
    %c0_i32_1 = arith.constant 0 : i32
    return %c0_i32, %c0_i32_0 : i32, i32
  }
}

</mosaic_0001>

<bundles_post_ra>
// kernel: explainable_nn_forward.5
= control target key start
LH: loop header
LB: loop body
LE: loop exit
PB: predicated region body
PF: predicated region fallthrough
CT: control target
= control target key end

     0   :  { %v1203_v3 = vmov 0.0   ;;  %vm367_vm0 = vcmask 130048   ;;  %s2058_s4 = inlined_call_operand.vmem [shape: f32[16,256], index: 4, kind: input, shape index: {}]   ;;  %s2059_s2 = inlined_call_operand.vmem [shape: f32[256,256], index: 2, kind: input, shape index: {}]   ;;  %s2060_s1 = inlined_call_operand.vmem [shape: f32[128,16], index: 1, kind: input, shape index: {}]   ;;  %s2061_s3 = inlined_call_operand.vmem [shape: f32[256,256], index: 3, kind: input, shape index: {}]   ;;  %s2062_s0 = inlined_call_operand.vmem [shape: f32[128,256], index: 0, kind: input, shape index: {}]   ;;  %s2063_s5 = inlined_call_operand.vmem [shape: f32[1,256], index: 5, kind: input, shape index: {}]   ;;  %s2064_s6 = inlined_call_operand.vmem [shape: f32[1,256], index: 6, kind: input, shape index: {}]   ;;  %s2065_s7 = inlined_call_operand.vmem [shape: f32[128,256], index: 7, kind: output, shape index: {}]  }
   0x1   :  { %v364_v0 = vld [vmem:[%s2058_s4 + $0x8] sm:$0xff]  ;;  %v366_v1 = vld [vmem:[%s2058_s4 + $0x18] sm:$0xff]  ;;  %v363_v2 = vld [vmem:[%s2058_s4] sm:$0xff]  ;;  %480 = vmatprep.mubr.f32.mxu1 %v1203_v3 }
   0x2   :  { %v1102_v4 = vpack.c.bf16 %v366_v1, %v364_v0  ;;  %v365_v5 = vld [vmem:[%s2058_s4 + $0x10] sm:$0xff]  ;;  %v59_v6 = vld [vmem:[%s2059_s2 + $0x8] sm:$0xff]  ;;  %v61_v7 = vld [vmem:[%s2059_s2 + $0x18] sm:$0xff] }
   0x3   :  { %v1104_v8 = vpack.c.bf16 %v365_v5, %v363_v2  ;;  %v1038_v9 = vpack.c.bf16 %v61_v7, %v59_v6  ;;  %v347_v10 = vld [vmem:[%s2060_s1] sm:$0xff]  ;;  %v284_v11 = vld [vmem:[%s2061_s3 + $0x8] sm:$0xff]  ;;  %v286_v12 = vld [vmem:[%s2061_s3 + $0x18] sm:$0xff] }
   0x4   :  { %1103 = vmatprep.subr.bf16.mxu1 %v1102_v4  ;;  %v1106_v13 = vpack.c.bf16 %v286_v12, %v284_v11  ;;  %v58_v14 = vld [vmem:[%s2059_s2] sm:$0xff]  ;;  %v60_v15 = vld [vmem:[%s2059_s2 + $0x10] sm:$0xff]  ;;  %v63_v19 = vld [vmem:[%s2059_s2 + $0x28] sm:$0xff] }
   0x5   :  { %v283_v16 = vld [vmem:[%s2061_s3] sm:$0xff]  ;;  %1105 = vmatpush1.bf16.msra.mxu1 %v1104_v8  ;;  %1039 = vmatprep.subr.bf16.mxu0 %v1038_v9  ;;  %v1040_v17 = vpack.c.bf16 %v60_v15, %v58_v14  ;;  %v285_v18 = vld [vmem:[%s2061_s3 + $0x10] sm:$0xff]  ;;  %v65_v20 = vld [vmem:[%s2059_s2 + $0x38] sm:$0xff] }
   0x6   :  { %1107 = vmatprep.subr.bf16.mxu1 %v1106_v13  ;;  %v1108_v21 = vpack.c.bf16 %v285_v18, %v283_v16  ;;  %v1042_v22 = vpack.c.bf16 %v65_v20, %v63_v19  ;;  %v288_v23 = vld [vmem:[%s2061_s3 + $0x28] sm:$0xff]  ;;  %v290_v24 = vld [vmem:[%s2061_s3 + $0x38] sm:$0xff]  ;;  %v62_v26 = vld [vmem:[%s2059_s2 + $0x20] sm:$0xff] }
   0x7   :  { %1041 = vmatpush1.bf16.msra.mxu0 %v1040_v17  ;;  %v1110_v25 = vpack.c.bf16 %v290_v24, %v288_v23  ;;  %v64_v27 = vld [vmem:[%s2059_s2 + $0x30] sm:$0xff]  ;;  %v287_v28 = vld [vmem:[%s2061_s3 + $0x20] sm:$0xff]  ;;  %v67_v31 = vld [vmem:[%s2059_s2 + $0x48] sm:$0xff] }
   0x8   :  { %1022 = vmatmul.mubr.msk.f32.vlgmr.msra.gmra.mrb[0].mxu1 %vm367_vm0, %v347_v10  ;;  %1043 = vmatprep.subr.bf16.mxu0 %v1042_v22  ;;  %v1044_v29 = vpack.c.bf16 %v64_v27, %v62_v26  ;;  %v289_v30 = vld [vmem:[%s2061_s3 + $0x30] sm:$0xff]  ;;  %v69_v32 = vld [vmem:[%s2059_s2 + $0x58] sm:$0xff]  ;;  %v348_v33 = vld [vmem:[%s2060_s1 + $0x8] sm:$0xff] }
   0x9   :  { %1109 = vmatpush1.bf16.msra.mxu1 %v1108_v21  ;;  %486 = vmatprep.mubr.f32.mxu1 %v1203_v3  ;;  %v1112_v34 = vpack.c.bf16 %v289_v30, %v287_v28  ;;  %v1046_v35 = vpack.c.bf16 %v69_v32, %v67_v31  ;;  %v292_v36 = vld [vmem:[%s2061_s3 + $0x48] sm:$0xff]  ;;  %v294_v37 = vld [vmem:[%s2061_s3 + $0x58] sm:$0xff]  ;;  %v66_v39 = vld [vmem:[%s2059_s2 + $0x40] sm:$0xff] }
   0xa   :  { %1111 = vmatprep.subr.bf16.mxu1 %v1110_v25  ;;  %v1114_v38 = vpack.c.bf16 %v294_v37, %v292_v36  ;;  %v68_v40 = vld [vmem:[%s2059_s2 + $0x50] sm:$0xff]  ;;  %v291_v41 = vld [vmem:[%s2061_s3 + $0x40] sm:$0xff]  ;;  %v71_v44 = vld [vmem:[%s2059_s2 + $0x68] sm:$0xff] }
   0xb   :  { %1045 = vmatpush1.bf16.msra.mxu0 %v1044_v29  ;;  %v1048_v42 = vpack.c.bf16 %v68_v40, %v66_v39  ;;  %v293_v43 = vld [vmem:[%s2061_s3 + $0x50] sm:$0xff]  ;;  %v73_v45 = vld [vmem:[%s2059_s2 + $0x78] sm:$0xff]  ;;  %v296_v48 = vld [vmem:[%s2061_s3 + $0x68] sm:$0xff] }
   0xc   :  { %1023 = vmatmul.mubr.msk.f32.gmra.mrb[2].mxu1 %vm367_vm0, %v348_v33  ;;  %1047 = vmatprep.subr.bf16.mxu0 %v1046_v35  ;;  %v349_v46 = vld [vmem:[%s2060_s1 + $0x10] sm:$0xff]  ;;  %v1050_v47 = vpack.c.bf16 %v73_v45, %v71_v44  ;;  %v298_v49 = vld [vmem:[%s2061_s3 + $0x78] sm:$0xff]  ;;  %v1116_v50 = vpack.c.bf16 %v293_v43, %v291_v41  ;;  %v70_v51 = vld [vmem:[%s2059_s2 + $0x60] sm:$0xff] }
   0xd   :  { %1113 = vmatpush1.bf16.msra.mxu1 %v1112_v34  ;;  %492 = vmatprep.mubr.f32.mxu1 %v1203_v3  ;;  %v72_v52 = vld [vmem:[%s2059_s2 + $0x70] sm:$0xff]  ;;  %v295_v53 = vld [vmem:[%s2061_s3 + $0x60] sm:$0xff]  ;;  %v1118_v54 = vpack.c.bf16 %v298_v49, %v296_v48  ;;  %v75_v56 = vld [vmem:[%s2059_s2 + $0x88] sm:$0xff] }
   0xe   :  { %1115 = vmatprep.subr.bf16.mxu1 %v1114_v38  ;;  %v297_v55 = vld [vmem:[%s2061_s3 + $0x70] sm:$0xff]  ;;  %v77_v57 = vld [vmem:[%s2059_s2 + $0x98] sm:$0xff]  ;;  %v1052_v58 = vpack.c.bf16 %v72_v52, %v70_v51  ;;  %v300_v59 = vld [vmem:[%s2061_s3 + $0x88] sm:$0xff] }
   0xf   :  { %1049 = vmatpush1.bf16.msra.mxu0 %v1048_v42  ;;  %v302_v60 = vld [vmem:[%s2061_s3 + $0x98] sm:$0xff]  ;;  %v1054_v61 = vpack.c.bf16 %v77_v57, %v75_v56  ;;  %v74_v62 = vld [vmem:[%s2059_s2 + $0x80] sm:$0xff]  ;;  %v76_v63 = vld [vmem:[%s2059_s2 + $0x90] sm:$0xff]  ;;  %v1120_v1 = vpack.c.bf16 %v297_v55, %v295_v53 }
  0x10   :  { %1024 = vmatmul.mubr.msk.f32.gmra.mrb[4].mxu1 %vm367_vm0, %v349_v46  ;;  %1051 = vmatprep.subr.bf16.mxu0 %v1050_v47  ;;  %v350_v0 = vld [vmem:[%s2060_s1 + $0x18] sm:$0xff]  ;;  %v79_v2 = vld [vmem:[%s2059_s2 + $0xa8] sm:$0xff]  ;;  %v1122_v5 = vpack.c.bf16 %v302_v60, %v300_v59  ;;  %v299_v6 = vld [vmem:[%s2061_s3 + $0x80] sm:$0xff]  ;;  %v1056_v8 = vpack.c.bf16 %v76_v63, %v74_v62 }
  0x11   :  { %1117 = vmatpush1.bf16.msra.mxu1 %v1116_v50  ;;  %498 = vmatprep.mubr.f32.mxu1 %v1203_v3  ;;  %v81_v4 = vld [vmem:[%s2059_s2 + $0xb8] sm:$0xff]  ;;  %v301_v7 = vld [vmem:[%s2061_s3 + $0x90] sm:$0xff]  ;;  %v304_v9 = vld [vmem:[%s2061_s3 + $0xa8] sm:$0xff] }
  0x12   :  { %1119 = vmatprep.subr.bf16.mxu1 %v1118_v54  ;;  %v306_v10 = vld [vmem:[%s2061_s3 + $0xb8] sm:$0xff]  ;;  %v1058_v11 = vpack.c.bf16 %v81_v4, %v79_v2  ;;  %v78_v12 = vld [vmem:[%s2059_s2 + $0xa0] sm:$0xff]  ;;  %v80_v13 = vld [vmem:[%s2059_s2 + $0xb0] sm:$0xff]  ;;  %v1124_v15 = vpack.c.bf16 %v301_v7, %v299_v6 }
  0x13   :  { %1053 = vmatpush1.bf16.msra.mxu0 %v1052_v58  ;;  %v351_v14 = vld [vmem:[%s2060_s1 + $0x20] sm:$0xff]  ;;  %v83_v16 = vld [vmem:[%s2059_s2 + $0xc8] sm:$0xff]  ;;  %v85_v17 = vld [vmem:[%s2059_s2 + $0xd8] sm:$0xff]  ;;  %v1126_v18 = vpack.c.bf16 %v306_v10, %v304_v9  ;;  %v1060_v21 = vpack.c.bf16 %v80_v13, %v78_v12 }
  0x14   :  { %1025 = vmatmul.mubr.msk.f32.gmra.mrb[6].mxu1 %vm367_vm0, %v350_v0  ;;  %1055 = vmatprep.subr.bf16.mxu0 %v1054_v61  ;;  %v303_v19 = vld [vmem:[%s2061_s3 + $0xa0] sm:$0xff]  ;;  %v305_v20 = vld [vmem:[%s2061_s3 + $0xb0] sm:$0xff]  ;;  %v308_v22 = vld [vmem:[%s2061_s3 + $0xc8] sm:$0xff]  ;;  %v1062_v24 = vpack.c.bf16 %v85_v17, %v83_v16 }
  0x15   :  { %1121 = vmatpush1.bf16.msra.mxu1 %v1120_v1  ;;  %504 = vmatprep.mubr.f32.mxu1 %v1203_v3  ;;  %v310_v23 = vld [vmem:[%s2061_s3 + $0xd8] sm:$0xff]  ;;  %v82_v25 = vld [vmem:[%s2059_s2 + $0xc0] sm:$0xff]  ;;  %v84_v26 = vld [vmem:[%s2059_s2 + $0xd0] sm:$0xff]  ;;  %v1128_v28 = vpack.c.bf16 %v305_v20, %v303_v19 }
  0x16   :  { %1123 = vmatprep.subr.bf16.mxu1 %v1122_v5  ;;  %v352_v27 = vld [vmem:[%s2060_s1 + $0x28] sm:$0xff]  ;;  %v89_v30 = vld [vmem:[%s2059_s2 + $0xf8] sm:$0xff]  ;;  %v1130_v31 = vpack.c.bf16 %v310_v23, %v308_v22  ;;  %v307_v32 = vld [vmem:[%s2061_s3 + $0xc0] sm:$0xff]  ;;  %v1064_v34 = vpack.c.bf16 %v84_v26, %v82_v25 }
  0x17   :  { %1057 = vmatpush1.bf16.msra.mxu0 %v1056_v8  ;;  %v87_v29 = vld [vmem:[%s2059_s2 + $0xe8] sm:$0xff]  ;;  %v309_v33 = vld [vmem:[%s2061_s3 + $0xd0] sm:$0xff]  ;;  %v314_v36 = vld [vmem:[%s2061_s3 + $0xf8] sm:$0xff] }
  0x18   :  { %1026 = vmatmul.mubr.msk.f32.gmra.mrb[8].mxu1 %vm367_vm0, %v351_v14  ;;  %1059 = vmatprep.subr.bf16.mxu0 %v1058_v11  ;;  %v312_v35 = vld [vmem:[%s2061_s3 + $0xe8] sm:$0xff]  ;;  %v1066_v37 = vpack.c.bf16 %v89_v30, %v87_v29  ;;  %v86_v38 = vld [vmem:[%s2059_s2 + $0xe0] sm:$0xff]  ;;  %v88_v39 = vld [vmem:[%s2059_s2 + $0xf0] sm:$0xff]  ;;  %v1132_v41 = vpack.c.bf16 %v309_v33, %v307_v32 }
  0x19   :  { %1125 = vmatpush1.bf16.msra.mxu1 %v1124_v15  ;;  %510 = vmatprep.mubr.f32.mxu1 %v1203_v3  ;;  %v353_v40 = vld [vmem:[%s2060_s1 + $0x30] sm:$0xff]  ;;  %v91_v42 = vld [vmem:[%s2059_s2 + $0x108] sm:$0xff]  ;;  %v93_v43 = vld [vmem:[%s2059_s2 + $0x118] sm:$0xff]  ;;  %v1134_v44 = vpack.c.bf16 %v314_v36, %v312_v35  ;;  %v1068_v47 = vpack.c.bf16 %v88_v39, %v86_v38 }
  0x1a   :  { %1127 = vmatprep.subr.bf16.mxu1 %v1126_v18  ;;  %v311_v45 = vld [vmem:[%s2061_s3 + $0xe0] sm:$0xff]  ;;  %v313_v46 = vld [vmem:[%s2061_s3 + $0xf0] sm:$0xff]  ;;  %v316_v48 = vld [vmem:[%s2061_s3 + $0x108] sm:$0xff]  ;;  %v1070_v50 = vpack.c.bf16 %v93_v43, %v91_v42 }
  0x1b   :  { %1061 = vmatpush1.bf16.msra.mxu0 %v1060_v21  ;;  %v318_v49 = vld [vmem:[%s2061_s3 + $0x118] sm:$0xff]  ;;  %v90_v51 = vld [vmem:[%s2059_s2 + $0x100] sm:$0xff]  ;;  %v92_v52 = vld [vmem:[%s2059_s2 + $0x110] sm:$0xff]  ;;  %v1136_v54 = vpack.c.bf16 %v313_v46, %v311_v45 }
  0x1c   :  { %1027 = vmatmul.mubr.msk.f32.gmra.mrb[10].mxu1 %vm367_vm0, %v352_v27  ;;  %1063 = vmatprep.subr.bf16.mxu0 %v1062_v24  ;;  %v354_v53 = vld [vmem:[%s2060_s1 + $0x38] sm:$0xff]  ;;  %v95_v55 = vld [vmem:[%s2059_s2 + $0x128] sm:$0xff]  ;;  %v1138_v57 = vpack.c.bf16 %v318_v49, %v316_v48  ;;  %v315_v58 = vld [vmem:[%s2061_s3 + $0x100] sm:$0xff]  ;;  %v1072_v60 = vpack.c.bf16 %v92_v52, %v90_v51 }
  0x1d   :  { %1129 = vmatpush1.bf16.msra.mxu1 %v1128_v28  ;;  %516 = vmatprep.mubr.f32.mxu1 %v1203_v3  ;;  %v97_v56 = vld [vmem:[%s2059_s2 + $0x138] sm:$0xff]  ;;  %v317_v59 = vld [vmem:[%s2061_s3 + $0x110] sm:$0xff]  ;;  %v320_v61 = vld [vmem:[%s2061_s3 + $0x128] sm:$0xff] }
  0x1e   :  { %1131 = vmatprep.subr.bf16.mxu1 %v1130_v31  ;;  %v322_v62 = vld [vmem:[%s2061_s3 + $0x138] sm:$0xff]  ;;  %v1074_v63 = vpack.c.bf16 %v97_v56, %v95_v55  ;;  %v94_v0 = vld [vmem:[%s2059_s2 + $0x120] sm:$0xff]  ;;  %v96_v1 = vld [vmem:[%s2059_s2 + $0x130] sm:$0xff]  ;;  %v1140_v4 = vpack.c.bf16 %v317_v59, %v315_v58 }
  0x1f   :  { %1065 = vmatpush1.bf16.msra.mxu0 %v1064_v34  ;;  %v355_v2 = vld [vmem:[%s2060_s1 + $0x40] sm:$0xff]  ;;  %v99_v5 = vld [vmem:[%s2059_s2 + $0x148] sm:$0xff]  ;;  %v101_v6 = vld [vmem:[%s2059_s2 + $0x158] sm:$0xff]  ;;  %v1142_v7 = vpack.c.bf16 %v322_v62, %v320_v61  ;;  %v1076_v10 = vpack.c.bf16 %v96_v1, %v94_v0 }
  0x20   :  { %1028 = vmatmul.mubr.msk.f32.gmra.mrb[12].mxu1 %vm367_vm0, %v353_v40  ;;  %1067 = vmatprep.subr.bf16.mxu0 %v1066_v37  ;;  %v319_v8 = vld [vmem:[%s2061_s3 + $0x120] sm:$0xff]  ;;  %v321_v9 = vld [vmem:[%s2061_s3 + $0x130] sm:$0xff]  ;;  %v324_v11 = vld [vmem:[%s2061_s3 + $0x148] sm:$0xff]  ;;  %v1078_v13 = vpack.c.bf16 %v101_v6, %v99_v5 }
  0x21   :  { %1133 = vmatpush1.bf16.msra.mxu1 %v1132_v41  ;;  %522 = vmatprep.mubr.f32.mxu1 %v1203_v3  ;;  %v326_v12 = vld [vmem:[%s2061_s3 + $0x158] sm:$0xff]  ;;  %v98_v14 = vld [vmem:[%s2059_s2 + $0x140] sm:$0xff]  ;;  %v100_v15 = vld [vmem:[%s2059_s2 + $0x150] sm:$0xff]  ;;  %v1144_v17 = vpack.c.bf16 %v321_v9, %v319_v8 }
  0x22   :  { %1135 = vmatprep.subr.bf16.mxu1 %v1134_v44  ;;  %v356_v16 = vld [vmem:[%s2060_s1 + $0x48] sm:$0xff]  ;;  %v105_v19 = vld [vmem:[%s2059_s2 + $0x178] sm:$0xff]  ;;  %v1146_v20 = vpack.c.bf16 %v326_v12, %v324_v11  ;;  %v323_v21 = vld [vmem:[%s2061_s3 + $0x140] sm:$0xff]  ;;  %v1080_v23 = vpack.c.bf16 %v100_v15, %v98_v14 }
  0x23   :  { %1069 = vmatpush1.bf16.msra.mxu0 %v1068_v47  ;;  %v103_v18 = vld [vmem:[%s2059_s2 + $0x168] sm:$0xff]  ;;  %v325_v22 = vld [vmem:[%s2061_s3 + $0x150] sm:$0xff]  ;;  %v330_v25 = vld [vmem:[%s2061_s3 + $0x178] sm:$0xff] }
  0x24   :  { %1029 = vmatmul.mubr.msk.f32.gmra.mrb[14].mxu1 %vm367_vm0, %v354_v53  ;;  %1071 = vmatprep.subr.bf16.mxu0 %v1070_v50  ;;  %v328_v24 = vld [vmem:[%s2061_s3 + $0x168] sm:$0xff]  ;;  %v1082_v26 = vpack.c.bf16 %v105_v19, %v103_v18  ;;  %v102_v27 = vld [vmem:[%s2059_s2 + $0x160] sm:$0xff]  ;;  %v104_v28 = vld [vmem:[%s2059_s2 + $0x170] sm:$0xff]  ;;  %v1148_v30 = vpack.c.bf16 %v325_v22, %v323_v21 }
  0x25   :  { %1137 = vmatpush1.bf16.msra.mxu1 %v1136_v54  ;;  %528 = vmatprep.mubr.f32.mxu1 %v1203_v3  ;;  %v357_v29 = vld [vmem:[%s2060_s1 + $0x50] sm:$0xff]  ;;  %v107_v31 = vld [vmem:[%s2059_s2 + $0x188] sm:$0xff]  ;;  %v109_v32 = vld [vmem:[%s2059_s2 + $0x198] sm:$0xff]  ;;  %v1150_v33 = vpack.c.bf16 %v330_v25, %v328_v24  ;;  %v1084_v36 = vpack.c.bf16 %v104_v28, %v102_v27 }
  0x26   :  { %1139 = vmatprep.subr.bf16.mxu1 %v1138_v57  ;;  %v327_v34 = vld [vmem:[%s2061_s3 + $0x160] sm:$0xff]  ;;  %v329_v35 = vld [vmem:[%s2061_s3 + $0x170] sm:$0xff]  ;;  %v332_v37 = vld [vmem:[%s2061_s3 + $0x188] sm:$0xff]  ;;  %v1086_v39 = vpack.c.bf16 %v109_v32, %v107_v31 }
  0x27   :  { %1073 = vmatpush1.bf16.msra.mxu0 %v1072_v60  ;;  %v334_v38 = vld [vmem:[%s2061_s3 + $0x198] sm:$0xff]  ;;  %v106_v40 = vld [vmem:[%s2059_s2 + $0x180] sm:$0xff]  ;;  %v108_v41 = vld [vmem:[%s2059_s2 + $0x190] sm:$0xff]  ;;  %v1152_v43 = vpack.c.bf16 %v329_v35, %v327_v34 }
  0x28   :  { %1030 = vmatmul.mubr.msk.f32.gmra.mrb[16].mxu1 %vm367_vm0, %v355_v2  ;;  %1075 = vmatprep.subr.bf16.mxu0 %v1074_v63  ;;  %v358_v42 = vld [vmem:[%s2060_s1 + $0x58] sm:$0xff]  ;;  %v111_v44 = vld [vmem:[%s2059_s2 + $0x1a8] sm:$0xff]  ;;  %v1154_v46 = vpack.c.bf16 %v334_v38, %v332_v37  ;;  %v331_v47 = vld [vmem:[%s2061_s3 + $0x180] sm:$0xff]  ;;  %v1088_v50 = vpack.c.bf16 %v108_v41, %v106_v40 }
  0x29   :  { %1141 = vmatpush1.bf16.msra.mxu1 %v1140_v4  ;;  %534 = vmatprep.mubr.f32.mxu1 %v1203_v3  ;;  %v113_v45 = vld [vmem:[%s2059_s2 + $0x1b8] sm:$0xff]  ;;  %v333_v48 = vld [vmem:[%s2061_s3 + $0x190] sm:$0xff]  ;;  %v1636_v49 = vld [vmem:[%s2062_s0 + $0x8] sm:$0xff] }
  0x2a   :  { %1143 = vmatprep.subr.bf16.mxu1 %v1142_v7  ;;  %v336_v51 = vld [vmem:[%s2061_s3 + $0x1a8] sm:$0xff]  ;;  %v338_v52 = vld [vmem:[%s2061_s3 + $0x1b8] sm:$0xff]  ;;  %186 = vmatprep.mubr.f32.mxu0 %v1636_v49  ;;  %v1090_v53 = vpack.c.bf16 %v113_v45, %v111_v44  ;;  %v110_v54 = vld [vmem:[%s2059_s2 + $0x1a0] sm:$0xff]  ;;  %v1156_v57 = vpack.c.bf16 %v333_v48, %v331_v47 }
  0x2b   :  { %1077 = vmatpush1.bf16.msra.mxu0 %v1076_v10  ;;  %v112_v55 = vld [vmem:[%s2059_s2 + $0x1b0] sm:$0xff]  ;;  %v359_v56 = vld [vmem:[%s2060_s1 + $0x60] sm:$0xff]  ;;  %v115_v58 = vld [vmem:[%s2059_s2 + $0x1c8] sm:$0xff]  ;;  %v1158_v60 = vpack.c.bf16 %v338_v52, %v336_v51 }
  0x2c   :  { %1031 = vmatmul.mubr.msk.f32.gmra.mrb[18].mxu1 %vm367_vm0, %v356_v16  ;;  %1079 = vmatprep.subr.bf16.mxu0 %v1078_v13  ;;  %v117_v59 = vld [vmem:[%s2059_s2 + $0x1d8] sm:$0xff]  ;;  %v335_v61 = vld [vmem:[%s2061_s3 + $0x1a0] sm:$0xff]  ;;  %v337_v62 = vld [vmem:[%s2061_s3 + $0x1b0] sm:$0xff]  ;;  %v1092_v63 = vpack.c.bf16 %v112_v55, %v110_v54 }
  0x2d   :  { %1145 = vmatpush1.bf16.msra.mxu1 %v1144_v17  ;;  %540 = vmatprep.mubr.f32.mxu1 %v1203_v3  ;;  %v340_v0 = vld [vmem:[%s2061_s3 + $0x1c8] sm:$0xff]  ;;  %v342_v1 = vld [vmem:[%s2061_s3 + $0x1d8] sm:$0xff]  ;;  %v1094_v2 = vpack.c.bf16 %v117_v59, %v115_v58  ;;  %v114_v4 = vld [vmem:[%s2059_s2 + $0x1c0] sm:$0xff]  ;;  %v1160_v7 = vpack.c.bf16 %v337_v62, %v335_v61 }
  0x2e   :  { %1147 = vmatprep.subr.bf16.mxu1 %v1146_v20  ;;  %v116_v5 = vld [vmem:[%s2059_s2 + $0x1d0] sm:$0xff]  ;;  %v360_v6 = vld [vmem:[%s2060_s1 + $0x68] sm:$0xff]  ;;  %v121_v9 = vld [vmem:[%s2059_s2 + $0x1f8] sm:$0xff]  ;;  %v1162_v10 = vpack.c.bf16 %v342_v1, %v340_v0 }
  0x2f   :  { %1081 = vmatpush1.bf16.msra.mxu0 %v1080_v23  ;;  %v119_v8 = vld [vmem:[%s2059_s2 + $0x1e8] sm:$0xff]  ;;  %v339_v11 = vld [vmem:[%s2061_s3 + $0x1c0] sm:$0xff]  ;;  %v341_v12 = vld [vmem:[%s2061_s3 + $0x1d0] sm:$0xff]  ;;  %v1096_v13 = vpack.c.bf16 %v116_v5, %v114_v4 }
  0x30   :  { %1032 = vmatmul.mubr.msk.f32.gmra.mrb[20].mxu1 %vm367_vm0, %v357_v29  ;;  %1083 = vmatprep.subr.bf16.mxu0 %v1082_v26  ;;  %v344_v14 = vld [vmem:[%s2061_s3 + $0x1e8] sm:$0xff]  ;;  %v346_v15 = vld [vmem:[%s2061_s3 + $0x1f8] sm:$0xff]  ;;  %v1098_v16 = vpack.c.bf16 %v121_v9, %v119_v8  ;;  %v118_v17 = vld [vmem:[%s2059_s2 + $0x1e0] sm:$0xff]  ;;  %v1164_v20 = vpack.c.bf16 %v341_v12, %v339_v11 }
  0x31   :  { %1149 = vmatpush1.bf16.msra.mxu1 %v1148_v30  ;;  %546 = vmatprep.mubr.f32.mxu1 %v1203_v3  ;;  %v120_v18 = vld [vmem:[%s2059_s2 + $0x1f0] sm:$0xff]  ;;  %v1166_v21 = vpack.c.bf16 %v346_v15, %v344_v14  ;;  %v343_v22 = vld [vmem:[%s2061_s3 + $0x1e0] sm:$0xff]  ;;  %v362_v25 = vld [vmem:[%s2060_s1 + $0x78] sm:$0xff] }
  0x32   :  { %1151 = vmatprep.subr.bf16.mxu1 %v1150_v33  ;;  %v361_v19 = vld [vmem:[%s2060_s1 + $0x70] sm:$0xff]  ;;  %v1100_v24 = vpack.c.bf16 %v120_v18, %v118_v17  ;;  %v26_v27 = vld [vmem:[%s2062_s0] sm:$0xff]  ;;  %v29_v28 = vld [vmem:[%s2062_s0 + $0x18] sm:$0xff] }
  0x33   :  { %1085 = vmatpush1.bf16.msra.mxu0 %v1084_v36  ;;  %v345_v23 = vld [vmem:[%s2061_s3 + $0x1f0] sm:$0xff]  ;;  %v31_v29 = vld [vmem:[%s2062_s0 + $0x28] sm:$0xff]  ;;  %v30_v30 = vld [vmem:[%s2062_s0 + $0x20] sm:$0xff] }
  0x34   :  { %1033 = vmatmul.mubr.msk.f32.gmra.mrb[22].mxu1 %vm367_vm0, %v358_v42  ;;  %1087 = vmatprep.subr.bf16.mxu0 %v1086_v39  ;;  %v1168_v26 = vpack.c.bf16 %v345_v23, %v343_v22  ;;  %v33_v31 = vld [vmem:[%s2062_s0 + $0x38] sm:$0xff]  ;;  %v32_v32 = vld [vmem:[%s2062_s0 + $0x30] sm:$0xff]  ;;  %v35_v33 = vld [vmem:[%s2062_s0 + $0x48] sm:$0xff] }
  0x35   :  { %1153 = vmatpush1.bf16.msra.mxu1 %v1152_v43  ;;  %552 = vmatprep.mubr.f32.mxu1 %v1203_v3  ;;  %v34_v34 = vld [vmem:[%s2062_s0 + $0x40] sm:$0xff]  ;;  %v37_v35 = vld [vmem:[%s2062_s0 + $0x58] sm:$0xff]  ;;  %v36_v36 = vld [vmem:[%s2062_s0 + $0x50] sm:$0xff] }
  0x36   :  { %1155 = vmatprep.subr.bf16.mxu1 %v1154_v46  ;;  %v39_v37 = vld [vmem:[%s2062_s0 + $0x68] sm:$0xff]  ;;  %v38_v38 = vld [vmem:[%s2062_s0 + $0x60] sm:$0xff]  ;;  %v41_v39 = vld [vmem:[%s2062_s0 + $0x78] sm:$0xff] }
  0x37   :  { %1089 = vmatpush1.bf16.msra.mxu0 %v1088_v50  ;;  %v40_v40 = vld [vmem:[%s2062_s0 + $0x70] sm:$0xff]  ;;  %v43_v41 = vld [vmem:[%s2062_s0 + $0x88] sm:$0xff]  ;;  %v42_v42 = vld [vmem:[%s2062_s0 + $0x80] sm:$0xff] }
  0x38   :  { %1034 = vmatmul.mubr.msk.f32.gmra.mrb[24].mxu1 %vm367_vm0, %v359_v56  ;;  %1091 = vmatprep.subr.bf16.mxu0 %v1090_v53  ;;  %v45_v43 = vld [vmem:[%s2062_s0 + $0x98] sm:$0xff]  ;;  %v44_v44 = vld [vmem:[%s2062_s0 + $0x90] sm:$0xff]  ;;  %v47_v45 = vld [vmem:[%s2062_s0 + $0xa8] sm:$0xff] }
  0x39   :  { %1157 = vmatpush1.bf16.msra.mxu1 %v1156_v57  ;;  %558 = vmatprep.mubr.f32.mxu1 %v1203_v3  ;;  %v46_v46 = vld [vmem:[%s2062_s0 + $0xa0] sm:$0xff]  ;;  %v49_v47 = vld [vmem:[%s2062_s0 + $0xb8] sm:$0xff]  ;;  %v48_v48 = vld [vmem:[%s2062_s0 + $0xb0] sm:$0xff]  ;;  %v741_v57 = vlaneseq }
  0x3a   :  { %1159 = vmatprep.subr.bf16.mxu1 %v1158_v60  ;;  %v50_v50 = vld [vmem:[%s2062_s0 + $0xc0] sm:$0xff]  ;;  %v53_v51 = vld [vmem:[%s2062_s0 + $0xd8] sm:$0xff]  ;;  %v52_v52 = vld [vmem:[%s2062_s0 + $0xd0] sm:$0xff] }
  0x3b   :  { %1093 = vmatpush1.bf16.msra.mxu0 %v1092_v63  ;;  %v55_v53 = vld [vmem:[%s2062_s0 + $0xe8] sm:$0xff]  ;;  %v54_v54 = vld [vmem:[%s2062_s0 + $0xe0] sm:$0xff]  ;;  %v57_v55 = vld [vmem:[%s2062_s0 + $0xf8] sm:$0xff]  ;;  %v742_v58 = vshrl.u32 %v741_v57, 7 }
  0x3c   :  { %1035 = vmatmul.mubr.msk.f32.gmra.mrb[26].mxu1 %vm367_vm0, %v360_v6  ;;  %1095 = vmatprep.subr.bf16.mxu0 %v1094_v2  ;;  %v56_v56 = vld [vmem:[%s2062_s0 + $0xf0] sm:$0xff]  ;;  %v738_v60 = vld [vmem:[%s2063_s5] sm:$0x3] }
  0x3d   :  { %1161 = vmatpush1.bf16.msra.mxu1 %v1160_v7  ;;  %564 = vmatprep.mubr.f32.mxu1 %v1203_v3  ;;  %v743_v59 = vsub.s32 0, %v742_v58  ;;  %v747_v61 = vsub.s32 1, %v742_v58  ;;  %v739_v62 = vld [vmem:[%s2064_s6] sm:$0x3] }
  0x3e   :  { %1163 = vmatprep.subr.bf16.mxu1 %v1162_v10 }
  0x3f   :  { %1097 = vmatpush1.bf16.msra.mxu0 %v1096_v13  ;;  %v1826_v63 = vrot.slane %v738_v60, %v743_v59  ;;  %v1828_v0 = vrot.slane %v738_v60, %v747_v61  ;;  %v1830_v1 = vrot.slane %v739_v62, %v743_v59  ;;  %v1832_v4 = vrot.slane %v739_v62, %v747_v61 }
  0x40   :  { %1036 = vmatmul.mubr.msk.f32.gmra.mrb[28].mxu1 %vm367_vm0, %v361_v19  ;;  %1099 = vmatprep.subr.bf16.mxu0 %v1098_v16 }
  0x41   :  { %1165 = vmatpush1.bf16.msra.mxu1 %v1164_v20  ;;  %570 = vmatprep.mubr.f32.mxu1 %v1203_v3  ;;  %v28_v3 = vld [vmem:[%s2062_s0 + $0x10] sm:$0xff] }
  0x42   :  { %1167 = vmatprep.subr.bf16.mxu1 %v1166_v21 }
  0x43   :  { %1101 = vmatpush1.bf16.msra.mxu0 %v1100_v24 }
  0x44   :  { %1037 = vmatmul.mubr.msk.f32.gmra.mrb[30].mxu1 %vm367_vm0, %v362_v25 }
  0x45   :  { %1169 = vmatpush1.bf16.msra.mxu1 %v1168_v26  ;;  %641 = vmatprep.mubr.f32.mxu1 %v1636_v49  ;;  %v51_v49 = vld [vmem:[%s2062_s0 + $0xc8] sm:$0xff] }
  0x46   :  { %187 = vmatmul.mubr.f32.vlgmr.msra.gmra.mrb[0].mxu0 %v26_v27 }
  0x47   :  { %192 = vmatprep.mubr.f32.mxu0 %v29_v28 }
  0x48   :  { %642 = vmatmul.mubr.f32.vlgmr.msra.gmra.mrb[0].mxu1 %v26_v27 }
  0x49   :  { %647 = vmatprep.mubr.f32.mxu1 %v29_v28 }
  0x4a   :  { %193 = vmatmul.mubr.f32.gmra.mrb[2].mxu0 %v28_v3 }
  0x4b   :  { %198 = vmatprep.mubr.f32.mxu0 %v31_v29 }
  0x4c   :  { %648 = vmatmul.mubr.f32.gmra.mrb[2].mxu1 %v28_v3 }
  0x4d   :  { %653 = vmatprep.mubr.f32.mxu1 %v31_v29 }
  0x4e   :  { %199 = vmatmul.mubr.f32.gmra.mrb[4].mxu0 %v30_v30 }
  0x4f   :  { %204 = vmatprep.mubr.f32.mxu0 %v33_v31 }
  0x50   :  { %654 = vmatmul.mubr.f32.gmra.mrb[4].mxu1 %v30_v30 }
  0x51   :  { %659 = vmatprep.mubr.f32.mxu1 %v33_v31 }
  0x52   :  { %205 = vmatmul.mubr.f32.gmra.mrb[6].mxu0 %v32_v32 }
  0x53   :  { %210 = vmatprep.mubr.f32.mxu0 %v35_v33 }
  0x54   :  { %660 = vmatmul.mubr.f32.gmra.mrb[6].mxu1 %v32_v32 }
  0x55   :  { %665 = vmatprep.mubr.f32.mxu1 %v35_v33 }
  0x56   :  { %211 = vmatmul.mubr.f32.gmra.mrb[8].mxu0 %v34_v34 }
  0x57   :  { %216 = vmatprep.mubr.f32.mxu0 %v37_v35 }
  0x58   :  { %666 = vmatmul.mubr.f32.gmra.mrb[8].mxu1 %v34_v34 }
  0x59   :  { %671 = vmatprep.mubr.f32.mxu1 %v37_v35 }
  0x5a   :  { %217 = vmatmul.mubr.f32.gmra.mrb[10].mxu0 %v36_v36 }
  0x5b   :  { %222 = vmatprep.mubr.f32.mxu0 %v39_v37 }
  0x5c   :  { %672 = vmatmul.mubr.f32.gmra.mrb[10].mxu1 %v36_v36 }
  0x5d   :  { %677 = vmatprep.mubr.f32.mxu1 %v39_v37 }
  0x5e   :  { %223 = vmatmul.mubr.f32.gmra.mrb[12].mxu0 %v38_v38 }
  0x5f   :  { %228 = vmatprep.mubr.f32.mxu0 %v41_v39 }
  0x60   :  { %678 = vmatmul.mubr.f32.gmra.mrb[12].mxu1 %v38_v38 }
  0x61   :  { %683 = vmatprep.mubr.f32.mxu1 %v41_v39 }
  0x62   :  { %229 = vmatmul.mubr.f32.gmra.mrb[14].mxu0 %v40_v40 }
  0x63   :  { %234 = vmatprep.mubr.f32.mxu0 %v43_v41 }
  0x64   :  { %684 = vmatmul.mubr.f32.gmra.mrb[14].mxu1 %v40_v40 }
  0x65   :  { %689 = vmatprep.mubr.f32.mxu1 %v43_v41 }
  0x66   :  { %235 = vmatmul.mubr.f32.gmra.mrb[16].mxu0 %v42_v42 }
  0x67   :  { %240 = vmatprep.mubr.f32.mxu0 %v45_v43 }
  0x68   :  { %690 = vmatmul.mubr.f32.gmra.mrb[16].mxu1 %v42_v42 }
  0x69   :  { %695 = vmatprep.mubr.f32.mxu1 %v45_v43 }
  0x6a   :  { %241 = vmatmul.mubr.f32.gmra.mrb[18].mxu0 %v44_v44 }
  0x6b   :  { %246 = vmatprep.mubr.f32.mxu0 %v47_v45 }
  0x6c   :  { %696 = vmatmul.mubr.f32.gmra.mrb[18].mxu1 %v44_v44 }
  0x6d   :  { %701 = vmatprep.mubr.f32.mxu1 %v47_v45 }
  0x6e   :  { %247 = vmatmul.mubr.f32.gmra.mrb[20].mxu0 %v46_v46 }
  0x6f   :  { %252 = vmatprep.mubr.f32.mxu0 %v49_v47 }
  0x70   :  { %702 = vmatmul.mubr.f32.gmra.mrb[20].mxu1 %v46_v46 }
  0x71   :  { %707 = vmatprep.mubr.f32.mxu1 %v49_v47 }
  0x72   :  { %253 = vmatmul.mubr.f32.gmra.mrb[22].mxu0 %v48_v48 }
  0x73   :  { %258 = vmatprep.mubr.f32.mxu0 %v51_v49 }
  0x74   :  { %708 = vmatmul.mubr.f32.gmra.mrb[22].mxu1 %v48_v48 }
  0x75   :  { %713 = vmatprep.mubr.f32.mxu1 %v51_v49 }
  0x76   :  { %259 = vmatmul.mubr.f32.gmra.mrb[24].mxu0 %v50_v50 }
  0x77   :  { %264 = vmatprep.mubr.f32.mxu0 %v53_v51 }
  0x78   :  { %714 = vmatmul.mubr.f32.gmra.mrb[24].mxu1 %v50_v50 }
  0x79   :  { %719 = vmatprep.mubr.f32.mxu1 %v53_v51 }
  0x7a   :  { %265 = vmatmul.mubr.f32.gmra.mrb[26].mxu0 %v52_v52 }
  0x7b   :  { %270 = vmatprep.mubr.f32.mxu0 %v55_v53 }
  0x7c   :  { %720 = vmatmul.mubr.f32.gmra.mrb[26].mxu1 %v52_v52 }
  0x7d   :  { %725 = vmatprep.mubr.f32.mxu1 %v55_v53 }
  0x7e   :  { %271 = vmatmul.mubr.f32.gmra.mrb[28].mxu0 %v54_v54 }
  0x7f   :  { %276 = vmatprep.mubr.f32.mxu0 %v57_v55 }
  0x80   :  { %726 = vmatmul.mubr.f32.gmra.mrb[28].mxu1 %v54_v54 }
  0x81   :  { %731 = vmatprep.mubr.f32.mxu1 %v57_v55 }
  0x82   :  { %277 = vmatmul.mubr.f32.gmra.mrb[30].mxu0 %v56_v56 }
  0x84   :  { %732 = vmatmul.mubr.f32.gmra.mrb[30].mxu1 %v56_v56 }
 0x119   :  { %v188_v2 = vpop.f32.mrb[0].mxu0 }
 0x11a   :  { %v751_v5 = vmul.f32 %v1826_v63, %v188_v2  ;;  %v190_v6 = vpop.f32.mrb[1].mxu0 }
 0x11b   :  { %v643_v7 = vpop.f32.mrb[0].mxu1  ;;  %v752_v8 = vmul.f32 %v1828_v0, %v190_v6 }
 0x11c   :  { %v794_v9 = vadd.f32 %v1830_v1, %v751_v5  ;;  %v858_v10 = vmul.f32 %v1826_v63, %v643_v7  ;;  %v645_v11 = vpop.f32.mrb[1].mxu1 }
 0x11d   :  { %v795_v12 = vadd.f32 %v1832_v4, %v752_v8  ;;  %v859_v13 = vmul.f32 %v1828_v0, %v645_v11  ;;  %v194_v14 = vpop.f32.mrb[2].mxu0 }
 0x11e   :  { %v826_v15 = vmax.f32 %v794_v9, 0.0  ;;  %v890_v16 = vadd.f32 %v858_v10, %v1830_v1  ;;  %v753_v17 = vmul.f32 %v1826_v63, %v194_v14  ;;  %v196_v18 = vpop.f32.mrb[3].mxu0 }
 0x11f   :  { %v827_v19 = vmax.f32 %v795_v12, 0.0  ;;  %v891_v20 = vadd.f32 %v859_v13, %v1832_v4  ;;  %v649_v21 = vpop.f32.mrb[2].mxu1  ;;  %v754_v22 = vmul.f32 %v1828_v0, %v196_v18 }
 0x120   :  { %v922_v23 = vmax.f32 %v890_v16, 0.0  ;;  %v796_v24 = vadd.f32 %v1830_v1, %v753_v17  ;;  %v860_v25 = vmul.f32 %v1826_v63, %v649_v21  ;;  %v651_v26 = vpop.f32.mrb[3].mxu1 }
 0x121   :  { %v923_v27 = vmax.f32 %v891_v20, 0.0  ;;  %v797_v28 = vadd.f32 %v1832_v4, %v754_v22  ;;  %v861_v3 = vmul.f32 %v1828_v0, %v651_v26  ;;  %v200_v29 = vpop.f32.mrb[4].mxu0 }
 0x122   :  { %v954_v30 = vmax.f32 %v826_v15, %v922_v23  ;;  %v828_v31 = vmax.f32 %v796_v24, 0.0  ;;  %v892_v32 = vadd.f32 %v860_v25, %v1830_v1  ;;  %v755_v33 = vmul.f32 %v1826_v63, %v200_v29  ;;  %v202_v34 = vpop.f32.mrb[5].mxu0 }
 0x123   :  { %v955_v35 = vmax.f32 %v827_v19, %v923_v27  ;;  %v829_v36 = vmax.f32 %v797_v28, 0.0  ;;  %v893_v37 = vadd.f32 %v861_v3, %v1832_v4  ;;  %v655_v38 = vpop.f32.mrb[4].mxu1  ;;  %v756_v39 = vmul.f32 %v1828_v0, %v202_v34 }
 0x124   :  { %986 = vst [vmem:[%s2065_s7] sm:$0xff] %v954_v30  ;;  %v924_v40 = vmax.f32 %v892_v32, 0.0  ;;  %v798_v41 = vadd.f32 %v1830_v1, %v755_v33  ;;  %v862_v42 = vmul.f32 %v1826_v63, %v655_v38  ;;  %v657_v43 = vpop.f32.mrb[5].mxu1 }
 0x125   :  { %987 = vst [vmem:[%s2065_s7 + $0x8] sm:$0xff] %v955_v35  ;;  %v925_v44 = vmax.f32 %v893_v37, 0.0  ;;  %v799_v45 = vadd.f32 %v1832_v4, %v756_v39  ;;  %v863_v46 = vmul.f32 %v1828_v0, %v657_v43  ;;  %v206_v47 = vpop.f32.mrb[6].mxu0 }
 0x126   :  { %v956_v48 = vmax.f32 %v828_v31, %v924_v40  ;;  %v830_v49 = vmax.f32 %v798_v41, 0.0  ;;  %v894_v50 = vadd.f32 %v862_v42, %v1830_v1  ;;  %v757_v51 = vmul.f32 %v1826_v63, %v206_v47  ;;  %v208_v52 = vpop.f32.mrb[7].mxu0 }
 0x127   :  { %v957_v53 = vmax.f32 %v829_v36, %v925_v44  ;;  %v831_v54 = vmax.f32 %v799_v45, 0.0  ;;  %v895_v55 = vadd.f32 %v863_v46, %v1832_v4  ;;  %v661_v56 = vpop.f32.mrb[6].mxu1  ;;  %v758_v57 = vmul.f32 %v1828_v0, %v208_v52 }
 0x128   :  { %988 = vst [vmem:[%s2065_s7 + $0x10] sm:$0xff] %v956_v48  ;;  %v926_v58 = vmax.f32 %v894_v50, 0.0  ;;  %v800_v59 = vadd.f32 %v1830_v1, %v757_v51  ;;  %v864_v60 = vmul.f32 %v1826_v63, %v661_v56  ;;  %v663_v61 = vpop.f32.mrb[7].mxu1 }
 0x129   :  { %989 = vst [vmem:[%s2065_s7 + $0x18] sm:$0xff] %v957_v53  ;;  %v927_v62 = vmax.f32 %v895_v55, 0.0  ;;  %v801_v2 = vadd.f32 %v1832_v4, %v758_v57  ;;  %v865_v5 = vmul.f32 %v1828_v0, %v663_v61  ;;  %v212_v6 = vpop.f32.mrb[8].mxu0 }
 0x12a   :  { %v958_v7 = vmax.f32 %v830_v49, %v926_v58  ;;  %v832_v8 = vmax.f32 %v800_v59, 0.0  ;;  %v896_v9 = vadd.f32 %v864_v60, %v1830_v1  ;;  %v759_v10 = vmul.f32 %v1826_v63, %v212_v6  ;;  %v214_v11 = vpop.f32.mrb[9].mxu0 }
 0x12b   :  { %v959_v12 = vmax.f32 %v831_v54, %v927_v62  ;;  %v833_v13 = vmax.f32 %v801_v2, 0.0  ;;  %v897_v14 = vadd.f32 %v865_v5, %v1832_v4  ;;  %v667_v15 = vpop.f32.mrb[8].mxu1  ;;  %v760_v16 = vmul.f32 %v1828_v0, %v214_v11 }
 0x12c   :  { %990 = vst [vmem:[%s2065_s7 + $0x20] sm:$0xff] %v958_v7  ;;  %v928_v17 = vmax.f32 %v896_v9, 0.0  ;;  %v802_v18 = vadd.f32 %v1830_v1, %v759_v10  ;;  %v866_v19 = vmul.f32 %v1826_v63, %v667_v15  ;;  %v669_v20 = vpop.f32.mrb[9].mxu1 }
 0x12d   :  { %991 = vst [vmem:[%s2065_s7 + $0x28] sm:$0xff] %v959_v12  ;;  %v929_v21 = vmax.f32 %v897_v14, 0.0  ;;  %v803_v22 = vadd.f32 %v1832_v4, %v760_v16  ;;  %v867_v23 = vmul.f32 %v1828_v0, %v669_v20  ;;  %v218_v24 = vpop.f32.mrb[10].mxu0 }
 0x12e   :  { %v960_v25 = vmax.f32 %v832_v8, %v928_v17  ;;  %v834_v26 = vmax.f32 %v802_v18, 0.0  ;;  %v898_v27 = vadd.f32 %v866_v19, %v1830_v1  ;;  %v761_v28 = vmul.f32 %v1826_v63, %v218_v24  ;;  %v220_v3 = vpop.f32.mrb[11].mxu0 }
 0x12f   :  { %v961_v29 = vmax.f32 %v833_v13, %v929_v21  ;;  %v835_v30 = vmax.f32 %v803_v22, 0.0  ;;  %v899_v31 = vadd.f32 %v867_v23, %v1832_v4  ;;  %v673_v32 = vpop.f32.mrb[10].mxu1  ;;  %v762_v33 = vmul.f32 %v1828_v0, %v220_v3 }
 0x130   :  { %992 = vst [vmem:[%s2065_s7 + $0x30] sm:$0xff] %v960_v25  ;;  %v930_v34 = vmax.f32 %v898_v27, 0.0  ;;  %v804_v35 = vadd.f32 %v1830_v1, %v761_v28  ;;  %v868_v36 = vmul.f32 %v1826_v63, %v673_v32  ;;  %v675_v37 = vpop.f32.mrb[11].mxu1 }
 0x131   :  { %993 = vst [vmem:[%s2065_s7 + $0x38] sm:$0xff] %v961_v29  ;;  %v931_v38 = vmax.f32 %v899_v31, 0.0  ;;  %v805_v39 = vadd.f32 %v1832_v4, %v762_v33  ;;  %v869_v40 = vmul.f32 %v1828_v0, %v675_v37  ;;  %v224_v41 = vpop.f32.mrb[12].mxu0 }
 0x132   :  { %v962_v42 = vmax.f32 %v834_v26, %v930_v34  ;;  %v836_v43 = vmax.f32 %v804_v35, 0.0  ;;  %v900_v44 = vadd.f32 %v868_v36, %v1830_v1  ;;  %v763_v45 = vmul.f32 %v1826_v63, %v224_v41  ;;  %v226_v46 = vpop.f32.mrb[13].mxu0 }
 0x133   :  { %v963_v47 = vmax.f32 %v835_v30, %v931_v38  ;;  %v837_v48 = vmax.f32 %v805_v39, 0.0  ;;  %v901_v49 = vadd.f32 %v869_v40, %v1832_v4  ;;  %v679_v50 = vpop.f32.mrb[12].mxu1  ;;  %v764_v51 = vmul.f32 %v1828_v0, %v226_v46 }
 0x134   :  { %994 = vst [vmem:[%s2065_s7 + $0x40] sm:$0xff] %v962_v42  ;;  %v932_v52 = vmax.f32 %v900_v44, 0.0  ;;  %v806_v53 = vadd.f32 %v1830_v1, %v763_v45  ;;  %v870_v54 = vmul.f32 %v1826_v63, %v679_v50  ;;  %v681_v55 = vpop.f32.mrb[13].mxu1 }
 0x135   :  { %995 = vst [vmem:[%s2065_s7 + $0x48] sm:$0xff] %v963_v47  ;;  %v933_v56 = vmax.f32 %v901_v49, 0.0  ;;  %v807_v57 = vadd.f32 %v1832_v4, %v764_v51  ;;  %v871_v58 = vmul.f32 %v1828_v0, %v681_v55  ;;  %v230_v59 = vpop.f32.mrb[14].mxu0 }
 0x136   :  { %v964_v60 = vmax.f32 %v836_v43, %v932_v52  ;;  %v838_v61 = vmax.f32 %v806_v53, 0.0  ;;  %v902_v62 = vadd.f32 %v870_v54, %v1830_v1  ;;  %v765_v2 = vmul.f32 %v1826_v63, %v230_v59  ;;  %v232_v5 = vpop.f32.mrb[15].mxu0 }
 0x137   :  { %v965_v6 = vmax.f32 %v837_v48, %v933_v56  ;;  %v839_v7 = vmax.f32 %v807_v57, 0.0  ;;  %v903_v8 = vadd.f32 %v871_v58, %v1832_v4  ;;  %v685_v9 = vpop.f32.mrb[14].mxu1  ;;  %v766_v10 = vmul.f32 %v1828_v0, %v232_v5 }
 0x138   :  { %996 = vst [vmem:[%s2065_s7 + $0x50] sm:$0xff] %v964_v60  ;;  %v934_v11 = vmax.f32 %v902_v62, 0.0  ;;  %v808_v12 = vadd.f32 %v1830_v1, %v765_v2  ;;  %v872_v13 = vmul.f32 %v1826_v63, %v685_v9  ;;  %v687_v14 = vpop.f32.mrb[15].mxu1 }
 0x139   :  { %997 = vst [vmem:[%s2065_s7 + $0x58] sm:$0xff] %v965_v6  ;;  %v935_v15 = vmax.f32 %v903_v8, 0.0  ;;  %v809_v16 = vadd.f32 %v1832_v4, %v766_v10  ;;  %v873_v17 = vmul.f32 %v1828_v0, %v687_v14  ;;  %v236_v18 = vpop.f32.mrb[16].mxu0 }
 0x13a   :  { %v966_v19 = vmax.f32 %v838_v61, %v934_v11  ;;  %v840_v20 = vmax.f32 %v808_v12, 0.0  ;;  %v904_v21 = vadd.f32 %v872_v13, %v1830_v1  ;;  %v767_v22 = vmul.f32 %v1826_v63, %v236_v18  ;;  %v238_v23 = vpop.f32.mrb[17].mxu0 }
 0x13b   :  { %v967_v24 = vmax.f32 %v839_v7, %v935_v15  ;;  %v841_v25 = vmax.f32 %v809_v16, 0.0  ;;  %v905_v26 = vadd.f32 %v873_v17, %v1832_v4  ;;  %v691_v27 = vpop.f32.mrb[16].mxu1  ;;  %v768_v28 = vmul.f32 %v1828_v0, %v238_v23 }
 0x13c   :  { %998 = vst [vmem:[%s2065_s7 + $0x60] sm:$0xff] %v966_v19  ;;  %v936_v3 = vmax.f32 %v904_v21, 0.0  ;;  %v810_v29 = vadd.f32 %v1830_v1, %v767_v22  ;;  %v874_v30 = vmul.f32 %v1826_v63, %v691_v27  ;;  %v693_v31 = vpop.f32.mrb[17].mxu1 }
 0x13d   :  { %999 = vst [vmem:[%s2065_s7 + $0x68] sm:$0xff] %v967_v24  ;;  %v937_v32 = vmax.f32 %v905_v26, 0.0  ;;  %v811_v33 = vadd.f32 %v1832_v4, %v768_v28  ;;  %v875_v34 = vmul.f32 %v1828_v0, %v693_v31  ;;  %v242_v35 = vpop.f32.mrb[18].mxu0 }
 0x13e   :  { %v968_v36 = vmax.f32 %v840_v20, %v936_v3  ;;  %v842_v37 = vmax.f32 %v810_v29, 0.0  ;;  %v906_v38 = vadd.f32 %v874_v30, %v1830_v1  ;;  %v769_v39 = vmul.f32 %v1826_v63, %v242_v35  ;;  %v244_v40 = vpop.f32.mrb[19].mxu0 }
 0x13f   :  { %v969_v41 = vmax.f32 %v841_v25, %v937_v32  ;;  %v843_v42 = vmax.f32 %v811_v33, 0.0  ;;  %v907_v43 = vadd.f32 %v875_v34, %v1832_v4  ;;  %v697_v44 = vpop.f32.mrb[18].mxu1  ;;  %v770_v45 = vmul.f32 %v1828_v0, %v244_v40 }
 0x140   :  { %1000 = vst [vmem:[%s2065_s7 + $0x70] sm:$0xff] %v968_v36  ;;  %v938_v46 = vmax.f32 %v906_v38, 0.0  ;;  %v812_v47 = vadd.f32 %v1830_v1, %v769_v39  ;;  %v876_v48 = vmul.f32 %v1826_v63, %v697_v44  ;;  %v699_v49 = vpop.f32.mrb[19].mxu1 }
 0x141   :  { %1001 = vst [vmem:[%s2065_s7 + $0x78] sm:$0xff] %v969_v41  ;;  %v939_v50 = vmax.f32 %v907_v43, 0.0  ;;  %v813_v51 = vadd.f32 %v1832_v4, %v770_v45  ;;  %v877_v52 = vmul.f32 %v1828_v0, %v699_v49  ;;  %v248_v53 = vpop.f32.mrb[20].mxu0 }
 0x142   :  { %v970_v54 = vmax.f32 %v842_v37, %v938_v46  ;;  %v844_v55 = vmax.f32 %v812_v47, 0.0  ;;  %v908_v56 = vadd.f32 %v876_v48, %v1830_v1  ;;  %v771_v57 = vmul.f32 %v1826_v63, %v248_v53  ;;  %v250_v58 = vpop.f32.mrb[21].mxu0 }
 0x143   :  { %v971_v59 = vmax.f32 %v843_v42, %v939_v50  ;;  %v845_v60 = vmax.f32 %v813_v51, 0.0  ;;  %v909_v61 = vadd.f32 %v877_v52, %v1832_v4  ;;  %v703_v62 = vpop.f32.mrb[20].mxu1  ;;  %v772_v2 = vmul.f32 %v1828_v0, %v250_v58 }
 0x144   :  { %1002 = vst [vmem:[%s2065_s7 + $0x80] sm:$0xff] %v970_v54  ;;  %v940_v5 = vmax.f32 %v908_v56, 0.0  ;;  %v814_v6 = vadd.f32 %v1830_v1, %v771_v57  ;;  %v878_v7 = vmul.f32 %v1826_v63, %v703_v62  ;;  %v705_v8 = vpop.f32.mrb[21].mxu1 }
 0x145   :  { %1003 = vst [vmem:[%s2065_s7 + $0x88] sm:$0xff] %v971_v59  ;;  %v941_v9 = vmax.f32 %v909_v61, 0.0  ;;  %v815_v10 = vadd.f32 %v1832_v4, %v772_v2  ;;  %v879_v11 = vmul.f32 %v1828_v0, %v705_v8  ;;  %v254_v12 = vpop.f32.mrb[22].mxu0 }
 0x146   :  { %v972_v13 = vmax.f32 %v844_v55, %v940_v5  ;;  %v846_v14 = vmax.f32 %v814_v6, 0.0  ;;  %v910_v15 = vadd.f32 %v878_v7, %v1830_v1  ;;  %v773_v16 = vmul.f32 %v1826_v63, %v254_v12  ;;  %v256_v17 = vpop.f32.mrb[23].mxu0 }
 0x147   :  { %v973_v18 = vmax.f32 %v845_v60, %v941_v9  ;;  %v847_v19 = vmax.f32 %v815_v10, 0.0  ;;  %v911_v20 = vadd.f32 %v879_v11, %v1832_v4  ;;  %v709_v21 = vpop.f32.mrb[22].mxu1  ;;  %v774_v22 = vmul.f32 %v1828_v0, %v256_v17 }
 0x148   :  { %1004 = vst [vmem:[%s2065_s7 + $0x90] sm:$0xff] %v972_v13  ;;  %v942_v23 = vmax.f32 %v910_v15, 0.0  ;;  %v816_v24 = vadd.f32 %v1830_v1, %v773_v16  ;;  %v880_v25 = vmul.f32 %v1826_v63, %v709_v21  ;;  %v711_v26 = vpop.f32.mrb[23].mxu1 }
 0x149   :  { %1005 = vst [vmem:[%s2065_s7 + $0x98] sm:$0xff] %v973_v18  ;;  %v943_v27 = vmax.f32 %v911_v20, 0.0  ;;  %v817_v28 = vadd.f32 %v1832_v4, %v774_v22  ;;  %v881_v3 = vmul.f32 %v1828_v0, %v711_v26  ;;  %v260_v29 = vpop.f32.mrb[24].mxu0 }
 0x14a   :  { %v974_v30 = vmax.f32 %v846_v14, %v942_v23  ;;  %v848_v31 = vmax.f32 %v816_v24, 0.0  ;;  %v912_v32 = vadd.f32 %v880_v25, %v1830_v1  ;;  %v775_v33 = vmul.f32 %v1826_v63, %v260_v29  ;;  %v262_v34 = vpop.f32.mrb[25].mxu0 }
 0x14b   :  { %v975_v35 = vmax.f32 %v847_v19, %v943_v27  ;;  %v849_v36 = vmax.f32 %v817_v28, 0.0  ;;  %v913_v37 = vadd.f32 %v881_v3, %v1832_v4  ;;  %v715_v38 = vpop.f32.mrb[24].mxu1  ;;  %v776_v39 = vmul.f32 %v1828_v0, %v262_v34 }
 0x14c   :  { %1006 = vst [vmem:[%s2065_s7 + $0xa0] sm:$0xff] %v974_v30  ;;  %v944_v40 = vmax.f32 %v912_v32, 0.0  ;;  %v818_v41 = vadd.f32 %v1830_v1, %v775_v33  ;;  %v882_v42 = vmul.f32 %v1826_v63, %v715_v38  ;;  %v717_v43 = vpop.f32.mrb[25].mxu1 }
 0x14d   :  { %1007 = vst [vmem:[%s2065_s7 + $0xa8] sm:$0xff] %v975_v35  ;;  %v945_v44 = vmax.f32 %v913_v37, 0.0  ;;  %v819_v45 = vadd.f32 %v1832_v4, %v776_v39  ;;  %v883_v46 = vmul.f32 %v1828_v0, %v717_v43  ;;  %v266_v47 = vpop.f32.mrb[26].mxu0 }
 0x14e   :  { %v976_v48 = vmax.f32 %v848_v31, %v944_v40  ;;  %v850_v49 = vmax.f32 %v818_v41, 0.0  ;;  %v914_v50 = vadd.f32 %v882_v42, %v1830_v1  ;;  %v777_v51 = vmul.f32 %v1826_v63, %v266_v47  ;;  %v268_v52 = vpop.f32.mrb[27].mxu0 }
 0x14f   :  { %v977_v53 = vmax.f32 %v849_v36, %v945_v44  ;;  %v851_v54 = vmax.f32 %v819_v45, 0.0  ;;  %v915_v55 = vadd.f32 %v883_v46, %v1832_v4  ;;  %v721_v56 = vpop.f32.mrb[26].mxu1  ;;  %v778_v57 = vmul.f32 %v1828_v0, %v268_v52 }
 0x150   :  { %1008 = vst [vmem:[%s2065_s7 + $0xb0] sm:$0xff] %v976_v48  ;;  %v946_v58 = vmax.f32 %v914_v50, 0.0  ;;  %v820_v59 = vadd.f32 %v1830_v1, %v777_v51  ;;  %v884_v60 = vmul.f32 %v1826_v63, %v721_v56  ;;  %v723_v61 = vpop.f32.mrb[27].mxu1 }
 0x151   :  { %1009 = vst [vmem:[%s2065_s7 + $0xb8] sm:$0xff] %v977_v53  ;;  %v947_v62 = vmax.f32 %v915_v55, 0.0  ;;  %v821_v2 = vadd.f32 %v1832_v4, %v778_v57  ;;  %v885_v5 = vmul.f32 %v1828_v0, %v723_v61  ;;  %v272_v6 = vpop.f32.mrb[28].mxu0 }
 0x152   :  { %v978_v7 = vmax.f32 %v850_v49, %v946_v58  ;;  %v852_v8 = vmax.f32 %v820_v59, 0.0  ;;  %v916_v9 = vadd.f32 %v884_v60, %v1830_v1  ;;  %v779_v10 = vmul.f32 %v1826_v63, %v272_v6  ;;  %v274_v11 = vpop.f32.mrb[29].mxu0 }
 0x153   :  { %v979_v12 = vmax.f32 %v851_v54, %v947_v62  ;;  %v853_v13 = vmax.f32 %v821_v2, 0.0  ;;  %v917_v14 = vadd.f32 %v885_v5, %v1832_v4  ;;  %v727_v15 = vpop.f32.mrb[28].mxu1  ;;  %v780_v16 = vmul.f32 %v1828_v0, %v274_v11 }
 0x154   :  { %1010 = vst [vmem:[%s2065_s7 + $0xc0] sm:$0xff] %v978_v7  ;;  %v948_v17 = vmax.f32 %v916_v9, 0.0  ;;  %v822_v18 = vadd.f32 %v1830_v1, %v779_v10  ;;  %v886_v19 = vmul.f32 %v1826_v63, %v727_v15  ;;  %v729_v20 = vpop.f32.mrb[29].mxu1 }
 0x155   :  { %1011 = vst [vmem:[%s2065_s7 + $0xc8] sm:$0xff] %v979_v12  ;;  %v949_v21 = vmax.f32 %v917_v14, 0.0  ;;  %v823_v22 = vadd.f32 %v1832_v4, %v780_v16  ;;  %v887_v23 = vmul.f32 %v1828_v0, %v729_v20  ;;  %v278_v24 = vpop.f32.mrb[30].mxu0 }
 0x156   :  { %v980_v25 = vmax.f32 %v852_v8, %v948_v17  ;;  %v854_v26 = vmax.f32 %v822_v18, 0.0  ;;  %v918_v27 = vadd.f32 %v886_v19, %v1830_v1  ;;  %v781_v28 = vmul.f32 %v1826_v63, %v278_v24  ;;  %v280_v3 = vpop.f32.mrb[31].mxu0 }
 0x157   :  { %v981_v29 = vmax.f32 %v853_v13, %v949_v21  ;;  %v855_v30 = vmax.f32 %v823_v22, 0.0  ;;  %v919_v31 = vadd.f32 %v887_v23, %v1832_v4  ;;  %v733_v32 = vpop.f32.mrb[30].mxu1  ;;  %v782_v33 = vmul.f32 %v1828_v0, %v280_v3 }
 0x158   :  { %1012 = vst [vmem:[%s2065_s7 + $0xd0] sm:$0xff] %v980_v25  ;;  %v950_v34 = vmax.f32 %v918_v27, 0.0  ;;  %v824_v35 = vadd.f32 %v1830_v1, %v781_v28  ;;  %v888_v36 = vmul.f32 %v1826_v63, %v733_v32  ;;  %v735_v37 = vpop.f32.mrb[31].mxu1 }
 0x159   :  { %1013 = vst [vmem:[%s2065_s7 + $0xd8] sm:$0xff] %v981_v29  ;;  %v951_v38 = vmax.f32 %v919_v31, 0.0  ;;  %v825_v39 = vadd.f32 %v1832_v4, %v782_v33  ;;  %v889_v40 = vmul.f32 %v1828_v0, %v735_v37 }
 0x15a   :  { %v982_v41 = vmax.f32 %v854_v26, %v950_v34  ;;  %v856_v42 = vmax.f32 %v824_v35, 0.0  ;;  %v920_v43 = vadd.f32 %v888_v36, %v1830_v1 }
 0x15b   :  { %v983_v44 = vmax.f32 %v855_v30, %v951_v38  ;;  %v857_v45 = vmax.f32 %v825_v39, 0.0  ;;  %v921_v46 = vadd.f32 %v889_v40, %v1832_v4 }
 0x15c   :  { %1014 = vst [vmem:[%s2065_s7 + $0xe0] sm:$0xff] %v982_v41  ;;  %v952_v63 = vmax.f32 %v920_v43, 0.0 }
 0x15d   :  { %1015 = vst [vmem:[%s2065_s7 + $0xe8] sm:$0xff] %v983_v44  ;;  %v953_v47 = vmax.f32 %v921_v46, 0.0 }
 0x15e   :  { %v984_v48 = vmax.f32 %v856_v42, %v952_v63 }
 0x15f   :  { %v985_v0 = vmax.f32 %v857_v45, %v953_v47 }
 0x160   :  { %1016 = vst [vmem:[%s2065_s7 + $0xf0] sm:$0xff] %v984_v48 }
 0x161   :  { %1017 = vst [vmem:[%s2065_s7 + $0xf8] sm:$0xff] %v985_v0 }

// kernel: explainable_nn_forward.6
= control target key start
LH: loop header
LB: loop body
LE: loop exit
PB: predicated region body
PF: predicated region fallthrough
CT: control target
= control target key end

     0   :  { %v1243_v3 = vmov 0.0   ;;  %vm371_vm0 = vcmask 261120   ;;  %s2254_s2 = inlined_call_operand.vmem [shape: f32[256,256], index: 2, kind: input, shape index: {}]   ;;  %s2255_s4 = inlined_call_operand.vmem [shape: f32[32,256], index: 4, kind: input, shape index: {}]   ;;  %s2256_s3 = inlined_call_operand.vmem [shape: f32[256,256], index: 3, kind: input, shape index: {}]   ;;  %s2257_s1 = inlined_call_operand.vmem [shape: f32[128,32], index: 1, kind: input, shape index: {}]   ;;  %s2258_s0 = inlined_call_operand.vmem [shape: f32[128,256], index: 0, kind: input, shape index: {}]   ;;  %s2259_s5 = inlined_call_operand.vmem [shape: f32[1,256], index: 5, kind: input, shape index: {}]   ;;  %s2260_s6 = inlined_call_operand.vmem [shape: f32[1,256], index: 6, kind: input, shape index: {}]   ;;  %s2261_s7 = inlined_call_operand.vmem [shape: f32[128,256], index: 7, kind: output, shape index: {}]  }
   0x1   :  { %v59_v0 = vld [vmem:[%s2254_s2 + $0x8] sm:$0xff]  ;;  %v61_v1 = vld [vmem:[%s2254_s2 + $0x18] sm:$0xff]  ;;  %484 = vmatprep.mubr.f32.mxu1 %v1243_v3  ;;  %v58_v6 = vld [vmem:[%s2254_s2] sm:$0xff] }
   0x2   :  { %v364_v2 = vld [vmem:[%s2255_s4 + $0x8] sm:$0xff]  ;;  %v1042_v4 = vpack.c.bf16 %v61_v1, %v59_v0  ;;  %v366_v5 = vld [vmem:[%s2255_s4 + $0x18] sm:$0xff]  ;;  %v60_v7 = vld [vmem:[%s2254_s2 + $0x10] sm:$0xff] }
   0x3   :  { %v1106_v8 = vpack.c.bf16 %v366_v5, %v364_v2  ;;  %v1044_v9 = vpack.c.bf16 %v60_v7, %v58_v6  ;;  %v363_v10 = vld [vmem:[%s2255_s4] sm:$0xff]  ;;  %v365_v11 = vld [vmem:[%s2255_s4 + $0x10] sm:$0xff]  ;;  %v63_v12 = vld [vmem:[%s2254_s2 + $0x28] sm:$0xff] }
   0x4   :  { %1043 = vmatprep.subr.bf16.mxu0 %v1042_v4  ;;  %v1108_v13 = vpack.c.bf16 %v365_v11, %v363_v10  ;;  %v65_v14 = vld [vmem:[%s2254_s2 + $0x38] sm:$0xff]  ;;  %v368_v15 = vld [vmem:[%s2255_s4 + $0x28] sm:$0xff]  ;;  %v62_v19 = vld [vmem:[%s2254_s2 + $0x20] sm:$0xff] }
   0x5   :  { %v370_v16 = vld [vmem:[%s2255_s4 + $0x38] sm:$0xff]  ;;  %1107 = vmatprep.subr.bf16.mxu1 %v1106_v8  ;;  %1045 = vmatpush1.bf16.msra.mxu0 %v1044_v9  ;;  %v1046_v17 = vpack.c.bf16 %v65_v14, %v63_v12  ;;  %v64_v20 = vld [vmem:[%s2254_s2 + $0x30] sm:$0xff]  ;;  %v367_v21 = vld [vmem:[%s2255_s4 + $0x20] sm:$0xff] }
   0x6   :  { %v1110_v18 = vpack.c.bf16 %v370_v16, %v368_v15  ;;  %1109 = vmatpush1.bf16.msra.mxu1 %v1108_v13  ;;  %v1048_v22 = vpack.c.bf16 %v64_v20, %v62_v19  ;;  %v369_v23 = vld [vmem:[%s2255_s4 + $0x30] sm:$0xff]  ;;  %v67_v24 = vld [vmem:[%s2254_s2 + $0x48] sm:$0xff]  ;;  %v69_v25 = vld [vmem:[%s2254_s2 + $0x58] sm:$0xff] }
   0x7   :  { %1047 = vmatprep.subr.bf16.mxu0 %v1046_v17  ;;  %v1112_v26 = vpack.c.bf16 %v369_v23, %v367_v21  ;;  %v1050_v27 = vpack.c.bf16 %v69_v25, %v67_v24  ;;  %v284_v28 = vld [vmem:[%s2256_s3 + $0x8] sm:$0xff]  ;;  %v286_v29 = vld [vmem:[%s2256_s3 + $0x18] sm:$0xff]  ;;  %v66_v31 = vld [vmem:[%s2254_s2 + $0x40] sm:$0xff] }
   0x8   :  { %1111 = vmatprep.subr.bf16.mxu1 %v1110_v18  ;;  %v1345_v30 = vpack.c.bf16 %v286_v29, %v284_v28  ;;  %v68_v32 = vld [vmem:[%s2254_s2 + $0x50] sm:$0xff]  ;;  %v283_v33 = vld [vmem:[%s2256_s3] sm:$0xff]  ;;  %v71_v36 = vld [vmem:[%s2254_s2 + $0x68] sm:$0xff] }
   0x9   :  { %1049 = vmatpush1.bf16.msra.mxu0 %v1048_v22  ;;  %v1052_v34 = vpack.c.bf16 %v68_v32, %v66_v31  ;;  %v285_v35 = vld [vmem:[%s2256_s3 + $0x10] sm:$0xff]  ;;  %v73_v37 = vld [vmem:[%s2254_s2 + $0x78] sm:$0xff]  ;;  %v347_v38 = vld [vmem:[%s2257_s1] sm:$0xff] }
   0xa   :  { %1113 = vmatpush1.bf16.msra.mxu1 %v1112_v26  ;;  %1051 = vmatprep.subr.bf16.mxu0 %v1050_v27  ;;  %v1368_v39 = vpack.c.bf16 %v285_v35, %v283_v33  ;;  %v288_v40 = vld [vmem:[%s2256_s3 + $0x28] sm:$0xff]  ;;  %v290_v41 = vld [vmem:[%s2256_s3 + $0x38] sm:$0xff]  ;;  %v1054_v42 = vpack.c.bf16 %v73_v37, %v71_v36  ;;  %v70_v44 = vld [vmem:[%s2254_s2 + $0x60] sm:$0xff] }
   0xb   :  { %1178 = vmatprep.subr.bf16.mxu1 %v1345_v30  ;;  %v1377_v43 = vpack.c.bf16 %v290_v41, %v288_v40  ;;  %v72_v45 = vld [vmem:[%s2254_s2 + $0x70] sm:$0xff]  ;;  %v287_v46 = vld [vmem:[%s2256_s3 + $0x20] sm:$0xff]  ;;  %v75_v48 = vld [vmem:[%s2254_s2 + $0x88] sm:$0xff] }
   0xc   :  { %v289_v47 = vld [vmem:[%s2256_s3 + $0x30] sm:$0xff]  ;;  %v77_v49 = vld [vmem:[%s2254_s2 + $0x98] sm:$0xff]  ;;  %v1056_v50 = vpack.c.bf16 %v72_v45, %v70_v44  ;;  %v292_v51 = vld [vmem:[%s2256_s3 + $0x48] sm:$0xff] }
   0xd   :  { %1026 = vmatmul.mubr.msk.f32.vlgmr.msra.gmra.mrb[0].mxu1 %vm371_vm0, %v347_v38  ;;  %1053 = vmatpush1.bf16.msra.mxu0 %v1052_v34  ;;  %v294_v52 = vld [vmem:[%s2256_s3 + $0x58] sm:$0xff]  ;;  %v348_v53 = vld [vmem:[%s2257_s1 + $0x8] sm:$0xff]  ;;  %v1409_v54 = vpack.c.bf16 %v289_v47, %v287_v46  ;;  %v74_v55 = vld [vmem:[%s2254_s2 + $0x80] sm:$0xff]  ;;  %v1058_v57 = vpack.c.bf16 %v77_v49, %v75_v48 }
   0xe   :  { %1194 = vmatpush1.bf16.msra.mxu1 %v1368_v39  ;;  %490 = vmatprep.mubr.f32.mxu1 %v1243_v3  ;;  %v76_v56 = vld [vmem:[%s2254_s2 + $0x90] sm:$0xff]  ;;  %v1418_v58 = vpack.c.bf16 %v294_v52, %v292_v51  ;;  %v291_v59 = vld [vmem:[%s2256_s3 + $0x40] sm:$0xff]  ;;  %v79_v61 = vld [vmem:[%s2254_s2 + $0xa8] sm:$0xff] }
   0xf   :  { %1055 = vmatprep.subr.bf16.mxu0 %v1054_v42  ;;  %1179 = vmatprep.subr.bf16.mxu1 %v1377_v43  ;;  %v293_v60 = vld [vmem:[%s2256_s3 + $0x50] sm:$0xff]  ;;  %v81_v62 = vld [vmem:[%s2254_s2 + $0xb8] sm:$0xff]  ;;  %v296_v63 = vld [vmem:[%s2256_s3 + $0x68] sm:$0xff]  ;;  %v1060_v1 = vpack.c.bf16 %v76_v56, %v74_v55 }
  0x10   :  { %v298_v0 = vld [vmem:[%s2256_s3 + $0x78] sm:$0xff]  ;;  %v349_v2 = vld [vmem:[%s2257_s1 + $0x10] sm:$0xff]  ;;  %v1444_v4 = vpack.c.bf16 %v293_v60, %v291_v59  ;;  %v78_v5 = vld [vmem:[%s2254_s2 + $0xa0] sm:$0xff]  ;;  %v1062_v7 = vpack.c.bf16 %v81_v62, %v79_v61 }
  0x11   :  { %1027 = vmatmul.mubr.msk.f32.gmra.mrb[2].mxu1 %vm371_vm0, %v348_v53  ;;  %1057 = vmatpush1.bf16.msra.mxu0 %v1056_v50  ;;  %v80_v6 = vld [vmem:[%s2254_s2 + $0xb0] sm:$0xff]  ;;  %v1453_v8 = vpack.c.bf16 %v298_v0, %v296_v63  ;;  %v295_v9 = vld [vmem:[%s2256_s3 + $0x60] sm:$0xff]  ;;  %v83_v11 = vld [vmem:[%s2254_s2 + $0xc8] sm:$0xff] }
  0x12   :  { %1195 = vmatpush1.bf16.msra.mxu1 %v1409_v54  ;;  %496 = vmatprep.mubr.f32.mxu1 %v1243_v3  ;;  %v297_v10 = vld [vmem:[%s2256_s3 + $0x70] sm:$0xff]  ;;  %v85_v12 = vld [vmem:[%s2254_s2 + $0xd8] sm:$0xff]  ;;  %v300_v13 = vld [vmem:[%s2256_s3 + $0x88] sm:$0xff]  ;;  %v1064_v15 = vpack.c.bf16 %v80_v6, %v78_v5 }
  0x13   :  { %1059 = vmatprep.subr.bf16.mxu0 %v1058_v57  ;;  %1180 = vmatprep.subr.bf16.mxu1 %v1418_v58  ;;  %v302_v14 = vld [vmem:[%s2256_s3 + $0x98] sm:$0xff]  ;;  %v1479_v17 = vpack.c.bf16 %v297_v10, %v295_v9  ;;  %v82_v18 = vld [vmem:[%s2254_s2 + $0xc0] sm:$0xff]  ;;  %v84_v19 = vld [vmem:[%s2254_s2 + $0xd0] sm:$0xff]  ;;  %v1066_v20 = vpack.c.bf16 %v85_v12, %v83_v11 }
  0x14   :  { %v350_v16 = vld [vmem:[%s2257_s1 + $0x18] sm:$0xff]  ;;  %v1488_v21 = vpack.c.bf16 %v302_v14, %v300_v13  ;;  %v299_v22 = vld [vmem:[%s2256_s3 + $0x80] sm:$0xff]  ;;  %v301_v23 = vld [vmem:[%s2256_s3 + $0x90] sm:$0xff]  ;;  %v1068_v28 = vpack.c.bf16 %v84_v19, %v82_v18 }
  0x15   :  { %1028 = vmatmul.mubr.msk.f32.gmra.mrb[4].mxu1 %vm371_vm0, %v349_v2  ;;  %1061 = vmatpush1.bf16.msra.mxu0 %v1060_v1  ;;  %v87_v24 = vld [vmem:[%s2254_s2 + $0xe8] sm:$0xff]  ;;  %v89_v25 = vld [vmem:[%s2254_s2 + $0xf8] sm:$0xff]  ;;  %v351_v29 = vld [vmem:[%s2257_s1 + $0x20] sm:$0xff]  ;;  %v1514_v31 = vpack.c.bf16 %v301_v23, %v299_v22 }
  0x16   :  { %1196 = vmatpush1.bf16.msra.mxu1 %v1444_v4  ;;  %502 = vmatprep.mubr.f32.mxu1 %v1243_v3  ;;  %v304_v26 = vld [vmem:[%s2256_s3 + $0xa8] sm:$0xff]  ;;  %v306_v27 = vld [vmem:[%s2256_s3 + $0xb8] sm:$0xff]  ;;  %v86_v32 = vld [vmem:[%s2254_s2 + $0xe0] sm:$0xff]  ;;  %v1070_v34 = vpack.c.bf16 %v89_v25, %v87_v24 }
  0x17   :  { %1063 = vmatprep.subr.bf16.mxu0 %v1062_v7  ;;  %1181 = vmatprep.subr.bf16.mxu1 %v1453_v8  ;;  %v88_v33 = vld [vmem:[%s2254_s2 + $0xf0] sm:$0xff]  ;;  %v1523_v35 = vpack.c.bf16 %v306_v27, %v304_v26  ;;  %v303_v36 = vld [vmem:[%s2256_s3 + $0xa0] sm:$0xff]  ;;  %v91_v38 = vld [vmem:[%s2254_s2 + $0x108] sm:$0xff] }
  0x18   :  { %v305_v37 = vld [vmem:[%s2256_s3 + $0xb0] sm:$0xff]  ;;  %v93_v40 = vld [vmem:[%s2254_s2 + $0x118] sm:$0xff]  ;;  %v308_v41 = vld [vmem:[%s2256_s3 + $0xc8] sm:$0xff]  ;;  %v1072_v44 = vpack.c.bf16 %v88_v33, %v86_v32 }
  0x19   :  { %1029 = vmatmul.mubr.msk.f32.gmra.mrb[6].mxu1 %vm371_vm0, %v350_v16  ;;  %1065 = vmatpush1.bf16.msra.mxu0 %v1064_v15  ;;  %v310_v42 = vld [vmem:[%s2256_s3 + $0xd8] sm:$0xff]  ;;  %v352_v45 = vld [vmem:[%s2257_s1 + $0x28] sm:$0xff]  ;;  %v1549_v46 = vpack.c.bf16 %v305_v37, %v303_v36  ;;  %v90_v47 = vld [vmem:[%s2254_s2 + $0x100] sm:$0xff]  ;;  %v1074_v49 = vpack.c.bf16 %v93_v40, %v91_v38 }
  0x1a   :  { %1197 = vmatpush1.bf16.msra.mxu1 %v1479_v17  ;;  %508 = vmatprep.mubr.f32.mxu1 %v1243_v3  ;;  %v92_v48 = vld [vmem:[%s2254_s2 + $0x110] sm:$0xff]  ;;  %v1558_v50 = vpack.c.bf16 %v310_v42, %v308_v41  ;;  %v307_v51 = vld [vmem:[%s2256_s3 + $0xc0] sm:$0xff]  ;;  %v95_v53 = vld [vmem:[%s2254_s2 + $0x128] sm:$0xff] }
  0x1b   :  { %1067 = vmatprep.subr.bf16.mxu0 %v1066_v20  ;;  %1182 = vmatprep.subr.bf16.mxu1 %v1488_v21  ;;  %v309_v52 = vld [vmem:[%s2256_s3 + $0xd0] sm:$0xff]  ;;  %v97_v55 = vld [vmem:[%s2254_s2 + $0x138] sm:$0xff]  ;;  %v312_v56 = vld [vmem:[%s2256_s3 + $0xe8] sm:$0xff]  ;;  %v1076_v59 = vpack.c.bf16 %v92_v48, %v90_v47 }
  0x1c   :  { %v314_v57 = vld [vmem:[%s2256_s3 + $0xf8] sm:$0xff]  ;;  %v353_v60 = vld [vmem:[%s2257_s1 + $0x30] sm:$0xff]  ;;  %v1584_v61 = vpack.c.bf16 %v309_v52, %v307_v51  ;;  %v94_v62 = vld [vmem:[%s2254_s2 + $0x120] sm:$0xff]  ;;  %v1078_v0 = vpack.c.bf16 %v97_v55, %v95_v53 }
  0x1d   :  { %1030 = vmatmul.mubr.msk.f32.gmra.mrb[8].mxu1 %vm371_vm0, %v351_v29  ;;  %1069 = vmatpush1.bf16.msra.mxu0 %v1068_v28  ;;  %v96_v63 = vld [vmem:[%s2254_s2 + $0x130] sm:$0xff]  ;;  %v1593_v1 = vpack.c.bf16 %v314_v57, %v312_v56  ;;  %v311_v2 = vld [vmem:[%s2256_s3 + $0xe0] sm:$0xff]  ;;  %v99_v6 = vld [vmem:[%s2254_s2 + $0x148] sm:$0xff] }
  0x1e   :  { %1198 = vmatpush1.bf16.msra.mxu1 %v1514_v31  ;;  %514 = vmatprep.mubr.f32.mxu1 %v1243_v3  ;;  %v313_v5 = vld [vmem:[%s2256_s3 + $0xf0] sm:$0xff]  ;;  %v101_v7 = vld [vmem:[%s2254_s2 + $0x158] sm:$0xff]  ;;  %v316_v9 = vld [vmem:[%s2256_s3 + $0x108] sm:$0xff]  ;;  %v1080_v11 = vpack.c.bf16 %v96_v63, %v94_v62 }
  0x1f   :  { %1071 = vmatprep.subr.bf16.mxu0 %v1070_v34  ;;  %1183 = vmatprep.subr.bf16.mxu1 %v1523_v35  ;;  %v318_v10 = vld [vmem:[%s2256_s3 + $0x118] sm:$0xff]  ;;  %v1619_v13 = vpack.c.bf16 %v313_v5, %v311_v2  ;;  %v98_v14 = vld [vmem:[%s2254_s2 + $0x140] sm:$0xff]  ;;  %v100_v15 = vld [vmem:[%s2254_s2 + $0x150] sm:$0xff]  ;;  %v1082_v16 = vpack.c.bf16 %v101_v7, %v99_v6 }
  0x20   :  { %v354_v12 = vld [vmem:[%s2257_s1 + $0x38] sm:$0xff]  ;;  %v1628_v18 = vpack.c.bf16 %v318_v10, %v316_v9  ;;  %v315_v19 = vld [vmem:[%s2256_s3 + $0x100] sm:$0xff]  ;;  %v317_v20 = vld [vmem:[%s2256_s3 + $0x110] sm:$0xff]  ;;  %v1084_v26 = vpack.c.bf16 %v100_v15, %v98_v14 }
  0x21   :  { %1031 = vmatmul.mubr.msk.f32.gmra.mrb[10].mxu1 %vm371_vm0, %v352_v45  ;;  %1073 = vmatpush1.bf16.msra.mxu0 %v1072_v44  ;;  %v103_v22 = vld [vmem:[%s2254_s2 + $0x168] sm:$0xff]  ;;  %v105_v23 = vld [vmem:[%s2254_s2 + $0x178] sm:$0xff]  ;;  %v355_v27 = vld [vmem:[%s2257_s1 + $0x40] sm:$0xff]  ;;  %v1654_v28 = vpack.c.bf16 %v317_v20, %v315_v19 }
  0x22   :  { %1199 = vmatpush1.bf16.msra.mxu1 %v1549_v46  ;;  %520 = vmatprep.mubr.f32.mxu1 %v1243_v3  ;;  %v320_v24 = vld [vmem:[%s2256_s3 + $0x128] sm:$0xff]  ;;  %v322_v25 = vld [vmem:[%s2256_s3 + $0x138] sm:$0xff]  ;;  %v102_v29 = vld [vmem:[%s2254_s2 + $0x160] sm:$0xff]  ;;  %v1086_v33 = vpack.c.bf16 %v105_v23, %v103_v22 }
  0x23   :  { %1075 = vmatprep.subr.bf16.mxu0 %v1074_v49  ;;  %1184 = vmatprep.subr.bf16.mxu1 %v1558_v50  ;;  %v104_v32 = vld [vmem:[%s2254_s2 + $0x170] sm:$0xff]  ;;  %v1663_v34 = vpack.c.bf16 %v322_v25, %v320_v24  ;;  %v319_v36 = vld [vmem:[%s2256_s3 + $0x120] sm:$0xff]  ;;  %v107_v38 = vld [vmem:[%s2254_s2 + $0x188] sm:$0xff] }
  0x24   :  { %v321_v37 = vld [vmem:[%s2256_s3 + $0x130] sm:$0xff]  ;;  %v109_v40 = vld [vmem:[%s2254_s2 + $0x198] sm:$0xff]  ;;  %v324_v41 = vld [vmem:[%s2256_s3 + $0x148] sm:$0xff]  ;;  %v1088_v44 = vpack.c.bf16 %v104_v32, %v102_v29 }
  0x25   :  { %1032 = vmatmul.mubr.msk.f32.gmra.mrb[12].mxu1 %vm371_vm0, %v353_v60  ;;  %1077 = vmatpush1.bf16.msra.mxu0 %v1076_v59  ;;  %v326_v42 = vld [vmem:[%s2256_s3 + $0x158] sm:$0xff]  ;;  %v356_v45 = vld [vmem:[%s2257_s1 + $0x48] sm:$0xff]  ;;  %v1689_v47 = vpack.c.bf16 %v321_v37, %v319_v36  ;;  %v106_v48 = vld [vmem:[%s2254_s2 + $0x180] sm:$0xff]  ;;  %v1090_v51 = vpack.c.bf16 %v109_v40, %v107_v38 }
  0x26   :  { %1200 = vmatpush1.bf16.msra.mxu1 %v1584_v61  ;;  %526 = vmatprep.mubr.f32.mxu1 %v1243_v3  ;;  %v108_v49 = vld [vmem:[%s2254_s2 + $0x190] sm:$0xff]  ;;  %v1698_v52 = vpack.c.bf16 %v326_v42, %v324_v41  ;;  %v323_v53 = vld [vmem:[%s2256_s3 + $0x140] sm:$0xff]  ;;  %v111_v56 = vld [vmem:[%s2254_s2 + $0x1a8] sm:$0xff] }
  0x27   :  { %1079 = vmatprep.subr.bf16.mxu0 %v1078_v0  ;;  %1185 = vmatprep.subr.bf16.mxu1 %v1593_v1  ;;  %v325_v55 = vld [vmem:[%s2256_s3 + $0x150] sm:$0xff]  ;;  %v113_v57 = vld [vmem:[%s2254_s2 + $0x1b8] sm:$0xff]  ;;  %v328_v59 = vld [vmem:[%s2256_s3 + $0x168] sm:$0xff]  ;;  %v1092_v62 = vpack.c.bf16 %v108_v49, %v106_v48 }
  0x28   :  { %v330_v60 = vld [vmem:[%s2256_s3 + $0x178] sm:$0xff]  ;;  %v1722_v63 = vld [vmem:[%s2258_s0 + $0x8] sm:$0xff]  ;;  %v357_v0 = vld [vmem:[%s2257_s1 + $0x50] sm:$0xff]  ;;  %v1729_v2 = vpack.c.bf16 %v325_v55, %v323_v53  ;;  %v1094_v7 = vpack.c.bf16 %v113_v57, %v111_v56 }
  0x29   :  { %1033 = vmatmul.mubr.msk.f32.gmra.mrb[14].mxu1 %vm371_vm0, %v354_v12  ;;  %1081 = vmatpush1.bf16.msra.mxu0 %v1080_v11  ;;  %v110_v5 = vld [vmem:[%s2254_s2 + $0x1a0] sm:$0xff]  ;;  %v112_v6 = vld [vmem:[%s2254_s2 + $0x1b0] sm:$0xff]  ;;  %v1738_v9 = vpack.c.bf16 %v330_v60, %v328_v59  ;;  %v115_v12 = vld [vmem:[%s2254_s2 + $0x1c8] sm:$0xff] }
  0x2a   :  { %1201 = vmatpush1.bf16.msra.mxu1 %v1619_v13  ;;  %532 = vmatprep.mubr.f32.mxu1 %v1243_v3  ;;  %v327_v10 = vld [vmem:[%s2256_s3 + $0x160] sm:$0xff]  ;;  %v329_v11 = vld [vmem:[%s2256_s3 + $0x170] sm:$0xff]  ;;  %v117_v14 = vld [vmem:[%s2254_s2 + $0x1d8] sm:$0xff]  ;;  %v1096_v19 = vpack.c.bf16 %v112_v6, %v110_v5 }
  0x2b   :  { %1083 = vmatprep.subr.bf16.mxu0 %v1082_v16  ;;  %1186 = vmatprep.subr.bf16.mxu1 %v1628_v18  ;;  %v332_v15 = vld [vmem:[%s2256_s3 + $0x188] sm:$0xff]  ;;  %v334_v16 = vld [vmem:[%s2256_s3 + $0x198] sm:$0xff]  ;;  %v1765_v22 = vpack.c.bf16 %v329_v11, %v327_v10  ;;  %v114_v23 = vld [vmem:[%s2254_s2 + $0x1c0] sm:$0xff]  ;;  %v1098_v25 = vpack.c.bf16 %v117_v14, %v115_v12 }
  0x2c   :  { %186 = vmatprep.mubr.f32.mxu0 %v1722_v63  ;;  %v358_v20 = vld [vmem:[%s2257_s1 + $0x58] sm:$0xff]  ;;  %v116_v24 = vld [vmem:[%s2254_s2 + $0x1d0] sm:$0xff]  ;;  %v119_v32 = vld [vmem:[%s2254_s2 + $0x1e8] sm:$0xff] }
  0x2d   :  { %1034 = vmatmul.mubr.msk.f32.gmra.mrb[16].mxu1 %vm371_vm0, %v355_v27  ;;  %1085 = vmatpush1.bf16.msra.mxu0 %v1084_v26  ;;  %v1774_v26 = vpack.c.bf16 %v334_v16, %v332_v15  ;;  %v331_v27 = vld [vmem:[%s2256_s3 + $0x180] sm:$0xff]  ;;  %v333_v29 = vld [vmem:[%s2256_s3 + $0x190] sm:$0xff]  ;;  %v336_v36 = vld [vmem:[%s2256_s3 + $0x1a8] sm:$0xff]  ;;  %v1100_v38 = vpack.c.bf16 %v116_v24, %v114_v23 }
  0x2e   :  { %1202 = vmatpush1.bf16.msra.mxu1 %v1654_v28  ;;  %538 = vmatprep.mubr.f32.mxu1 %v1243_v3  ;;  %v338_v37 = vld [vmem:[%s2256_s3 + $0x1b8] sm:$0xff]  ;;  %v359_v40 = vld [vmem:[%s2257_s1 + $0x60] sm:$0xff]  ;;  %v1800_v41 = vpack.c.bf16 %v333_v29, %v331_v27  ;;  %v340_v53 = vld [vmem:[%s2256_s3 + $0x1c8] sm:$0xff] }
  0x2f   :  { %1087 = vmatprep.subr.bf16.mxu0 %v1086_v33  ;;  %1187 = vmatprep.subr.bf16.mxu1 %v1663_v34  ;;  %v121_v33 = vld [vmem:[%s2254_s2 + $0x1f8] sm:$0xff]  ;;  %v118_v42 = vld [vmem:[%s2254_s2 + $0x1e0] sm:$0xff]  ;;  %v1809_v48 = vpack.c.bf16 %v338_v37, %v336_v36  ;;  %v360_v57 = vld [vmem:[%s2257_s1 + $0x68] sm:$0xff] }
  0x30   :  { %v335_v49 = vld [vmem:[%s2256_s3 + $0x1a0] sm:$0xff]  ;;  %v342_v55 = vld [vmem:[%s2256_s3 + $0x1d8] sm:$0xff]  ;;  %v344_v6 = vld [vmem:[%s2256_s3 + $0x1e8] sm:$0xff] }
  0x31   :  { %1035 = vmatmul.mubr.msk.f32.gmra.mrb[18].mxu1 %vm371_vm0, %v356_v45  ;;  %1089 = vmatpush1.bf16.msra.mxu0 %v1088_v44  ;;  %v120_v44 = vld [vmem:[%s2254_s2 + $0x1f0] sm:$0xff]  ;;  %v1102_v45 = vpack.c.bf16 %v121_v33, %v119_v32  ;;  %v1832_v60 = vpack.c.bf16 %v342_v55, %v340_v53  ;;  %v1844_v5 = vld [vmem:[%s2258_s0] sm:$0xff]  ;;  %v29_v12 = vld [vmem:[%s2258_s0 + $0x18] sm:$0xff]  ;;  %v745_v32 = vlaneseq }
  0x32   :  { %1203 = vmatpush1.bf16.msra.mxu1 %v1689_v47  ;;  %544 = vmatprep.mubr.f32.mxu1 %v1243_v3  ;;  %v1104_v56 = vpack.c.bf16 %v120_v44, %v118_v42  ;;  %v361_v10 = vld [vmem:[%s2257_s1 + $0x70] sm:$0xff]  ;;  %v343_v14 = vld [vmem:[%s2256_s3 + $0x1e0] sm:$0xff] }
  0x33   :  { %1091 = vmatprep.subr.bf16.mxu0 %v1090_v51  ;;  %1188 = vmatprep.subr.bf16.mxu1 %v1698_v52  ;;  %v337_v51 = vld [vmem:[%s2256_s3 + $0x1b0] sm:$0xff]  ;;  %v30_v23 = vld [vmem:[%s2258_s0 + $0x20] sm:$0xff]  ;;  %v746_v33 = vshrl.u32 %v745_v32, 7 }
  0x34   :  { %v1829_v59 = vpack.c.bf16 %v337_v51, %v335_v49  ;;  %v345_v15 = vld [vmem:[%s2256_s3 + $0x1f0] sm:$0xff]  ;;  %v54_v24 = vld [vmem:[%s2258_s0 + $0xe0] sm:$0xff] }
  0x35   :  { %1036 = vmatmul.mubr.msk.f32.gmra.mrb[20].mxu1 %vm371_vm0, %v357_v0  ;;  %1093 = vmatpush1.bf16.msra.mxu0 %v1092_v62  ;;  %v339_v62 = vld [vmem:[%s2256_s3 + $0x1c0] sm:$0xff]  ;;  %v341_v0 = vld [vmem:[%s2256_s3 + $0x1d0] sm:$0xff]  ;;  %v747_v37 = vsub.s32 0, %v746_v33 }
  0x36   :  { %1204 = vmatpush1.bf16.msra.mxu1 %v1729_v2  ;;  %550 = vmatprep.mubr.f32.mxu1 %v1243_v3  ;;  %v1857_v11 = vpack.c.bf16 %v341_v0, %v339_v62  ;;  %v743_v44 = vld [vmem:[%s2260_s6] sm:$0x3] }
  0x37   :  { %1095 = vmatprep.subr.bf16.mxu0 %v1094_v7  ;;  %1189 = vmatprep.subr.bf16.mxu1 %v1738_v9  ;;  %v346_v7 = vld [vmem:[%s2256_s3 + $0x1f8] sm:$0xff]  ;;  %v2024_v53 = vrot.slane %v743_v44, %v747_v37 }
  0x38   :  { %v1871_v16 = vpack.c.bf16 %v346_v7, %v344_v6 }
  0x39   :  { %1037 = vmatmul.mubr.msk.f32.gmra.mrb[22].mxu1 %vm371_vm0, %v358_v20  ;;  %1097 = vmatpush1.bf16.msra.mxu0 %v1096_v19  ;;  %v362_v19 = vld [vmem:[%s2257_s1 + $0x78] sm:$0xff]  ;;  %v1882_v20 = vpack.c.bf16 %v345_v15, %v343_v14 }
  0x3a   :  { %1205 = vmatpush1.bf16.msra.mxu1 %v1765_v22  ;;  %556 = vmatprep.mubr.f32.mxu1 %v1243_v3 }
  0x3b   :  { %1099 = vmatprep.subr.bf16.mxu0 %v1098_v25  ;;  %1190 = vmatprep.subr.bf16.mxu1 %v1774_v26  ;;  %v57_v25 = vld [vmem:[%s2258_s0 + $0xf8] sm:$0xff] }
  0x3d   :  { %1038 = vmatmul.mubr.msk.f32.gmra.mrb[24].mxu1 %vm371_vm0, %v359_v40  ;;  %1101 = vmatpush1.bf16.msra.mxu0 %v1100_v38  ;;  %v742_v38 = vld [vmem:[%s2259_s5] sm:$0x3] }
  0x3e   :  { %1206 = vmatpush1.bf16.msra.mxu1 %v1800_v41  ;;  %562 = vmatprep.mubr.f32.mxu1 %v1243_v3 }
  0x3f   :  { %1103 = vmatprep.subr.bf16.mxu0 %v1102_v45  ;;  %1191 = vmatprep.subr.bf16.mxu1 %v1809_v48 }
  0x41   :  { %1039 = vmatmul.mubr.msk.f32.gmra.mrb[26].mxu1 %vm371_vm0, %v360_v57  ;;  %1105 = vmatpush1.bf16.msra.mxu0 %v1104_v56 }
  0x42   :  { %1207 = vmatpush1.bf16.msra.mxu1 %v1829_v59  ;;  %568 = vmatprep.mubr.f32.mxu1 %v1243_v3 }
  0x43   :  { %1115 = vmatprep.subr.bf16.mxu0 %v1345_v30  ;;  %1192 = vmatprep.subr.bf16.mxu1 %v1832_v60  ;;  %v28_v30 = vld [vmem:[%s2258_s0 + $0x10] sm:$0xff] }
  0x44   :  { %187 = vmatmul.mubr.f32.vlgmr.msra.gmra.mrb[0].mxu0 %v1844_v5 }
  0x45   :  { %1040 = vmatmul.mubr.msk.f32.gmra.mrb[28].mxu1 %vm371_vm0, %v361_v10  ;;  %1117 = vmatpush1.bf16.msra.mxu0 %v1368_v39  ;;  %v31_v39 = vld [vmem:[%s2258_s0 + $0x28] sm:$0xff] }
  0x46   :  { %1208 = vmatpush1.bf16.msra.mxu1 %v1857_v11  ;;  %192 = vmatprep.mubr.f32.mxu0 %v29_v12 }
  0x47   :  { %574 = vmatprep.mubr.f32.mxu1 %v1243_v3  ;;  %1119 = vmatprep.subr.bf16.mxu0 %v1377_v43  ;;  %v33_v3 = vld [vmem:[%s2258_s0 + $0x38] sm:$0xff]  ;;  %v32_v43 = vld [vmem:[%s2258_s0 + $0x30] sm:$0xff] }
  0x48   :  { %193 = vmatmul.mubr.f32.gmra.mrb[2].mxu0 %v28_v30  ;;  %1193 = vmatprep.subr.bf16.mxu1 %v1871_v16 }
  0x49   :  { %1041 = vmatmul.mubr.msk.f32.gmra.mrb[30].mxu1 %vm371_vm0, %v362_v19  ;;  %1121 = vmatpush1.bf16.msra.mxu0 %v1409_v54  ;;  %v35_v54 = vld [vmem:[%s2258_s0 + $0x48] sm:$0xff] }
  0x4a   :  { %1209 = vmatpush1.bf16.msra.mxu1 %v1882_v20  ;;  %198 = vmatprep.mubr.f32.mxu0 %v31_v39 }
  0x4b   :  { %651 = vmatprep.mubr.f32.mxu1 %v29_v12  ;;  %1123 = vmatprep.subr.bf16.mxu0 %v1418_v58  ;;  %v34_v58 = vld [vmem:[%s2258_s0 + $0x40] sm:$0xff] }
  0x4c   :  { %199 = vmatmul.mubr.f32.gmra.mrb[4].mxu0 %v30_v23 }
  0x4d   :  { %652 = vmatmul.mubr.f32.vlgmr.msra.gmra.mrb[2].mxu1 %v28_v30  ;;  %1125 = vmatpush1.bf16.msra.mxu0 %v1444_v4  ;;  %v37_v4 = vld [vmem:[%s2258_s0 + $0x58] sm:$0xff] }
  0x4e   :  { %204 = vmatprep.mubr.f32.mxu0 %v33_v3  ;;  %657 = vmatprep.mubr.f32.mxu1 %v31_v39 }
  0x4f   :  { %1127 = vmatprep.subr.bf16.mxu0 %v1453_v8  ;;  %v36_v8 = vld [vmem:[%s2258_s0 + $0x50] sm:$0xff] }
  0x50   :  { %205 = vmatmul.mubr.f32.gmra.mrb[6].mxu0 %v32_v43 }
  0x51   :  { %658 = vmatmul.mubr.f32.gmra.mrb[4].mxu1 %v30_v23  ;;  %1129 = vmatpush1.bf16.msra.mxu0 %v1479_v17  ;;  %v39_v17 = vld [vmem:[%s2258_s0 + $0x68] sm:$0xff] }
  0x52   :  { %210 = vmatprep.mubr.f32.mxu0 %v35_v54  ;;  %663 = vmatprep.mubr.f32.mxu1 %v33_v3 }
  0x53   :  { %1131 = vmatprep.subr.bf16.mxu0 %v1488_v21  ;;  %v38_v21 = vld [vmem:[%s2258_s0 + $0x60] sm:$0xff] }
  0x54   :  { %211 = vmatmul.mubr.f32.gmra.mrb[8].mxu0 %v34_v58 }
  0x55   :  { %664 = vmatmul.mubr.f32.gmra.mrb[6].mxu1 %v32_v43  ;;  %1133 = vmatpush1.bf16.msra.mxu0 %v1514_v31  ;;  %v41_v31 = vld [vmem:[%s2258_s0 + $0x78] sm:$0xff] }
  0x56   :  { %216 = vmatprep.mubr.f32.mxu0 %v37_v4  ;;  %669 = vmatprep.mubr.f32.mxu1 %v35_v54 }
  0x57   :  { %1135 = vmatprep.subr.bf16.mxu0 %v1523_v35  ;;  %v40_v35 = vld [vmem:[%s2258_s0 + $0x70] sm:$0xff] }
  0x58   :  { %217 = vmatmul.mubr.f32.gmra.mrb[10].mxu0 %v36_v8 }
  0x59   :  { %670 = vmatmul.mubr.f32.gmra.mrb[8].mxu1 %v34_v58  ;;  %1137 = vmatpush1.bf16.msra.mxu0 %v1549_v46  ;;  %v43_v46 = vld [vmem:[%s2258_s0 + $0x88] sm:$0xff] }
  0x5a   :  { %222 = vmatprep.mubr.f32.mxu0 %v39_v17  ;;  %675 = vmatprep.mubr.f32.mxu1 %v37_v4 }
  0x5b   :  { %1139 = vmatprep.subr.bf16.mxu0 %v1558_v50  ;;  %v42_v50 = vld [vmem:[%s2258_s0 + $0x80] sm:$0xff] }
  0x5c   :  { %223 = vmatmul.mubr.f32.gmra.mrb[12].mxu0 %v38_v21 }
  0x5d   :  { %676 = vmatmul.mubr.f32.gmra.mrb[10].mxu1 %v36_v8  ;;  %1141 = vmatpush1.bf16.msra.mxu0 %v1584_v61  ;;  %v45_v61 = vld [vmem:[%s2258_s0 + $0x98] sm:$0xff] }
  0x5e   :  { %228 = vmatprep.mubr.f32.mxu0 %v41_v31  ;;  %681 = vmatprep.mubr.f32.mxu1 %v39_v17 }
  0x5f   :  { %1143 = vmatprep.subr.bf16.mxu0 %v1593_v1  ;;  %v44_v1 = vld [vmem:[%s2258_s0 + $0x90] sm:$0xff] }
  0x60   :  { %229 = vmatmul.mubr.f32.gmra.mrb[14].mxu0 %v40_v35 }
  0x61   :  { %682 = vmatmul.mubr.f32.gmra.mrb[12].mxu1 %v38_v21  ;;  %1145 = vmatpush1.bf16.msra.mxu0 %v1619_v13  ;;  %v47_v13 = vld [vmem:[%s2258_s0 + $0xa8] sm:$0xff] }
  0x62   :  { %234 = vmatprep.mubr.f32.mxu0 %v43_v46  ;;  %687 = vmatprep.mubr.f32.mxu1 %v41_v31 }
  0x63   :  { %1147 = vmatprep.subr.bf16.mxu0 %v1628_v18  ;;  %v46_v18 = vld [vmem:[%s2258_s0 + $0xa0] sm:$0xff] }
  0x64   :  { %235 = vmatmul.mubr.f32.gmra.mrb[16].mxu0 %v42_v50 }
  0x65   :  { %688 = vmatmul.mubr.f32.gmra.mrb[14].mxu1 %v40_v35  ;;  %1149 = vmatpush1.bf16.msra.mxu0 %v1654_v28  ;;  %v49_v28 = vld [vmem:[%s2258_s0 + $0xb8] sm:$0xff] }
  0x66   :  { %240 = vmatprep.mubr.f32.mxu0 %v45_v61  ;;  %693 = vmatprep.mubr.f32.mxu1 %v43_v46 }
  0x67   :  { %1151 = vmatprep.subr.bf16.mxu0 %v1663_v34  ;;  %v48_v34 = vld [vmem:[%s2258_s0 + $0xb0] sm:$0xff] }
  0x68   :  { %241 = vmatmul.mubr.f32.gmra.mrb[18].mxu0 %v44_v1 }
  0x69   :  { %694 = vmatmul.mubr.f32.gmra.mrb[16].mxu1 %v42_v50  ;;  %1153 = vmatpush1.bf16.msra.mxu0 %v1689_v47  ;;  %v51_v47 = vld [vmem:[%s2258_s0 + $0xc8] sm:$0xff] }
  0x6a   :  { %246 = vmatprep.mubr.f32.mxu0 %v47_v13  ;;  %699 = vmatprep.mubr.f32.mxu1 %v45_v61 }
  0x6b   :  { %1155 = vmatprep.subr.bf16.mxu0 %v1698_v52  ;;  %v50_v52 = vld [vmem:[%s2258_s0 + $0xc0] sm:$0xff] }
  0x6c   :  { %247 = vmatmul.mubr.f32.gmra.mrb[20].mxu0 %v46_v18 }
  0x6d   :  { %700 = vmatmul.mubr.f32.gmra.mrb[18].mxu1 %v44_v1  ;;  %1157 = vmatpush1.bf16.msra.mxu0 %v1729_v2  ;;  %v53_v2 = vld [vmem:[%s2258_s0 + $0xd8] sm:$0xff] }
  0x6e   :  { %252 = vmatprep.mubr.f32.mxu0 %v49_v28  ;;  %705 = vmatprep.mubr.f32.mxu1 %v47_v13 }
  0x6f   :  { %1159 = vmatprep.subr.bf16.mxu0 %v1738_v9  ;;  %v52_v9 = vld [vmem:[%s2258_s0 + $0xd0] sm:$0xff] }
  0x70   :  { %253 = vmatmul.mubr.f32.gmra.mrb[22].mxu0 %v48_v34 }
  0x71   :  { %706 = vmatmul.mubr.f32.gmra.mrb[20].mxu1 %v46_v18  ;;  %1161 = vmatpush1.bf16.msra.mxu0 %v1765_v22  ;;  %v55_v22 = vld [vmem:[%s2258_s0 + $0xe8] sm:$0xff] }
  0x72   :  { %258 = vmatprep.mubr.f32.mxu0 %v51_v47  ;;  %711 = vmatprep.mubr.f32.mxu1 %v49_v28 }
  0x73   :  { %1163 = vmatprep.subr.bf16.mxu0 %v1774_v26  ;;  %v56_v26 = vld [vmem:[%s2258_s0 + $0xf0] sm:$0xff] }
  0x74   :  { %259 = vmatmul.mubr.f32.gmra.mrb[24].mxu0 %v50_v52 }
  0x75   :  { %712 = vmatmul.mubr.f32.gmra.mrb[22].mxu1 %v48_v34  ;;  %1165 = vmatpush1.bf16.msra.mxu0 %v1800_v41  ;;  %v2015_v41 = vrot.slane %v742_v38, %v747_v37 }
  0x76   :  { %264 = vmatprep.mubr.f32.mxu0 %v53_v2  ;;  %717 = vmatprep.mubr.f32.mxu1 %v51_v47 }
  0x77   :  { %1167 = vmatprep.subr.bf16.mxu0 %v1809_v48 }
  0x78   :  { %265 = vmatmul.mubr.f32.gmra.mrb[26].mxu0 %v52_v9 }
  0x79   :  { %718 = vmatmul.mubr.f32.gmra.mrb[24].mxu1 %v50_v52  ;;  %1169 = vmatpush1.bf16.msra.mxu0 %v1829_v59 }
  0x7a   :  { %270 = vmatprep.mubr.f32.mxu0 %v55_v22  ;;  %723 = vmatprep.mubr.f32.mxu1 %v53_v2 }
  0x7b   :  { %1171 = vmatprep.subr.bf16.mxu0 %v1832_v60 }
  0x7c   :  { %271 = vmatmul.mubr.f32.gmra.mrb[28].mxu0 %v54_v24 }
  0x7d   :  { %724 = vmatmul.mubr.f32.gmra.mrb[26].mxu1 %v52_v9  ;;  %1173 = vmatpush1.bf16.msra.mxu0 %v1857_v11 }
  0x7e   :  { %276 = vmatprep.mubr.f32.mxu0 %v57_v25  ;;  %729 = vmatprep.mubr.f32.mxu1 %v55_v22 }
  0x7f   :  { %1175 = vmatprep.subr.bf16.mxu0 %v1871_v16 }
  0x80   :  { %277 = vmatmul.mubr.f32.gmra.mrb[30].mxu0 %v56_v26 }
  0x81   :  { %730 = vmatmul.mubr.f32.gmra.mrb[28].mxu1 %v54_v24  ;;  %1177 = vmatpush1.bf16.msra.mxu0 %v1882_v20 }
  0x82   :  { %645 = vmatprep.mubr.f32.mxu0 %v1722_v63  ;;  %735 = vmatprep.mubr.f32.mxu1 %v57_v25  ;;  %v751_v63 = vsub.s32 1, %v746_v33 }
  0x84   :  { %646 = vmatmul.mubr.f32.vlgmr.msra.gmra.mrb[32].mxu0 %v1844_v5  ;;  %v2020_v45 = vrot.slane %v742_v38, %v751_v63  ;;  %v2026_v56 = vrot.slane %v743_v44, %v751_v63 }
  0x85   :  { %736 = vmatmul.mubr.f32.gmra.mrb[30].mxu1 %v56_v26 }
  0xe0   :  { %v2004_v27 = vpop.f32.mrb[0].mxu1 }
  0xe1   :  { %v2006_v29 = vpop.f32.mrb[1].mxu1 }
 0x117   :  { %v2008_v36 = vpop.f32.mrb[0].mxu0 }
 0x118   :  { %v2013_v40 = vpop.f32.mrb[1].mxu0 }
 0x11b   :  { %v194_v42 = vpop.f32.mrb[2].mxu0 }
 0x11c   :  { %v196_v48 = vpop.f32.mrb[3].mxu0  ;;  %v757_v49 = vmul.f32 %v2015_v41, %v194_v42 }
 0x11d   :  { %v758_v51 = vmul.f32 %v2020_v45, %v196_v48 }
 0x11e   :  { %v800_v62 = vadd.f32 %v2024_v53, %v757_v49 }
 0x11f   :  { %v200_v55 = vpop.f32.mrb[4].mxu0  ;;  %v801_v7 = vadd.f32 %v2026_v56, %v758_v51 }
 0x120   :  { %v759_v57 = vmul.f32 %v2015_v41, %v200_v55  ;;  %v653_v59 = vpop.f32.mrb[2].mxu1  ;;  %v202_v60 = vpop.f32.mrb[5].mxu0  ;;  %v832_v20 = vmax.f32 %v800_v62, 0.0 }
 0x121   :  { %v864_v0 = vmul.f32 %v2015_v41, %v653_v59  ;;  %v760_v5 = vmul.f32 %v2020_v45, %v202_v60  ;;  %v655_v6 = vpop.f32.mrb[3].mxu1  ;;  %v833_v54 = vmax.f32 %v801_v7, 0.0 }
 0x122   :  { %v865_v10 = vmul.f32 %v2020_v45, %v655_v6  ;;  %v802_v14 = vadd.f32 %v2024_v53, %v759_v57 }
 0x123   :  { %v896_v11 = vadd.f32 %v864_v0, %v2024_v53  ;;  %v206_v12 = vpop.f32.mrb[6].mxu0  ;;  %v803_v23 = vadd.f32 %v2026_v56, %v760_v5 }
 0x124   :  { %v897_v15 = vadd.f32 %v865_v10, %v2026_v56  ;;  %v761_v16 = vmul.f32 %v2015_v41, %v206_v12  ;;  %v659_v30 = vpop.f32.mrb[4].mxu1  ;;  %v208_v19 = vpop.f32.mrb[7].mxu0  ;;  %v834_v35 = vmax.f32 %v802_v14, 0.0 }
 0x125   :  { %v928_v39 = vmax.f32 %v896_v11, 0.0  ;;  %v866_v3 = vmul.f32 %v2015_v41, %v659_v30  ;;  %v661_v43 = vpop.f32.mrb[5].mxu1  ;;  %v762_v4 = vmul.f32 %v2020_v45, %v208_v19  ;;  %v835_v18 = vmax.f32 %v803_v23, 0.0 }
 0x126   :  { %v929_v58 = vmax.f32 %v897_v15, 0.0  ;;  %v867_v8 = vmul.f32 %v2020_v45, %v661_v43  ;;  %v804_v50 = vadd.f32 %v2024_v53, %v761_v16 }
 0x127   :  { %v960_v17 = vmax.f32 %v832_v20, %v928_v39  ;;  %v898_v21 = vadd.f32 %v866_v3, %v2024_v53  ;;  %v212_v31 = vpop.f32.mrb[8].mxu0  ;;  %v805_v2 = vadd.f32 %v2026_v56, %v762_v4 }
 0x128   :  { %v961_v46 = vmax.f32 %v833_v54, %v929_v58  ;;  %v899_v61 = vadd.f32 %v867_v8, %v2026_v56  ;;  %v665_v1 = vpop.f32.mrb[6].mxu1  ;;  %v214_v13 = vpop.f32.mrb[9].mxu0  ;;  %v763_v34 = vmul.f32 %v2015_v41, %v212_v31  ;;  %v836_v33 = vmax.f32 %v804_v50, 0.0 }
 0x129   :  { %992 = vst [vmem:[%s2261_s7 + $0x10] sm:$0xff] %v960_v17  ;;  %v930_v28 = vmax.f32 %v898_v21, 0.0  ;;  %v868_v47 = vmul.f32 %v2015_v41, %v665_v1  ;;  %v667_v52 = vpop.f32.mrb[7].mxu1  ;;  %v764_v22 = vmul.f32 %v2020_v45, %v214_v13  ;;  %v837_v59 = vmax.f32 %v805_v2, 0.0 }
 0x12a   :  { %993 = vst [vmem:[%s2261_s7 + $0x18] sm:$0xff] %v961_v46  ;;  %v931_v9 = vmax.f32 %v899_v61, 0.0  ;;  %v869_v24 = vmul.f32 %v2020_v45, %v667_v52  ;;  %v806_v48 = vadd.f32 %v2024_v53, %v763_v34 }
 0x12b   :  { %v962_v25 = vmax.f32 %v834_v35, %v930_v28  ;;  %v900_v26 = vadd.f32 %v868_v47, %v2024_v53  ;;  %v218_v32 = vpop.f32.mrb[10].mxu0  ;;  %v807_v60 = vadd.f32 %v2026_v56, %v764_v22 }
 0x12c   :  { %v963_v37 = vmax.f32 %v835_v18, %v931_v9  ;;  %v901_v38 = vadd.f32 %v869_v24, %v2026_v56  ;;  %v765_v63 = vmul.f32 %v2015_v41, %v218_v32  ;;  %v671_v42 = vpop.f32.mrb[8].mxu1  ;;  %v220_v44 = vpop.f32.mrb[11].mxu0  ;;  %v838_v30 = vmax.f32 %v806_v48, 0.0 }
 0x12d   :  { %994 = vst [vmem:[%s2261_s7 + $0x20] sm:$0xff] %v962_v25  ;;  %v932_v49 = vmax.f32 %v900_v26, 0.0  ;;  %v870_v51 = vmul.f32 %v2015_v41, %v671_v42  ;;  %v766_v55 = vmul.f32 %v2020_v45, %v220_v44  ;;  %v673_v57 = vpop.f32.mrb[9].mxu1  ;;  %v839_v3 = vmax.f32 %v807_v60, 0.0 }
 0x12e   :  { %995 = vst [vmem:[%s2261_s7 + $0x28] sm:$0xff] %v963_v37  ;;  %v933_v62 = vmax.f32 %v901_v38, 0.0  ;;  %v871_v0 = vmul.f32 %v2020_v45, %v673_v57  ;;  %v808_v11 = vadd.f32 %v2024_v53, %v765_v63 }
 0x12f   :  { %v964_v5 = vmax.f32 %v836_v33, %v932_v49  ;;  %v902_v6 = vadd.f32 %v870_v51, %v2024_v53  ;;  %v224_v7 = vpop.f32.mrb[12].mxu0  ;;  %v809_v20 = vadd.f32 %v2026_v56, %v766_v55 }
 0x130   :  { %v965_v10 = vmax.f32 %v837_v59, %v933_v62  ;;  %v903_v12 = vadd.f32 %v871_v0, %v2026_v56  ;;  %v767_v14 = vmul.f32 %v2015_v41, %v224_v7  ;;  %v677_v15 = vpop.f32.mrb[10].mxu1  ;;  %v226_v16 = vpop.f32.mrb[13].mxu0  ;;  %v840_v21 = vmax.f32 %v808_v11, 0.0 }
 0x131   :  { %996 = vst [vmem:[%s2261_s7 + $0x30] sm:$0xff] %v964_v5  ;;  %v934_v19 = vmax.f32 %v902_v6, 0.0  ;;  %v872_v39 = vmul.f32 %v2015_v41, %v677_v15  ;;  %v679_v23 = vpop.f32.mrb[11].mxu1  ;;  %v768_v54 = vmul.f32 %v2020_v45, %v226_v16  ;;  %v841_v1 = vmax.f32 %v809_v20, 0.0 }
 0x132   :  { %997 = vst [vmem:[%s2261_s7 + $0x38] sm:$0xff] %v965_v10  ;;  %v935_v43 = vmax.f32 %v903_v12, 0.0  ;;  %v873_v58 = vmul.f32 %v2020_v45, %v679_v23  ;;  %v810_v35 = vadd.f32 %v2024_v53, %v767_v14 }
 0x133   :  { %v966_v4 = vmax.f32 %v838_v30, %v934_v19  ;;  %v904_v8 = vadd.f32 %v872_v39, %v2024_v53  ;;  %v230_v17 = vpop.f32.mrb[14].mxu0  ;;  %v811_v47 = vadd.f32 %v2026_v56, %v768_v54 }
 0x134   :  { %v967_v31 = vmax.f32 %v839_v3, %v935_v43  ;;  %v905_v46 = vadd.f32 %v873_v58, %v2026_v56  ;;  %v683_v50 = vpop.f32.mrb[12].mxu1  ;;  %v232_v61 = vpop.f32.mrb[15].mxu0  ;;  %v769_v18 = vmul.f32 %v2015_v41, %v230_v17  ;;  %v842_v26 = vmax.f32 %v810_v35, 0.0 }
 0x135   :  { %998 = vst [vmem:[%s2261_s7 + $0x40] sm:$0xff] %v966_v4  ;;  %v936_v13 = vmax.f32 %v904_v8, 0.0  ;;  %v874_v28 = vmul.f32 %v2015_v41, %v683_v50  ;;  %v685_v34 = vpop.f32.mrb[13].mxu1  ;;  %v770_v2 = vmul.f32 %v2020_v45, %v232_v61  ;;  %v843_v55 = vmax.f32 %v811_v47, 0.0 }
 0x136   :  { %999 = vst [vmem:[%s2261_s7 + $0x48] sm:$0xff] %v967_v31  ;;  %v937_v52 = vmax.f32 %v905_v46, 0.0  ;;  %v875_v9 = vmul.f32 %v2020_v45, %v685_v34  ;;  %v812_v42 = vadd.f32 %v2024_v53, %v769_v18 }
 0x137   :  { %v968_v22 = vmax.f32 %v840_v21, %v936_v13  ;;  %v906_v24 = vadd.f32 %v874_v28, %v2024_v53  ;;  %v236_v25 = vpop.f32.mrb[16].mxu0  ;;  %v813_v57 = vadd.f32 %v2026_v56, %v770_v2 }
 0x138   :  { %v969_v32 = vmax.f32 %v841_v1, %v937_v52  ;;  %v907_v33 = vadd.f32 %v875_v9, %v2026_v56  ;;  %v771_v37 = vmul.f32 %v2015_v41, %v236_v25  ;;  %v689_v38 = vpop.f32.mrb[14].mxu1  ;;  %v238_v63 = vpop.f32.mrb[17].mxu0  ;;  %v844_v15 = vmax.f32 %v812_v42, 0.0 }
 0x139   :  { %1000 = vst [vmem:[%s2261_s7 + $0x50] sm:$0xff] %v968_v22  ;;  %v938_v44 = vmax.f32 %v906_v24, 0.0  ;;  %v876_v48 = vmul.f32 %v2015_v41, %v689_v38  ;;  %v772_v49 = vmul.f32 %v2020_v45, %v238_v63  ;;  %v691_v51 = vpop.f32.mrb[15].mxu1  ;;  %v845_v39 = vmax.f32 %v813_v57, 0.0 }
 0x13a   :  { %1001 = vst [vmem:[%s2261_s7 + $0x58] sm:$0xff] %v969_v32  ;;  %v939_v59 = vmax.f32 %v907_v33, 0.0  ;;  %v877_v60 = vmul.f32 %v2020_v45, %v691_v51  ;;  %v814_v7 = vadd.f32 %v2024_v53, %v771_v37 }
 0x13b   :  { %v970_v62 = vmax.f32 %v842_v26, %v938_v44  ;;  %v908_v0 = vadd.f32 %v876_v48, %v2024_v53  ;;  %v242_v5 = vpop.f32.mrb[18].mxu0  ;;  %v815_v30 = vadd.f32 %v2026_v56, %v772_v49 }
 0x13c   :  { %v971_v6 = vmax.f32 %v843_v55, %v939_v59  ;;  %v909_v10 = vadd.f32 %v877_v60, %v2026_v56  ;;  %v773_v11 = vmul.f32 %v2015_v41, %v242_v5  ;;  %v695_v12 = vpop.f32.mrb[16].mxu1  ;;  %v244_v14 = vpop.f32.mrb[19].mxu0  ;;  %v846_v8 = vmax.f32 %v814_v7, 0.0 }
 0x13d   :  { %1002 = vst [vmem:[%s2261_s7 + $0x60] sm:$0xff] %v970_v62  ;;  %v940_v16 = vmax.f32 %v908_v0, 0.0  ;;  %v878_v19 = vmul.f32 %v2015_v41, %v695_v12  ;;  %v697_v20 = vpop.f32.mrb[17].mxu1  ;;  %v774_v3 = vmul.f32 %v2020_v45, %v244_v14  ;;  %v847_v50 = vmax.f32 %v815_v30, 0.0 }
 0x13e   :  { %1003 = vst [vmem:[%s2261_s7 + $0x68] sm:$0xff] %v971_v6  ;;  %v941_v23 = vmax.f32 %v909_v10, 0.0  ;;  %v879_v43 = vmul.f32 %v2020_v45, %v697_v20  ;;  %v816_v21 = vadd.f32 %v2024_v53, %v773_v11 }
 0x13f   :  { %v972_v54 = vmax.f32 %v844_v15, %v940_v16  ;;  %v910_v58 = vadd.f32 %v878_v19, %v2024_v53  ;;  %v248_v4 = vpop.f32.mrb[20].mxu0  ;;  %v817_v28 = vadd.f32 %v2026_v56, %v774_v3 }
 0x140   :  { %v973_v17 = vmax.f32 %v845_v39, %v941_v23  ;;  %v911_v31 = vadd.f32 %v879_v43, %v2026_v56  ;;  %v701_v35 = vpop.f32.mrb[18].mxu1  ;;  %v250_v46 = vpop.f32.mrb[21].mxu0  ;;  %v775_v1 = vmul.f32 %v2015_v41, %v248_v4  ;;  %v848_v24 = vmax.f32 %v816_v21, 0.0 }
 0x141   :  { %1004 = vst [vmem:[%s2261_s7 + $0x70] sm:$0xff] %v972_v54  ;;  %v942_v61 = vmax.f32 %v910_v58, 0.0  ;;  %v880_v13 = vmul.f32 %v2015_v41, %v701_v35  ;;  %v703_v18 = vpop.f32.mrb[19].mxu1  ;;  %v776_v47 = vmul.f32 %v2020_v45, %v250_v46  ;;  %v849_v49 = vmax.f32 %v817_v28, 0.0 }
 0x142   :  { %1005 = vst [vmem:[%s2261_s7 + $0x78] sm:$0xff] %v973_v17  ;;  %v943_v34 = vmax.f32 %v911_v31, 0.0  ;;  %v881_v52 = vmul.f32 %v2020_v45, %v703_v18  ;;  %v818_v38 = vadd.f32 %v2024_v53, %v775_v1 }
 0x143   :  { %v974_v2 = vmax.f32 %v846_v8, %v942_v61  ;;  %v912_v9 = vadd.f32 %v880_v13, %v2024_v53  ;;  %v254_v22 = vpop.f32.mrb[22].mxu0  ;;  %v819_v51 = vadd.f32 %v2026_v56, %v776_v47 }
 0x144   :  { %v975_v25 = vmax.f32 %v847_v50, %v943_v34  ;;  %v913_v26 = vadd.f32 %v881_v52, %v2026_v56  ;;  %v777_v32 = vmul.f32 %v2015_v41, %v254_v22  ;;  %v707_v33 = vpop.f32.mrb[20].mxu1  ;;  %v256_v37 = vpop.f32.mrb[23].mxu0  ;;  %v850_v12 = vmax.f32 %v818_v38, 0.0 }
 0x145   :  { %1006 = vst [vmem:[%s2261_s7 + $0x80] sm:$0xff] %v974_v2  ;;  %v944_v63 = vmax.f32 %v912_v9, 0.0  ;;  %v882_v42 = vmul.f32 %v2015_v41, %v707_v33  ;;  %v778_v44 = vmul.f32 %v2020_v45, %v256_v37  ;;  %v709_v48 = vpop.f32.mrb[21].mxu1  ;;  %v851_v19 = vmax.f32 %v819_v51, 0.0 }
 0x146   :  { %1007 = vst [vmem:[%s2261_s7 + $0x88] sm:$0xff] %v975_v25  ;;  %v945_v55 = vmax.f32 %v913_v26, 0.0  ;;  %v883_v57 = vmul.f32 %v2020_v45, %v709_v48  ;;  %v820_v5 = vadd.f32 %v2024_v53, %v777_v32 }
 0x147   :  { %v976_v59 = vmax.f32 %v848_v24, %v944_v63  ;;  %v914_v60 = vadd.f32 %v882_v42, %v2024_v53  ;;  %v260_v62 = vpop.f32.mrb[24].mxu0  ;;  %v821_v15 = vadd.f32 %v2026_v56, %v778_v44 }
 0x148   :  { %v977_v0 = vmax.f32 %v849_v49, %v945_v55  ;;  %v915_v6 = vadd.f32 %v883_v57, %v2026_v56  ;;  %v779_v7 = vmul.f32 %v2015_v41, %v260_v62  ;;  %v713_v10 = vpop.f32.mrb[22].mxu1  ;;  %v262_v11 = vpop.f32.mrb[25].mxu0  ;;  %v852_v58 = vmax.f32 %v820_v5, 0.0 }
 0x149   :  { %1008 = vst [vmem:[%s2261_s7 + $0x90] sm:$0xff] %v976_v59  ;;  %v946_v14 = vmax.f32 %v914_v60, 0.0  ;;  %v884_v16 = vmul.f32 %v2015_v41, %v713_v10  ;;  %v715_v30 = vpop.f32.mrb[23].mxu1  ;;  %v780_v39 = vmul.f32 %v2020_v45, %v262_v11  ;;  %v853_v35 = vmax.f32 %v821_v15, 0.0 }
 0x14a   :  { %1009 = vst [vmem:[%s2261_s7 + $0x98] sm:$0xff] %v977_v0  ;;  %v947_v20 = vmax.f32 %v915_v6, 0.0  ;;  %v885_v23 = vmul.f32 %v2020_v45, %v715_v30  ;;  %v822_v8 = vadd.f32 %v2024_v53, %v779_v7  ;;  %v755_v55 = vmul.f32 %v2015_v41, %v2008_v36 }
 0x14b   :  { %v978_v3 = vmax.f32 %v850_v12, %v946_v14  ;;  %v916_v43 = vadd.f32 %v884_v16, %v2024_v53  ;;  %v266_v54 = vpop.f32.mrb[26].mxu0  ;;  %v823_v13 = vadd.f32 %v2026_v56, %v780_v39  ;;  %v756_v0 = vmul.f32 %v2020_v45, %v2013_v40 }
 0x14c   :  { %v979_v4 = vmax.f32 %v851_v19, %v947_v20  ;;  %v917_v17 = vadd.f32 %v885_v23, %v2026_v56  ;;  %v719_v21 = vpop.f32.mrb[24].mxu1  ;;  %v268_v31 = vpop.f32.mrb[27].mxu0  ;;  %v781_v50 = vmul.f32 %v2015_v41, %v266_v54  ;;  %v854_v9 = vmax.f32 %v822_v8, 0.0 }
 0x14d   :  { %1010 = vst [vmem:[%s2261_s7 + $0xa0] sm:$0xff] %v978_v3  ;;  %v948_v46 = vmax.f32 %v916_v43, 0.0  ;;  %v886_v61 = vmul.f32 %v2015_v41, %v719_v21  ;;  %v721_v1 = vpop.f32.mrb[25].mxu1  ;;  %v782_v28 = vmul.f32 %v2020_v45, %v268_v31  ;;  %v855_v44 = vmax.f32 %v823_v13, 0.0 }
 0x14e   :  { %1011 = vst [vmem:[%s2261_s7 + $0xa8] sm:$0xff] %v979_v4  ;;  %v949_v18 = vmax.f32 %v917_v17, 0.0  ;;  %v887_v34 = vmul.f32 %v2020_v45, %v721_v1  ;;  %v824_v33 = vadd.f32 %v2024_v53, %v781_v50  ;;  %v798_v39 = vadd.f32 %v2024_v53, %v755_v55 }
 0x14f   :  { %v980_v47 = vmax.f32 %v852_v58, %v948_v46  ;;  %v918_v52 = vadd.f32 %v886_v61, %v2024_v53  ;;  %v272_v2 = vpop.f32.mrb[28].mxu0  ;;  %v825_v48 = vadd.f32 %v2026_v56, %v782_v28 }
 0x150   :  { %v981_v22 = vmax.f32 %v853_v35, %v949_v18  ;;  %v919_v24 = vadd.f32 %v887_v34, %v2026_v56  ;;  %v783_v25 = vmul.f32 %v2015_v41, %v272_v2  ;;  %v725_v26 = vpop.f32.mrb[26].mxu1  ;;  %v274_v32 = vpop.f32.mrb[29].mxu0  ;;  %v856_v12 = vmax.f32 %v824_v33, 0.0 }
 0x151   :  { %1012 = vst [vmem:[%s2261_s7 + $0xb0] sm:$0xff] %v980_v47  ;;  %v950_v37 = vmax.f32 %v918_v52, 0.0  ;;  %v888_v38 = vmul.f32 %v2015_v41, %v725_v26  ;;  %v784_v63 = vmul.f32 %v2020_v45, %v274_v32  ;;  %v727_v42 = vpop.f32.mrb[27].mxu1  ;;  %v857_v30 = vmax.f32 %v825_v48, 0.0 }
 0x152   :  { %1013 = vst [vmem:[%s2261_s7 + $0xb8] sm:$0xff] %v981_v22  ;;  %v951_v49 = vmax.f32 %v919_v24, 0.0  ;;  %v889_v51 = vmul.f32 %v2020_v45, %v727_v42  ;;  %v826_v59 = vadd.f32 %v2024_v53, %v783_v25  ;;  %v799_v34 = vadd.f32 %v2026_v56, %v756_v0 }
 0x153   :  { %v982_v57 = vmax.f32 %v854_v9, %v950_v37  ;;  %v920_v60 = vadd.f32 %v888_v38, %v2024_v53  ;;  %v278_v62 = vpop.f32.mrb[30].mxu0  ;;  %v827_v6 = vadd.f32 %v2026_v56, %v784_v63  ;;  %v830_v26 = vmax.f32 %v798_v39, 0.0 }
 0x154   :  { %v983_v5 = vmax.f32 %v855_v44, %v951_v49  ;;  %v921_v7 = vadd.f32 %v889_v51, %v2026_v56  ;;  %v731_v10 = vpop.f32.mrb[28].mxu1  ;;  %v280_v11 = vpop.f32.mrb[31].mxu0  ;;  %v785_v14 = vmul.f32 %v2015_v41, %v278_v62  ;;  %v858_v23 = vmax.f32 %v826_v59, 0.0 }
 0x155   :  { %1014 = vst [vmem:[%s2261_s7 + $0xc0] sm:$0xff] %v982_v57  ;;  %v952_v36 = vmax.f32 %v920_v60, 0.0  ;;  %v890_v15 = vmul.f32 %v2015_v41, %v731_v10  ;;  %v733_v16 = vpop.f32.mrb[29].mxu1  ;;  %v786_v19 = vmul.f32 %v2020_v45, %v280_v11  ;;  %v859_v58 = vmax.f32 %v827_v6, 0.0 }
 0x156   :  { %1015 = vst [vmem:[%s2261_s7 + $0xc8] sm:$0xff] %v983_v5  ;;  %v953_v40 = vmax.f32 %v921_v7, 0.0  ;;  %v891_v20 = vmul.f32 %v2020_v45, %v733_v16  ;;  %v828_v35 = vadd.f32 %v2024_v53, %v785_v14  ;;  %v831_v37 = vmax.f32 %v799_v34, 0.0 }
 0x157   :  { %v984_v3 = vmax.f32 %v856_v12, %v952_v36  ;;  %v922_v43 = vadd.f32 %v890_v15, %v2024_v53  ;;  %v647_v54 = vpop.f32.mrb[32].mxu0 }
 0x158   :  { %v985_v4 = vmax.f32 %v857_v30, %v953_v40  ;;  %v923_v8 = vadd.f32 %v891_v20, %v2026_v56  ;;  %v648_v17 = vadd.f32 %v647_v54, %v2004_v27  ;;  %v737_v21 = vpop.f32.mrb[30].mxu1  ;;  %v649_v31 = vpop.f32.mrb[33].mxu0  ;;  %v829_v27 = vadd.f32 %v2026_v56, %v786_v19 }
 0x159   :  { %1016 = vst [vmem:[%s2261_s7 + $0xd0] sm:$0xff] %v984_v3  ;;  %v954_v46 = vmax.f32 %v922_v43, 0.0  ;;  %v892_v50 = vmul.f32 %v2015_v41, %v737_v21  ;;  %v650_v61 = vadd.f32 %v649_v31, %v2006_v29  ;;  %v739_v1 = vpop.f32.mrb[31].mxu1  ;;  %v860_v24 = vmax.f32 %v828_v35, 0.0 }
 0x15a   :  { %1017 = vst [vmem:[%s2261_s7 + $0xd8] sm:$0xff] %v985_v4  ;;  %v955_v13 = vmax.f32 %v923_v8, 0.0  ;;  %v862_v18 = vmul.f32 %v2015_v41, %v648_v17  ;;  %v893_v28 = vmul.f32 %v2020_v45, %v739_v1  ;;  %v861_v32 = vmax.f32 %v829_v27, 0.0 }
 0x15b   :  { %v986_v47 = vmax.f32 %v858_v23, %v954_v46  ;;  %v924_v52 = vadd.f32 %v892_v50, %v2024_v53  ;;  %v863_v2 = vmul.f32 %v2020_v45, %v650_v61 }
 0x15c   :  { %v987_v29 = vmax.f32 %v859_v58, %v955_v13  ;;  %v894_v9 = vadd.f32 %v862_v18, %v2024_v53  ;;  %v925_v22 = vadd.f32 %v893_v28, %v2026_v56 }
 0x15d   :  { %1018 = vst [vmem:[%s2261_s7 + $0xe0] sm:$0xff] %v986_v47  ;;  %v956_v41 = vmax.f32 %v924_v52, 0.0  ;;  %v895_v25 = vadd.f32 %v863_v2, %v2026_v56 }
 0x15e   :  { %1019 = vst [vmem:[%s2261_s7 + $0xe8] sm:$0xff] %v987_v29  ;;  %v926_v45 = vmax.f32 %v894_v9, 0.0  ;;  %v957_v33 = vmax.f32 %v925_v22, 0.0 }
 0x15f   :  { %v988_v53 = vmax.f32 %v860_v24, %v956_v41  ;;  %v927_v38 = vmax.f32 %v895_v25, 0.0 }
 0x160   :  { %v958_v63 = vmax.f32 %v830_v26, %v926_v45  ;;  %v989_v42 = vmax.f32 %v861_v32, %v957_v33 }
 0x161   :  { %1020 = vst [vmem:[%s2261_s7 + $0xf0] sm:$0xff] %v988_v53  ;;  %v959_v44 = vmax.f32 %v831_v37, %v927_v38 }
 0x162   :  { %990 = vst [vmem:[%s2261_s7] sm:$0xff] %v958_v63  ;;  %1021 = vst [vmem:[%s2261_s7 + $0xf8] sm:$0xff] %v989_v42 }
 0x163   :  { %991 = vst [vmem:[%s2261_s7 + $0x8] sm:$0xff] %v959_v44 }

// kernel: explainable_nn_forward.7
= control target key start
LH: loop header
LB: loop body
LE: loop exit
PB: predicated region body
PF: predicated region fallthrough
CT: control target
= control target key end

     0   :  { %v1259_v3 = vmov 0.0   ;;  %vm379_vm0 = vcmask 523264   ;;  %s2330_s2 = inlined_call_operand.vmem [shape: f32[256,256], index: 2, kind: input, shape index: {}]   ;;  %s2331_s4 = inlined_call_operand.vmem [shape: f32[64,256], index: 4, kind: input, shape index: {}]   ;;  %s2332_s3 = inlined_call_operand.vmem [shape: f32[256,256], index: 3, kind: input, shape index: {}]   ;;  %s2333_s1 = inlined_call_operand.vmem [shape: f32[128,64], index: 1, kind: input, shape index: {}]   ;;  %s2334_s0 = inlined_call_operand.vmem [shape: f32[128,256], index: 0, kind: input, shape index: {}]   ;;  %s2335_s5 = inlined_call_operand.vmem [shape: f32[1,256], index: 5, kind: input, shape index: {}]   ;;  %s2336_s6 = inlined_call_operand.vmem [shape: f32[1,256], index: 6, kind: input, shape index: {}]   ;;  %s2337_s7 = inlined_call_operand.vmem [shape: f32[128,256], index: 7, kind: output, shape index: {}]  }
   0x1   :  { %v59_v0 = vld [vmem:[%s2330_s2 + $0x8] sm:$0xff]  ;;  %v61_v1 = vld [vmem:[%s2330_s2 + $0x18] sm:$0xff]  ;;  %492 = vmatprep.mubr.f32.mxu1 %v1259_v3  ;;  %v58_v6 = vld [vmem:[%s2330_s2] sm:$0xff] }
   0x2   :  { %v364_v2 = vld [vmem:[%s2331_s4 + $0x8] sm:$0xff]  ;;  %v1050_v4 = vpack.c.bf16 %v61_v1, %v59_v0  ;;  %v366_v5 = vld [vmem:[%s2331_s4 + $0x18] sm:$0xff]  ;;  %v60_v7 = vld [vmem:[%s2330_s2 + $0x10] sm:$0xff] }
   0x3   :  { %v1114_v8 = vpack.c.bf16 %v366_v5, %v364_v2  ;;  %v1052_v9 = vpack.c.bf16 %v60_v7, %v58_v6  ;;  %v363_v10 = vld [vmem:[%s2331_s4] sm:$0xff]  ;;  %v365_v11 = vld [vmem:[%s2331_s4 + $0x10] sm:$0xff]  ;;  %v63_v12 = vld [vmem:[%s2330_s2 + $0x28] sm:$0xff] }
   0x4   :  { %1051 = vmatprep.subr.bf16.mxu0 %v1050_v4  ;;  %v1116_v13 = vpack.c.bf16 %v365_v11, %v363_v10  ;;  %v65_v14 = vld [vmem:[%s2330_s2 + $0x38] sm:$0xff]  ;;  %v368_v15 = vld [vmem:[%s2331_s4 + $0x28] sm:$0xff]  ;;  %v62_v19 = vld [vmem:[%s2330_s2 + $0x20] sm:$0xff] }
   0x5   :  { %v370_v16 = vld [vmem:[%s2331_s4 + $0x38] sm:$0xff]  ;;  %1115 = vmatprep.subr.bf16.mxu1 %v1114_v8  ;;  %1053 = vmatpush1.bf16.msra.mxu0 %v1052_v9  ;;  %v1054_v17 = vpack.c.bf16 %v65_v14, %v63_v12  ;;  %v64_v20 = vld [vmem:[%s2330_s2 + $0x30] sm:$0xff]  ;;  %v367_v21 = vld [vmem:[%s2331_s4 + $0x20] sm:$0xff] }
   0x6   :  { %v1118_v18 = vpack.c.bf16 %v370_v16, %v368_v15  ;;  %1117 = vmatpush1.bf16.msra.mxu1 %v1116_v13  ;;  %v1056_v22 = vpack.c.bf16 %v64_v20, %v62_v19  ;;  %v369_v23 = vld [vmem:[%s2331_s4 + $0x30] sm:$0xff]  ;;  %v67_v24 = vld [vmem:[%s2330_s2 + $0x48] sm:$0xff]  ;;  %v69_v25 = vld [vmem:[%s2330_s2 + $0x58] sm:$0xff] }
   0x7   :  { %1055 = vmatprep.subr.bf16.mxu0 %v1054_v17  ;;  %v1120_v26 = vpack.c.bf16 %v369_v23, %v367_v21  ;;  %v1058_v27 = vpack.c.bf16 %v69_v25, %v67_v24  ;;  %v372_v28 = vld [vmem:[%s2331_s4 + $0x48] sm:$0xff]  ;;  %v374_v29 = vld [vmem:[%s2331_s4 + $0x58] sm:$0xff]  ;;  %v66_v30 = vld [vmem:[%s2330_s2 + $0x40] sm:$0xff] }
   0x8   :  { %1119 = vmatprep.subr.bf16.mxu1 %v1118_v18  ;;  %v1122_v31 = vpack.c.bf16 %v374_v29, %v372_v28  ;;  %v68_v32 = vld [vmem:[%s2330_s2 + $0x50] sm:$0xff]  ;;  %v371_v33 = vld [vmem:[%s2331_s4 + $0x40] sm:$0xff]  ;;  %v71_v36 = vld [vmem:[%s2330_s2 + $0x68] sm:$0xff] }
   0x9   :  { %v373_v34 = vld [vmem:[%s2331_s4 + $0x50] sm:$0xff]  ;;  %1057 = vmatpush1.bf16.msra.mxu0 %v1056_v22  ;;  %v1060_v35 = vpack.c.bf16 %v68_v32, %v66_v30  ;;  %v73_v37 = vld [vmem:[%s2330_s2 + $0x78] sm:$0xff]  ;;  %v376_v38 = vld [vmem:[%s2331_s4 + $0x68] sm:$0xff] }
   0xa   :  { %1121 = vmatpush1.bf16.msra.mxu1 %v1120_v26  ;;  %1059 = vmatprep.subr.bf16.mxu0 %v1058_v27  ;;  %v1124_v39 = vpack.c.bf16 %v373_v34, %v371_v33  ;;  %v1062_v40 = vpack.c.bf16 %v73_v37, %v71_v36  ;;  %v378_v41 = vld [vmem:[%s2331_s4 + $0x78] sm:$0xff]  ;;  %v70_v42 = vld [vmem:[%s2330_s2 + $0x60] sm:$0xff]  ;;  %v72_v43 = vld [vmem:[%s2330_s2 + $0x70] sm:$0xff] }
   0xb   :  { %1123 = vmatprep.subr.bf16.mxu1 %v1122_v31  ;;  %v1126_v44 = vpack.c.bf16 %v378_v41, %v376_v38  ;;  %v375_v45 = vld [vmem:[%s2331_s4 + $0x60] sm:$0xff]  ;;  %v377_v46 = vld [vmem:[%s2331_s4 + $0x70] sm:$0xff]  ;;  %v75_v47 = vld [vmem:[%s2330_s2 + $0x88] sm:$0xff]  ;;  %v1064_v50 = vpack.c.bf16 %v72_v43, %v70_v42 }
   0xc   :  { %v77_v48 = vld [vmem:[%s2330_s2 + $0x98] sm:$0xff]  ;;  %v284_v49 = vld [vmem:[%s2332_s3 + $0x8] sm:$0xff]  ;;  %v1128_v52 = vpack.c.bf16 %v377_v46, %v375_v45  ;;  %v74_v54 = vld [vmem:[%s2330_s2 + $0x80] sm:$0xff] }
   0xd   :  { %1061 = vmatpush1.bf16.msra.mxu0 %v1060_v35  ;;  %v286_v51 = vld [vmem:[%s2332_s3 + $0x18] sm:$0xff]  ;;  %v1066_v53 = vpack.c.bf16 %v77_v48, %v75_v47  ;;  %v76_v55 = vld [vmem:[%s2330_s2 + $0x90] sm:$0xff]  ;;  %v283_v57 = vld [vmem:[%s2332_s3] sm:$0xff] }
   0xe   :  { %1125 = vmatpush1.bf16.msra.mxu1 %v1124_v39  ;;  %1063 = vmatprep.subr.bf16.mxu0 %v1062_v40  ;;  %v1415_v56 = vpack.c.bf16 %v286_v51, %v284_v49  ;;  %v285_v58 = vld [vmem:[%s2332_s3 + $0x10] sm:$0xff]  ;;  %v79_v59 = vld [vmem:[%s2330_s2 + $0xa8] sm:$0xff]  ;;  %v81_v60 = vld [vmem:[%s2330_s2 + $0xb8] sm:$0xff]  ;;  %v1068_v63 = vpack.c.bf16 %v76_v55, %v74_v54 }
   0xf   :  { %1127 = vmatprep.subr.bf16.mxu1 %v1126_v44  ;;  %v288_v61 = vld [vmem:[%s2332_s3 + $0x28] sm:$0xff]  ;;  %v290_v62 = vld [vmem:[%s2332_s3 + $0x38] sm:$0xff]  ;;  %v347_v0 = vld [vmem:[%s2333_s1] sm:$0xff]  ;;  %v1438_v1 = vpack.c.bf16 %v285_v58, %v283_v57  ;;  %v1070_v5 = vpack.c.bf16 %v81_v60, %v79_v59 }
  0x10   :  { %v78_v2 = vld [vmem:[%s2330_s2 + $0xa0] sm:$0xff]  ;;  %v80_v4 = vld [vmem:[%s2330_s2 + $0xb0] sm:$0xff]  ;;  %v1447_v6 = vpack.c.bf16 %v290_v62, %v288_v61  ;;  %v83_v9 = vld [vmem:[%s2330_s2 + $0xc8] sm:$0xff] }
  0x11   :  { %1065 = vmatpush1.bf16.msra.mxu0 %v1064_v50  ;;  %v287_v7 = vld [vmem:[%s2332_s3 + $0x20] sm:$0xff]  ;;  %v289_v8 = vld [vmem:[%s2332_s3 + $0x30] sm:$0xff]  ;;  %v85_v10 = vld [vmem:[%s2330_s2 + $0xd8] sm:$0xff]  ;;  %v1072_v13 = vpack.c.bf16 %v80_v4, %v78_v2 }
  0x12   :  { %1129 = vmatpush1.bf16.msra.mxu1 %v1128_v52  ;;  %1067 = vmatprep.subr.bf16.mxu0 %v1066_v53  ;;  %v292_v11 = vld [vmem:[%s2332_s3 + $0x48] sm:$0xff]  ;;  %v294_v12 = vld [vmem:[%s2332_s3 + $0x58] sm:$0xff]  ;;  %v1473_v15 = vpack.c.bf16 %v289_v8, %v287_v7  ;;  %v82_v16 = vld [vmem:[%s2330_s2 + $0xc0] sm:$0xff]  ;;  %v1074_v18 = vpack.c.bf16 %v85_v10, %v83_v9 }
  0x13   :  { %1194 = vmatprep.subr.bf16.mxu1 %v1415_v56  ;;  %v348_v14 = vld [vmem:[%s2333_s1 + $0x8] sm:$0xff]  ;;  %v84_v17 = vld [vmem:[%s2330_s2 + $0xd0] sm:$0xff]  ;;  %v1482_v19 = vpack.c.bf16 %v294_v12, %v292_v11  ;;  %v291_v20 = vld [vmem:[%s2332_s3 + $0x40] sm:$0xff] }
  0x14   :  { %v293_v21 = vld [vmem:[%s2332_s3 + $0x50] sm:$0xff]  ;;  %v87_v22 = vld [vmem:[%s2330_s2 + $0xe8] sm:$0xff]  ;;  %v89_v23 = vld [vmem:[%s2330_s2 + $0xf8] sm:$0xff]  ;;  %v1076_v26 = vpack.c.bf16 %v84_v17, %v82_v16 }
  0x15   :  { %1034 = vmatmul.mubr.msk.f32.vlgmr.msra.gmra.mrb[0].mxu1 %vm379_vm0, %v347_v0  ;;  %1069 = vmatpush1.bf16.msra.mxu0 %v1068_v63  ;;  %v296_v24 = vld [vmem:[%s2332_s3 + $0x68] sm:$0xff]  ;;  %v298_v25 = vld [vmem:[%s2332_s3 + $0x78] sm:$0xff]  ;;  %v349_v27 = vld [vmem:[%s2333_s1 + $0x10] sm:$0xff]  ;;  %v1508_v28 = vpack.c.bf16 %v293_v21, %v291_v20  ;;  %v1078_v31 = vpack.c.bf16 %v89_v23, %v87_v22 }
  0x16   :  { %1210 = vmatpush1.bf16.msra.mxu1 %v1438_v1  ;;  %498 = vmatprep.mubr.f32.mxu1 %v1259_v3  ;;  %v86_v29 = vld [vmem:[%s2330_s2 + $0xe0] sm:$0xff]  ;;  %v88_v30 = vld [vmem:[%s2330_s2 + $0xf0] sm:$0xff]  ;;  %v1517_v32 = vpack.c.bf16 %v298_v25, %v296_v24  ;;  %v91_v35 = vld [vmem:[%s2330_s2 + $0x108] sm:$0xff] }
  0x17   :  { %1071 = vmatprep.subr.bf16.mxu0 %v1070_v5  ;;  %1195 = vmatprep.subr.bf16.mxu1 %v1447_v6  ;;  %v295_v33 = vld [vmem:[%s2332_s3 + $0x60] sm:$0xff]  ;;  %v297_v34 = vld [vmem:[%s2332_s3 + $0x70] sm:$0xff]  ;;  %v93_v36 = vld [vmem:[%s2330_s2 + $0x118] sm:$0xff]  ;;  %v1080_v39 = vpack.c.bf16 %v88_v30, %v86_v29 }
  0x18   :  { %v300_v37 = vld [vmem:[%s2332_s3 + $0x88] sm:$0xff]  ;;  %v302_v38 = vld [vmem:[%s2332_s3 + $0x98] sm:$0xff]  ;;  %v1543_v41 = vpack.c.bf16 %v297_v34, %v295_v33  ;;  %v90_v42 = vld [vmem:[%s2330_s2 + $0x100] sm:$0xff]  ;;  %v1082_v44 = vpack.c.bf16 %v93_v36, %v91_v35 }
  0x19   :  { %1035 = vmatmul.mubr.msk.f32.gmra.mrb[2].mxu1 %vm379_vm0, %v348_v14  ;;  %1073 = vmatpush1.bf16.msra.mxu0 %v1072_v13  ;;  %v350_v40 = vld [vmem:[%s2333_s1 + $0x18] sm:$0xff]  ;;  %v92_v43 = vld [vmem:[%s2330_s2 + $0x110] sm:$0xff]  ;;  %v1552_v45 = vpack.c.bf16 %v302_v38, %v300_v37  ;;  %v299_v46 = vld [vmem:[%s2332_s3 + $0x80] sm:$0xff] }
  0x1a   :  { %1211 = vmatpush1.bf16.msra.mxu1 %v1473_v15  ;;  %504 = vmatprep.mubr.f32.mxu1 %v1259_v3  ;;  %v301_v47 = vld [vmem:[%s2332_s3 + $0x90] sm:$0xff]  ;;  %v95_v48 = vld [vmem:[%s2330_s2 + $0x128] sm:$0xff]  ;;  %v97_v49 = vld [vmem:[%s2330_s2 + $0x138] sm:$0xff]  ;;  %v1084_v52 = vpack.c.bf16 %v92_v43, %v90_v42 }
  0x1b   :  { %1075 = vmatprep.subr.bf16.mxu0 %v1074_v18  ;;  %1196 = vmatprep.subr.bf16.mxu1 %v1482_v19  ;;  %v304_v50 = vld [vmem:[%s2332_s3 + $0xa8] sm:$0xff]  ;;  %v306_v51 = vld [vmem:[%s2332_s3 + $0xb8] sm:$0xff]  ;;  %v351_v53 = vld [vmem:[%s2333_s1 + $0x20] sm:$0xff]  ;;  %v1578_v54 = vpack.c.bf16 %v301_v47, %v299_v46  ;;  %v1086_v58 = vpack.c.bf16 %v97_v49, %v95_v48 }
  0x1c   :  { %v94_v55 = vld [vmem:[%s2330_s2 + $0x120] sm:$0xff]  ;;  %v96_v57 = vld [vmem:[%s2330_s2 + $0x130] sm:$0xff]  ;;  %v1587_v59 = vpack.c.bf16 %v306_v51, %v304_v50  ;;  %v99_v62 = vld [vmem:[%s2330_s2 + $0x148] sm:$0xff] }
  0x1d   :  { %1036 = vmatmul.mubr.msk.f32.gmra.mrb[4].mxu1 %vm379_vm0, %v349_v27  ;;  %1077 = vmatpush1.bf16.msra.mxu0 %v1076_v26  ;;  %v303_v60 = vld [vmem:[%s2332_s3 + $0xa0] sm:$0xff]  ;;  %v305_v61 = vld [vmem:[%s2332_s3 + $0xb0] sm:$0xff]  ;;  %v101_v63 = vld [vmem:[%s2330_s2 + $0x158] sm:$0xff]  ;;  %v1088_v4 = vpack.c.bf16 %v96_v57, %v94_v55 }
  0x1e   :  { %1212 = vmatpush1.bf16.msra.mxu1 %v1508_v28  ;;  %510 = vmatprep.mubr.f32.mxu1 %v1259_v3  ;;  %v308_v0 = vld [vmem:[%s2332_s3 + $0xc8] sm:$0xff]  ;;  %v310_v2 = vld [vmem:[%s2332_s3 + $0xd8] sm:$0xff]  ;;  %v1613_v7 = vpack.c.bf16 %v305_v61, %v303_v60  ;;  %v98_v8 = vld [vmem:[%s2330_s2 + $0x140] sm:$0xff]  ;;  %v1090_v10 = vpack.c.bf16 %v101_v63, %v99_v62 }
  0x1f   :  { %1079 = vmatprep.subr.bf16.mxu0 %v1078_v31  ;;  %1197 = vmatprep.subr.bf16.mxu1 %v1517_v32  ;;  %v352_v5 = vld [vmem:[%s2333_s1 + $0x28] sm:$0xff]  ;;  %v100_v9 = vld [vmem:[%s2330_s2 + $0x150] sm:$0xff]  ;;  %v1622_v11 = vpack.c.bf16 %v310_v2, %v308_v0  ;;  %v307_v12 = vld [vmem:[%s2332_s3 + $0xc0] sm:$0xff] }
  0x20   :  { %v309_v13 = vld [vmem:[%s2332_s3 + $0xd0] sm:$0xff]  ;;  %v103_v14 = vld [vmem:[%s2330_s2 + $0x168] sm:$0xff]  ;;  %v105_v16 = vld [vmem:[%s2330_s2 + $0x178] sm:$0xff]  ;;  %v1092_v20 = vpack.c.bf16 %v100_v9, %v98_v8 }
  0x21   :  { %1037 = vmatmul.mubr.msk.f32.gmra.mrb[6].mxu1 %vm379_vm0, %v350_v40  ;;  %1081 = vmatpush1.bf16.msra.mxu0 %v1080_v39  ;;  %v312_v17 = vld [vmem:[%s2332_s3 + $0xe8] sm:$0xff]  ;;  %v314_v18 = vld [vmem:[%s2332_s3 + $0xf8] sm:$0xff]  ;;  %v353_v21 = vld [vmem:[%s2333_s1 + $0x30] sm:$0xff]  ;;  %v1648_v22 = vpack.c.bf16 %v309_v13, %v307_v12  ;;  %v1094_v25 = vpack.c.bf16 %v105_v16, %v103_v14 }
  0x22   :  { %1213 = vmatpush1.bf16.msra.mxu1 %v1543_v41  ;;  %516 = vmatprep.mubr.f32.mxu1 %v1259_v3  ;;  %v102_v23 = vld [vmem:[%s2330_s2 + $0x160] sm:$0xff]  ;;  %v104_v24 = vld [vmem:[%s2330_s2 + $0x170] sm:$0xff]  ;;  %v1657_v26 = vpack.c.bf16 %v314_v18, %v312_v17  ;;  %v107_v30 = vld [vmem:[%s2330_s2 + $0x188] sm:$0xff] }
  0x23   :  { %1083 = vmatprep.subr.bf16.mxu0 %v1082_v44  ;;  %1198 = vmatprep.subr.bf16.mxu1 %v1552_v45  ;;  %v311_v27 = vld [vmem:[%s2332_s3 + $0xe0] sm:$0xff]  ;;  %v313_v29 = vld [vmem:[%s2332_s3 + $0xf0] sm:$0xff]  ;;  %v109_v31 = vld [vmem:[%s2330_s2 + $0x198] sm:$0xff]  ;;  %v1096_v36 = vpack.c.bf16 %v104_v24, %v102_v23 }
  0x24   :  { %v316_v33 = vld [vmem:[%s2332_s3 + $0x108] sm:$0xff]  ;;  %v318_v34 = vld [vmem:[%s2332_s3 + $0x118] sm:$0xff]  ;;  %v1683_v37 = vpack.c.bf16 %v313_v29, %v311_v27  ;;  %v106_v38 = vld [vmem:[%s2330_s2 + $0x180] sm:$0xff]  ;;  %v1098_v42 = vpack.c.bf16 %v109_v31, %v107_v30 }
  0x25   :  { %1038 = vmatmul.mubr.msk.f32.gmra.mrb[8].mxu1 %vm379_vm0, %v351_v53  ;;  %1085 = vmatpush1.bf16.msra.mxu0 %v1084_v52  ;;  %v354_v35 = vld [vmem:[%s2333_s1 + $0x38] sm:$0xff]  ;;  %v108_v39 = vld [vmem:[%s2330_s2 + $0x190] sm:$0xff]  ;;  %v315_v40 = vld [vmem:[%s2332_s3 + $0x100] sm:$0xff]  ;;  %v1695_v43 = vpack.c.bf16 %v318_v34, %v316_v33 }
  0x26   :  { %1214 = vmatpush1.bf16.msra.mxu1 %v1578_v54  ;;  %522 = vmatprep.mubr.f32.mxu1 %v1259_v3  ;;  %v317_v44 = vld [vmem:[%s2332_s3 + $0x110] sm:$0xff]  ;;  %v111_v46 = vld [vmem:[%s2330_s2 + $0x1a8] sm:$0xff]  ;;  %v113_v48 = vld [vmem:[%s2330_s2 + $0x1b8] sm:$0xff]  ;;  %v1100_v51 = vpack.c.bf16 %v108_v39, %v106_v38 }
  0x27   :  { %1087 = vmatprep.subr.bf16.mxu0 %v1086_v58  ;;  %1199 = vmatprep.subr.bf16.mxu1 %v1587_v59  ;;  %v1706_v47 = vld [vmem:[%s2334_s0 + $0x8] sm:$0xff]  ;;  %v322_v50 = vld [vmem:[%s2332_s3 + $0x138] sm:$0xff]  ;;  %v355_v52 = vld [vmem:[%s2333_s1 + $0x40] sm:$0xff]  ;;  %v1724_v53 = vpack.c.bf16 %v317_v44, %v315_v40  ;;  %v1102_v58 = vpack.c.bf16 %v113_v48, %v111_v46 }
  0x28   :  { %v320_v49 = vld [vmem:[%s2332_s3 + $0x128] sm:$0xff]  ;;  %186 = vmatprep.mubr.f32.mxu0 %v1706_v47  ;;  %v110_v55 = vld [vmem:[%s2330_s2 + $0x1a0] sm:$0xff]  ;;  %v112_v57 = vld [vmem:[%s2330_s2 + $0x1b0] sm:$0xff] }
  0x29   :  { %1039 = vmatmul.mubr.msk.f32.gmra.mrb[10].mxu1 %vm379_vm0, %v352_v5  ;;  %1089 = vmatpush1.bf16.msra.mxu0 %v1088_v4  ;;  %v1733_v60 = vpack.c.bf16 %v322_v50, %v320_v49  ;;  %v319_v61 = vld [vmem:[%s2332_s3 + $0x120] sm:$0xff]  ;;  %v321_v62 = vld [vmem:[%s2332_s3 + $0x130] sm:$0xff]  ;;  %v115_v63 = vld [vmem:[%s2330_s2 + $0x1c8] sm:$0xff]  ;;  %v1104_v5 = vpack.c.bf16 %v112_v57, %v110_v55 }
  0x2a   :  { %1215 = vmatpush1.bf16.msra.mxu1 %v1613_v7  ;;  %528 = vmatprep.mubr.f32.mxu1 %v1259_v3  ;;  %v117_v0 = vld [vmem:[%s2330_s2 + $0x1d8] sm:$0xff]  ;;  %v324_v2 = vld [vmem:[%s2332_s3 + $0x148] sm:$0xff]  ;;  %v1759_v9 = vpack.c.bf16 %v321_v62, %v319_v61  ;;  %v116_v12 = vld [vmem:[%s2330_s2 + $0x1d0] sm:$0xff] }
  0x2b   :  { %1091 = vmatprep.subr.bf16.mxu0 %v1090_v10  ;;  %1200 = vmatprep.subr.bf16.mxu1 %v1622_v11  ;;  %v326_v4 = vld [vmem:[%s2332_s3 + $0x158] sm:$0xff]  ;;  %v356_v8 = vld [vmem:[%s2333_s1 + $0x48] sm:$0xff]  ;;  %v114_v10 = vld [vmem:[%s2330_s2 + $0x1c0] sm:$0xff]  ;;  %v1106_v13 = vpack.c.bf16 %v117_v0, %v115_v63 }
  0x2c   :  { %v1768_v14 = vpack.c.bf16 %v326_v4, %v324_v2  ;;  %v323_v16 = vld [vmem:[%s2332_s3 + $0x140] sm:$0xff]  ;;  %v325_v17 = vld [vmem:[%s2332_s3 + $0x150] sm:$0xff]  ;;  %v119_v18 = vld [vmem:[%s2330_s2 + $0x1e8] sm:$0xff]  ;;  %v1108_v24 = vpack.c.bf16 %v116_v12, %v114_v10 }
  0x2d   :  { %1040 = vmatmul.mubr.msk.f32.gmra.mrb[12].mxu1 %vm379_vm0, %v353_v21  ;;  %1093 = vmatpush1.bf16.msra.mxu0 %v1092_v20  ;;  %v121_v20 = vld [vmem:[%s2330_s2 + $0x1f8] sm:$0xff]  ;;  %v328_v21 = vld [vmem:[%s2332_s3 + $0x168] sm:$0xff]  ;;  %v1794_v27 = vpack.c.bf16 %v325_v17, %v323_v16  ;;  %v118_v29 = vld [vmem:[%s2330_s2 + $0x1e0] sm:$0xff] }
  0x2e   :  { %1216 = vmatpush1.bf16.msra.mxu1 %v1648_v22  ;;  %534 = vmatprep.mubr.f32.mxu1 %v1259_v3  ;;  %v330_v23 = vld [vmem:[%s2332_s3 + $0x178] sm:$0xff]  ;;  %v120_v30 = vld [vmem:[%s2330_s2 + $0x1f0] sm:$0xff]  ;;  %v1110_v31 = vpack.c.bf16 %v121_v20, %v119_v18  ;;  %v327_v34 = vld [vmem:[%s2332_s3 + $0x160] sm:$0xff] }
  0x2f   :  { %1095 = vmatprep.subr.bf16.mxu0 %v1094_v25  ;;  %1201 = vmatprep.subr.bf16.mxu1 %v1657_v26  ;;  %v357_v25 = vld [vmem:[%s2333_s1 + $0x50] sm:$0xff]  ;;  %v1803_v33 = vpack.c.bf16 %v330_v23, %v328_v21  ;;  %v334_v38 = vld [vmem:[%s2332_s3 + $0x198] sm:$0xff]  ;;  %v1112_v39 = vpack.c.bf16 %v120_v30, %v118_v29  ;;  %v331_v46 = vld [vmem:[%s2332_s3 + $0x180] sm:$0xff] }
  0x30   :  { %v358_v40 = vld [vmem:[%s2333_s1 + $0x58] sm:$0xff]  ;;  %v333_v48 = vld [vmem:[%s2332_s3 + $0x190] sm:$0xff]  ;;  %v1838_v49 = vld [vmem:[%s2334_s0] sm:$0xff] }
  0x31   :  { %1041 = vmatmul.mubr.msk.f32.gmra.mrb[14].mxu1 %vm379_vm0, %v354_v35  ;;  %1097 = vmatpush1.bf16.msra.mxu0 %v1096_v36  ;;  %v329_v35 = vld [vmem:[%s2332_s3 + $0x170] sm:$0xff]  ;;  %v332_v36 = vld [vmem:[%s2332_s3 + $0x188] sm:$0xff]  ;;  %v1851_v55 = vpack.c.bf16 %v333_v48, %v331_v46  ;;  %v1858_v57 = vld [vmem:[%s2334_s0 + $0x18] sm:$0xff] }
  0x32   :  { %1217 = vmatpush1.bf16.msra.mxu1 %v1683_v37  ;;  %540 = vmatprep.mubr.f32.mxu1 %v1259_v3  ;;  %v1826_v44 = vpack.c.bf16 %v334_v38, %v332_v36  ;;  %v336_v50 = vld [vmem:[%s2332_s3 + $0x1a8] sm:$0xff]  ;;  %v337_v61 = vld [vmem:[%s2332_s3 + $0x1b0] sm:$0xff]  ;;  %v342_v0 = vld [vmem:[%s2332_s3 + $0x1d8] sm:$0xff] }
  0x33   :  { %1099 = vmatprep.subr.bf16.mxu0 %v1098_v42  ;;  %1202 = vmatprep.subr.bf16.mxu1 %v1695_v43  ;;  %v1823_v42 = vpack.c.bf16 %v329_v35, %v327_v34  ;;  %v340_v63 = vld [vmem:[%s2332_s3 + $0x1c8] sm:$0xff]  ;;  %v361_v16 = vld [vmem:[%s2333_s1 + $0x70] sm:$0xff]  ;;  %v33_v17 = vld [vmem:[%s2334_s0 + $0x38] sm:$0xff] }
  0x34   :  { %v31_v4 = vld [vmem:[%s2334_s0 + $0x28] sm:$0xff]  ;;  %v1902_v10 = vpack.c.bf16 %v342_v0, %v340_v63  ;;  %v343_v18 = vld [vmem:[%s2332_s3 + $0x1e0] sm:$0xff]  ;;  %v345_v20 = vld [vmem:[%s2332_s3 + $0x1f0] sm:$0xff] }
  0x35   :  { %1042 = vmatmul.mubr.msk.f32.gmra.mrb[16].mxu1 %vm379_vm0, %v355_v52  ;;  %1101 = vmatpush1.bf16.msra.mxu0 %v1100_v51  ;;  %v338_v51 = vld [vmem:[%s2332_s3 + $0x1b8] sm:$0xff]  ;;  %v359_v52 = vld [vmem:[%s2333_s1 + $0x60] sm:$0xff]  ;;  %v344_v12 = vld [vmem:[%s2332_s3 + $0x1e8] sm:$0xff] }
  0x36   :  { %1218 = vmatpush1.bf16.msra.mxu1 %v1724_v53  ;;  %546 = vmatprep.mubr.f32.mxu1 %v1259_v3  ;;  %v1867_v62 = vpack.c.bf16 %v338_v51, %v336_v50  ;;  %v362_v23 = vld [vmem:[%s2333_s1 + $0x78] sm:$0xff]  ;;  %v52_v29 = vld [vmem:[%s2334_s0 + $0xd0] sm:$0xff]  ;;  %v55_v30 = vld [vmem:[%s2334_s0 + $0xe8] sm:$0xff] }
  0x37   :  { %1103 = vmatprep.subr.bf16.mxu0 %v1102_v58  ;;  %1203 = vmatprep.subr.bf16.mxu1 %v1733_v60  ;;  %v335_v58 = vld [vmem:[%s2332_s3 + $0x1a0] sm:$0xff]  ;;  %v56_v34 = vld [vmem:[%s2334_s0 + $0xf0] sm:$0xff] }
  0x38   :  { %v1887_v2 = vpack.c.bf16 %v337_v61, %v335_v58  ;;  %v750_v50 = vld [vmem:[%s2335_s5] sm:$0x3] }
  0x39   :  { %1043 = vmatmul.mubr.msk.f32.gmra.mrb[18].mxu1 %vm379_vm0, %v356_v8  ;;  %1105 = vmatpush1.bf16.msra.mxu0 %v1104_v5  ;;  %v339_v5 = vld [vmem:[%s2332_s3 + $0x1c0] sm:$0xff]  ;;  %v341_v8 = vld [vmem:[%s2332_s3 + $0x1d0] sm:$0xff] }
  0x3a   :  { %1219 = vmatpush1.bf16.msra.mxu1 %v1759_v9  ;;  %552 = vmatprep.mubr.f32.mxu1 %v1259_v3  ;;  %v751_v58 = vld [vmem:[%s2336_s6] sm:$0x3] }
  0x3b   :  { %1107 = vmatprep.subr.bf16.mxu0 %v1106_v13  ;;  %1204 = vmatprep.subr.bf16.mxu1 %v1768_v14  ;;  %v346_v13 = vld [vmem:[%s2332_s3 + $0x1f8] sm:$0xff] }
  0x3c   :  { %v1933_v21 = vpack.c.bf16 %v346_v13, %v344_v12 }
  0x3d   :  { %1044 = vmatmul.mubr.msk.f32.gmra.mrb[20].mxu1 %vm379_vm0, %v357_v25  ;;  %1109 = vmatpush1.bf16.msra.mxu0 %v1108_v24  ;;  %v1944_v24 = vpack.c.bf16 %v345_v20, %v343_v18  ;;  %v34_v25 = vld [vmem:[%s2334_s0 + $0x40] sm:$0xff] }
  0x3e   :  { %1220 = vmatpush1.bf16.msra.mxu1 %v1794_v27  ;;  %558 = vmatprep.mubr.f32.mxu1 %v1259_v3 }
  0x3f   :  { %1111 = vmatprep.subr.bf16.mxu0 %v1110_v31  ;;  %1205 = vmatprep.subr.bf16.mxu1 %v1803_v33  ;;  %v54_v31 = vld [vmem:[%s2334_s0 + $0xe0] sm:$0xff] }
  0x41   :  { %1045 = vmatmul.mubr.msk.f32.gmra.mrb[22].mxu1 %vm379_vm0, %v358_v40  ;;  %1113 = vmatpush1.bf16.msra.mxu0 %v1112_v39  ;;  %v753_v40 = vlaneseq }
  0x42   :  { %1221 = vmatpush1.bf16.msra.mxu1 %v1823_v42  ;;  %564 = vmatprep.mubr.f32.mxu1 %v1259_v3 }
  0x43   :  { %1131 = vmatprep.subr.bf16.mxu0 %v1415_v56  ;;  %1206 = vmatprep.subr.bf16.mxu1 %v1826_v44  ;;  %v1874_v56 = vld [vmem:[%s2334_s0 + $0x10] sm:$0xff] }
  0x44   :  { %187 = vmatmul.mubr.f32.vlgmr.msra.gmra.mrb[0].mxu0 %v1838_v49 }
  0x45   :  { %1046 = vmatmul.mubr.msk.f32.gmra.mrb[24].mxu1 %vm379_vm0, %v359_v52  ;;  %1133 = vmatpush1.bf16.msra.mxu0 %v1438_v1  ;;  %v360_v1 = vld [vmem:[%s2333_s1 + $0x68] sm:$0xff] }
  0x46   :  { %1222 = vmatpush1.bf16.msra.mxu1 %v1851_v55  ;;  %192 = vmatprep.mubr.f32.mxu0 %v1858_v57 }
  0x47   :  { %570 = vmatprep.mubr.f32.mxu1 %v1259_v3  ;;  %1135 = vmatprep.subr.bf16.mxu0 %v1447_v6  ;;  %v30_v6 = vld [vmem:[%s2334_s0 + $0x20] sm:$0xff] }
  0x48   :  { %193 = vmatmul.mubr.f32.gmra.mrb[2].mxu0 %v1874_v56  ;;  %1207 = vmatprep.subr.bf16.mxu1 %v1867_v62 }
  0x49   :  { %1047 = vmatmul.mubr.msk.f32.gmra.mrb[26].mxu1 %vm379_vm0, %v360_v1  ;;  %1137 = vmatpush1.bf16.msra.mxu0 %v1473_v15  ;;  %v1919_v15 = vpack.c.bf16 %v341_v8, %v339_v5 }
  0x4a   :  { %1223 = vmatpush1.bf16.msra.mxu1 %v1887_v2  ;;  %198 = vmatprep.mubr.f32.mxu0 %v31_v4 }
  0x4b   :  { %576 = vmatprep.mubr.f32.mxu1 %v1259_v3  ;;  %1139 = vmatprep.subr.bf16.mxu0 %v1482_v19  ;;  %v32_v19 = vld [vmem:[%s2334_s0 + $0x30] sm:$0xff] }
  0x4c   :  { %199 = vmatmul.mubr.f32.gmra.mrb[4].mxu0 %v30_v6  ;;  %1208 = vmatprep.subr.bf16.mxu1 %v1902_v10 }
  0x4d   :  { %1048 = vmatmul.mubr.msk.f32.gmra.mrb[28].mxu1 %vm379_vm0, %v361_v16  ;;  %1141 = vmatpush1.bf16.msra.mxu0 %v1508_v28  ;;  %v35_v28 = vld [vmem:[%s2334_s0 + $0x48] sm:$0xff] }
  0x4e   :  { %1224 = vmatpush1.bf16.msra.mxu1 %v1919_v15  ;;  %204 = vmatprep.mubr.f32.mxu0 %v33_v17 }
  0x4f   :  { %582 = vmatprep.mubr.f32.mxu1 %v1259_v3  ;;  %1143 = vmatprep.subr.bf16.mxu0 %v1517_v32  ;;  %v37_v3 = vld [vmem:[%s2334_s0 + $0x58] sm:$0xff]  ;;  %v36_v32 = vld [vmem:[%s2334_s0 + $0x50] sm:$0xff] }
  0x50   :  { %205 = vmatmul.mubr.f32.gmra.mrb[6].mxu0 %v32_v19  ;;  %1209 = vmatprep.subr.bf16.mxu1 %v1933_v21 }
  0x51   :  { %1049 = vmatmul.mubr.msk.f32.gmra.mrb[30].mxu1 %vm379_vm0, %v362_v23  ;;  %1145 = vmatpush1.bf16.msra.mxu0 %v1543_v41  ;;  %v39_v41 = vld [vmem:[%s2334_s0 + $0x68] sm:$0xff] }
  0x52   :  { %1225 = vmatpush1.bf16.msra.mxu1 %v1944_v24  ;;  %210 = vmatprep.mubr.f32.mxu0 %v35_v28 }
  0x53   :  { %665 = vmatprep.mubr.f32.mxu1 %v31_v4  ;;  %1147 = vmatprep.subr.bf16.mxu0 %v1552_v45  ;;  %v38_v45 = vld [vmem:[%s2334_s0 + $0x60] sm:$0xff] }
  0x54   :  { %211 = vmatmul.mubr.f32.gmra.mrb[8].mxu0 %v34_v25 }
  0x55   :  { %666 = vmatmul.mubr.f32.vlgmr.msra.gmra.mrb[4].mxu1 %v30_v6  ;;  %1149 = vmatpush1.bf16.msra.mxu0 %v1578_v54  ;;  %v41_v54 = vld [vmem:[%s2334_s0 + $0x78] sm:$0xff] }
  0x56   :  { %216 = vmatprep.mubr.f32.mxu0 %v37_v3  ;;  %671 = vmatprep.mubr.f32.mxu1 %v33_v17 }
  0x57   :  { %1151 = vmatprep.subr.bf16.mxu0 %v1587_v59  ;;  %v40_v59 = vld [vmem:[%s2334_s0 + $0x70] sm:$0xff] }
  0x58   :  { %217 = vmatmul.mubr.f32.gmra.mrb[10].mxu0 %v36_v32 }
  0x59   :  { %672 = vmatmul.mubr.f32.gmra.mrb[6].mxu1 %v32_v19  ;;  %1153 = vmatpush1.bf16.msra.mxu0 %v1613_v7  ;;  %v43_v7 = vld [vmem:[%s2334_s0 + $0x88] sm:$0xff] }
  0x5a   :  { %222 = vmatprep.mubr.f32.mxu0 %v39_v41  ;;  %677 = vmatprep.mubr.f32.mxu1 %v35_v28 }
  0x5b   :  { %1155 = vmatprep.subr.bf16.mxu0 %v1622_v11  ;;  %v42_v11 = vld [vmem:[%s2334_s0 + $0x80] sm:$0xff] }
  0x5c   :  { %223 = vmatmul.mubr.f32.gmra.mrb[12].mxu0 %v38_v45 }
  0x5d   :  { %678 = vmatmul.mubr.f32.gmra.mrb[8].mxu1 %v34_v25  ;;  %1157 = vmatpush1.bf16.msra.mxu0 %v1648_v22  ;;  %v45_v22 = vld [vmem:[%s2334_s0 + $0x98] sm:$0xff] }
  0x5e   :  { %228 = vmatprep.mubr.f32.mxu0 %v41_v54  ;;  %683 = vmatprep.mubr.f32.mxu1 %v37_v3 }
  0x5f   :  { %1159 = vmatprep.subr.bf16.mxu0 %v1657_v26  ;;  %v44_v26 = vld [vmem:[%s2334_s0 + $0x90] sm:$0xff] }
  0x60   :  { %229 = vmatmul.mubr.f32.gmra.mrb[14].mxu0 %v40_v59 }
  0x61   :  { %684 = vmatmul.mubr.f32.gmra.mrb[10].mxu1 %v36_v32  ;;  %1161 = vmatpush1.bf16.msra.mxu0 %v1683_v37  ;;  %v47_v37 = vld [vmem:[%s2334_s0 + $0xa8] sm:$0xff] }
  0x62   :  { %234 = vmatprep.mubr.f32.mxu0 %v43_v7  ;;  %689 = vmatprep.mubr.f32.mxu1 %v39_v41 }
  0x63   :  { %1163 = vmatprep.subr.bf16.mxu0 %v1695_v43  ;;  %v46_v43 = vld [vmem:[%s2334_s0 + $0xa0] sm:$0xff] }
  0x64   :  { %235 = vmatmul.mubr.f32.gmra.mrb[16].mxu0 %v42_v11 }
  0x65   :  { %690 = vmatmul.mubr.f32.gmra.mrb[12].mxu1 %v38_v45  ;;  %1165 = vmatpush1.bf16.msra.mxu0 %v1724_v53  ;;  %v49_v53 = vld [vmem:[%s2334_s0 + $0xb8] sm:$0xff] }
  0x66   :  { %240 = vmatprep.mubr.f32.mxu0 %v45_v22  ;;  %695 = vmatprep.mubr.f32.mxu1 %v41_v54 }
  0x67   :  { %1167 = vmatprep.subr.bf16.mxu0 %v1733_v60  ;;  %v48_v60 = vld [vmem:[%s2334_s0 + $0xb0] sm:$0xff] }
  0x68   :  { %241 = vmatmul.mubr.f32.gmra.mrb[18].mxu0 %v44_v26 }
  0x69   :  { %696 = vmatmul.mubr.f32.gmra.mrb[14].mxu1 %v40_v59  ;;  %1169 = vmatpush1.bf16.msra.mxu0 %v1759_v9  ;;  %v51_v9 = vld [vmem:[%s2334_s0 + $0xc8] sm:$0xff] }
  0x6a   :  { %246 = vmatprep.mubr.f32.mxu0 %v47_v37  ;;  %701 = vmatprep.mubr.f32.mxu1 %v43_v7 }
  0x6b   :  { %1171 = vmatprep.subr.bf16.mxu0 %v1768_v14  ;;  %v50_v14 = vld [vmem:[%s2334_s0 + $0xc0] sm:$0xff] }
  0x6c   :  { %247 = vmatmul.mubr.f32.gmra.mrb[20].mxu0 %v46_v43 }
  0x6d   :  { %702 = vmatmul.mubr.f32.gmra.mrb[16].mxu1 %v42_v11  ;;  %1173 = vmatpush1.bf16.msra.mxu0 %v1794_v27  ;;  %v53_v27 = vld [vmem:[%s2334_s0 + $0xd8] sm:$0xff] }
  0x6e   :  { %252 = vmatprep.mubr.f32.mxu0 %v49_v53  ;;  %707 = vmatprep.mubr.f32.mxu1 %v45_v22 }
  0x6f   :  { %1175 = vmatprep.subr.bf16.mxu0 %v1803_v33  ;;  %v57_v33 = vld [vmem:[%s2334_s0 + $0xf8] sm:$0xff] }
  0x70   :  { %253 = vmatmul.mubr.f32.gmra.mrb[22].mxu0 %v48_v60 }
  0x71   :  { %708 = vmatmul.mubr.f32.gmra.mrb[18].mxu1 %v44_v26  ;;  %1177 = vmatpush1.bf16.msra.mxu0 %v1823_v42 }
  0x72   :  { %258 = vmatprep.mubr.f32.mxu0 %v51_v9  ;;  %713 = vmatprep.mubr.f32.mxu1 %v47_v37 }
  0x73   :  { %1179 = vmatprep.subr.bf16.mxu0 %v1826_v44  ;;  %v754_v44 = vshrl.u32 %v753_v40, 7 }
  0x74   :  { %259 = vmatmul.mubr.f32.gmra.mrb[24].mxu0 %v50_v14 }
  0x75   :  { %714 = vmatmul.mubr.f32.gmra.mrb[20].mxu1 %v46_v43  ;;  %1181 = vmatpush1.bf16.msra.mxu0 %v1851_v55  ;;  %v759_v52 = vsub.s32 1, %v754_v44 }
  0x76   :  { %264 = vmatprep.mubr.f32.mxu0 %v53_v27  ;;  %719 = vmatprep.mubr.f32.mxu1 %v49_v53 }
  0x77   :  { %1183 = vmatprep.subr.bf16.mxu0 %v1867_v62  ;;  %v2076_v62 = vrot.slane %v750_v50, %v759_v52  ;;  %v2082_v4 = vrot.slane %v751_v58, %v759_v52 }
  0x78   :  { %265 = vmatmul.mubr.f32.gmra.mrb[26].mxu0 %v52_v29 }
  0x79   :  { %720 = vmatmul.mubr.f32.gmra.mrb[22].mxu1 %v48_v60  ;;  %1185 = vmatpush1.bf16.msra.mxu0 %v1887_v2 }
  0x7a   :  { %270 = vmatprep.mubr.f32.mxu0 %v55_v30  ;;  %725 = vmatprep.mubr.f32.mxu1 %v51_v9 }
  0x7b   :  { %1187 = vmatprep.subr.bf16.mxu0 %v1902_v10 }
  0x7c   :  { %271 = vmatmul.mubr.f32.gmra.mrb[28].mxu0 %v54_v31 }
  0x7d   :  { %726 = vmatmul.mubr.f32.gmra.mrb[24].mxu1 %v50_v14  ;;  %1189 = vmatpush1.bf16.msra.mxu0 %v1919_v15 }
  0x7e   :  { %276 = vmatprep.mubr.f32.mxu0 %v57_v33  ;;  %731 = vmatprep.mubr.f32.mxu1 %v53_v27 }
  0x7f   :  { %1191 = vmatprep.subr.bf16.mxu0 %v1933_v21 }
  0x80   :  { %277 = vmatmul.mubr.f32.gmra.mrb[30].mxu0 %v56_v34 }
  0x81   :  { %732 = vmatmul.mubr.f32.gmra.mrb[26].mxu1 %v52_v29  ;;  %1193 = vmatpush1.bf16.msra.mxu0 %v1944_v24 }
  0x82   :  { %653 = vmatprep.mubr.f32.mxu0 %v1706_v47  ;;  %737 = vmatprep.mubr.f32.mxu1 %v55_v30 }
  0x84   :  { %654 = vmatmul.mubr.f32.vlgmr.msra.gmra.mrb[32].mxu0 %v1838_v49  ;;  %v755_v49 = vsub.s32 0, %v754_v44 }
  0x85   :  { %738 = vmatmul.mubr.f32.gmra.mrb[28].mxu1 %v54_v31  ;;  %659 = vmatprep.mubr.f32.mxu0 %v1858_v57 }
  0x86   :  { %743 = vmatprep.mubr.f32.mxu1 %v57_v33  ;;  %v2071_v57 = vrot.slane %v750_v50, %v755_v49  ;;  %v2079_v0 = vrot.slane %v751_v58, %v755_v49 }
  0x88   :  { %660 = vmatmul.mubr.f32.gmra.mrb[34].mxu0 %v1874_v56 }
  0x89   :  { %744 = vmatmul.mubr.f32.gmra.mrb[30].mxu1 %v56_v34 }
  0xe8   :  { %v2052_v35 = vpop.f32.mrb[0].mxu1 }
  0xe9   :  { %v2054_v36 = vpop.f32.mrb[1].mxu1 }
  0xec   :  { %v2056_v38 = vpop.f32.mrb[2].mxu1 }
  0xed   :  { %v2058_v39 = vpop.f32.mrb[3].mxu1 }
 0x117   :  { %v2060_v47 = vpop.f32.mrb[0].mxu0 }
 0x118   :  { %v2062_v42 = vpop.f32.mrb[1].mxu0 }
 0x11b   :  { %v2064_v46 = vpop.f32.mrb[2].mxu0 }
 0x11c   :  { %v2066_v48 = vpop.f32.mrb[3].mxu0 }
 0x11f   :  { %v200_v51 = vpop.f32.mrb[4].mxu0 }
 0x120   :  { %v202_v55 = vpop.f32.mrb[5].mxu0  ;;  %v767_v56 = vmul.f32 %v2071_v57, %v200_v51 }
 0x121   :  { %v768_v1 = vmul.f32 %v2076_v62, %v202_v55 }
 0x122   :  { %v810_v5 = vadd.f32 %v2079_v0, %v767_v56 }
 0x123   :  { %v206_v61 = vpop.f32.mrb[6].mxu0  ;;  %v811_v16 = vadd.f32 %v2082_v4, %v768_v1 }
 0x124   :  { %v208_v63 = vpop.f32.mrb[7].mxu0  ;;  %v769_v6 = vmul.f32 %v2071_v57, %v206_v61  ;;  %v842_v21 = vmax.f32 %v810_v5, 0.0 }
 0x125   :  { %v770_v15 = vmul.f32 %v2076_v62, %v208_v63  ;;  %v843_v54 = vmax.f32 %v811_v16, 0.0 }
 0x126   :  { %v812_v25 = vadd.f32 %v2079_v0, %v769_v6 }
 0x127   :  { %v212_v2 = vpop.f32.mrb[8].mxu0  ;;  %v813_v59 = vadd.f32 %v2082_v4, %v770_v15 }
 0x128   :  { %v667_v8 = vpop.f32.mrb[4].mxu1  ;;  %v214_v10 = vpop.f32.mrb[9].mxu0  ;;  %v771_v19 = vmul.f32 %v2071_v57, %v212_v2  ;;  %v844_v29 = vmax.f32 %v812_v25, 0.0 }
 0x129   :  { %v874_v12 = vmul.f32 %v2071_v57, %v667_v8  ;;  %v669_v13 = vpop.f32.mrb[5].mxu1  ;;  %v772_v32 = vmul.f32 %v2076_v62, %v214_v10  ;;  %v845_v40 = vmax.f32 %v813_v59, 0.0 }
 0x12a   :  { %v875_v17 = vmul.f32 %v2076_v62, %v669_v13  ;;  %v814_v43 = vadd.f32 %v2079_v0, %v771_v19 }
 0x12b   :  { %v906_v18 = vadd.f32 %v874_v12, %v2079_v0  ;;  %v218_v20 = vpop.f32.mrb[10].mxu0  ;;  %v815_v30 = vadd.f32 %v2082_v4, %v772_v32 }
 0x12c   :  { %v907_v23 = vadd.f32 %v875_v17, %v2082_v4  ;;  %v673_v24 = vpop.f32.mrb[6].mxu1  ;;  %v220_v28 = vpop.f32.mrb[11].mxu0  ;;  %v773_v60 = vmul.f32 %v2071_v57, %v218_v20  ;;  %v846_v58 = vmax.f32 %v814_v43, 0.0  ;;  %v764_v43 = vmul.f32 %v2076_v62, %v2062_v42 }
 0x12d   :  { %v938_v3 = vmax.f32 %v906_v18, 0.0  ;;  %v876_v41 = vmul.f32 %v2071_v57, %v673_v24  ;;  %v675_v45 = vpop.f32.mrb[7].mxu1  ;;  %v774_v44 = vmul.f32 %v2076_v62, %v220_v28  ;;  %v847_v5 = vmax.f32 %v815_v30, 0.0 }
 0x12e   :  { %v939_v7 = vmax.f32 %v907_v23, 0.0  ;;  %v877_v11 = vmul.f32 %v2076_v62, %v675_v45  ;;  %v816_v61 = vadd.f32 %v2079_v0, %v773_v60 }
 0x12f   :  { %v970_v22 = vmax.f32 %v842_v21, %v938_v3  ;;  %v908_v26 = vadd.f32 %v876_v41, %v2079_v0  ;;  %v224_v37 = vpop.f32.mrb[12].mxu0  ;;  %v817_v13 = vadd.f32 %v2082_v4, %v774_v44 }
 0x130   :  { %v971_v53 = vmax.f32 %v843_v54, %v939_v7  ;;  %v909_v9 = vadd.f32 %v877_v11, %v2082_v4  ;;  %v679_v14 = vpop.f32.mrb[8].mxu1  ;;  %v226_v27 = vpop.f32.mrb[13].mxu0  ;;  %v775_v8 = vmul.f32 %v2071_v57, %v224_v37  ;;  %v848_v19 = vmax.f32 %v816_v61, 0.0 }
 0x131   :  { %1002 = vst [vmem:[%s2337_s7 + $0x20] sm:$0xff] %v970_v22  ;;  %v940_v31 = vmax.f32 %v908_v26, 0.0  ;;  %v878_v33 = vmul.f32 %v2071_v57, %v679_v14  ;;  %v681_v34 = vpop.f32.mrb[9].mxu1  ;;  %v776_v16 = vmul.f32 %v2076_v62, %v226_v27  ;;  %v849_v7 = vmax.f32 %v817_v13, 0.0 }
 0x132   :  { %1003 = vst [vmem:[%s2337_s7 + $0x28] sm:$0xff] %v971_v53  ;;  %v941_v49 = vmax.f32 %v909_v9, 0.0  ;;  %v879_v50 = vmul.f32 %v2076_v62, %v681_v34  ;;  %v818_v32 = vadd.f32 %v2079_v0, %v775_v8  ;;  %v763_v37 = vmul.f32 %v2071_v57, %v2060_v47 }
 0x133   :  { %v972_v51 = vmax.f32 %v844_v29, %v940_v31  ;;  %v910_v52 = vadd.f32 %v878_v33, %v2079_v0  ;;  %v230_v55 = vpop.f32.mrb[14].mxu0  ;;  %v819_v11 = vadd.f32 %v2082_v4, %v776_v16 }
 0x134   :  { %v973_v56 = vmax.f32 %v845_v40, %v941_v49  ;;  %v911_v63 = vadd.f32 %v879_v50, %v2082_v4  ;;  %v685_v1 = vpop.f32.mrb[10].mxu1  ;;  %v232_v2 = vpop.f32.mrb[15].mxu0  ;;  %v777_v24 = vmul.f32 %v2071_v57, %v230_v55  ;;  %v850_v34 = vmax.f32 %v818_v32, 0.0 }
 0x135   :  { %1004 = vst [vmem:[%s2337_s7 + $0x30] sm:$0xff] %v972_v51  ;;  %v942_v10 = vmax.f32 %v910_v52, 0.0  ;;  %v880_v6 = vmul.f32 %v2071_v57, %v685_v1  ;;  %v687_v12 = vpop.f32.mrb[11].mxu1  ;;  %v778_v45 = vmul.f32 %v2076_v62, %v232_v2  ;;  %v851_v49 = vmax.f32 %v819_v11, 0.0 }
 0x136   :  { %1005 = vst [vmem:[%s2337_s7 + $0x38] sm:$0xff] %v973_v56  ;;  %v943_v15 = vmax.f32 %v911_v63, 0.0  ;;  %v881_v17 = vmul.f32 %v2076_v62, %v687_v12  ;;  %v820_v14 = vadd.f32 %v2079_v0, %v777_v24  ;;  %v2159_v55 = vadd.f32 %v2079_v0, %v763_v37 }
 0x137   :  { %v974_v18 = vmax.f32 %v846_v58, %v942_v10  ;;  %v912_v20 = vadd.f32 %v880_v6, %v2079_v0  ;;  %v236_v21 = vpop.f32.mrb[16].mxu0  ;;  %v821_v47 = vadd.f32 %v2082_v4, %v778_v45  ;;  %v2162_v58 = vadd.f32 %v2082_v4, %v764_v43 }
 0x138   :  { %v975_v23 = vmax.f32 %v847_v5, %v943_v15  ;;  %v913_v28 = vadd.f32 %v881_v17, %v2082_v4  ;;  %v691_v25 = vpop.f32.mrb[12].mxu1  ;;  %v238_v3 = vpop.f32.mrb[17].mxu0  ;;  %v779_v29 = vmul.f32 %v2071_v57, %v236_v21  ;;  %v852_v1 = vmax.f32 %v820_v14, 0.0 }
 0x139   :  { %1006 = vst [vmem:[%s2337_s7 + $0x40] sm:$0xff] %v974_v18  ;;  %v944_v41 = vmax.f32 %v912_v20, 0.0  ;;  %v882_v54 = vmul.f32 %v2071_v57, %v691_v25  ;;  %v693_v59 = vpop.f32.mrb[13].mxu1  ;;  %v780_v50 = vmul.f32 %v2076_v62, %v238_v3  ;;  %v853_v12 = vmax.f32 %v821_v47, 0.0 }
 0x13a   :  { %1007 = vst [vmem:[%s2337_s7 + $0x48] sm:$0xff] %v975_v23  ;;  %v945_v22 = vmax.f32 %v913_v28, 0.0  ;;  %v883_v26 = vmul.f32 %v2076_v62, %v693_v59  ;;  %v822_v2 = vadd.f32 %v2079_v0, %v779_v29  ;;  %v838_v23 = vmax.f32 %v2159_v55, 0.0 }
 0x13b   :  { %v976_v53 = vmax.f32 %v848_v19, %v944_v41  ;;  %v914_v60 = vadd.f32 %v882_v54, %v2079_v0  ;;  %v242_v9 = vpop.f32.mrb[18].mxu0  ;;  %v823_v18 = vadd.f32 %v2082_v4, %v780_v50  ;;  %v765_v24 = vmul.f32 %v2071_v57, %v2064_v46 }
 0x13c   :  { %v977_v27 = vmax.f32 %v849_v7, %v945_v22  ;;  %v915_v30 = vadd.f32 %v883_v26, %v2082_v4  ;;  %v697_v31 = vpop.f32.mrb[14].mxu1  ;;  %v244_v33 = vpop.f32.mrb[19].mxu0  ;;  %v781_v13 = vmul.f32 %v2071_v57, %v242_v9  ;;  %v854_v32 = vmax.f32 %v822_v2, 0.0 }
 0x13d   :  { %1008 = vst [vmem:[%s2337_s7 + $0x50] sm:$0xff] %v976_v53  ;;  %v946_v42 = vmax.f32 %v914_v60, 0.0  ;;  %v884_v40 = vmul.f32 %v2071_v57, %v697_v31  ;;  %v699_v44 = vpop.f32.mrb[15].mxu1  ;;  %v782_v20 = vmul.f32 %v2076_v62, %v244_v33  ;;  %v855_v43 = vmax.f32 %v823_v18, 0.0 }
 0x13e   :  { %1009 = vst [vmem:[%s2337_s7 + $0x58] sm:$0xff] %v977_v27  ;;  %v947_v51 = vmax.f32 %v915_v30, 0.0  ;;  %v885_v52 = vmul.f32 %v2076_v62, %v699_v44  ;;  %v824_v11 = vadd.f32 %v2079_v0, %v781_v13  ;;  %v839_v14 = vmax.f32 %v2162_v58, 0.0 }
 0x13f   :  { %v978_v61 = vmax.f32 %v850_v34, %v946_v42  ;;  %v916_v56 = vadd.f32 %v884_v40, %v2079_v0  ;;  %v248_v63 = vpop.f32.mrb[20].mxu0  ;;  %v825_v53 = vadd.f32 %v2082_v4, %v782_v20  ;;  %v766_v33 = vmul.f32 %v2076_v62, %v2066_v48 }
 0x140   :  { %v979_v5 = vmax.f32 %v851_v49, %v947_v51  ;;  %v917_v8 = vadd.f32 %v885_v52, %v2082_v4  ;;  %v703_v10 = vpop.f32.mrb[16].mxu1  ;;  %v250_v6 = vpop.f32.mrb[21].mxu0  ;;  %v783_v45 = vmul.f32 %v2071_v57, %v248_v63  ;;  %v856_v49 = vmax.f32 %v824_v11, 0.0 }
 0x141   :  { %1010 = vst [vmem:[%s2337_s7 + $0x60] sm:$0xff] %v978_v61  ;;  %v948_v16 = vmax.f32 %v916_v56, 0.0  ;;  %v886_v15 = vmul.f32 %v2071_v57, %v703_v10  ;;  %v705_v17 = vpop.f32.mrb[17].mxu1  ;;  %v784_v46 = vmul.f32 %v2076_v62, %v250_v6  ;;  %v857_v56 = vmax.f32 %v825_v53, 0.0 }
 0x142   :  { %1011 = vst [vmem:[%s2337_s7 + $0x68] sm:$0xff] %v979_v5  ;;  %v949_v21 = vmax.f32 %v917_v8, 0.0  ;;  %v887_v19 = vmul.f32 %v2076_v62, %v705_v17  ;;  %v826_v34 = vadd.f32 %v2079_v0, %v783_v45  ;;  %v2213_v2 = vadd.f32 %v2079_v0, %v765_v24 }
 0x143   :  { %v980_v28 = vmax.f32 %v852_v1, %v948_v16  ;;  %v918_v25 = vadd.f32 %v886_v15, %v2079_v0  ;;  %v254_v3 = vpop.f32.mrb[22].mxu0  ;;  %v827_v50 = vadd.f32 %v2082_v4, %v784_v46 }
 0x144   :  { %v981_v41 = vmax.f32 %v853_v12, %v949_v21  ;;  %v919_v54 = vadd.f32 %v887_v19, %v2082_v4  ;;  %v709_v59 = vpop.f32.mrb[18].mxu1  ;;  %v256_v7 = vpop.f32.mrb[23].mxu0  ;;  %v785_v29 = vmul.f32 %v2071_v57, %v254_v3  ;;  %v858_v12 = vmax.f32 %v826_v34, 0.0 }
 0x145   :  { %1012 = vst [vmem:[%s2337_s7 + $0x70] sm:$0xff] %v980_v28  ;;  %v950_v22 = vmax.f32 %v918_v25, 0.0  ;;  %v888_v26 = vmul.f32 %v2071_v57, %v709_v59  ;;  %v711_v37 = vpop.f32.mrb[19].mxu1  ;;  %v786_v48 = vmul.f32 %v2076_v62, %v256_v7  ;;  %v859_v20 = vmax.f32 %v827_v50, 0.0 }
 0x146   :  { %1013 = vst [vmem:[%s2337_s7 + $0x78] sm:$0xff] %v981_v41  ;;  %v951_v60 = vmax.f32 %v919_v54, 0.0  ;;  %v889_v9 = vmul.f32 %v2076_v62, %v711_v37  ;;  %v828_v5 = vadd.f32 %v2079_v0, %v785_v29 }
 0x147   :  { %v982_v27 = vmax.f32 %v854_v32, %v950_v22  ;;  %v920_v30 = vadd.f32 %v888_v26, %v2079_v0  ;;  %v260_v31 = vpop.f32.mrb[24].mxu0  ;;  %v829_v25 = vadd.f32 %v2082_v4, %v786_v48 }
 0x148   :  { %v983_v47 = vmax.f32 %v855_v43, %v951_v60  ;;  %v921_v42 = vadd.f32 %v889_v9, %v2082_v4  ;;  %v715_v40 = vpop.f32.mrb[20].mxu1  ;;  %v262_v44 = vpop.f32.mrb[25].mxu0  ;;  %v787_v16 = vmul.f32 %v2071_v57, %v260_v31  ;;  %v860_v45 = vmax.f32 %v828_v5, 0.0 }
 0x149   :  { %1014 = vst [vmem:[%s2337_s7 + $0x80] sm:$0xff] %v982_v27  ;;  %v952_v51 = vmax.f32 %v920_v30, 0.0  ;;  %v890_v52 = vmul.f32 %v2071_v57, %v715_v40  ;;  %v717_v61 = vpop.f32.mrb[21].mxu1  ;;  %v788_v19 = vmul.f32 %v2076_v62, %v262_v44  ;;  %v861_v31 = vmax.f32 %v829_v25, 0.0 }
 0x14a   :  { %1015 = vst [vmem:[%s2337_s7 + $0x88] sm:$0xff] %v983_v47  ;;  %v953_v63 = vmax.f32 %v921_v42, 0.0  ;;  %v891_v1 = vmul.f32 %v2076_v62, %v717_v61  ;;  %v830_v22 = vadd.f32 %v2079_v0, %v787_v16  ;;  %v2247_v40 = vadd.f32 %v2082_v4, %v766_v33 }
 0x14b   :  { %v984_v8 = vmax.f32 %v856_v49, %v952_v51  ;;  %v922_v10 = vadd.f32 %v890_v52, %v2079_v0  ;;  %v266_v6 = vpop.f32.mrb[26].mxu0  ;;  %v831_v60 = vadd.f32 %v2082_v4, %v788_v19 }
 0x14c   :  { %v985_v13 = vmax.f32 %v857_v56, %v953_v63  ;;  %v923_v15 = vadd.f32 %v891_v1, %v2082_v4  ;;  %v721_v17 = vpop.f32.mrb[22].mxu1  ;;  %v268_v18 = vpop.f32.mrb[27].mxu0  ;;  %v789_v32 = vmul.f32 %v2071_v57, %v266_v6  ;;  %v862_v52 = vmax.f32 %v830_v22, 0.0 }
 0x14d   :  { %1016 = vst [vmem:[%s2337_s7 + $0x90] sm:$0xff] %v984_v8  ;;  %v954_v21 = vmax.f32 %v922_v10, 0.0  ;;  %v892_v24 = vmul.f32 %v2071_v57, %v721_v17  ;;  %v723_v28 = vpop.f32.mrb[23].mxu1  ;;  %v790_v7 = vmul.f32 %v2076_v62, %v268_v18  ;;  %v863_v5 = vmax.f32 %v831_v60, 0.0 }
 0x14e   :  { %1017 = vst [vmem:[%s2337_s7 + $0x98] sm:$0xff] %v985_v13  ;;  %v955_v3 = vmax.f32 %v923_v15, 0.0  ;;  %v893_v41 = vmul.f32 %v2076_v62, %v723_v28  ;;  %v832_v34 = vadd.f32 %v2079_v0, %v789_v32 }
 0x14f   :  { %v986_v54 = vmax.f32 %v858_v12, %v954_v21  ;;  %v924_v59 = vadd.f32 %v892_v24, %v2079_v0  ;;  %v272_v11 = vpop.f32.mrb[28].mxu0  ;;  %v833_v49 = vadd.f32 %v2082_v4, %v790_v7 }
 0x150   :  { %v987_v46 = vmax.f32 %v859_v20, %v955_v3  ;;  %v925_v26 = vadd.f32 %v893_v41, %v2082_v4  ;;  %v791_v37 = vmul.f32 %v2071_v57, %v272_v11  ;;  %v727_v43 = vpop.f32.mrb[24].mxu1  ;;  %v274_v53 = vpop.f32.mrb[29].mxu0  ;;  %v864_v12 = vmax.f32 %v832_v34, 0.0 }
 0x151   :  { %1018 = vst [vmem:[%s2337_s7 + $0xa0] sm:$0xff] %v986_v54  ;;  %v956_v9 = vmax.f32 %v924_v59, 0.0  ;;  %v894_v27 = vmul.f32 %v2071_v57, %v727_v43  ;;  %v792_v29 = vmul.f32 %v2076_v62, %v274_v53  ;;  %v729_v30 = vpop.f32.mrb[25].mxu1  ;;  %v865_v17 = vmax.f32 %v833_v49, 0.0 }
 0x152   :  { %1019 = vst [vmem:[%s2337_s7 + $0xa8] sm:$0xff] %v987_v46  ;;  %v957_v47 = vmax.f32 %v925_v26, 0.0  ;;  %v895_v42 = vmul.f32 %v2076_v62, %v729_v30  ;;  %v834_v56 = vadd.f32 %v2079_v0, %v791_v37 }
 0x153   :  { %v988_v44 = vmax.f32 %v860_v45, %v956_v9  ;;  %v926_v50 = vadd.f32 %v894_v27, %v2079_v0  ;;  %v278_v51 = vpop.f32.mrb[30].mxu0  ;;  %v835_v8 = vadd.f32 %v2082_v4, %v792_v29 }
 0x154   :  { %v989_v61 = vmax.f32 %v861_v31, %v957_v47  ;;  %v927_v48 = vadd.f32 %v895_v42, %v2082_v4  ;;  %v733_v63 = vpop.f32.mrb[26].mxu1  ;;  %v280_v1 = vpop.f32.mrb[31].mxu0  ;;  %v793_v16 = vmul.f32 %v2071_v57, %v278_v51  ;;  %v866_v24 = vmax.f32 %v834_v56, 0.0 }
 0x155   :  { %1020 = vst [vmem:[%s2337_s7 + $0xb0] sm:$0xff] %v988_v44  ;;  %v958_v33 = vmax.f32 %v926_v50, 0.0  ;;  %v896_v10 = vmul.f32 %v2071_v57, %v733_v63  ;;  %v735_v6 = vpop.f32.mrb[27].mxu1  ;;  %v794_v21 = vmul.f32 %v2076_v62, %v280_v1  ;;  %v867_v45 = vmax.f32 %v835_v8, 0.0 }
 0x156   :  { %1021 = vst [vmem:[%s2337_s7 + $0xb8] sm:$0xff] %v989_v61  ;;  %v959_v13 = vmax.f32 %v927_v48, 0.0  ;;  %v897_v15 = vmul.f32 %v2076_v62, %v735_v6  ;;  %v836_v22 = vadd.f32 %v2079_v0, %v793_v16 }
 0x157   :  { %v990_v18 = vmax.f32 %v862_v52, %v958_v33  ;;  %v928_v20 = vadd.f32 %v896_v10, %v2079_v0  ;;  %v655_v19 = vpop.f32.mrb[32].mxu0  ;;  %v837_v43 = vadd.f32 %v2082_v4, %v794_v21 }
 0x158   :  { %v991_v28 = vmax.f32 %v863_v5, %v959_v13  ;;  %v929_v25 = vadd.f32 %v897_v15, %v2082_v4  ;;  %v656_v3 = vadd.f32 %v655_v19, %v2052_v35  ;;  %v739_v32 = vpop.f32.mrb[28].mxu1  ;;  %v657_v41 = vpop.f32.mrb[33].mxu0  ;;  %v868_v10 = vmax.f32 %v836_v22, 0.0 }
 0x159   :  { %1022 = vst [vmem:[%s2337_s7 + $0xc0] sm:$0xff] %v990_v18  ;;  %v960_v54 = vmax.f32 %v928_v20, 0.0  ;;  %v898_v59 = vmul.f32 %v2071_v57, %v739_v32  ;;  %v658_v7 = vadd.f32 %v657_v41, %v2054_v36  ;;  %v741_v11 = vpop.f32.mrb[29].mxu1  ;;  %v869_v55 = vmax.f32 %v837_v43, 0.0 }
 0x15a   :  { %1023 = vst [vmem:[%s2337_s7 + $0xc8] sm:$0xff] %v991_v28  ;;  %v961_v35 = vmax.f32 %v929_v25, 0.0  ;;  %v870_v46 = vmul.f32 %v2071_v57, %v656_v3  ;;  %v899_v26 = vmul.f32 %v2076_v62, %v741_v11  ;;  %v841_v13 = vmax.f32 %v2247_v40, 0.0 }
 0x15b   :  { %v992_v37 = vmax.f32 %v864_v12, %v960_v54  ;;  %v930_v53 = vadd.f32 %v898_v59, %v2079_v0  ;;  %v871_v60 = vmul.f32 %v2076_v62, %v658_v7  ;;  %v661_v36 = vpop.f32.mrb[34].mxu0 }
 0x15c   :  { %v993_v9 = vmax.f32 %v865_v17, %v961_v35  ;;  %v902_v27 = vadd.f32 %v870_v46, %v2079_v0  ;;  %v931_v29 = vadd.f32 %v899_v26, %v2082_v4  ;;  %v662_v30 = vadd.f32 %v661_v36, %v2056_v38  ;;  %v745_v31 = vpop.f32.mrb[30].mxu1  ;;  %v663_v34 = vpop.f32.mrb[35].mxu0 }
 0x15d   :  { %1024 = vst [vmem:[%s2337_s7 + $0xd0] sm:$0xff] %v992_v37  ;;  %v962_v47 = vmax.f32 %v930_v53, 0.0  ;;  %v903_v42 = vadd.f32 %v871_v60, %v2082_v4  ;;  %v900_v44 = vmul.f32 %v2071_v57, %v745_v31  ;;  %v664_v49 = vadd.f32 %v663_v34, %v2058_v39  ;;  %v747_v50 = vpop.f32.mrb[31].mxu1 }
 0x15e   :  { %1025 = vst [vmem:[%s2337_s7 + $0xd8] sm:$0xff] %v993_v9  ;;  %v934_v51 = vmax.f32 %v902_v27, 0.0  ;;  %v963_v38 = vmax.f32 %v931_v29, 0.0  ;;  %v872_v52 = vmul.f32 %v2071_v57, %v662_v30  ;;  %v901_v61 = vmul.f32 %v2076_v62, %v747_v50 }
 0x15f   :  { %v994_v56 = vmax.f32 %v866_v24, %v962_v47  ;;  %v935_v48 = vmax.f32 %v903_v42, 0.0  ;;  %v932_v63 = vadd.f32 %v900_v44, %v2079_v0  ;;  %v873_v1 = vmul.f32 %v2076_v62, %v664_v49 }
 0x160   :  { %v966_v39 = vmax.f32 %v838_v23, %v934_v51  ;;  %v995_v5 = vmax.f32 %v867_v45, %v963_v38  ;;  %v904_v33 = vadd.f32 %v872_v52, %v2079_v0  ;;  %v933_v8 = vadd.f32 %v901_v61, %v2082_v4 }
 0x161   :  { %1026 = vst [vmem:[%s2337_s7 + $0xe0] sm:$0xff] %v994_v56  ;;  %v967_v57 = vmax.f32 %v839_v14, %v935_v48  ;;  %v964_v6 = vmax.f32 %v932_v63, 0.0  ;;  %v905_v12 = vadd.f32 %v873_v1, %v2082_v4  ;;  %v840_v62 = vmax.f32 %v2213_v2, 0.0 }
 0x162   :  { %998 = vst [vmem:[%s2337_s7] sm:$0xff] %v966_v39  ;;  %1027 = vst [vmem:[%s2337_s7 + $0xe8] sm:$0xff] %v995_v5  ;;  %v936_v0 = vmax.f32 %v904_v33, 0.0  ;;  %v965_v23 = vmax.f32 %v933_v8, 0.0 }
 0x163   :  { %999 = vst [vmem:[%s2337_s7 + $0x8] sm:$0xff] %v967_v57  ;;  %v996_v4 = vmax.f32 %v868_v10, %v964_v6  ;;  %v937_v58 = vmax.f32 %v905_v12, 0.0 }
 0x164   :  { %v968_v14 = vmax.f32 %v840_v62, %v936_v0  ;;  %v997_v2 = vmax.f32 %v869_v55, %v965_v23 }
 0x165   :  { %1028 = vst [vmem:[%s2337_s7 + $0xf0] sm:$0xff] %v996_v4  ;;  %v969_v16 = vmax.f32 %v841_v13, %v937_v58 }
 0x166   :  { %1000 = vst [vmem:[%s2337_s7 + $0x10] sm:$0xff] %v968_v14  ;;  %1029 = vst [vmem:[%s2337_s7 + $0xf8] sm:$0xff] %v997_v2 }
 0x167   :  { %1001 = vst [vmem:[%s2337_s7 + $0x18] sm:$0xff] %v969_v16 }

// kernel: explainable_nn_forward.8
= control target key start
LH: loop header
LB: loop body
LE: loop exit
PB: predicated region body
PF: predicated region fallthrough
CT: control target
= control target key end

     0   :  { %v1778_v3 = vmov 0.0   ;;  %s2521_s3 = inlined_call_operand.vmem [shape: f32[128,256], index: 3, kind: input, shape index: {}]   ;;  %s2522_s4 = inlined_call_operand.vmem [shape: f32[128,256], index: 4, kind: input, shape index: {}]   ;;  %s2523_s0 = inlined_call_operand.vmem [shape: f32[128,128], index: 0, kind: input, shape index: {}]   ;;  %s2524_s1 = inlined_call_operand.vmem [shape: f32[128,128], index: 1, kind: input, shape index: {}]   ;;  %s2525_s2 = inlined_call_operand.vmem [shape: f32[128,128], index: 2, kind: input, shape index: {}]   ;;  %s2526_s5 = inlined_call_operand.vmem [shape: f32[1,256], index: 5, kind: input, shape index: {}]   ;;  %s2527_s6 = inlined_call_operand.vmem [shape: f32[1,256], index: 6, kind: input, shape index: {}]   ;;  %s2528_s7 = inlined_call_operand.vmem [shape: f32[128,256], index: 7, kind: output, shape index: {}]  }
   0x1   :  { %v95_v0 = vld [vmem:[%s2521_s3 + $0x8] sm:$0xff]  ;;  %v97_v1 = vld [vmem:[%s2521_s3 + $0x18] sm:$0xff]  ;;  %v94_v2 = vld [vmem:[%s2521_s3] sm:$0xff]  ;;  %286 = vmatprep.mubr.f32.mxu0 %v1778_v3  ;;  %800 = vmatprep.mubr.f32.mxu1 %v1778_v3 }
   0x2   :  { %v1585_v4 = vpack.c.bf16 %v97_v1, %v95_v0  ;;  %v96_v5 = vld [vmem:[%s2521_s3 + $0x10] sm:$0xff]  ;;  %v99_v6 = vld [vmem:[%s2521_s3 + $0x28] sm:$0xff]  ;;  %v101_v7 = vld [vmem:[%s2521_s3 + $0x38] sm:$0xff] }
   0x3   :  { %v1587_v8 = vpack.c.bf16 %v96_v5, %v94_v2  ;;  %v1589_v9 = vpack.c.bf16 %v101_v7, %v99_v6  ;;  %v98_v10 = vld [vmem:[%s2521_s3 + $0x20] sm:$0xff]  ;;  %v100_v11 = vld [vmem:[%s2521_s3 + $0x30] sm:$0xff]  ;;  %v103_v12 = vld [vmem:[%s2521_s3 + $0x48] sm:$0xff] }
   0x4   :  { %1586 = vmatprep.subr.bf16.mxu0 %v1585_v4  ;;  %1650 = vmatprep.subr.bf16.mxu1 %v1585_v4  ;;  %v105_v13 = vld [vmem:[%s2521_s3 + $0x58] sm:$0xff]  ;;  %v1591_v14 = vpack.c.bf16 %v100_v11, %v98_v10  ;;  %v102_v16 = vld [vmem:[%s2521_s3 + $0x40] sm:$0xff]  ;;  %v104_v17 = vld [vmem:[%s2521_s3 + $0x50] sm:$0xff] }
   0x5   :  { %1588 = vmatpush1.bf16.msra.mxu0 %v1587_v8  ;;  %1652 = vmatpush1.bf16.msra.mxu1 %v1587_v8  ;;  %v1593_v15 = vpack.c.bf16 %v105_v13, %v103_v12  ;;  %v107_v18 = vld [vmem:[%s2521_s3 + $0x68] sm:$0xff]  ;;  %v109_v19 = vld [vmem:[%s2521_s3 + $0x78] sm:$0xff]  ;;  %v1595_v20 = vpack.c.bf16 %v104_v17, %v102_v16  ;;  %v106_v22 = vld [vmem:[%s2521_s3 + $0x60] sm:$0xff] }
   0x6   :  { %1590 = vmatprep.subr.bf16.mxu0 %v1589_v9  ;;  %1654 = vmatprep.subr.bf16.mxu1 %v1589_v9  ;;  %v1597_v21 = vpack.c.bf16 %v109_v19, %v107_v18  ;;  %v108_v23 = vld [vmem:[%s2521_s3 + $0x70] sm:$0xff]  ;;  %v111_v24 = vld [vmem:[%s2521_s3 + $0x88] sm:$0xff]  ;;  %v113_v25 = vld [vmem:[%s2521_s3 + $0x98] sm:$0xff] }
   0x7   :  { %v1599_v26 = vpack.c.bf16 %v108_v23, %v106_v22  ;;  %v1601_v27 = vpack.c.bf16 %v113_v25, %v111_v24  ;;  %v110_v28 = vld [vmem:[%s2521_s3 + $0x80] sm:$0xff]  ;;  %v112_v29 = vld [vmem:[%s2521_s3 + $0x90] sm:$0xff]  ;;  %v115_v30 = vld [vmem:[%s2521_s3 + $0xa8] sm:$0xff] }
   0x8   :  { %v117_v31 = vld [vmem:[%s2521_s3 + $0xb8] sm:$0xff]  ;;  %v1603_v32 = vpack.c.bf16 %v112_v29, %v110_v28  ;;  %v114_v34 = vld [vmem:[%s2521_s3 + $0xa0] sm:$0xff]  ;;  %v116_v35 = vld [vmem:[%s2521_s3 + $0xb0] sm:$0xff] }
   0x9   :  { %1592 = vmatpush1.bf16.msra.mxu0 %v1591_v14  ;;  %1656 = vmatpush1.bf16.msra.mxu1 %v1591_v14  ;;  %v1605_v33 = vpack.c.bf16 %v117_v31, %v115_v30  ;;  %v119_v36 = vld [vmem:[%s2521_s3 + $0xc8] sm:$0xff]  ;;  %v121_v37 = vld [vmem:[%s2521_s3 + $0xd8] sm:$0xff]  ;;  %v1607_v38 = vpack.c.bf16 %v116_v35, %v114_v34  ;;  %v118_v40 = vld [vmem:[%s2521_s3 + $0xc0] sm:$0xff] }
   0xa   :  { %1594 = vmatprep.subr.bf16.mxu0 %v1593_v15  ;;  %1658 = vmatprep.subr.bf16.mxu1 %v1593_v15  ;;  %v1609_v39 = vpack.c.bf16 %v121_v37, %v119_v36  ;;  %v120_v41 = vld [vmem:[%s2521_s3 + $0xd0] sm:$0xff]  ;;  %v123_v42 = vld [vmem:[%s2521_s3 + $0xe8] sm:$0xff]  ;;  %v125_v43 = vld [vmem:[%s2521_s3 + $0xf8] sm:$0xff] }
   0xb   :  { %v1611_v44 = vpack.c.bf16 %v120_v41, %v118_v40  ;;  %v1613_v45 = vpack.c.bf16 %v125_v43, %v123_v42  ;;  %v122_v46 = vld [vmem:[%s2521_s3 + $0xe0] sm:$0xff]  ;;  %v124_v47 = vld [vmem:[%s2521_s3 + $0xf0] sm:$0xff]  ;;  %v127_v48 = vld [vmem:[%s2522_s4 + $0x8] sm:$0xff] }
   0xc   :  { %v129_v49 = vld [vmem:[%s2522_s4 + $0x18] sm:$0xff]  ;;  %v1615_v50 = vpack.c.bf16 %v124_v47, %v122_v46  ;;  %v126_v52 = vld [vmem:[%s2522_s4] sm:$0xff]  ;;  %v128_v53 = vld [vmem:[%s2522_s4 + $0x10] sm:$0xff] }
   0xd   :  { %1596 = vmatpush1.bf16.msra.mxu0 %v1595_v20  ;;  %1660 = vmatpush1.bf16.msra.mxu1 %v1595_v20  ;;  %v1617_v51 = vpack.c.bf16 %v129_v49, %v127_v48  ;;  %v131_v54 = vld [vmem:[%s2522_s4 + $0x28] sm:$0xff]  ;;  %v133_v55 = vld [vmem:[%s2522_s4 + $0x38] sm:$0xff]  ;;  %v158_v56 = vld [vmem:[%s2523_s0] sm:$0xff]  ;;  %v1619_v58 = vpack.c.bf16 %v128_v53, %v126_v52 }
   0xe   :  { %1598 = vmatprep.subr.bf16.mxu0 %v1597_v21  ;;  %1662 = vmatprep.subr.bf16.mxu1 %v1597_v21  ;;  %v1941_v57 = vld [vmem:[%s2524_s1] sm:$0xff]  ;;  %v1621_v59 = vpack.c.bf16 %v133_v55, %v131_v54  ;;  %v132_v61 = vld [vmem:[%s2522_s4 + $0x30] sm:$0xff]  ;;  %v135_v62 = vld [vmem:[%s2522_s4 + $0x48] sm:$0xff] }
   0xf   :  { %v130_v60 = vld [vmem:[%s2522_s4 + $0x20] sm:$0xff]  ;;  %v137_v63 = vld [vmem:[%s2522_s4 + $0x58] sm:$0xff]  ;;  %v159_v0 = vld [vmem:[%s2523_s0 + $0x8] sm:$0xff] }
  0x10   :  { %v1962_v1 = vld [vmem:[%s2524_s1 + $0x8] sm:$0xff]  ;;  %v1623_v2 = vpack.c.bf16 %v132_v61, %v130_v60  ;;  %v1625_v4 = vpack.c.bf16 %v137_v63, %v135_v62  ;;  %v134_v5 = vld [vmem:[%s2522_s4 + $0x40] sm:$0xff]  ;;  %v136_v6 = vld [vmem:[%s2522_s4 + $0x50] sm:$0xff] }
  0x11   :  { %1600 = vmatpush1.bf16.msra.mxu0 %v1599_v26  ;;  %1664 = vmatpush1.bf16.msra.mxu1 %v1599_v26  ;;  %v139_v7 = vld [vmem:[%s2522_s4 + $0x68] sm:$0xff]  ;;  %v141_v8 = vld [vmem:[%s2522_s4 + $0x78] sm:$0xff]  ;;  %v160_v9 = vld [vmem:[%s2523_s0 + $0x10] sm:$0xff]  ;;  %v1627_v11 = vpack.c.bf16 %v136_v6, %v134_v5 }
  0x12   :  { %1602 = vmatprep.subr.bf16.mxu0 %v1601_v27  ;;  %1666 = vmatprep.subr.bf16.mxu1 %v1601_v27  ;;  %v1987_v10 = vld [vmem:[%s2524_s1 + $0x10] sm:$0xff]  ;;  %v1629_v12 = vpack.c.bf16 %v141_v8, %v139_v7  ;;  %v138_v13 = vld [vmem:[%s2522_s4 + $0x60] sm:$0xff]  ;;  %v143_v15 = vld [vmem:[%s2522_s4 + $0x88] sm:$0xff] }
  0x13   :  { %v140_v14 = vld [vmem:[%s2522_s4 + $0x70] sm:$0xff]  ;;  %v145_v16 = vld [vmem:[%s2522_s4 + $0x98] sm:$0xff]  ;;  %v142_v21 = vld [vmem:[%s2522_s4 + $0x80] sm:$0xff] }
  0x14   :  { %v161_v17 = vld [vmem:[%s2523_s0 + $0x18] sm:$0xff]  ;;  %v1631_v19 = vpack.c.bf16 %v140_v14, %v138_v13  ;;  %v1633_v20 = vpack.c.bf16 %v145_v16, %v143_v15  ;;  %v144_v22 = vld [vmem:[%s2522_s4 + $0x90] sm:$0xff]  ;;  %v147_v23 = vld [vmem:[%s2522_s4 + $0xa8] sm:$0xff] }
  0x15   :  { %1604 = vmatpush1.bf16.msra.mxu0 %v1603_v32  ;;  %1668 = vmatpush1.bf16.msra.mxu1 %v1603_v32  ;;  %v2010_v18 = vld [vmem:[%s2524_s1 + $0x18] sm:$0xff]  ;;  %v162_v25 = vld [vmem:[%s2523_s0 + $0x20] sm:$0xff]  ;;  %v1635_v27 = vpack.c.bf16 %v144_v22, %v142_v21  ;;  %v148_v30 = vld [vmem:[%s2522_s4 + $0xb0] sm:$0xff] }
  0x16   :  { %1606 = vmatprep.subr.bf16.mxu0 %v1605_v33  ;;  %1670 = vmatprep.subr.bf16.mxu1 %v1605_v33  ;;  %v149_v24 = vld [vmem:[%s2522_s4 + $0xb8] sm:$0xff]  ;;  %v2033_v26 = vld [vmem:[%s2524_s1 + $0x20] sm:$0xff]  ;;  %v151_v31 = vld [vmem:[%s2522_s4 + $0xc8] sm:$0xff] }
  0x17   :  { %v1637_v28 = vpack.c.bf16 %v149_v24, %v147_v23  ;;  %v146_v29 = vld [vmem:[%s2522_s4 + $0xa0] sm:$0xff]  ;;  %v153_v32 = vld [vmem:[%s2522_s4 + $0xd8] sm:$0xff]  ;;  %v163_v33 = vld [vmem:[%s2523_s0 + $0x28] sm:$0xff] }
  0x18   :  { %v2056_v34 = vld [vmem:[%s2524_s1 + $0x28] sm:$0xff]  ;;  %v1639_v35 = vpack.c.bf16 %v148_v30, %v146_v29  ;;  %v1641_v36 = vpack.c.bf16 %v153_v32, %v151_v31  ;;  %v150_v37 = vld [vmem:[%s2522_s4 + $0xc0] sm:$0xff]  ;;  %v157_v40 = vld [vmem:[%s2522_s4 + $0xf8] sm:$0xff] }
  0x19   :  { %1608 = vmatpush1.bf16.msra.mxu0 %v1607_v38  ;;  %1672 = vmatpush1.bf16.msra.mxu1 %v1607_v38  ;;  %v152_v38 = vld [vmem:[%s2522_s4 + $0xd0] sm:$0xff]  ;;  %v165_v47 = vld [vmem:[%s2523_s0 + $0x38] sm:$0xff]  ;;  %v167_v52 = vld [vmem:[%s2523_s0 + $0x48] sm:$0xff] }
  0x1a   :  { %1610 = vmatprep.subr.bf16.mxu0 %v1609_v39  ;;  %1674 = vmatprep.subr.bf16.mxu1 %v1609_v39  ;;  %v155_v39 = vld [vmem:[%s2522_s4 + $0xe8] sm:$0xff]  ;;  %v164_v41 = vld [vmem:[%s2523_s0 + $0x30] sm:$0xff]  ;;  %v1643_v43 = vpack.c.bf16 %v152_v38, %v150_v37  ;;  %v2096_v48 = vld [vmem:[%s2524_s1 + $0x38] sm:$0xff] }
  0x1b   :  { %v2079_v42 = vld [vmem:[%s2524_s1 + $0x30] sm:$0xff]  ;;  %v2118_v53 = vld [vmem:[%s2524_s1 + $0x48] sm:$0xff]  ;;  %v2151_v60 = vld [vmem:[%s2524_s1 + $0x60] sm:$0xff] }
  0x1c   :  { %v156_v46 = vld [vmem:[%s2522_s4 + $0xf0] sm:$0xff]  ;;  %v171_v61 = vld [vmem:[%s2523_s0 + $0x68] sm:$0xff]  ;;  %v993_v5 = vld [vmem:[%s2525_s2] sm:$0xff] }
  0x1d   :  { %1612 = vmatpush1.bf16.msra.mxu0 %v1611_v44  ;;  %1676 = vmatpush1.bf16.msra.mxu1 %v1611_v44  ;;  %v1645_v44 = vpack.c.bf16 %v157_v40, %v155_v39  ;;  %v168_v54 = vld [vmem:[%s2523_s0 + $0x50] sm:$0xff]  ;;  %v2162_v62 = vld [vmem:[%s2524_s1 + $0x68] sm:$0xff]  ;;  %v997_v7 = vld [vmem:[%s2525_s2 + $0x20] sm:$0xff] }
  0x1e   :  { %1614 = vmatprep.subr.bf16.mxu0 %v1613_v45  ;;  %1678 = vmatprep.subr.bf16.mxu1 %v1613_v45  ;;  %v154_v45 = vld [vmem:[%s2522_s4 + $0xe0] sm:$0xff]  ;;  %v2129_v55 = vld [vmem:[%s2524_s1 + $0x50] sm:$0xff]  ;;  %v994_v6 = vld [vmem:[%s2525_s2 + $0x8] sm:$0xff] }
  0x1f   :  { %v1647_v49 = vpack.c.bf16 %v156_v46, %v154_v45  ;;  %v172_v63 = vld [vmem:[%s2523_s0 + $0x70] sm:$0xff]  ;;  %v998_v8 = vld [vmem:[%s2525_s2 + $0x28] sm:$0xff]  ;;  %v1004_v14 = vld [vmem:[%s2525_s2 + $0x58] sm:$0xff] }
  0x20   :  { %v1003_v13 = vld [vmem:[%s2525_s2 + $0x50] sm:$0xff]  ;;  %v1005_v15 = vld [vmem:[%s2525_s2 + $0x60] sm:$0xff]  ;;  %v1006_v16 = vld [vmem:[%s2525_s2 + $0x68] sm:$0xff] }
  0x21   :  { %1616 = vmatpush1.bf16.msra.mxu0 %v1615_v50  ;;  %1680 = vmatpush1.bf16.msra.mxu1 %v1615_v50  ;;  %v166_v50 = vld [vmem:[%s2523_s0 + $0x40] sm:$0xff] }
  0x22   :  { %1618 = vmatprep.subr.bf16.mxu0 %v1617_v51  ;;  %1682 = vmatprep.subr.bf16.mxu1 %v1617_v51  ;;  %v2107_v51 = vld [vmem:[%s2524_s1 + $0x40] sm:$0xff] }
  0x23   :  { %v1237_v22 = vld [vmem:[%s2526_s5] sm:$0x3] }
  0x24   :  { %287 = vmatmul.mubr.f32.vlgmr.msra.gmra.mrb[0].mxu0 %v158_v56  ;;  %801 = vmatmul.mubr.f32.vlgmr.msra.gmra.mrb[0].mxu1 %v1941_v57  ;;  %v169_v56 = vld [vmem:[%s2523_s0 + $0x58] sm:$0xff]  ;;  %v1238_v24 = vld [vmem:[%s2527_s6] sm:$0x3] }
  0x25   :  { %1620 = vmatpush1.bf16.msra.mxu0 %v1619_v58  ;;  %1684 = vmatpush1.bf16.msra.mxu1 %v1619_v58  ;;  %v2140_v58 = vld [vmem:[%s2524_s1 + $0x58] sm:$0xff] }
  0x26   :  { %292 = vmatprep.mubr.f32.mxu0 %v1778_v3  ;;  %806 = vmatprep.mubr.f32.mxu1 %v1778_v3 }
  0x27   :  { %1622 = vmatprep.subr.bf16.mxu0 %v1621_v59  ;;  %1686 = vmatprep.subr.bf16.mxu1 %v1621_v59  ;;  %v170_v59 = vld [vmem:[%s2523_s0 + $0x60] sm:$0xff] }
  0x28   :  { %293 = vmatmul.mubr.f32.gmra.mrb[2].mxu0 %v159_v0  ;;  %807 = vmatmul.mubr.f32.gmra.mrb[2].mxu1 %v1962_v1  ;;  %v2173_v0 = vld [vmem:[%s2524_s1 + $0x70] sm:$0xff] }
  0x29   :  { %298 = vmatprep.mubr.f32.mxu0 %v1778_v3  ;;  %812 = vmatprep.mubr.f32.mxu1 %v1778_v3 }
  0x2a   :  { %1624 = vmatpush1.bf16.msra.mxu0 %v1623_v2  ;;  %1688 = vmatpush1.bf16.msra.mxu1 %v1623_v2  ;;  %v173_v2 = vld [vmem:[%s2523_s0 + $0x78] sm:$0xff] }
  0x2b   :  { %1626 = vmatprep.subr.bf16.mxu0 %v1625_v4  ;;  %1690 = vmatprep.subr.bf16.mxu1 %v1625_v4  ;;  %v2184_v4 = vld [vmem:[%s2524_s1 + $0x78] sm:$0xff] }
  0x2c   :  { %299 = vmatmul.mubr.f32.gmra.mrb[4].mxu0 %v160_v9  ;;  %813 = vmatmul.mubr.f32.gmra.mrb[4].mxu1 %v1987_v10  ;;  %v999_v9 = vld [vmem:[%s2525_s2 + $0x30] sm:$0xff] }
  0x2d   :  { %304 = vmatprep.mubr.f32.mxu0 %v1778_v3  ;;  %818 = vmatprep.mubr.f32.mxu1 %v1778_v3 }
  0x2e   :  { %1628 = vmatpush1.bf16.msra.mxu0 %v1627_v11  ;;  %1692 = vmatpush1.bf16.msra.mxu1 %v1627_v11  ;;  %v1001_v11 = vld [vmem:[%s2525_s2 + $0x40] sm:$0xff] }
  0x2f   :  { %1630 = vmatprep.subr.bf16.mxu0 %v1629_v12  ;;  %1694 = vmatprep.subr.bf16.mxu1 %v1629_v12  ;;  %v1002_v12 = vld [vmem:[%s2525_s2 + $0x48] sm:$0xff] }
  0x30   :  { %305 = vmatmul.mubr.f32.gmra.mrb[6].mxu0 %v161_v17  ;;  %819 = vmatmul.mubr.f32.gmra.mrb[6].mxu1 %v2010_v18  ;;  %v1007_v17 = vld [vmem:[%s2525_s2 + $0x70] sm:$0xff] }
  0x31   :  { %310 = vmatprep.mubr.f32.mxu0 %v1778_v3  ;;  %824 = vmatprep.mubr.f32.mxu1 %v1778_v3 }
  0x32   :  { %1632 = vmatpush1.bf16.msra.mxu0 %v1631_v19  ;;  %1696 = vmatpush1.bf16.msra.mxu1 %v1631_v19  ;;  %v1272_v19 = vlaneseq }
  0x33   :  { %1634 = vmatprep.subr.bf16.mxu0 %v1633_v20  ;;  %1698 = vmatprep.subr.bf16.mxu1 %v1633_v20 }
  0x34   :  { %311 = vmatmul.mubr.f32.gmra.mrb[8].mxu0 %v162_v25  ;;  %825 = vmatmul.mubr.f32.gmra.mrb[8].mxu1 %v2033_v26  ;;  %v1273_v20 = vshrl.u32 %v1272_v19, 7 }
  0x35   :  { %316 = vmatprep.mubr.f32.mxu0 %v1778_v3  ;;  %830 = vmatprep.mubr.f32.mxu1 %v1778_v3 }
  0x36   :  { %1636 = vmatpush1.bf16.msra.mxu0 %v1635_v27  ;;  %1700 = vmatpush1.bf16.msra.mxu1 %v1635_v27  ;;  %v1274_v21 = vsub.s32 0, %v1273_v20  ;;  %v1278_v23 = vsub.s32 1, %v1273_v20 }
  0x37   :  { %1638 = vmatprep.subr.bf16.mxu0 %v1637_v28  ;;  %1702 = vmatprep.subr.bf16.mxu1 %v1637_v28 }
  0x38   :  { %317 = vmatmul.mubr.f32.gmra.mrb[10].mxu0 %v163_v33  ;;  %831 = vmatmul.mubr.f32.gmra.mrb[10].mxu1 %v2056_v34  ;;  %v2291_v25 = vrot.slane %v1237_v22, %v1278_v23  ;;  %v2295_v29 = vrot.slane %v1238_v24, %v1278_v23 }
  0x39   :  { %322 = vmatprep.mubr.f32.mxu0 %v1778_v3  ;;  %836 = vmatprep.mubr.f32.mxu1 %v1778_v3 }
  0x3a   :  { %1640 = vmatpush1.bf16.msra.mxu0 %v1639_v35  ;;  %1704 = vmatpush1.bf16.msra.mxu1 %v1639_v35 }
  0x3b   :  { %1642 = vmatprep.subr.bf16.mxu0 %v1641_v36  ;;  %1706 = vmatprep.subr.bf16.mxu1 %v1641_v36 }
  0x3c   :  { %323 = vmatmul.mubr.f32.gmra.mrb[12].mxu0 %v164_v41  ;;  %837 = vmatmul.mubr.f32.gmra.mrb[12].mxu1 %v2079_v42 }
  0x3d   :  { %328 = vmatprep.mubr.f32.mxu0 %v1778_v3  ;;  %842 = vmatprep.mubr.f32.mxu1 %v1778_v3 }
  0x3e   :  { %1644 = vmatpush1.bf16.msra.mxu0 %v1643_v43  ;;  %1708 = vmatpush1.bf16.msra.mxu1 %v1643_v43 }
  0x3f   :  { %1646 = vmatprep.subr.bf16.mxu0 %v1645_v44  ;;  %1710 = vmatprep.subr.bf16.mxu1 %v1645_v44 }
  0x40   :  { %329 = vmatmul.mubr.f32.gmra.mrb[14].mxu0 %v165_v47  ;;  %843 = vmatmul.mubr.f32.gmra.mrb[14].mxu1 %v2096_v48 }
  0x41   :  { %334 = vmatprep.mubr.f32.mxu0 %v1778_v3  ;;  %848 = vmatprep.mubr.f32.mxu1 %v1778_v3 }
  0x42   :  { %1648 = vmatpush1.bf16.msra.mxu0 %v1647_v49  ;;  %1712 = vmatpush1.bf16.msra.mxu1 %v1647_v49 }
  0x44   :  { %335 = vmatmul.mubr.f32.gmra.mrb[16].mxu0 %v166_v50  ;;  %849 = vmatmul.mubr.f32.gmra.mrb[16].mxu1 %v2107_v51 }
  0x45   :  { %340 = vmatprep.mubr.f32.mxu0 %v1778_v3  ;;  %854 = vmatprep.mubr.f32.mxu1 %v1778_v3 }
  0x48   :  { %341 = vmatmul.mubr.f32.gmra.mrb[18].mxu0 %v167_v52  ;;  %855 = vmatmul.mubr.f32.gmra.mrb[18].mxu1 %v2118_v53 }
  0x49   :  { %346 = vmatprep.mubr.f32.mxu0 %v1778_v3  ;;  %860 = vmatprep.mubr.f32.mxu1 %v1778_v3 }
  0x4c   :  { %347 = vmatmul.mubr.f32.gmra.mrb[20].mxu0 %v168_v54  ;;  %861 = vmatmul.mubr.f32.gmra.mrb[20].mxu1 %v2129_v55 }
  0x4d   :  { %352 = vmatprep.mubr.f32.mxu0 %v1778_v3  ;;  %866 = vmatprep.mubr.f32.mxu1 %v1778_v3 }
  0x50   :  { %353 = vmatmul.mubr.f32.gmra.mrb[22].mxu0 %v169_v56  ;;  %867 = vmatmul.mubr.f32.gmra.mrb[22].mxu1 %v2140_v58 }
  0x51   :  { %358 = vmatprep.mubr.f32.mxu0 %v1778_v3  ;;  %872 = vmatprep.mubr.f32.mxu1 %v1778_v3 }
  0x54   :  { %359 = vmatmul.mubr.f32.gmra.mrb[24].mxu0 %v170_v59  ;;  %873 = vmatmul.mubr.f32.gmra.mrb[24].mxu1 %v2151_v60 }
  0x55   :  { %364 = vmatprep.mubr.f32.mxu0 %v1778_v3  ;;  %878 = vmatprep.mubr.f32.mxu1 %v1778_v3 }
  0x58   :  { %365 = vmatmul.mubr.f32.gmra.mrb[26].mxu0 %v171_v61  ;;  %879 = vmatmul.mubr.f32.gmra.mrb[26].mxu1 %v2162_v62 }
  0x59   :  { %370 = vmatprep.mubr.f32.mxu0 %v1778_v3  ;;  %884 = vmatprep.mubr.f32.mxu1 %v1778_v3 }
  0x5c   :  { %371 = vmatmul.mubr.f32.gmra.mrb[28].mxu0 %v172_v63  ;;  %885 = vmatmul.mubr.f32.gmra.mrb[28].mxu1 %v2173_v0 }
  0x5d   :  { %376 = vmatprep.mubr.f32.mxu0 %v1778_v3  ;;  %890 = vmatprep.mubr.f32.mxu1 %v1778_v3 }
  0x60   :  { %377 = vmatmul.mubr.f32.gmra.mrb[30].mxu0 %v173_v2  ;;  %891 = vmatmul.mubr.f32.gmra.mrb[30].mxu1 %v2184_v4 }
  0x61   :  { %543 = vmatprep.mubr.f32.mxu0 %v1778_v3  ;;  %1073 = vmatprep.mubr.f32.mxu1 %v1778_v3 }
  0x64   :  { %544 = vmatmul.mubr.f32.vlgmr.msra.gmra.mrb[0].mxu0 %v1941_v57  ;;  %1074 = vmatmul.mubr.f32.vlgmr.msra.gmra.mrb[0].mxu1 %v993_v5  ;;  %v995_v57 = vld [vmem:[%s2525_s2 + $0x10] sm:$0xff] }
  0x65   :  { %549 = vmatprep.mubr.f32.mxu0 %v1778_v3  ;;  %1079 = vmatprep.mubr.f32.mxu1 %v1778_v3 }
  0x68   :  { %550 = vmatmul.mubr.f32.gmra.mrb[2].mxu0 %v1962_v1  ;;  %1080 = vmatmul.mubr.f32.gmra.mrb[2].mxu1 %v994_v6  ;;  %v996_v1 = vld [vmem:[%s2525_s2 + $0x18] sm:$0xff] }
  0x69   :  { %555 = vmatprep.mubr.f32.mxu0 %v1778_v3  ;;  %1085 = vmatprep.mubr.f32.mxu1 %v1778_v3 }
  0x6c   :  { %556 = vmatmul.mubr.f32.gmra.mrb[4].mxu0 %v1987_v10  ;;  %1086 = vmatmul.mubr.f32.gmra.mrb[4].mxu1 %v995_v57  ;;  %v1000_v10 = vld [vmem:[%s2525_s2 + $0x38] sm:$0xff] }
  0x6d   :  { %561 = vmatprep.mubr.f32.mxu0 %v1778_v3  ;;  %1091 = vmatprep.mubr.f32.mxu1 %v1778_v3 }
  0x70   :  { %562 = vmatmul.mubr.f32.gmra.mrb[6].mxu0 %v2010_v18  ;;  %1092 = vmatmul.mubr.f32.gmra.mrb[6].mxu1 %v996_v1  ;;  %v1008_v18 = vld [vmem:[%s2525_s2 + $0x78] sm:$0xff] }
  0x71   :  { %567 = vmatprep.mubr.f32.mxu0 %v1778_v3  ;;  %1097 = vmatprep.mubr.f32.mxu1 %v1778_v3 }
  0x74   :  { %568 = vmatmul.mubr.f32.gmra.mrb[8].mxu0 %v2033_v26  ;;  %1098 = vmatmul.mubr.f32.gmra.mrb[8].mxu1 %v997_v7  ;;  %v2293_v26 = vrot.slane %v1238_v24, %v1274_v21 }
  0x75   :  { %573 = vmatprep.mubr.f32.mxu0 %v1778_v3  ;;  %1103 = vmatprep.mubr.f32.mxu1 %v1778_v3 }
  0x78   :  { %574 = vmatmul.mubr.f32.gmra.mrb[10].mxu0 %v2056_v34  ;;  %1104 = vmatmul.mubr.f32.gmra.mrb[10].mxu1 %v998_v8 }
  0x79   :  { %579 = vmatprep.mubr.f32.mxu0 %v1778_v3  ;;  %1109 = vmatprep.mubr.f32.mxu1 %v1778_v3 }
  0x7c   :  { %580 = vmatmul.mubr.f32.gmra.mrb[12].mxu0 %v2079_v42  ;;  %1110 = vmatmul.mubr.f32.gmra.mrb[12].mxu1 %v999_v9 }
  0x7d   :  { %585 = vmatprep.mubr.f32.mxu0 %v1778_v3  ;;  %1115 = vmatprep.mubr.f32.mxu1 %v1778_v3 }
  0x80   :  { %586 = vmatmul.mubr.f32.gmra.mrb[14].mxu0 %v2096_v48  ;;  %1116 = vmatmul.mubr.f32.gmra.mrb[14].mxu1 %v1000_v10 }
  0x81   :  { %591 = vmatprep.mubr.f32.mxu0 %v1778_v3  ;;  %1121 = vmatprep.mubr.f32.mxu1 %v1778_v3 }
  0x84   :  { %592 = vmatmul.mubr.f32.gmra.mrb[16].mxu0 %v2107_v51  ;;  %1122 = vmatmul.mubr.f32.gmra.mrb[16].mxu1 %v1001_v11 }
  0x85   :  { %597 = vmatprep.mubr.f32.mxu0 %v1778_v3  ;;  %1127 = vmatprep.mubr.f32.mxu1 %v1778_v3 }
  0x88   :  { %598 = vmatmul.mubr.f32.gmra.mrb[18].mxu0 %v2118_v53  ;;  %1128 = vmatmul.mubr.f32.gmra.mrb[18].mxu1 %v1002_v12 }
  0x89   :  { %603 = vmatprep.mubr.f32.mxu0 %v1778_v3  ;;  %1133 = vmatprep.mubr.f32.mxu1 %v1778_v3 }
  0x8c   :  { %604 = vmatmul.mubr.f32.gmra.mrb[20].mxu0 %v2129_v55  ;;  %1134 = vmatmul.mubr.f32.gmra.mrb[20].mxu1 %v1003_v13 }
  0x8d   :  { %609 = vmatprep.mubr.f32.mxu0 %v1778_v3  ;;  %1139 = vmatprep.mubr.f32.mxu1 %v1778_v3 }
  0x90   :  { %610 = vmatmul.mubr.f32.gmra.mrb[22].mxu0 %v2140_v58  ;;  %1140 = vmatmul.mubr.f32.gmra.mrb[22].mxu1 %v1004_v14 }
  0x91   :  { %615 = vmatprep.mubr.f32.mxu0 %v1778_v3  ;;  %1145 = vmatprep.mubr.f32.mxu1 %v1778_v3 }
  0x94   :  { %616 = vmatmul.mubr.f32.gmra.mrb[24].mxu0 %v2151_v60  ;;  %1146 = vmatmul.mubr.f32.gmra.mrb[24].mxu1 %v1005_v15 }
  0x95   :  { %621 = vmatprep.mubr.f32.mxu0 %v1778_v3  ;;  %1151 = vmatprep.mubr.f32.mxu1 %v1778_v3 }
  0x98   :  { %622 = vmatmul.mubr.f32.gmra.mrb[26].mxu0 %v2162_v62  ;;  %1152 = vmatmul.mubr.f32.gmra.mrb[26].mxu1 %v1006_v16 }
  0x99   :  { %627 = vmatprep.mubr.f32.mxu0 %v1778_v3  ;;  %1157 = vmatprep.mubr.f32.mxu1 %v1778_v3 }
  0x9c   :  { %628 = vmatmul.mubr.f32.gmra.mrb[28].mxu0 %v2173_v0  ;;  %1158 = vmatmul.mubr.f32.gmra.mrb[28].mxu1 %v1007_v17 }
  0x9d   :  { %633 = vmatprep.mubr.f32.mxu0 %v1778_v3  ;;  %1163 = vmatprep.mubr.f32.mxu1 %v1778_v3  ;;  %v2289_v3 = vrot.slane %v1237_v22, %v1274_v21 }
  0xa0   :  { %634 = vmatmul.mubr.f32.gmra.mrb[30].mxu0 %v2184_v4  ;;  %1164 = vmatmul.mubr.f32.gmra.mrb[30].mxu1 %v1008_v18 }
 0x137   :  { %v545_v27 = vpop.f32.mrb[0].mxu0  ;;  %v1075_v28 = vpop.f32.mrb[0].mxu1 }
 0x138   :  { %v1282_v30 = vmul.f32 %v2289_v3, %v545_v27  ;;  %v1421_v31 = vmul.f32 %v2289_v3, %v1075_v28  ;;  %v547_v32 = vpop.f32.mrb[1].mxu0  ;;  %v1077_v33 = vpop.f32.mrb[1].mxu1 }
 0x139   :  { %v1283_v34 = vmul.f32 %v2291_v25, %v547_v32  ;;  %v1422_v35 = vmul.f32 %v2291_v25, %v1077_v33 }
 0x13a   :  { %v1325_v36 = vadd.f32 %v2293_v26, %v1282_v30  ;;  %v1453_v37 = vadd.f32 %v1421_v31, %v2293_v26 }
 0x13b   :  { %v1326_v38 = vadd.f32 %v2295_v29, %v1283_v34  ;;  %v1454_v39 = vadd.f32 %v1422_v35, %v2295_v29  ;;  %v551_v40 = vpop.f32.mrb[2].mxu0  ;;  %v1081_v41 = vpop.f32.mrb[2].mxu1 }
 0x13c   :  { %v1357_v42 = vmax.f32 %v1325_v36, 0.0  ;;  %v1485_v43 = vmax.f32 %v1453_v37, 0.0  ;;  %v1284_v44 = vmul.f32 %v2289_v3, %v551_v40  ;;  %v1423_v45 = vmul.f32 %v2289_v3, %v1081_v41  ;;  %v553_v46 = vpop.f32.mrb[3].mxu0  ;;  %v1083_v47 = vpop.f32.mrb[3].mxu1 }
 0x13d   :  { %v1358_v48 = vmax.f32 %v1326_v38, 0.0  ;;  %v1486_v49 = vmax.f32 %v1454_v39, 0.0  ;;  %v1285_v50 = vmul.f32 %v2291_v25, %v553_v46  ;;  %v1424_v51 = vmul.f32 %v2291_v25, %v1083_v47 }
 0x13e   :  { %v1517_v52 = vmax.f32 %v1357_v42, %v1485_v43  ;;  %v1327_v53 = vadd.f32 %v2293_v26, %v1284_v44  ;;  %v1455_v54 = vadd.f32 %v1423_v45, %v2293_v26 }
 0x13f   :  { %v1518_v55 = vmax.f32 %v1358_v48, %v1486_v49  ;;  %v1328_v56 = vadd.f32 %v2295_v29, %v1285_v50  ;;  %v1456_v58 = vadd.f32 %v1424_v51, %v2295_v29  ;;  %v557_v59 = vpop.f32.mrb[4].mxu0  ;;  %v1087_v60 = vpop.f32.mrb[4].mxu1 }
 0x140   :  { %1549 = vst [vmem:[%s2528_s7] sm:$0xff] %v1517_v52  ;;  %v1359_v61 = vmax.f32 %v1327_v53, 0.0  ;;  %v1487_v62 = vmax.f32 %v1455_v54, 0.0  ;;  %v1286_v63 = vmul.f32 %v2289_v3, %v557_v59  ;;  %v1425_v0 = vmul.f32 %v2289_v3, %v1087_v60  ;;  %v559_v2 = vpop.f32.mrb[5].mxu0  ;;  %v1089_v4 = vpop.f32.mrb[5].mxu1 }
 0x141   :  { %1550 = vst [vmem:[%s2528_s7 + $0x8] sm:$0xff] %v1518_v55  ;;  %v1360_v5 = vmax.f32 %v1328_v56, 0.0  ;;  %v1488_v6 = vmax.f32 %v1456_v58, 0.0  ;;  %v1287_v57 = vmul.f32 %v2291_v25, %v559_v2  ;;  %v1426_v1 = vmul.f32 %v2291_v25, %v1089_v4 }
 0x142   :  { %v1519_v7 = vmax.f32 %v1359_v61, %v1487_v62  ;;  %v1329_v8 = vadd.f32 %v2293_v26, %v1286_v63  ;;  %v1457_v9 = vadd.f32 %v1425_v0, %v2293_v26 }
 0x143   :  { %v1520_v10 = vmax.f32 %v1360_v5, %v1488_v6  ;;  %v1330_v11 = vadd.f32 %v2295_v29, %v1287_v57  ;;  %v1458_v12 = vadd.f32 %v1426_v1, %v2295_v29  ;;  %v563_v13 = vpop.f32.mrb[6].mxu0  ;;  %v1093_v14 = vpop.f32.mrb[6].mxu1 }
 0x144   :  { %1551 = vst [vmem:[%s2528_s7 + $0x10] sm:$0xff] %v1519_v7  ;;  %v1361_v15 = vmax.f32 %v1329_v8, 0.0  ;;  %v1489_v16 = vmax.f32 %v1457_v9, 0.0  ;;  %v1288_v17 = vmul.f32 %v2289_v3, %v563_v13  ;;  %v1427_v18 = vmul.f32 %v2289_v3, %v1093_v14  ;;  %v565_v19 = vpop.f32.mrb[7].mxu0  ;;  %v1095_v20 = vpop.f32.mrb[7].mxu1 }
 0x145   :  { %1552 = vst [vmem:[%s2528_s7 + $0x18] sm:$0xff] %v1520_v10  ;;  %v1362_v21 = vmax.f32 %v1330_v11, 0.0  ;;  %v1490_v22 = vmax.f32 %v1458_v12, 0.0  ;;  %v1289_v23 = vmul.f32 %v2291_v25, %v565_v19  ;;  %v1428_v24 = vmul.f32 %v2291_v25, %v1095_v20 }
 0x146   :  { %v1521_v27 = vmax.f32 %v1361_v15, %v1489_v16  ;;  %v1331_v28 = vadd.f32 %v2293_v26, %v1288_v17  ;;  %v1459_v30 = vadd.f32 %v1427_v18, %v2293_v26 }
 0x147   :  { %v1522_v31 = vmax.f32 %v1362_v21, %v1490_v22  ;;  %v1332_v32 = vadd.f32 %v2295_v29, %v1289_v23  ;;  %v1460_v33 = vadd.f32 %v1428_v24, %v2295_v29  ;;  %v569_v34 = vpop.f32.mrb[8].mxu0  ;;  %v1099_v35 = vpop.f32.mrb[8].mxu1 }
 0x148   :  { %1553 = vst [vmem:[%s2528_s7 + $0x20] sm:$0xff] %v1521_v27  ;;  %v1363_v36 = vmax.f32 %v1331_v28, 0.0  ;;  %v1491_v37 = vmax.f32 %v1459_v30, 0.0  ;;  %v1290_v38 = vmul.f32 %v2289_v3, %v569_v34  ;;  %v1429_v39 = vmul.f32 %v2289_v3, %v1099_v35  ;;  %v571_v40 = vpop.f32.mrb[9].mxu0  ;;  %v1101_v41 = vpop.f32.mrb[9].mxu1 }
 0x149   :  { %1554 = vst [vmem:[%s2528_s7 + $0x28] sm:$0xff] %v1522_v31  ;;  %v1364_v42 = vmax.f32 %v1332_v32, 0.0  ;;  %v1492_v43 = vmax.f32 %v1460_v33, 0.0  ;;  %v1291_v44 = vmul.f32 %v2291_v25, %v571_v40  ;;  %v1430_v45 = vmul.f32 %v2291_v25, %v1101_v41 }
 0x14a   :  { %v1523_v46 = vmax.f32 %v1363_v36, %v1491_v37  ;;  %v1333_v47 = vadd.f32 %v2293_v26, %v1290_v38  ;;  %v1461_v48 = vadd.f32 %v1429_v39, %v2293_v26 }
 0x14b   :  { %v1524_v49 = vmax.f32 %v1364_v42, %v1492_v43  ;;  %v1334_v50 = vadd.f32 %v2295_v29, %v1291_v44  ;;  %v1462_v51 = vadd.f32 %v1430_v45, %v2295_v29  ;;  %v575_v52 = vpop.f32.mrb[10].mxu0  ;;  %v1105_v53 = vpop.f32.mrb[10].mxu1 }
 0x14c   :  { %1555 = vst [vmem:[%s2528_s7 + $0x30] sm:$0xff] %v1523_v46  ;;  %v1365_v54 = vmax.f32 %v1333_v47, 0.0  ;;  %v1493_v55 = vmax.f32 %v1461_v48, 0.0  ;;  %v1292_v56 = vmul.f32 %v2289_v3, %v575_v52  ;;  %v1431_v58 = vmul.f32 %v2289_v3, %v1105_v53  ;;  %v577_v59 = vpop.f32.mrb[11].mxu0  ;;  %v1107_v60 = vpop.f32.mrb[11].mxu1 }
 0x14d   :  { %1556 = vst [vmem:[%s2528_s7 + $0x38] sm:$0xff] %v1524_v49  ;;  %v1366_v61 = vmax.f32 %v1334_v50, 0.0  ;;  %v1494_v62 = vmax.f32 %v1462_v51, 0.0  ;;  %v1293_v63 = vmul.f32 %v2291_v25, %v577_v59  ;;  %v1432_v0 = vmul.f32 %v2291_v25, %v1107_v60 }
 0x14e   :  { %v1525_v2 = vmax.f32 %v1365_v54, %v1493_v55  ;;  %v1335_v4 = vadd.f32 %v2293_v26, %v1292_v56  ;;  %v1463_v5 = vadd.f32 %v1431_v58, %v2293_v26 }
 0x14f   :  { %v1526_v6 = vmax.f32 %v1366_v61, %v1494_v62  ;;  %v1336_v57 = vadd.f32 %v2295_v29, %v1293_v63  ;;  %v1464_v1 = vadd.f32 %v1432_v0, %v2295_v29  ;;  %v581_v7 = vpop.f32.mrb[12].mxu0  ;;  %v1111_v8 = vpop.f32.mrb[12].mxu1 }
 0x150   :  { %1557 = vst [vmem:[%s2528_s7 + $0x40] sm:$0xff] %v1525_v2  ;;  %v1367_v9 = vmax.f32 %v1335_v4, 0.0  ;;  %v1495_v10 = vmax.f32 %v1463_v5, 0.0  ;;  %v1294_v11 = vmul.f32 %v2289_v3, %v581_v7  ;;  %v1433_v12 = vmul.f32 %v2289_v3, %v1111_v8  ;;  %v583_v13 = vpop.f32.mrb[13].mxu0  ;;  %v1113_v14 = vpop.f32.mrb[13].mxu1 }
 0x151   :  { %1558 = vst [vmem:[%s2528_s7 + $0x48] sm:$0xff] %v1526_v6  ;;  %v1368_v15 = vmax.f32 %v1336_v57, 0.0  ;;  %v1496_v16 = vmax.f32 %v1464_v1, 0.0  ;;  %v1295_v17 = vmul.f32 %v2291_v25, %v583_v13  ;;  %v1434_v18 = vmul.f32 %v2291_v25, %v1113_v14 }
 0x152   :  { %v1527_v19 = vmax.f32 %v1367_v9, %v1495_v10  ;;  %v1337_v20 = vadd.f32 %v2293_v26, %v1294_v11  ;;  %v1465_v21 = vadd.f32 %v1433_v12, %v2293_v26 }
 0x153   :  { %v1528_v22 = vmax.f32 %v1368_v15, %v1496_v16  ;;  %v1338_v23 = vadd.f32 %v2295_v29, %v1295_v17  ;;  %v1466_v24 = vadd.f32 %v1434_v18, %v2295_v29  ;;  %v587_v27 = vpop.f32.mrb[14].mxu0  ;;  %v1117_v28 = vpop.f32.mrb[14].mxu1 }
 0x154   :  { %1559 = vst [vmem:[%s2528_s7 + $0x50] sm:$0xff] %v1527_v19  ;;  %v1369_v30 = vmax.f32 %v1337_v20, 0.0  ;;  %v1497_v31 = vmax.f32 %v1465_v21, 0.0  ;;  %v1296_v32 = vmul.f32 %v2289_v3, %v587_v27  ;;  %v1435_v33 = vmul.f32 %v2289_v3, %v1117_v28  ;;  %v589_v34 = vpop.f32.mrb[15].mxu0  ;;  %v1119_v35 = vpop.f32.mrb[15].mxu1 }
 0x155   :  { %1560 = vst [vmem:[%s2528_s7 + $0x58] sm:$0xff] %v1528_v22  ;;  %v1370_v36 = vmax.f32 %v1338_v23, 0.0  ;;  %v1498_v37 = vmax.f32 %v1466_v24, 0.0  ;;  %v1297_v38 = vmul.f32 %v2291_v25, %v589_v34  ;;  %v1436_v39 = vmul.f32 %v2291_v25, %v1119_v35 }
 0x156   :  { %v1529_v40 = vmax.f32 %v1369_v30, %v1497_v31  ;;  %v1339_v41 = vadd.f32 %v2293_v26, %v1296_v32  ;;  %v1467_v42 = vadd.f32 %v1435_v33, %v2293_v26 }
 0x157   :  { %v1530_v43 = vmax.f32 %v1370_v36, %v1498_v37  ;;  %v1340_v44 = vadd.f32 %v2295_v29, %v1297_v38  ;;  %v1468_v45 = vadd.f32 %v1436_v39, %v2295_v29  ;;  %v593_v46 = vpop.f32.mrb[16].mxu0  ;;  %v1123_v47 = vpop.f32.mrb[16].mxu1 }
 0x158   :  { %1561 = vst [vmem:[%s2528_s7 + $0x60] sm:$0xff] %v1529_v40  ;;  %v1371_v48 = vmax.f32 %v1339_v41, 0.0  ;;  %v1499_v49 = vmax.f32 %v1467_v42, 0.0  ;;  %v1298_v50 = vmul.f32 %v2289_v3, %v593_v46  ;;  %v1437_v51 = vmul.f32 %v2289_v3, %v1123_v47  ;;  %v595_v52 = vpop.f32.mrb[17].mxu0  ;;  %v1125_v53 = vpop.f32.mrb[17].mxu1 }
 0x159   :  { %1562 = vst [vmem:[%s2528_s7 + $0x68] sm:$0xff] %v1530_v43  ;;  %v1372_v54 = vmax.f32 %v1340_v44, 0.0  ;;  %v1500_v55 = vmax.f32 %v1468_v45, 0.0  ;;  %v1299_v56 = vmul.f32 %v2291_v25, %v595_v52  ;;  %v1438_v58 = vmul.f32 %v2291_v25, %v1125_v53 }
 0x15a   :  { %v1531_v59 = vmax.f32 %v1371_v48, %v1499_v49  ;;  %v1341_v60 = vadd.f32 %v2293_v26, %v1298_v50  ;;  %v1469_v61 = vadd.f32 %v1437_v51, %v2293_v26 }
 0x15b   :  { %v1532_v62 = vmax.f32 %v1372_v54, %v1500_v55  ;;  %v1342_v63 = vadd.f32 %v2295_v29, %v1299_v56  ;;  %v1470_v0 = vadd.f32 %v1438_v58, %v2295_v29  ;;  %v599_v2 = vpop.f32.mrb[18].mxu0  ;;  %v1129_v4 = vpop.f32.mrb[18].mxu1 }
 0x15c   :  { %1563 = vst [vmem:[%s2528_s7 + $0x70] sm:$0xff] %v1531_v59  ;;  %v1373_v5 = vmax.f32 %v1341_v60, 0.0  ;;  %v1501_v6 = vmax.f32 %v1469_v61, 0.0  ;;  %v1300_v57 = vmul.f32 %v2289_v3, %v599_v2  ;;  %v1439_v1 = vmul.f32 %v2289_v3, %v1129_v4  ;;  %v601_v7 = vpop.f32.mrb[19].mxu0  ;;  %v1131_v8 = vpop.f32.mrb[19].mxu1 }
 0x15d   :  { %1564 = vst [vmem:[%s2528_s7 + $0x78] sm:$0xff] %v1532_v62  ;;  %v1374_v9 = vmax.f32 %v1342_v63, 0.0  ;;  %v1502_v10 = vmax.f32 %v1470_v0, 0.0  ;;  %v1301_v11 = vmul.f32 %v2291_v25, %v601_v7  ;;  %v1440_v12 = vmul.f32 %v2291_v25, %v1131_v8 }
 0x15e   :  { %v1533_v13 = vmax.f32 %v1373_v5, %v1501_v6  ;;  %v1343_v14 = vadd.f32 %v2293_v26, %v1300_v57  ;;  %v1471_v15 = vadd.f32 %v1439_v1, %v2293_v26 }
 0x15f   :  { %v1534_v16 = vmax.f32 %v1374_v9, %v1502_v10  ;;  %v1344_v17 = vadd.f32 %v2295_v29, %v1301_v11  ;;  %v1472_v18 = vadd.f32 %v1440_v12, %v2295_v29  ;;  %v605_v19 = vpop.f32.mrb[20].mxu0  ;;  %v1135_v20 = vpop.f32.mrb[20].mxu1 }
 0x160   :  { %1565 = vst [vmem:[%s2528_s7 + $0x80] sm:$0xff] %v1533_v13  ;;  %v1375_v21 = vmax.f32 %v1343_v14, 0.0  ;;  %v1503_v22 = vmax.f32 %v1471_v15, 0.0  ;;  %v1302_v23 = vmul.f32 %v2289_v3, %v605_v19  ;;  %v1441_v24 = vmul.f32 %v2289_v3, %v1135_v20  ;;  %v607_v27 = vpop.f32.mrb[21].mxu0  ;;  %v1137_v28 = vpop.f32.mrb[21].mxu1 }
 0x161   :  { %1566 = vst [vmem:[%s2528_s7 + $0x88] sm:$0xff] %v1534_v16  ;;  %v1376_v30 = vmax.f32 %v1344_v17, 0.0  ;;  %v1504_v31 = vmax.f32 %v1472_v18, 0.0  ;;  %v1303_v32 = vmul.f32 %v2291_v25, %v607_v27  ;;  %v1442_v33 = vmul.f32 %v2291_v25, %v1137_v28 }
 0x162   :  { %v1535_v34 = vmax.f32 %v1375_v21, %v1503_v22  ;;  %v1345_v35 = vadd.f32 %v2293_v26, %v1302_v23  ;;  %v1473_v36 = vadd.f32 %v1441_v24, %v2293_v26 }
 0x163   :  { %v1536_v37 = vmax.f32 %v1376_v30, %v1504_v31  ;;  %v1346_v38 = vadd.f32 %v2295_v29, %v1303_v32  ;;  %v1474_v39 = vadd.f32 %v1442_v33, %v2295_v29  ;;  %v611_v40 = vpop.f32.mrb[22].mxu0  ;;  %v1141_v41 = vpop.f32.mrb[22].mxu1 }
 0x164   :  { %1567 = vst [vmem:[%s2528_s7 + $0x90] sm:$0xff] %v1535_v34  ;;  %v1377_v42 = vmax.f32 %v1345_v35, 0.0  ;;  %v1505_v43 = vmax.f32 %v1473_v36, 0.0  ;;  %v1304_v44 = vmul.f32 %v2289_v3, %v611_v40  ;;  %v1443_v45 = vmul.f32 %v2289_v3, %v1141_v41  ;;  %v613_v46 = vpop.f32.mrb[23].mxu0  ;;  %v1143_v47 = vpop.f32.mrb[23].mxu1 }
 0x165   :  { %1568 = vst [vmem:[%s2528_s7 + $0x98] sm:$0xff] %v1536_v37  ;;  %v1378_v48 = vmax.f32 %v1346_v38, 0.0  ;;  %v1506_v49 = vmax.f32 %v1474_v39, 0.0  ;;  %v1305_v50 = vmul.f32 %v2291_v25, %v613_v46  ;;  %v1444_v51 = vmul.f32 %v2291_v25, %v1143_v47 }
 0x166   :  { %v1537_v52 = vmax.f32 %v1377_v42, %v1505_v43  ;;  %v1347_v53 = vadd.f32 %v2293_v26, %v1304_v44  ;;  %v1475_v54 = vadd.f32 %v1443_v45, %v2293_v26 }
 0x167   :  { %v1538_v55 = vmax.f32 %v1378_v48, %v1506_v49  ;;  %v1348_v56 = vadd.f32 %v2295_v29, %v1305_v50  ;;  %v1476_v58 = vadd.f32 %v1444_v51, %v2295_v29  ;;  %v617_v59 = vpop.f32.mrb[24].mxu0  ;;  %v1147_v60 = vpop.f32.mrb[24].mxu1 }
 0x168   :  { %1569 = vst [vmem:[%s2528_s7 + $0xa0] sm:$0xff] %v1537_v52  ;;  %v1379_v61 = vmax.f32 %v1347_v53, 0.0  ;;  %v1507_v62 = vmax.f32 %v1475_v54, 0.0  ;;  %v1306_v63 = vmul.f32 %v2289_v3, %v617_v59  ;;  %v1445_v0 = vmul.f32 %v2289_v3, %v1147_v60  ;;  %v619_v2 = vpop.f32.mrb[25].mxu0  ;;  %v1149_v4 = vpop.f32.mrb[25].mxu1 }
 0x169   :  { %1570 = vst [vmem:[%s2528_s7 + $0xa8] sm:$0xff] %v1538_v55  ;;  %v1380_v5 = vmax.f32 %v1348_v56, 0.0  ;;  %v1508_v6 = vmax.f32 %v1476_v58, 0.0  ;;  %v1307_v57 = vmul.f32 %v2291_v25, %v619_v2  ;;  %v1446_v1 = vmul.f32 %v2291_v25, %v1149_v4 }
 0x16a   :  { %v1539_v7 = vmax.f32 %v1379_v61, %v1507_v62  ;;  %v1349_v8 = vadd.f32 %v2293_v26, %v1306_v63  ;;  %v1477_v9 = vadd.f32 %v1445_v0, %v2293_v26 }
 0x16b   :  { %v1540_v10 = vmax.f32 %v1380_v5, %v1508_v6  ;;  %v1350_v11 = vadd.f32 %v2295_v29, %v1307_v57  ;;  %v1478_v12 = vadd.f32 %v1446_v1, %v2295_v29  ;;  %v623_v13 = vpop.f32.mrb[26].mxu0  ;;  %v1153_v14 = vpop.f32.mrb[26].mxu1 }
 0x16c   :  { %1571 = vst [vmem:[%s2528_s7 + $0xb0] sm:$0xff] %v1539_v7  ;;  %v1381_v15 = vmax.f32 %v1349_v8, 0.0  ;;  %v1509_v16 = vmax.f32 %v1477_v9, 0.0  ;;  %v1308_v17 = vmul.f32 %v2289_v3, %v623_v13  ;;  %v1447_v18 = vmul.f32 %v2289_v3, %v1153_v14  ;;  %v625_v19 = vpop.f32.mrb[27].mxu0  ;;  %v1155_v20 = vpop.f32.mrb[27].mxu1 }
 0x16d   :  { %1572 = vst [vmem:[%s2528_s7 + $0xb8] sm:$0xff] %v1540_v10  ;;  %v1382_v21 = vmax.f32 %v1350_v11, 0.0  ;;  %v1510_v22 = vmax.f32 %v1478_v12, 0.0  ;;  %v1309_v23 = vmul.f32 %v2291_v25, %v625_v19  ;;  %v1448_v24 = vmul.f32 %v2291_v25, %v1155_v20 }
 0x16e   :  { %v1541_v27 = vmax.f32 %v1381_v15, %v1509_v16  ;;  %v1351_v28 = vadd.f32 %v2293_v26, %v1308_v17  ;;  %v1479_v30 = vadd.f32 %v1447_v18, %v2293_v26 }
 0x16f   :  { %v1542_v31 = vmax.f32 %v1382_v21, %v1510_v22  ;;  %v1352_v32 = vadd.f32 %v2295_v29, %v1309_v23  ;;  %v1480_v33 = vadd.f32 %v1448_v24, %v2295_v29  ;;  %v629_v34 = vpop.f32.mrb[28].mxu0  ;;  %v1159_v35 = vpop.f32.mrb[28].mxu1 }
 0x170   :  { %1573 = vst [vmem:[%s2528_s7 + $0xc0] sm:$0xff] %v1541_v27  ;;  %v1383_v36 = vmax.f32 %v1351_v28, 0.0  ;;  %v1511_v37 = vmax.f32 %v1479_v30, 0.0  ;;  %v1310_v38 = vmul.f32 %v2289_v3, %v629_v34  ;;  %v1449_v39 = vmul.f32 %v2289_v3, %v1159_v35  ;;  %v631_v40 = vpop.f32.mrb[29].mxu0  ;;  %v1161_v41 = vpop.f32.mrb[29].mxu1 }
 0x171   :  { %1574 = vst [vmem:[%s2528_s7 + $0xc8] sm:$0xff] %v1542_v31  ;;  %v1384_v42 = vmax.f32 %v1352_v32, 0.0  ;;  %v1512_v43 = vmax.f32 %v1480_v33, 0.0  ;;  %v1311_v44 = vmul.f32 %v2291_v25, %v631_v40  ;;  %v1450_v45 = vmul.f32 %v2291_v25, %v1161_v41 }
 0x172   :  { %v1543_v46 = vmax.f32 %v1383_v36, %v1511_v37  ;;  %v1353_v47 = vadd.f32 %v2293_v26, %v1310_v38  ;;  %v1481_v48 = vadd.f32 %v1449_v39, %v2293_v26 }
 0x173   :  { %v1544_v49 = vmax.f32 %v1384_v42, %v1512_v43  ;;  %v1354_v50 = vadd.f32 %v2295_v29, %v1311_v44  ;;  %v1482_v51 = vadd.f32 %v1450_v45, %v2295_v29  ;;  %v635_v52 = vpop.f32.mrb[30].mxu0  ;;  %v1165_v53 = vpop.f32.mrb[30].mxu1 }
 0x174   :  { %1575 = vst [vmem:[%s2528_s7 + $0xd0] sm:$0xff] %v1543_v46  ;;  %v1385_v54 = vmax.f32 %v1353_v47, 0.0  ;;  %v1513_v55 = vmax.f32 %v1481_v48, 0.0  ;;  %v1312_v56 = vmul.f32 %v2289_v3, %v635_v52  ;;  %v1451_v58 = vmul.f32 %v2289_v3, %v1165_v53  ;;  %v637_v59 = vpop.f32.mrb[31].mxu0  ;;  %v1167_v60 = vpop.f32.mrb[31].mxu1 }
 0x175   :  { %1576 = vst [vmem:[%s2528_s7 + $0xd8] sm:$0xff] %v1544_v49  ;;  %v1386_v61 = vmax.f32 %v1354_v50, 0.0  ;;  %v1514_v62 = vmax.f32 %v1482_v51, 0.0  ;;  %v1313_v63 = vmul.f32 %v2291_v25, %v637_v59  ;;  %v1452_v0 = vmul.f32 %v2291_v25, %v1167_v60 }
 0x176   :  { %v1545_v2 = vmax.f32 %v1385_v54, %v1513_v55  ;;  %v1355_v4 = vadd.f32 %v2293_v26, %v1312_v56  ;;  %v1483_v5 = vadd.f32 %v1451_v58, %v2293_v26 }
 0x177   :  { %v1546_v6 = vmax.f32 %v1386_v61, %v1514_v62  ;;  %v1356_v3 = vadd.f32 %v2295_v29, %v1313_v63  ;;  %v1484_v57 = vadd.f32 %v1452_v0, %v2295_v29 }
 0x178   :  { %1577 = vst [vmem:[%s2528_s7 + $0xe0] sm:$0xff] %v1545_v2  ;;  %v1387_v1 = vmax.f32 %v1355_v4, 0.0  ;;  %v1515_v7 = vmax.f32 %v1483_v5, 0.0 }
 0x179   :  { %1578 = vst [vmem:[%s2528_s7 + $0xe8] sm:$0xff] %v1546_v6  ;;  %v1388_v25 = vmax.f32 %v1356_v3, 0.0  ;;  %v1516_v8 = vmax.f32 %v1484_v57, 0.0 }
 0x17a   :  { %v1547_v9 = vmax.f32 %v1387_v1, %v1515_v7 }
 0x17b   :  { %v1548_v10 = vmax.f32 %v1388_v25, %v1516_v8 }
 0x17c   :  { %1579 = vst [vmem:[%s2528_s7 + $0xf0] sm:$0xff] %v1547_v9 }
 0x17d   :  { %1580 = vst [vmem:[%s2528_s7 + $0xf8] sm:$0xff] %v1548_v10 }

// kernel: explainable_nn_forward.9
= control target key start
LH: loop header
LB: loop body
LE: loop exit
PB: predicated region body
PF: predicated region fallthrough
CT: control target
= control target key end

     0   :  { %vm30_vm0 = vcmask 24576   ;;  %vm238_vm1 = vcmask 1040384   ;;  %s3442_s0 = inlined_call_operand.vmem [shape: f32[14,9,256], index: 0, kind: input, shape index: {}]   ;;  %s3443_s1 = inlined_call_operand.vmem [shape: f32[9,14,256], index: 1, kind: input, shape index: {}]   ;;  %s3444_s2 = inlined_call_operand.vmem [shape: f32[1,4], index: 2, kind: input, shape index: {}]   ;;  %s3445_s3 = inlined_call_operand.vmem [shape: f32[9,1,4], index: 3, kind: input, shape index: {}]   ;;  %s3446_s4 = inlined_call_operand.vmem [shape: f32[1,128], index: 4, kind: input, shape index: {}]   ;;  %s3447_s5 = inlined_call_operand.hbm [shape: f32[1,128], index: 5, kind: output, shape index: {}]  }
   0x1   :  { %v27_v0 = vld [vmem:[%s3444_s2] sm:$0x1]  ;;  %v2219_v3 = vld [vmem:[%s3445_s3 + $0x2] sm:$0x1]  ;;  %v2218_v4 = vld [vmem:[%s3445_s3 + $0x1] sm:$0x1] }
   0x2   :  { %v28_v1 = vld [vmem:[%s3445_s3] sm:$0x1]  ;;  %v2220_v5 = vld [vmem:[%s3445_s3 + $0x3] sm:$0x1]  ;;  %v64_v6 = vmul.f32 %v2219_v3, %v27_v0  ;;  %v47_v7 = vmul.f32 %v2218_v4, %v27_v0  ;;  %v2221_v9 = vld [vmem:[%s3445_s3 + $0x4] sm:$0x1] }
   0x3   :  { %v29_v2 = vmul.f32 %v28_v1, %v27_v0  ;;  %v81_v8 = vmul.f32 %v2220_v5, %v27_v0  ;;  %v2222_v11 = vld [vmem:[%s3445_s3 + $0x5] sm:$0x1]  ;;  %v98_v14 = vmul.f32 %v2221_v9, %v27_v0  ;;  %v2223_v15 = vld [vmem:[%s3445_s3 + $0x6] sm:$0x1]  ;;  %v2224_v16 = vld [vmem:[%s3445_s3 + $0x7] sm:$0x1] }
   0x4   :  { %v65_v12 = vsel %vm30_vm0, %v64_v6, 0.0  ;;  %v48_v13 = vsel %vm30_vm0, %v47_v7, 0.0  ;;  %v115_v18 = vmul.f32 %v2222_v11, %v27_v0  ;;  %v184_v19 = vld [vmem:[%s3442_s0 + $0x10] sm:$0x1]  ;;  %v185_v20 = vld [vmem:[%s3442_s0 + $0x18] sm:$0x1]  ;;  %v132_v24 = vmul.f32 %v2223_v15, %v27_v0 }
   0x5   :  { %v31_v10 = vsel %vm30_vm0, %v29_v2, 0.0  ;;  %66 = vadd.xlane.f32.xlu1 %v65_v12  ;;  %v82_v17 = vsel %vm30_vm0, %v81_v8, 0.0  ;;  %v182_v21 = vld [vmem:[%s3442_s0] sm:$0xff]  ;;  %v183_v22 = vld [vmem:[%s3442_s0 + $0x8] sm:$0xff]  ;;  %v188_v23 = vld [vmem:[%s3442_s0 + $0x30] sm:$0x1]  ;;  %v149_v28 = vmul.f32 %v2224_v16, %v27_v0 }
   0x6   :  { %32 = vadd.xlane.f32.xlu0 %v31_v10  ;;  %v186_v25 = vld [vmem:[%s3442_s0 + $0x20] sm:$0xff]  ;;  %v189_v26 = vld [vmem:[%s3442_s0 + $0x38] sm:$0x1]  ;;  %v99_v27 = vsel %vm30_vm0, %v98_v14, 0.0  ;;  %v187_v29 = vld [vmem:[%s3442_s0 + $0x28] sm:$0xff]  ;;  %v239_v30 = vsel %vm238_vm1, %v184_v19, 0.0 }
   0x7   :  { %v247_v31 = vsel %vm238_vm1, %v185_v20, 0.0  ;;  %v116_v32 = vsel %vm30_vm0, %v115_v18, 0.0  ;;  %v2225_v33 = vld [vmem:[%s3445_s3 + $0x8] sm:$0x1]  ;;  %v192_v34 = vld [vmem:[%s3442_s0 + $0x50] sm:$0x1]  ;;  %v240_v35 = vadd.f32 %v239_v30, %v182_v21 }
   0x8   :  { %v248_v36 = vadd.f32 %v247_v31, %v183_v22  ;;  %v255_v37 = vsel %vm238_vm1, %v188_v23, 0.0  ;;  %v190_v38 = vld [vmem:[%s3442_s0 + $0x40] sm:$0xff]  ;;  %v263_v40 = vsel %vm238_vm1, %v189_v26, 0.0  ;;  %v133_v41 = vsel %vm30_vm0, %v132_v24, 0.0  ;;  %v193_v42 = vld [vmem:[%s3442_s0 + $0x58] sm:$0x1] }
   0x9   :  { %83 = vadd.xlane.f32.xlu1 %v82_v17  ;;  %v256_v39 = vadd.f32 %v255_v37, %v186_v25  ;;  %v241_v43 = vrot.slane %v240_v35, 4  ;;  %v264_v45 = vadd.f32 %v263_v40, %v187_v29  ;;  %v150_v46 = vsel %vm30_vm0, %v149_v28, 0.0  ;;  %v191_v48 = vld [vmem:[%s3442_s0 + $0x48] sm:$0xff]  ;;  %v196_v3 = vld [vmem:[%s3442_s0 + $0x70] sm:$0x1]  ;;  %v194_v7 = vld [vmem:[%s3442_s0 + $0x60] sm:$0xff] }
   0xa   :  { %49 = vadd.xlane.f32.xlu0 %v48_v13  ;;  %v249_v44 = vrot.slane %v248_v36, 4  ;;  %v166_v47 = vmul.f32 %v2225_v33, %v27_v0  ;;  %v271_v50 = vsel %vm238_vm1, %v192_v34, 0.0  ;;  %v279_v56 = vsel %vm238_vm1, %v193_v42, 0.0  ;;  %v197_v8 = vld [vmem:[%s3442_s0 + $0x78] sm:$0x1]  ;;  %v195_v17 = vld [vmem:[%s3442_s0 + $0x68] sm:$0xff] }
   0xb   :  { %v257_v49 = vrot.slane %v256_v39, 4  ;;  %v242_v51 = vadd.f32 %v241_v43, %v240_v35  ;;  %v265_v53 = vrot.slane %v264_v45, 4  ;;  %v272_v54 = vadd.f32 %v271_v50, %v190_v38  ;;  %v200_v12 = vld [vmem:[%s3442_s0 + $0x90] sm:$0x1]  ;;  %v201_v13 = vld [vmem:[%s3442_s0 + $0x98] sm:$0x1] }
   0xc   :  { %v250_v52 = vadd.f32 %v249_v44, %v248_v36  ;;  %v280_v60 = vadd.f32 %v279_v56, %v191_v48  ;;  %v167_v61 = vsel %vm30_vm0, %v166_v47, 0.0  ;;  %v198_v18 = vld [vmem:[%s3442_s0 + $0x80] sm:$0xff]  ;;  %v287_v22 = vsel %vm238_vm1, %v196_v3, 0.0  ;;  %v199_v23 = vld [vmem:[%s3442_s0 + $0x88] sm:$0xff]  ;;  %v204_v24 = vld [vmem:[%s3442_s0 + $0xb0] sm:$0x1] }
   0xd   :  { %117 = vadd.xlane.f32.xlu1 %v116_v32  ;;  %v258_v55 = vadd.f32 %v257_v49, %v256_v39  ;;  %v243_v57 = vrot.slane %v242_v51, 2  ;;  %v266_v59 = vadd.f32 %v265_v53, %v264_v45  ;;  %v273_v63 = vrot.slane %v272_v54, 4  ;;  %v205_v25 = vld [vmem:[%s3442_s0 + $0xb8] sm:$0x1]  ;;  %v202_v34 = vld [vmem:[%s3442_s0 + $0xa0] sm:$0xff]  ;;  %v203_v35 = vld [vmem:[%s3442_s0 + $0xa8] sm:$0xff] }
   0xe   :  { %100 = vadd.xlane.f32.xlu0 %v99_v27  ;;  %v251_v58 = vrot.slane %v250_v52, 2  ;;  %v281_v6 = vrot.slane %v280_v60, 4  ;;  %v288_v29 = vadd.f32 %v287_v22, %v194_v7  ;;  %v295_v31 = vsel %vm238_vm1, %v197_v8, 0.0  ;;  %v208_v40 = vld [vmem:[%s3442_s0 + $0xd0] sm:$0x1]  ;;  %v206_v49 = vld [vmem:[%s3442_s0 + $0xc0] sm:$0xff] }
   0xf   :  { %v259_v62 = vrot.slane %v258_v55, 2  ;;  %v244_v0 = vadd.f32 %v243_v57, %v242_v51  ;;  %v267_v2 = vrot.slane %v266_v59, 2  ;;  %v274_v5 = vadd.f32 %v273_v63, %v272_v54  ;;  %v209_v50 = vld [vmem:[%s3442_s0 + $0xd8] sm:$0x1] }
  0x10   :  { %v252_v1 = vadd.f32 %v251_v58, %v250_v52  ;;  %v282_v16 = vadd.f32 %v281_v6, %v280_v60  ;;  %v303_v32 = vsel %vm238_vm1, %v200_v12, 0.0  ;;  %v311_v33 = vsel %vm238_vm1, %v201_v13, 0.0 }
  0x11   :  { %151 = vadd.xlane.f32.xlu1 %v150_v46  ;;  %v260_v4 = vadd.f32 %v259_v62, %v258_v55  ;;  %v245_v9 = vrot.slane %v244_v0, 1  ;;  %v268_v11 = vadd.f32 %v267_v2, %v266_v59  ;;  %v275_v15 = vrot.slane %v274_v5, 2 }
  0x12   :  { %134 = vadd.xlane.f32.xlu0 %v133_v41  ;;  %v253_v10 = vrot.slane %v252_v1, 1  ;;  %v283_v28 = vrot.slane %v282_v16, 2  ;;  %v289_v38 = vrot.slane %v288_v29, 4  ;;  %v296_v39 = vadd.f32 %v295_v31, %v195_v17 }
  0x13   :  { %v261_v14 = vrot.slane %v260_v4, 1  ;;  %v2456_v19 = vadd.f32 %v245_v9, %v244_v0  ;;  %v269_v21 = vrot.slane %v268_v11, 1  ;;  %v276_v27 = vadd.f32 %v275_v15, %v274_v5 }
  0x14   :  { %v2458_v20 = vadd.f32 %v253_v10, %v252_v1  ;;  %v284_v37 = vadd.f32 %v283_v28, %v282_v16  ;;  %v304_v41 = vadd.f32 %v303_v32, %v198_v18  ;;  %v312_v42 = vadd.f32 %v311_v33, %v199_v23 }
  0x15   :  { %v2470_v26 = vadd.f32 %v261_v14, %v260_v4  ;;  %v2472_v30 = vadd.f32 %v269_v21, %v268_v11  ;;  %v277_v36 = vrot.slane %v276_v27, 1  ;;  %v319_v43 = vsel %vm238_vm1, %v204_v24, 0.0 }
  0x16   :  { %168 = vadd.xlane.f32.xlu0 %v167_v61  ;;  %v327_v44 = vsel %vm238_vm1, %v205_v25, 0.0  ;;  %v285_v46 = vrot.slane %v284_v37, 1  ;;  %v290_v47 = vadd.f32 %v289_v38, %v288_v29  ;;  %v297_v48 = vrot.slane %v296_v39, 4 }
  0x17   :  { %v2488_v45 = vadd.f32 %v277_v36, %v276_v27  ;;  %v305_v51 = vrot.slane %v304_v41, 4  ;;  %v313_v52 = vrot.slane %v312_v42, 4  ;;  %v320_v53 = vadd.f32 %v319_v43, %v202_v34 }
  0x18   :  { %v328_v54 = vadd.f32 %v327_v44, %v203_v35  ;;  %v2496_v55 = vadd.f32 %v285_v46, %v284_v37  ;;  %v291_v56 = vrot.slane %v290_v47, 2  ;;  %v298_v57 = vadd.f32 %v297_v48, %v296_v39 }
  0x19   :  { %v335_v58 = vsel %vm238_vm1, %v208_v40, 0.0 }
  0x1a   :  { %10 = vsyncpa [#allocation4], 0  ;;  %v207_v59 = vld [vmem:[%s3442_s0 + $0xc8] sm:$0xff]  ;;  %v306_v60 = vadd.f32 %v305_v51, %v304_v41  ;;  %v314_v61 = vadd.f32 %v313_v52, %v312_v42  ;;  %v321_v62 = vrot.slane %v320_v53, 4  ;;  %v329_v63 = vrot.slane %v328_v54, 4  ;;  %v210_v23 = vld [vmem:[%s3442_s0 + $0xe0] sm:$0xff] }
  0x1b   :  { %v292_v0 = vadd.f32 %v291_v56, %v290_v47  ;;  %v299_v1 = vrot.slane %v298_v57, 2  ;;  %v336_v2 = vadd.f32 %v335_v58, %v206_v49  ;;  %v343_v3 = vsel %vm238_vm1, %v209_v50, 0.0  ;;  %v212_v12 = vld [vmem:[%s3442_s0 + $0xf0] sm:$0x1]  ;;  %v213_v24 = vld [vmem:[%s3442_s0 + $0xf8] sm:$0x1] }
  0x1c   :  { %v307_v4 = vrot.slane %v306_v60, 2  ;;  %v315_v5 = vrot.slane %v314_v61, 2  ;;  %v322_v6 = vadd.f32 %v321_v62, %v320_v53  ;;  %v330_v7 = vadd.f32 %v329_v63, %v328_v54  ;;  %v211_v31 = vld [vmem:[%s3442_s0 + $0xe8] sm:$0xff]  ;;  %v216_v32 = vld [vmem:[%s3442_s0 + $0x110] sm:$0x1]  ;;  %v214_v37 = vld [vmem:[%s3442_s0 + $0x100] sm:$0xff] }
  0x1d   :  { %v293_v8 = vrot.slane %v292_v0, 1  ;;  %v300_v9 = vadd.f32 %v299_v1, %v298_v57  ;;  %v337_v10 = vrot.slane %v336_v2, 4  ;;  %v344_v11 = vadd.f32 %v343_v3, %v207_v59  ;;  %v217_v38 = vld [vmem:[%s3442_s0 + $0x118] sm:$0x1]  ;;  %v220_v43 = vld [vmem:[%s3442_s0 + $0x130] sm:$0x1] }
  0x1e   :  { %v308_v13 = vadd.f32 %v307_v4, %v306_v60  ;;  %v316_v14 = vadd.f32 %v315_v5, %v314_v61  ;;  %v323_v15 = vrot.slane %v322_v6, 2  ;;  %v331_v16 = vrot.slane %v330_v7, 2  ;;  %v221_v44 = vld [vmem:[%s3442_s0 + $0x138] sm:$0x1]  ;;  %v215_v54 = vld [vmem:[%s3442_s0 + $0x108] sm:$0xff]  ;;  %v218_v56 = vld [vmem:[%s3442_s0 + $0x120] sm:$0xff] }
  0x1f   :  { %v2506_v17 = vadd.f32 %v293_v8, %v292_v0  ;;  %v301_v18 = vrot.slane %v300_v9, 1  ;;  %v338_v21 = vadd.f32 %v337_v10, %v336_v2  ;;  %v345_v22 = vrot.slane %v344_v11, 4  ;;  %v219_v57 = vld [vmem:[%s3442_s0 + $0x128] sm:$0xff]  ;;  %v224_v62 = vld [vmem:[%s3442_s0 + $0x150] sm:$0x1]  ;;  %s2323_s22 = smov [#allocation3]  }
  0x20   :  { %v309_v25 = vrot.slane %v308_v13, 1  ;;  %v317_v27 = vrot.slane %v316_v14, 1  ;;  %v324_v28 = vadd.f32 %v323_v15, %v322_v6  ;;  %v332_v29 = vadd.f32 %v331_v16, %v330_v7  ;;  %v222_v7 = vld [vmem:[%s3442_s0 + $0x140] sm:$0xff]  ;;  %v225_v8 = vld [vmem:[%s3442_s0 + $0x158] sm:$0x1] }
  0x21   :  { %v2520_v33 = vadd.f32 %v301_v18, %v300_v9  ;;  %v339_v34 = vrot.slane %v338_v21, 2  ;;  %v346_v35 = vadd.f32 %v345_v22, %v344_v11  ;;  %v351_v36 = vsel %vm238_vm1, %v212_v12, 0.0  ;;  %v223_v18 = vld [vmem:[%s3442_s0 + $0x148] sm:$0xff] }
  0x22   :  { %v2529_v39 = vadd.f32 %v309_v25, %v308_v13  ;;  %v2531_v40 = vadd.f32 %v317_v27, %v316_v14  ;;  %v325_v41 = vrot.slane %v324_v28, 1  ;;  %v333_v42 = vrot.slane %v332_v29, 1 }
  0x23   :  { %v340_v46 = vadd.f32 %v339_v34, %v338_v21  ;;  %v347_v47 = vrot.slane %v346_v35, 2  ;;  %v352_v48 = vadd.f32 %v351_v36, %v210_v23  ;;  %v359_v49 = vsel %vm238_vm1, %v213_v24, 0.0 }
  0x24   :  { %v2540_v50 = vadd.f32 %v325_v41, %v324_v28  ;;  %v2542_v51 = vadd.f32 %v333_v42, %v332_v29  ;;  %v360_v52 = vadd.f32 %v359_v49, %v211_v31  ;;  %v367_v53 = vsel %vm238_vm1, %v216_v32, 0.0  ;;  %v228_v42 = vld [vmem:[%s3442_s0 + $0x170] sm:$0x1] }
  0x25   :  { %v341_v58 = vrot.slane %v340_v46, 1  ;;  %v348_v59 = vadd.f32 %v347_v47, %v346_v35  ;;  %v353_v60 = vrot.slane %v352_v48, 4  ;;  %v368_v61 = vadd.f32 %v367_v53, %v214_v37 }
  0x26   :  { %v361_v63 = vrot.slane %v360_v52, 4  ;;  %v375_v0 = vsel %vm238_vm1, %v217_v38, 0.0  ;;  %v383_v1 = vsel %vm238_vm1, %v220_v43, 0.0  ;;  %v391_v2 = vsel %vm238_vm1, %v221_v44, 0.0 }
  0x27   :  { %v2560_v3 = vadd.f32 %v341_v58, %v340_v46  ;;  %v349_v4 = vrot.slane %v348_v59, 1  ;;  %v354_v5 = vadd.f32 %v353_v60, %v352_v48  ;;  %v369_v6 = vrot.slane %v368_v61, 4  ;;  %v226_v48 = vld [vmem:[%s3442_s0 + $0x160] sm:$0xff] }
  0x28   :  { %v362_v9 = vadd.f32 %v361_v63, %v360_v52  ;;  %v376_v10 = vadd.f32 %v375_v0, %v215_v54  ;;  %v384_v11 = vadd.f32 %v383_v1, %v218_v56  ;;  %v392_v12 = vadd.f32 %v391_v2, %v219_v57  ;;  %v229_v56 = vld [vmem:[%s3442_s0 + $0x178] sm:$0x1]  ;;  %v232_v57 = vld [vmem:[%s3442_s0 + $0x190] sm:$0x1] }
  0x29   :  { %v2568_v13 = vadd.f32 %v349_v4, %v348_v59  ;;  %v355_v14 = vrot.slane %v354_v5, 2  ;;  %v370_v15 = vadd.f32 %v369_v6, %v368_v61  ;;  %v399_v16 = vsel %vm238_vm1, %v224_v62, 0.0  ;;  %v227_v62 = vld [vmem:[%s3442_s0 + $0x168] sm:$0xff]  ;;  %v233_v63 = vld [vmem:[%s3442_s0 + $0x198] sm:$0x1] }
  0x2a   :  { %v363_v21 = vrot.slane %v362_v9, 2  ;;  %v377_v22 = vrot.slane %v376_v10, 4  ;;  %v385_v23 = vrot.slane %v384_v11, 4  ;;  %v393_v24 = vrot.slane %v392_v12, 4  ;;  %v236_v6 = vld [vmem:[%s3442_s0 + $0x1b0] sm:$0x1] }
  0x2b   :  { %v356_v25 = vadd.f32 %v355_v14, %v354_v5  ;;  %v371_v27 = vrot.slane %v370_v15, 2  ;;  %v400_v28 = vadd.f32 %v399_v16, %v222_v7  ;;  %v407_v29 = vsel %vm238_vm1, %v225_v8, 0.0  ;;  %v230_v5 = vld [vmem:[%s3442_s0 + $0x180] sm:$0xff] }
  0x2c   :  { %v364_v31 = vadd.f32 %v363_v21, %v362_v9  ;;  %v378_v32 = vadd.f32 %v377_v22, %v376_v10  ;;  %v386_v34 = vadd.f32 %v385_v23, %v384_v11  ;;  %v394_v35 = vadd.f32 %v393_v24, %v392_v12  ;;  %v237_v11 = vld [vmem:[%s3442_s0 + $0x1b8] sm:$0x1]  ;;  %v231_v24 = vld [vmem:[%s3442_s0 + $0x188] sm:$0xff] }
  0x2d   :  { %v357_v36 = vrot.slane %v356_v25, 1  ;;  %v372_v37 = vadd.f32 %v371_v27, %v370_v15  ;;  %v401_v38 = vrot.slane %v400_v28, 4  ;;  %v408_v41 = vadd.f32 %v407_v29, %v223_v18  ;;  %v235_v27 = vld [vmem:[%s3442_s0 + $0x1a8] sm:$0xff] }
  0x2e   :  { %v365_v43 = vrot.slane %v364_v31, 1  ;;  %v379_v44 = vrot.slane %v378_v32, 2  ;;  %v387_v46 = vrot.slane %v386_v34, 2  ;;  %v395_v47 = vrot.slane %v394_v35, 2 }
  0x2f   :  { %v2581_v49 = vadd.f32 %v357_v36, %v356_v25  ;;  %v373_v52 = vrot.slane %v372_v37, 1  ;;  %v402_v53 = vadd.f32 %v401_v38, %v400_v28  ;;  %v409_v54 = vrot.slane %v408_v41, 4  ;;  %v234_v25 = vld [vmem:[%s3442_s0 + $0x1a0] sm:$0xff] }
  0x30   :  { %v2589_v58 = vadd.f32 %v365_v43, %v364_v31  ;;  %v380_v59 = vadd.f32 %v379_v44, %v378_v32  ;;  %v388_v60 = vadd.f32 %v387_v46, %v386_v34  ;;  %v396_v61 = vadd.f32 %v395_v47, %v394_v35 }
  0x31   :  { %v2597_v0 = vadd.f32 %v373_v52, %v372_v37  ;;  %v403_v1 = vrot.slane %v402_v53, 2  ;;  %v410_v2 = vadd.f32 %v409_v54, %v408_v41  ;;  %v415_v4 = vsel %vm238_vm1, %v228_v42, 0.0 }
  0x32   :  { %v381_v7 = vrot.slane %v380_v59, 1  ;;  %v389_v8 = vrot.slane %v388_v60, 1  ;;  %v397_v9 = vrot.slane %v396_v61, 1  ;;  %v416_v10 = vadd.f32 %v415_v4, %v226_v48 }
  0x33   :  { %v404_v12 = vadd.f32 %v403_v1, %v402_v53  ;;  %v411_v14 = vrot.slane %v410_v2, 2  ;;  %v423_v15 = vsel %vm238_vm1, %v229_v56, 0.0  ;;  %v431_v16 = vsel %vm238_vm1, %v232_v57, 0.0 }
  0x34   :  { %v2611_v18 = vadd.f32 %v381_v7, %v380_v59  ;;  %v2613_v21 = vadd.f32 %v389_v8, %v388_v60  ;;  %v2615_v22 = vadd.f32 %v397_v9, %v396_v61  ;;  %v417_v23 = vrot.slane %v416_v10, 4 }
  0x35   :  { %v405_v28 = vrot.slane %v404_v12, 1  ;;  %v412_v29 = vadd.f32 %v411_v14, %v410_v2  ;;  %v424_v31 = vadd.f32 %v423_v15, %v227_v62  ;;  %v432_v32 = vadd.f32 %v431_v16, %v230_v5 }
  0x36   :  { %v418_v34 = vadd.f32 %v417_v23, %v416_v10  ;;  %v439_v35 = vsel %vm238_vm1, %v233_v63, 0.0  ;;  %v447_v36 = vsel %vm238_vm1, %v236_v6, 0.0  ;;  %v455_v37 = vsel %vm238_vm1, %v237_v11, 0.0 }
  0x37   :  { %v2629_v38 = vadd.f32 %v405_v28, %v404_v12  ;;  %v413_v41 = vrot.slane %v412_v29, 1  ;;  %v425_v42 = vrot.slane %v424_v31, 4  ;;  %v433_v43 = vrot.slane %v432_v32, 4 }
  0x38   :  { %v419_v44 = vrot.slane %v418_v34, 2  ;;  %v440_v46 = vadd.f32 %v439_v35, %v231_v24  ;;  %v448_v47 = vadd.f32 %v447_v36, %v234_v25  ;;  %v456_v48 = vadd.f32 %v455_v37, %v235_v27  ;;  %v2667_v35 = vld [vmem:[%s3443_s1] sm:$0xff] }
  0x39   :  { %v414_v52 = vadd.f32 %v413_v41, %v412_v29  ;;  %v426_v53 = vadd.f32 %v425_v42, %v424_v31  ;;  %v434_v54 = vadd.f32 %v433_v43, %v432_v32  ;;  %v2632_v56 = vmul.f32 0.11111111, %v2456_v19 }
  0x3a   :  { %v420_v57 = vadd.f32 %v419_v44, %v418_v34  ;;  %v441_v59 = vrot.slane %v440_v46, 4  ;;  %v449_v60 = vrot.slane %v448_v47, 4  ;;  %v457_v61 = vrot.slane %v456_v48, 4 }
  0x3b   :  { %3498 = vst [vmem:[#allocation6_spill] sm:$0xff] %v2632_v56  ;;  %v427_v62 = vrot.slane %v426_v53, 2  ;;  %v435_v63 = vrot.slane %v434_v54, 2  ;;  %v2635_v1 = vmul.f32 0.11111111, %v2458_v20  ;;  %v2680_v36 = vmul.f32 %v2667_v35, %v2632_v56 }
  0x3c   :  { %v2638_v2 = vmul.f32 0.11111111, %v2470_v26  ;;  %v421_v4 = vrot.slane %v420_v57, 1  ;;  %v442_v5 = vadd.f32 %v441_v59, %v440_v46  ;;  %v450_v6 = vadd.f32 %v449_v60, %v448_v47  ;;  %v2710_v46 = vld [vmem:[%s3443_s1 + $0x18] sm:$0x3f] }
  0x3d   :  { %v458_v7 = vadd.f32 %v457_v61, %v456_v48  ;;  %v428_v8 = vadd.f32 %v427_v62, %v426_v53  ;;  %v436_v9 = vadd.f32 %v435_v63, %v434_v54  ;;  %v2641_v19 = vmul.f32 0.11111111, %v2472_v30 }
  0x3e   :  { %v2644_v10 = vmul.f32 0.11111111, %v2488_v45  ;;  %v422_v11 = vadd.f32 %v421_v4, %v420_v57  ;;  %v443_v12 = vrot.slane %v442_v5, 2  ;;  %v451_v14 = vrot.slane %v450_v6, 2 }
  0x3f   :  { %v459_v20 = vrot.slane %v458_v7, 2  ;;  %v429_v15 = vrot.slane %v428_v8, 1  ;;  %v437_v16 = vrot.slane %v436_v9, 1  ;;  %v2647_v26 = vmul.f32 0.11111111, %v2496_v55 }
  0x40   :  { %v2650_v23 = vmul.f32 0.11111111, %v2506_v17  ;;  %v444_v24 = vadd.f32 %v443_v12, %v442_v5  ;;  %v452_v25 = vadd.f32 %v451_v14, %v450_v6  ;;  %v2653_v30 = vmul.f32 0.11111111, %v2520_v33 }
  0x41   :  { %v460_v27 = vadd.f32 %v459_v20, %v458_v7  ;;  %v430_v45 = vadd.f32 %v429_v15, %v428_v8  ;;  %v438_v28 = vadd.f32 %v437_v16, %v436_v9  ;;  %v2656_v29 = vmul.f32 0.11111111, %v2529_v39 }
  0x42   :  { %v2659_v31 = vmul.f32 0.11111111, %v2531_v40  ;;  %v445_v32 = vrot.slane %v444_v24, 1  ;;  %v453_v55 = vrot.slane %v452_v25, 1  ;;  %v2662_v17 = vmul.f32 0.11111111, %v2540_v50 }
  0x43   :  { %v461_v34 = vrot.slane %v460_v27, 1  ;;  %v2670_v33 = vmul.f32 0.11111111, %v2542_v51  ;;  %v2673_v39 = vmul.f32 0.11111111, %v2560_v3  ;;  %v492_v51 = vld [vmem:[%s3443_s1 + $0x8] sm:$0xff] }
  0x44   :  { %v2676_v40 = vmul.f32 0.11111111, %v2568_v13  ;;  %v446_v50 = vadd.f32 %v445_v32, %v444_v24  ;;  %v454_v37 = vadd.f32 %v453_v55, %v452_v25  ;;  %v2683_v42 = vmul.f32 0.11111111, %v2581_v49  ;;  %v2691_v3 = vld [vmem:[%s3443_s1 + $0x10] sm:$0x3f] }
  0x45   :  { %3499 = vst [vmem:[#allocation7_spill] sm:$0xff] %v2670_v33  ;;  %3500 = vst [vmem:[#allocation8_spill] sm:$0xff] %v2673_v39  ;;  %v462_v41 = vadd.f32 %v461_v34, %v460_v27  ;;  %v2696_v13 = vld [vmem:[%s3443_s1 + $0x20] sm:$0xff]  ;;  %v2699_v43 = vmul.f32 0.11111111, %v2589_v58  ;;  %v2713_v47 = vmul.f32 %v492_v51, %v2635_v1  ;;  %v499_v61 = vrot.slane %v2667_v35, 1 }
  0x46   :  { %3501 = vst [vmem:[#allocation9_spill] sm:$0xff] %v2676_v40  ;;  %3502 = vst [vmem:[#allocation10_spill] sm:$0xff] %v2683_v42  ;;  %v2702_v49 = vmul.f32 0.11111111, %v2597_v0  ;;  %v2705_v44 = vmul.f32 0.11111111, %v2611_v18  ;;  %v2726_v18 = vmul.f32 %v2696_v13, %v2632_v56 }
  0x47   :  { %3503 = vst [vmem:[#allocation11_spill] sm:$0xff] %v2699_v43  ;;  %v2716_v48 = vmul.f32 0.11111111, %v2613_v21  ;;  %v2719_v58 = vmul.f32 0.11111111, %v2615_v22  ;;  %v500_v62 = vrot.slane %v492_v51, 1 }
  0x48   :  { %3504 = vst [vmem:[#allocation12_spill] sm:$0xff] %v2702_v49  ;;  %3505 = vst [vmem:[#allocation13_spill] sm:$0xff] %v2705_v44  ;;  %v2722_v0 = vmul.f32 0.11111111, %v2629_v38  ;;  %v2728_v53 = vmul.f32 0.11111111, %v414_v52  ;;  %v2736_v21 = vmul.f32 %v2691_v3, %v2702_v49  ;;  %v2746_v60 = vmul.f32 %v2710_v46, %v2705_v44 }
  0x49   :  { %3506 = vst [vmem:[#allocation14_spill] sm:$0xff] %v2716_v48  ;;  %3507 = vst [vmem:[#allocation15_spill] sm:$0xff] %v2719_v58  ;;  %v2730_v54 = vmul.f32 0.11111111, %v422_v11  ;;  %v2732_v57 = vmul.f32 0.11111111, %v430_v45 }
  0x4a   :  { %3508 = vst [vmem:[#allocation16_spill] sm:$0xff] %v2722_v0  ;;  %3509 = vst [vmem:[#allocation17_spill] sm:$0xff] %v2726_v18  ;;  %v2738_v59 = vmul.f32 0.11111111, %v438_v28  ;;  %v2740_v22 = vmul.f32 0.11111111, %v446_v50  ;;  %v553_v50 = vmul.f32 %v499_v61, %v2638_v2 }
  0x4b   :  { %3510 = vst [vmem:[#allocation18_spill] sm:$0xff] %v2728_v53  ;;  %3511 = vst [vmem:[#allocation19_spill] sm:$0xff] %v2730_v54  ;;  %v2742_v38 = vmul.f32 0.11111111, %v454_v37  ;;  %v2748_v52 = vmul.f32 0.11111111, %v462_v41  ;;  %v554_v37 = vmul.f32 %v500_v62, %v2641_v19 }
  0x4c   :  { %3512 = vst [vmem:[#allocation20_spill] sm:$0xff] %v2732_v57  ;;  %3513 = vst [vmem:[#allocation21_spill] sm:$0xff] %v2738_v59  ;;  %v501_v63 = vrot.slane %v2667_v35, 2  ;;  %v502_v4 = vrot.slane %v492_v51, 2  ;;  %v503_v5 = vrot.slane %v2667_v35, 3  ;;  %v504_v6 = vrot.slane %v492_v51, 3 }
  0x4d   :  { %3514 = vst [vmem:[#allocation22_spill] sm:$0xff] %v2740_v22  ;;  %3515 = vst [vmem:[#allocation23_spill] sm:$0xff] %v2742_v38  ;;  %v505_v7 = vrot.slane %v2667_v35, 4  ;;  %v506_v8 = vrot.slane %v492_v51, 4  ;;  %v507_v9 = vrot.slane %v2667_v35, 5  ;;  %v508_v11 = vrot.slane %v492_v51, 5 }
  0x4e   :  { %3516 = vst [vmem:[#allocation24_spill] sm:$0xff] %v2748_v52  ;;  %v509_v12 = vrot.slane %v2667_v35, 6  ;;  %v510_v14 = vrot.slane %v492_v51, 6  ;;  %v511_v20 = vrot.slane %v2667_v35, 7  ;;  %v512_v15 = vrot.slane %v492_v51, 7 }
  0x4f   :  { %v513_v16 = vrot.slane %v2691_v3, 1  ;;  %vm608_vm2 = vcmask 1041409   ;;  %v514_v24 = vrot.slane %v2710_v46, 1  ;;  %v515_v25 = vrot.slane %v2691_v3, 2 }
  0x50   :  { %v516_v27 = vrot.slane %v2710_v46, 2  ;;  %v517_v45 = vrot.slane %v2691_v3, 3  ;;  %v518_v28 = vrot.slane %v2710_v46, 3  ;;  %v519_v32 = vrot.slane %v2691_v3, 4 }
  0x51   :  { %v520_v55 = vrot.slane %v2710_v46, 4  ;;  %v521_v34 = vrot.slane %v2691_v3, 5  ;;  %v522_v35 = vrot.slane %v2710_v46, 5  ;;  %v555_v41 = vmul.f32 %v501_v63, %v2644_v10 }
  0x52   :  { %v556_v51 = vmul.f32 %v502_v4, %v2647_v26  ;;  %v557_v56 = vmul.f32 %v503_v5, %v2650_v23  ;;  %v558_v18 = vmul.f32 %v504_v6, %v2653_v30  ;;  %v559_v44 = vmul.f32 %v505_v7, %v2656_v29 }
  0x53   :  { %v560_v49 = vmul.f32 %v506_v8, %v2659_v31  ;;  %v561_v3 = vmul.f32 %v507_v9, %v2662_v17  ;;  %v562_v46 = vmul.f32 %v508_v11, %v2670_v33  ;;  %v563_v61 = vmul.f32 %v509_v12, %v2673_v39 }
  0x54   :  { %v564_v62 = vmul.f32 %v510_v14, %v2676_v40  ;;  %v565_v63 = vmul.f32 %v511_v20, %v2683_v42  ;;  %v566_v4 = vmul.f32 %v512_v15, %v2699_v43  ;;  %v569_v5 = vmul.f32 %v513_v16, %v2716_v48 }
  0x55   :  { %v570_v6 = vmul.f32 %v514_v24, %v2719_v58  ;;  %v571_v7 = vmul.f32 %v515_v25, %v2722_v0  ;;  %v572_v8 = vmul.f32 %v516_v27, %v2728_v53  ;;  %v573_v9 = vmul.f32 %v517_v45, %v2730_v54 }
  0x56   :  { %v574_v11 = vmul.f32 %v518_v28, %v2732_v57  ;;  %v575_v12 = vmul.f32 %v519_v32, %v2738_v59  ;;  %v576_v14 = vmul.f32 %v520_v55, %v2740_v22  ;;  %v577_v20 = vmul.f32 %v521_v34, %v2742_v38 }
  0x57   :  { %v2791_v15 = vmul.f32 %v522_v35, %v2748_v52  ;;  %v607_v16 = vrot.slane %v553_v50, 7  ;;  %v610_v48 = vrot.slane %v555_v41, 6  ;;  %vm611_vm3 = vcmask 1042434  }
  0x58   :  { %v613_v24 = vrot.slane %v557_v56, 5  ;;  %vm614_vm4 = vcmask 1043459   ;;  %v616_v25 = vrot.slane %v559_v44, 4  ;;  %vm617_vm5 = vcmask 1044484  }
  0x59   :  { %v609_v27 = vsel %vm608_vm2, %v607_v16, %v2680_v36  ;;  %v619_v45 = vrot.slane %v561_v3, 3  ;;  %vm620_vm6 = vcmask 1045509   ;;  %v622_v28 = vrot.slane %v563_v61, 2 }
  0x5a   :  { %v612_v32 = vsel %vm611_vm3, %v610_v48, %v609_v27  ;;  %vm623_vm7 = vcmask 1046534   ;;  %v625_v55 = vrot.slane %v565_v63, 1  ;;  %vm626_vm8 = vcmask 1047559  }
  0x5b   :  { %v615_v34 = vsel %vm614_vm4, %v613_v24, %v612_v32  ;;  %v628_v35 = vrot.slane %v554_v37, 7  ;;  %v630_v50 = vrot.slane %v556_v51, 6  ;;  %v632_v41 = vrot.slane %v558_v18, 5  ;;  %v2227_v32 = vld [vmem:[%s3443_s1 + $0x28] sm:$0xff] }
  0x5c   :  { %v618_v56 = vsel %vm617_vm5, %v616_v25, %v615_v34  ;;  %v634_v44 = vrot.slane %v560_v49, 4  ;;  %v636_v52 = vrot.slane %v562_v46, 3  ;;  %v638_v38 = vrot.slane %v564_v62, 2 }
  0x5d   :  { %v621_v36 = vsel %vm620_vm6, %v619_v45, %v618_v56  ;;  %v629_v3 = vsel %vm608_vm2, %v628_v35, %v2713_v47  ;;  %v640_v61 = vrot.slane %v566_v4, 1  ;;  %v642_v48 = vrot.slane %v569_v5, 7 }
  0x5e   :  { %v624_v63 = vsel %vm623_vm7, %v622_v28, %v621_v36  ;;  %v631_v16 = vsel %vm611_vm3, %v630_v50, %v629_v3  ;;  %v644_v24 = vrot.slane %v571_v7, 6  ;;  %v646_v37 = vrot.slane %v573_v9, 5  ;;  %v2229_v3 = vld [vmem:[%s3443_s1 + $0x38] sm:$0x3f] }
  0x5f   :  { %v627_v18 = vsel %vm626_vm8, %v625_v55, %v624_v63  ;;  %v633_v51 = vsel %vm614_vm4, %v632_v41, %v631_v16  ;;  %v643_v49 = vsel %vm608_vm2, %v642_v48, %v2736_v21  ;;  %v648_v46 = vrot.slane %v575_v12, 4 }
  0x60   :  { %v635_v62 = vsel %vm617_vm5, %v634_v44, %v633_v51  ;;  %v645_v47 = vsel %vm611_vm3, %v644_v24, %v643_v49  ;;  %v650_v4 = vrot.slane %v577_v20, 3  ;;  %v652_v5 = vrot.slane %v570_v6, 7 }
  0x61   :  { %v637_v25 = vsel %vm620_vm6, %v636_v52, %v635_v62  ;;  %v647_v27 = vsel %vm614_vm4, %v646_v37, %v645_v47  ;;  %v654_v7 = vrot.slane %v572_v8, 6  ;;  %v656_v9 = vrot.slane %v574_v11, 5 }
  0x62   :  { %v639_v45 = vsel %vm623_vm7, %v638_v38, %v637_v25  ;;  %v649_v28 = vsel %vm617_vm5, %v648_v46, %v647_v27  ;;  %v653_v21 = vsel %vm608_vm2, %v652_v5, %v2746_v60  ;;  %v658_v12 = vrot.slane %v576_v14, 4 }
  0x63   :  { %v641_v6 = vsel %vm626_vm8, %v640_v61, %v639_v45  ;;  %v651_v52 = vsel %vm620_vm6, %v650_v4, %v649_v28  ;;  %v655_v20 = vsel %vm611_vm3, %v654_v7, %v653_v21  ;;  %v660_v8 = vrot.slane %v2791_v15, 3  ;;  %v2228_v15 = vld [vmem:[%s3443_s1 + $0x30] sm:$0x3f] }
  0x64   :  { %v657_v38 = vsel %vm614_vm4, %v656_v9, %v655_v20  ;;  %v666_v11 = vadd.f32 %v641_v6, %v627_v18  ;;  %vm667_vm9 = vcmask 1045504   ;;  %v694_v55 = vrot.slane %v2696_v13, 1 }
  0x65   :  { %v659_v60 = vsel %vm617_vm5, %v658_v12, %v657_v38  ;;  %v668_v14 = vsel %vm667_vm9, %v651_v52, 0.0  ;;  %v695_v34 = vrot.slane %v2227_v32, 1  ;;  %v696_v35 = vrot.slane %v2696_v13, 2 }
  0x66   :  { %v661_v50 = vsel %vm620_vm6, %v660_v8, %v659_v60  ;;  %v669_v41 = vadd.f32 %v668_v14, %v666_v11  ;;  %v697_v56 = vrot.slane %v2227_v32, 2  ;;  %v698_v44 = vrot.slane %v2696_v13, 3 }
  0x67   :  { %v670_v36 = vsel %vm667_vm9, %v661_v50, 0.0  ;;  %v699_v61 = vrot.slane %v2227_v32, 3  ;;  %v700_v48 = vrot.slane %v2696_v13, 4  ;;  %v701_v63 = vrot.slane %v2227_v32, 4  ;;  %v3517_v50 = vld [vmem:[#allocation12_spill] sm:$0xff] }
  0x68   :  { %v671_v16 = vadd.f32 %v670_v36, %v669_v41  ;;  %v702_v24 = vrot.slane %v2696_v13, 5  ;;  %v703_v37 = vrot.slane %v2227_v32, 5  ;;  %v704_v18 = vrot.slane %v2696_v13, 6  ;;  %v3519_v36 = vld [vmem:[#allocation14_spill] sm:$0xff] }
  0x69   :  { %v705_v51 = vrot.slane %v2227_v32, 6  ;;  %v706_v49 = vrot.slane %v2696_v13, 7  ;;  %v707_v46 = vrot.slane %v2227_v32, 7  ;;  %v708_v62 = vrot.slane %v2228_v15, 1 }
  0x6a   :  { %672 = vadd.xlane.f32.xlu1 %v671_v16  ;;  %v709_v47 = vrot.slane %v2229_v3, 1  ;;  %v710_v4 = vrot.slane %v2228_v15, 2  ;;  %v711_v5 = vrot.slane %v2229_v3, 2  ;;  %v712_v25 = vrot.slane %v2228_v15, 3 }
  0x6b   :  { %v713_v27 = vrot.slane %v2229_v3, 3  ;;  %v714_v7 = vrot.slane %v2228_v15, 4  ;;  %v715_v9 = vrot.slane %v2229_v3, 4  ;;  %v716_v45 = vrot.slane %v2228_v15, 5 }
  0x6c   :  { %v717_v28 = vrot.slane %v2229_v3, 5  ;;  %v747_v21 = vmul.f32 %v2227_v32, %v2635_v1  ;;  %v748_v12 = vmul.f32 %v694_v55, %v2638_v2  ;;  %v749_v6 = vmul.f32 %v695_v34, %v2641_v19 }
  0x6d   :  { %v750_v13 = vmul.f32 %v696_v35, %v2644_v10  ;;  %v751_v52 = vmul.f32 %v697_v56, %v2647_v26  ;;  %v752_v20 = vmul.f32 %v698_v44, %v2650_v23  ;;  %v753_v8 = vmul.f32 %v699_v61, %v2653_v30  ;;  %v3518_v56 = vld [vmem:[#allocation13_spill] sm:$0xff] }
  0x6e   :  { %v754_v38 = vmul.f32 %v700_v48, %v2656_v29  ;;  %v755_v11 = vmul.f32 %v701_v63, %v2659_v31  ;;  %v756_v60 = vmul.f32 %v702_v24, %v2662_v17  ;;  %v757_v32 = vmul.f32 %v703_v37, %v2670_v33 }
  0x6f   :  { %v758_v55 = vmul.f32 %v704_v18, %v2673_v39  ;;  %v759_v14 = vmul.f32 %v705_v51, %v2676_v40  ;;  %v760_v34 = vmul.f32 %v706_v49, %v2683_v42  ;;  %v761_v35 = vmul.f32 %v707_v46, %v2699_v43  ;;  %v3520_v49 = vld [vmem:[#allocation23_spill] sm:$0xff]  ;;  %v3521_v46 = vld [vmem:[#allocation24_spill] sm:$0xff] }
  0x70   :  { %v762_v41 = vmul.f32 %v2228_v15, %v3517_v50  ;;  %v763_v44 = vmul.f32 %v2229_v3, %v3518_v56  ;;  %v764_v61 = vmul.f32 %v708_v62, %v3519_v36  ;;  %v765_v48 = vmul.f32 %v709_v47, %v2719_v58 }
  0x71   :  { %v766_v63 = vmul.f32 %v710_v4, %v2722_v0  ;;  %v767_v16 = vmul.f32 %v711_v5, %v2728_v53  ;;  %v768_v24 = vmul.f32 %v712_v25, %v2730_v54  ;;  %v769_v37 = vmul.f32 %v713_v27, %v2732_v57  ;;  %v3522_v53 = vld [vmem:[#allocation17_spill] sm:$0xff] }
  0x72   :  { %v770_v18 = vmul.f32 %v714_v7, %v2738_v59  ;;  %v771_v51 = vmul.f32 %v715_v9, %v2740_v22  ;;  %v772_v15 = vmul.f32 %v716_v45, %v3520_v49  ;;  %v773_v3 = vmul.f32 %v717_v28, %v3521_v46 }
  0x73   :  { %v802_v56 = vrot.slane %v748_v12, 7  ;;  %v804_v62 = vrot.slane %v750_v13, 6  ;;  %v806_v36 = vrot.slane %v752_v20, 5  ;;  %v808_v47 = vrot.slane %v754_v38, 4 }
  0x74   :  { %v810_v58 = vrot.slane %v756_v60, 3  ;;  %v812_v4 = vrot.slane %v758_v55, 2  ;;  %v814_v0 = vrot.slane %v760_v34, 1  ;;  %v816_v5 = vrot.slane %v749_v6, 7 }
  0x75   :  { %v803_v25 = vsel %vm608_vm2, %v802_v56, %v3522_v53  ;;  %v818_v27 = vrot.slane %v751_v52, 6  ;;  %v820_v57 = vrot.slane %v753_v8, 5  ;;  %v822_v7 = vrot.slane %v755_v11, 4 }
  0x76   :  { %v805_v9 = vsel %vm611_vm3, %v804_v62, %v803_v25  ;;  %v817_v45 = vsel %vm608_vm2, %v816_v5, %v747_v21  ;;  %v824_v49 = vrot.slane %v757_v32, 3  ;;  %v826_v28 = vrot.slane %v759_v14, 2 }
  0x77   :  { %v807_v12 = vsel %vm614_vm4, %v806_v36, %v805_v9  ;;  %v819_v13 = vsel %vm611_vm3, %v818_v27, %v817_v45  ;;  %v828_v20 = vrot.slane %v761_v35, 1  ;;  %v830_v38 = vrot.slane %v764_v61, 7 }
  0x78   :  { %v809_v6 = vsel %vm617_vm5, %v808_v47, %v807_v12  ;;  %v821_v60 = vsel %vm614_vm4, %v820_v57, %v819_v13  ;;  %v832_v53 = vrot.slane %v766_v63, 6  ;;  %v834_v52 = vrot.slane %v768_v24, 5  ;;  %v2233_v12 = vld [vmem:[%s3443_s1 + $0x58] sm:$0x3f] }
  0x79   :  { %v811_v8 = vsel %vm620_vm6, %v810_v58, %v809_v6  ;;  %v823_v11 = vsel %vm617_vm5, %v822_v7, %v821_v60  ;;  %v831_v21 = vsel %vm608_vm2, %v830_v38, %v762_v41  ;;  %v836_v32 = vrot.slane %v770_v18, 4  ;;  %v2230_v58 = vld [vmem:[%s3443_s1 + $0x40] sm:$0xff] }
  0x7a   :  { %v813_v55 = vsel %vm623_vm7, %v812_v4, %v811_v8  ;;  %v825_v14 = vsel %vm620_vm6, %v824_v49, %v823_v11  ;;  %v833_v34 = vsel %vm611_vm3, %v832_v53, %v831_v21  ;;  %v838_v35 = vrot.slane %v772_v15, 3  ;;  %v2231_v49 = vld [vmem:[%s3443_s1 + $0x48] sm:$0xff] }
  0x7b   :  { %v815_v56 = vsel %vm626_vm8, %v814_v0, %v813_v55  ;;  %v827_v57 = vsel %vm623_vm7, %v826_v28, %v825_v14  ;;  %v835_v36 = vsel %vm614_vm4, %v834_v52, %v833_v34  ;;  %v840_v61 = vrot.slane %v765_v48, 7 }
  0x7c   :  { %v829_v41 = vsel %vm626_vm8, %v828_v20, %v827_v57  ;;  %v837_v63 = vsel %vm617_vm5, %v836_v32, %v835_v36  ;;  %v842_v24 = vrot.slane %v767_v16, 6  ;;  %v844_v18 = vrot.slane %v769_v37, 5 }
  0x7d   :  { %v839_v0 = vsel %vm620_vm6, %v838_v35, %v837_v63  ;;  %v841_v15 = vsel %vm608_vm2, %v840_v61, %v763_v44  ;;  %v846_v62 = vrot.slane %v771_v51, 4  ;;  %v848_v48 = vrot.slane %v773_v3, 3  ;;  %v2232_v44 = vld [vmem:[%s3443_s1 + $0x50] sm:$0x3f]  ;;  %v3523_v63 = vld [vmem:[#allocation6_spill] sm:$0xff] }
  0x7e   :  { %v843_v47 = vsel %vm611_vm3, %v842_v24, %v841_v15  ;;  %v854_v4 = vadd.f32 %v829_v41, %v815_v56  ;;  %v855_v5 = vsel %vm667_vm9, %v839_v0, 0.0  ;;  %v881_v25 = vrot.slane %v2230_v58, 1 }
  0x7f   :  { %v845_v27 = vsel %vm614_vm4, %v844_v18, %v843_v47  ;;  %v882_v16 = vrot.slane %v2231_v49, 1  ;;  %v883_v37 = vrot.slane %v2230_v58, 2  ;;  %v884_v7 = vrot.slane %v2231_v49, 2 }
  0x80   :  { %v847_v9 = vsel %vm617_vm5, %v846_v62, %v845_v27  ;;  %v856_v45 = vadd.f32 %v855_v5, %v854_v4  ;;  %v885_v51 = vrot.slane %v2230_v58, 3  ;;  %v886_v3 = vrot.slane %v2231_v49, 3 }
  0x81   :  { %v849_v28 = vsel %vm620_vm6, %v848_v48, %v847_v9  ;;  %v887_v13 = vrot.slane %v2230_v58, 4  ;;  %v888_v20 = vrot.slane %v2231_v49, 4  ;;  %v889_v38 = vrot.slane %v2230_v58, 5 }
  0x82   :  { %v857_v6 = vsel %vm667_vm9, %v849_v28, 0.0  ;;  %v890_v60 = vrot.slane %v2231_v49, 5  ;;  %v891_v53 = vrot.slane %v2230_v58, 6  ;;  %v892_v52 = vrot.slane %v2231_v49, 6 }
  0x83   :  { %v858_v8 = vadd.f32 %v857_v6, %v856_v45  ;;  %v893_v11 = vrot.slane %v2230_v58, 7  ;;  %v894_v21 = vrot.slane %v2231_v49, 7  ;;  %v895_v32 = vrot.slane %v2232_v44, 1  ;;  %v3524_v45 = vld [vmem:[#allocation13_spill] sm:$0xff]  ;;  %v3527_v6 = vld [vmem:[#allocation16_spill] sm:$0xff] }
  0x84   :  { %v896_v55 = vrot.slane %v2233_v12, 1  ;;  %v897_v14 = vrot.slane %v2232_v44, 2  ;;  %v898_v34 = vrot.slane %v2233_v12, 2  ;;  %v899_v35 = vrot.slane %v2232_v44, 3 }
  0x85   :  { %859 = vadd.xlane.f32.xlu0 %v858_v8  ;;  %v900_v56 = vrot.slane %v2233_v12, 3  ;;  %v901_v57 = vrot.slane %v2232_v44, 4  ;;  %v902_v36 = vrot.slane %v2233_v12, 4  ;;  %v903_v61 = vrot.slane %v2232_v44, 5  ;;  %v3528_v8 = vld [vmem:[#allocation18_spill] sm:$0xff] }
  0x86   :  { %v904_v41 = vrot.slane %v2233_v12, 5  ;;  %v933_v24 = vmul.f32 %v2230_v58, %v3523_v63  ;;  %v934_v18 = vmul.f32 %v2231_v49, %v2635_v1  ;;  %v935_v0 = vmul.f32 %v881_v25, %v2638_v2 }
  0x87   :  { %v936_v15 = vmul.f32 %v882_v16, %v2641_v19  ;;  %v937_v62 = vmul.f32 %v883_v37, %v2644_v10  ;;  %v938_v48 = vmul.f32 %v884_v7, %v2647_v26  ;;  %v939_v47 = vmul.f32 %v885_v51, %v2650_v23 }
  0x88   :  { %v940_v4 = vmul.f32 %v886_v3, %v2653_v30  ;;  %v941_v5 = vmul.f32 %v887_v13, %v2656_v29  ;;  %v942_v27 = vmul.f32 %v888_v20, %v2659_v31  ;;  %v943_v58 = vmul.f32 %v889_v38, %v2662_v17  ;;  %v3525_v3 = vld [vmem:[#allocation14_spill] sm:$0xff]  ;;  %v3526_v13 = vld [vmem:[#allocation15_spill] sm:$0xff] }
  0x89   :  { %v944_v49 = vmul.f32 %v890_v60, %v2670_v33  ;;  %v945_v25 = vmul.f32 %v891_v53, %v2673_v39  ;;  %v946_v16 = vmul.f32 %v892_v52, %v2676_v40  ;;  %v947_v37 = vmul.f32 %v893_v11, %v2683_v42  ;;  %v3529_v39 = vld [vmem:[#allocation20_spill] sm:$0xff] }
  0x8a   :  { %v948_v7 = vmul.f32 %v894_v21, %v2699_v43  ;;  %v949_v9 = vmul.f32 %v2232_v44, %v3517_v50  ;;  %v950_v51 = vmul.f32 %v2233_v12, %v3524_v45  ;;  %v951_v28 = vmul.f32 %v895_v32, %v3525_v3  ;;  %v3530_v43 = vld [vmem:[#allocation23_spill] sm:$0xff] }
  0x8b   :  { %v952_v20 = vmul.f32 %v896_v55, %v3526_v13  ;;  %v953_v38 = vmul.f32 %v897_v14, %v3527_v6  ;;  %v954_v60 = vmul.f32 %v898_v34, %v3528_v8  ;;  %v955_v53 = vmul.f32 %v899_v35, %v2730_v54 }
  0x8c   :  { %v956_v52 = vmul.f32 %v900_v56, %v3529_v39  ;;  %v957_v11 = vmul.f32 %v901_v57, %v2738_v59  ;;  %v958_v21 = vmul.f32 %v902_v36, %v2740_v22  ;;  %v959_v44 = vmul.f32 %v903_v61, %v3530_v43 }
  0x8d   :  { %v960_v12 = vmul.f32 %v904_v41, %v3521_v46  ;;  %v989_v45 = vrot.slane %v935_v0, 7  ;;  %v991_v32 = vrot.slane %v937_v62, 6  ;;  %v993_v3 = vrot.slane %v939_v47, 5 }
  0x8e   :  { %v995_v55 = vrot.slane %v941_v5, 4  ;;  %v997_v13 = vrot.slane %v943_v58, 3  ;;  %v999_v14 = vrot.slane %v945_v25, 2  ;;  %v1001_v6 = vrot.slane %v947_v37, 1 }
  0x8f   :  { %v990_v34 = vsel %vm608_vm2, %v989_v45, %v933_v24  ;;  %v1003_v35 = vrot.slane %v936_v15, 7  ;;  %v1005_v54 = vrot.slane %v938_v48, 6  ;;  %v1007_v56 = vrot.slane %v940_v4, 5 }
  0x90   :  { %v992_v57 = vsel %vm611_vm3, %v991_v32, %v990_v34  ;;  %v1009_v59 = vrot.slane %v942_v27, 4  ;;  %v1011_v36 = vrot.slane %v944_v49, 3  ;;  %v1013_v22 = vrot.slane %v946_v16, 2 }
  0x91   :  { %v994_v61 = vsel %vm614_vm4, %v993_v3, %v992_v57  ;;  %v1004_v41 = vsel %vm608_vm2, %v1003_v35, %v934_v18  ;;  %v1015_v0 = vrot.slane %v948_v7, 1  ;;  %v1017_v62 = vrot.slane %v951_v28, 7  ;;  %v2236_v57 = vld [vmem:[%s3443_s1 + $0x70] sm:$0x3f] }
  0x92   :  { %v996_v47 = vsel %vm617_vm5, %v995_v55, %v994_v61  ;;  %v1006_v5 = vsel %vm611_vm3, %v1005_v54, %v1004_v41  ;;  %v1019_v58 = vrot.slane %v953_v38, 6  ;;  %v1021_v24 = vrot.slane %v955_v53, 5  ;;  %v2235_v38 = vld [vmem:[%s3443_s1 + $0x68] sm:$0xff] }
  0x93   :  { %v998_v15 = vsel %vm620_vm6, %v997_v13, %v996_v47  ;;  %v1008_v48 = vsel %vm614_vm4, %v1007_v56, %v1006_v5  ;;  %v1018_v4 = vsel %vm608_vm2, %v1017_v62, %v949_v9  ;;  %v1023_v27 = vrot.slane %v957_v11, 4 }
  0x94   :  { %v1000_v49 = vsel %vm623_vm7, %v999_v14, %v998_v15  ;;  %v1010_v25 = vsel %vm617_vm5, %v1009_v59, %v1008_v48  ;;  %v1020_v18 = vsel %vm611_vm3, %v1019_v58, %v1018_v4  ;;  %v1025_v16 = vrot.slane %v959_v44, 3  ;;  %v2234_v59 = vld [vmem:[%s3443_s1 + $0x60] sm:$0xff] }
  0x95   :  { %v1002_v37 = vsel %vm626_vm8, %v1001_v6, %v1000_v49  ;;  %v1012_v54 = vsel %vm620_vm6, %v1011_v36, %v1010_v25  ;;  %v1022_v7 = vsel %vm614_vm4, %v1021_v24, %v1020_v18  ;;  %v1027_v45 = vrot.slane %v952_v20, 7 }
  0x96   :  { %v1014_v3 = vsel %vm623_vm7, %v1013_v22, %v1012_v54  ;;  %v1024_v28 = vsel %vm617_vm5, %v1023_v27, %v1022_v7  ;;  %v1029_v9 = vrot.slane %v954_v60, 6  ;;  %v1031_v13 = vrot.slane %v956_v52, 5 }
  0x97   :  { %v1016_v6 = vsel %vm626_vm8, %v1015_v0, %v1014_v3  ;;  %v1026_v53 = vsel %vm620_vm6, %v1025_v16, %v1024_v28  ;;  %v1028_v20 = vsel %vm608_vm2, %v1027_v45, %v950_v51  ;;  %v1033_v11 = vrot.slane %v958_v21, 4 }
  0x98   :  { %v1030_v22 = vsel %vm611_vm3, %v1029_v9, %v1028_v20  ;;  %v1035_v44 = vrot.slane %v960_v12, 3  ;;  %v1041_v60 = vadd.f32 %v1016_v6, %v1002_v37  ;;  %v1042_v52 = vsel %vm667_vm9, %v1026_v53, 0.0  ;;  %v2237_v12 = vld [vmem:[%s3443_s1 + $0x78] sm:$0x3f] }
  0x99   :  { %v1032_v32 = vsel %vm614_vm4, %v1031_v13, %v1030_v22  ;;  %v1068_v55 = vrot.slane %v2234_v59, 1  ;;  %v1069_v14 = vrot.slane %v2235_v38, 1  ;;  %v1070_v34 = vrot.slane %v2234_v59, 2 }
  0x9a   :  { %v1034_v35 = vsel %vm617_vm5, %v1033_v11, %v1032_v32  ;;  %v1043_v56 = vadd.f32 %v1042_v52, %v1041_v60  ;;  %v1071_v51 = vrot.slane %v2235_v38, 2  ;;  %v1072_v21 = vrot.slane %v2234_v59, 3  ;;  %v3531_v52 = vld [vmem:[#allocation8_spill] sm:$0xff] }
  0x9b   :  { %v1036_v36 = vsel %vm620_vm6, %v1035_v44, %v1034_v35  ;;  %v1073_v61 = vrot.slane %v2235_v38, 3  ;;  %v1074_v41 = vrot.slane %v2234_v59, 4  ;;  %v1075_v0 = vrot.slane %v2235_v38, 4 }
  0x9c   :  { %v1044_v62 = vsel %vm667_vm9, %v1036_v36, 0.0  ;;  %v1076_v47 = vrot.slane %v2234_v59, 5  ;;  %v1077_v5 = vrot.slane %v2235_v38, 5  ;;  %v1078_v58 = vrot.slane %v2234_v59, 6  ;;  %v3534_v36 = vld [vmem:[#allocation14_spill] sm:$0xff] }
  0x9d   :  { %v1045_v24 = vadd.f32 %v1044_v62, %v1043_v56  ;;  %v1079_v15 = vrot.slane %v2235_v38, 6  ;;  %v1080_v48 = vrot.slane %v2234_v59, 7  ;;  %v1081_v4 = vrot.slane %v2235_v38, 7  ;;  %v3536_v62 = vld [vmem:[#allocation16_spill] sm:$0xff] }
  0x9e   :  { %v1082_v27 = vrot.slane %v2236_v57, 1  ;;  %v1083_v49 = vrot.slane %v2237_v12, 1  ;;  %v1084_v25 = vrot.slane %v2236_v57, 2  ;;  %v1085_v18 = vrot.slane %v2237_v12, 2 }
  0x9f   :  { %1046 = vadd.xlane.f32.xlu1 %v1045_v24  ;;  %v1086_v16 = vrot.slane %v2236_v57, 3  ;;  %v1087_v37 = vrot.slane %v2237_v12, 3  ;;  %v1088_v54 = vrot.slane %v2236_v57, 4  ;;  %v1089_v7 = vrot.slane %v2237_v12, 4  ;;  %v3537_v24 = vld [vmem:[#allocation19_spill] sm:$0xff] }
  0xa0   :  { %v1090_v45 = vrot.slane %v2236_v57, 5  ;;  %v1091_v3 = vrot.slane %v2237_v12, 5  ;;  %v1120_v28 = vmul.f32 %v2234_v59, %v3523_v63  ;;  %v1121_v9 = vmul.f32 %v2235_v38, %v2635_v1 }
  0xa1   :  { %v1122_v13 = vmul.f32 %v1068_v55, %v2638_v2  ;;  %v1123_v6 = vmul.f32 %v1069_v14, %v2641_v19  ;;  %v1124_v53 = vmul.f32 %v1070_v34, %v2644_v10  ;;  %v1125_v20 = vmul.f32 %v1071_v51, %v2647_v26  ;;  %v3532_v34 = vld [vmem:[#allocation11_spill] sm:$0xff]  ;;  %v3533_v51 = vld [vmem:[#allocation13_spill] sm:$0xff] }
  0xa2   :  { %v1126_v11 = vmul.f32 %v1072_v21, %v2650_v23  ;;  %v1127_v22 = vmul.f32 %v1073_v61, %v2653_v30  ;;  %v1128_v44 = vmul.f32 %v1074_v41, %v2656_v29  ;;  %v1129_v60 = vmul.f32 %v1075_v0, %v2659_v31  ;;  %v3535_v41 = vld [vmem:[#allocation15_spill] sm:$0xff] }
  0xa3   :  { %v1130_v59 = vmul.f32 %v1076_v47, %v2662_v17  ;;  %v1131_v38 = vmul.f32 %v1077_v5, %v2670_v33  ;;  %v1132_v32 = vmul.f32 %v1078_v58, %v3531_v52  ;;  %v1133_v55 = vmul.f32 %v1079_v15, %v2676_v40  ;;  %v3538_v40 = vld [vmem:[#allocation21_spill] sm:$0xff] }
  0xa4   :  { %v1134_v14 = vmul.f32 %v1080_v48, %v2683_v42  ;;  %v1135_v35 = vmul.f32 %v1081_v4, %v3532_v34  ;;  %v1136_v56 = vmul.f32 %v2236_v57, %v3517_v50  ;;  %v1137_v21 = vmul.f32 %v2237_v12, %v3533_v51  ;;  %v3539_v42 = vld [vmem:[#allocation22_spill] sm:$0xff] }
  0xa5   :  { %v1138_v61 = vmul.f32 %v1082_v27, %v3534_v36  ;;  %v1139_v0 = vmul.f32 %v1083_v49, %v3535_v41  ;;  %v1140_v47 = vmul.f32 %v1084_v25, %v3536_v62  ;;  %v1141_v5 = vmul.f32 %v1085_v18, %v3528_v8 }
  0xa6   :  { %v1142_v58 = vmul.f32 %v1086_v16, %v3537_v24  ;;  %v1143_v15 = vmul.f32 %v1087_v37, %v3529_v39  ;;  %v1144_v48 = vmul.f32 %v1088_v54, %v3538_v40  ;;  %v1145_v4 = vmul.f32 %v1089_v7, %v3539_v42 }
  0xa7   :  { %v1146_v57 = vmul.f32 %v1090_v45, %v3530_v43  ;;  %v1147_v12 = vmul.f32 %v1091_v3, %v3521_v46  ;;  %v1176_v51 = vrot.slane %v1122_v13, 7  ;;  %v1178_v27 = vrot.slane %v1124_v53, 6 }
  0xa8   :  { %v1180_v36 = vrot.slane %v1126_v11, 5  ;;  %v1182_v49 = vrot.slane %v1128_v44, 4  ;;  %v1184_v41 = vrot.slane %v1130_v59, 3  ;;  %v1186_v25 = vrot.slane %v1132_v32, 2 }
  0xa9   :  { %v1177_v18 = vsel %vm608_vm2, %v1176_v51, %v1120_v28  ;;  %v1188_v8 = vrot.slane %v1134_v14, 1  ;;  %v1190_v16 = vrot.slane %v1123_v6, 7  ;;  %v1192_v24 = vrot.slane %v1125_v20, 6 }
  0xaa   :  { %v1179_v37 = vsel %vm611_vm3, %v1178_v27, %v1177_v18  ;;  %v1194_v54 = vrot.slane %v1127_v22, 5  ;;  %v1196_v40 = vrot.slane %v1129_v60, 4  ;;  %v1198_v7 = vrot.slane %v1131_v38, 3 }
  0xab   :  { %v1181_v45 = vsel %vm614_vm4, %v1180_v36, %v1179_v37  ;;  %v1191_v3 = vsel %vm608_vm2, %v1190_v16, %v1121_v9  ;;  %v1200_v13 = vrot.slane %v1133_v55, 2  ;;  %v1202_v53 = vrot.slane %v1135_v35, 1 }
  0xac   :  { %v1183_v11 = vsel %vm617_vm5, %v1182_v49, %v1181_v45  ;;  %v1193_v44 = vsel %vm611_vm3, %v1192_v24, %v1191_v3  ;;  %v1204_v59 = vrot.slane %v1138_v61, 7  ;;  %v1206_v28 = vrot.slane %v1140_v47, 6 }
  0xad   :  { %v1185_v6 = vsel %vm620_vm6, %v1184_v41, %v1183_v11  ;;  %v1195_v20 = vsel %vm614_vm4, %v1194_v54, %v1193_v44  ;;  %v1208_v32 = vrot.slane %v1142_v58, 5  ;;  %v1210_v22 = vrot.slane %v1144_v48, 4 }
  0xae   :  { %v1187_v60 = vsel %vm623_vm7, %v1186_v25, %v1185_v6  ;;  %v1197_v38 = vsel %vm617_vm5, %v1196_v40, %v1195_v20  ;;  %v1205_v9 = vsel %vm608_vm2, %v1204_v59, %v1136_v56  ;;  %v1212_v55 = vrot.slane %v1146_v57, 3  ;;  %v2238_v40 = vld [vmem:[%s3443_s1 + $0x80] sm:$0xff]  ;;  %v2239_v56 = vld [vmem:[%s3443_s1 + $0x88] sm:$0xff] }
  0xaf   :  { %v1189_v14 = vsel %vm626_vm8, %v1188_v8, %v1187_v60  ;;  %v1199_v35 = vsel %vm620_vm6, %v1198_v7, %v1197_v38  ;;  %v1207_v51 = vsel %vm611_vm3, %v1206_v28, %v1205_v9  ;;  %v1214_v36 = vrot.slane %v1139_v0, 7 }
  0xb0   :  { %v1201_v61 = vsel %vm623_vm7, %v1200_v13, %v1199_v35  ;;  %v1209_v41 = vsel %vm614_vm4, %v1208_v32, %v1207_v51  ;;  %v1216_v47 = vrot.slane %v1141_v5, 6  ;;  %v1218_v24 = vrot.slane %v1143_v15, 5 }
  0xb1   :  { %v1203_v8 = vsel %vm626_vm8, %v1202_v53, %v1201_v61  ;;  %v1211_v58 = vsel %vm617_vm5, %v1210_v22, %v1209_v41  ;;  %v1215_v0 = vsel %vm608_vm2, %v1214_v36, %v1137_v21  ;;  %v1220_v48 = vrot.slane %v1145_v4, 4  ;;  %v2240_v21 = vld [vmem:[%s3443_s1 + $0x90] sm:$0x3f] }
  0xb2   :  { %v1213_v57 = vsel %vm620_vm6, %v1212_v55, %v1211_v58  ;;  %v1217_v5 = vsel %vm611_vm3, %v1216_v47, %v1215_v0  ;;  %v1222_v15 = vrot.slane %v1147_v12, 3  ;;  %v1228_v27 = vadd.f32 %v1203_v8, %v1189_v14  ;;  %v2241_v12 = vld [vmem:[%s3443_s1 + $0x98] sm:$0x3f] }
  0xb3   :  { %v1219_v49 = vsel %vm614_vm4, %v1218_v24, %v1217_v5  ;;  %v1229_v25 = vsel %vm667_vm9, %v1213_v57, 0.0  ;;  %v1255_v18 = vrot.slane %v2238_v40, 1  ;;  %v1256_v16 = vrot.slane %v2239_v56, 1 }
  0xb4   :  { %v1221_v37 = vsel %vm617_vm5, %v1220_v48, %v1219_v49  ;;  %v1230_v54 = vadd.f32 %v1229_v25, %v1228_v27  ;;  %v1257_v4 = vrot.slane %v2238_v40, 2  ;;  %v1258_v7 = vrot.slane %v2239_v56, 2 }
  0xb5   :  { %v1223_v45 = vsel %vm620_vm6, %v1222_v15, %v1221_v37  ;;  %v1259_v3 = vrot.slane %v2238_v40, 3  ;;  %v1260_v13 = vrot.slane %v2239_v56, 3  ;;  %v1261_v53 = vrot.slane %v2238_v40, 4  ;;  %v3541_v37 = vld [vmem:[#allocation10_spill] sm:$0xff] }
  0xb6   :  { %v1231_v11 = vsel %vm667_vm9, %v1223_v45, 0.0  ;;  %v1262_v44 = vrot.slane %v2239_v56, 4  ;;  %v1263_v59 = vrot.slane %v2238_v40, 5  ;;  %v1264_v28 = vrot.slane %v2239_v56, 5  ;;  %v3542_v45 = vld [vmem:[#allocation13_spill] sm:$0xff] }
  0xb7   :  { %v1232_v6 = vadd.f32 %v1231_v11, %v1230_v54  ;;  %v1265_v20 = vrot.slane %v2238_v40, 6  ;;  %v1266_v32 = vrot.slane %v2239_v56, 6  ;;  %v1267_v22 = vrot.slane %v2238_v40, 7  ;;  %v3544_v11 = vld [vmem:[#allocation15_spill] sm:$0xff] }
  0xb8   :  { %v1268_v60 = vrot.slane %v2239_v56, 7  ;;  %v1269_v38 = vrot.slane %v2240_v21, 1  ;;  %v1270_v9 = vrot.slane %v2241_v12, 1  ;;  %v1271_v55 = vrot.slane %v2240_v21, 2 }
  0xb9   :  { %1233 = vadd.xlane.f32.xlu0 %v1232_v6  ;;  %v1272_v14 = vrot.slane %v2241_v12, 2  ;;  %v1273_v35 = vrot.slane %v2240_v21, 3  ;;  %v1274_v51 = vrot.slane %v2241_v12, 3  ;;  %v1275_v36 = vrot.slane %v2240_v21, 4  ;;  %v3545_v6 = vld [vmem:[#allocation18_spill] sm:$0xff] }
  0xba   :  { %v1276_v61 = vrot.slane %v2241_v12, 4  ;;  %v1277_v41 = vrot.slane %v2240_v21, 5  ;;  %v1278_v47 = vrot.slane %v2241_v12, 5  ;;  %v1307_v24 = vmul.f32 %v2238_v40, %v3523_v63 }
  0xbb   :  { %v1308_v8 = vmul.f32 %v2239_v56, %v2635_v1  ;;  %v1309_v58 = vmul.f32 %v1255_v18, %v2638_v2  ;;  %v1310_v0 = vmul.f32 %v1256_v16, %v2641_v19  ;;  %v1311_v48 = vmul.f32 %v1257_v4, %v2644_v10  ;;  %v3540_v18 = vld [vmem:[#allocation9_spill] sm:$0xff] }
  0xbc   :  { %v1312_v57 = vmul.f32 %v1258_v7, %v2647_v26  ;;  %v1313_v5 = vmul.f32 %v1259_v3, %v2650_v23  ;;  %v1314_v15 = vmul.f32 %v1260_v13, %v2653_v30  ;;  %v1315_v27 = vmul.f32 %v1261_v53, %v2656_v29  ;;  %v3543_v13 = vld [vmem:[#allocation14_spill] sm:$0xff] }
  0xbd   :  { %v1316_v49 = vmul.f32 %v1262_v44, %v2659_v31  ;;  %v1317_v40 = vmul.f32 %v1263_v59, %v2662_v17  ;;  %v1318_v56 = vmul.f32 %v1264_v28, %v2670_v33  ;;  %v1319_v25 = vmul.f32 %v1265_v20, %v3531_v52  ;;  %v3546_v33 = vld [vmem:[#allocation19_spill] sm:$0xff] }
  0xbe   :  { %v1320_v16 = vmul.f32 %v1266_v32, %v3540_v18  ;;  %v1321_v54 = vmul.f32 %v1267_v22, %v3541_v37  ;;  %v1322_v4 = vmul.f32 %v1268_v60, %v3532_v34  ;;  %v1323_v7 = vmul.f32 %v2240_v21, %v3517_v50  ;;  %v3547_v18 = vld [vmem:[#allocation21_spill] sm:$0xff] }
  0xbf   :  { %v1324_v3 = vmul.f32 %v2241_v12, %v3542_v45  ;;  %v1325_v53 = vmul.f32 %v1269_v38, %v3543_v13  ;;  %v1326_v44 = vmul.f32 %v1270_v9, %v3544_v11  ;;  %v1327_v59 = vmul.f32 %v1271_v55, %v3536_v62 }
  0xc0   :  { %v1328_v28 = vmul.f32 %v1272_v14, %v3545_v6  ;;  %v1329_v20 = vmul.f32 %v1273_v35, %v3546_v33  ;;  %v1330_v32 = vmul.f32 %v1274_v51, %v3529_v39  ;;  %v1331_v22 = vmul.f32 %v1275_v36, %v3547_v18 }
  0xc1   :  { %v1332_v60 = vmul.f32 %v1276_v61, %v3539_v42  ;;  %v1333_v21 = vmul.f32 %v1277_v41, %v3530_v43  ;;  %v3066_v12 = vmul.f32 %v1278_v47, %v3521_v46  ;;  %v1363_v38 = vrot.slane %v1309_v58, 7 }
  0xc2   :  { %v1365_v13 = vrot.slane %v1311_v48, 6  ;;  %v1367_v9 = vrot.slane %v1313_v5, 5  ;;  %v1369_v11 = vrot.slane %v1315_v27, 4  ;;  %v1371_v55 = vrot.slane %v1317_v40, 3 }
  0xc3   :  { %v1364_v14 = vsel %vm608_vm2, %v1363_v38, %v1307_v24  ;;  %v1373_v6 = vrot.slane %v1319_v25, 2  ;;  %v1375_v35 = vrot.slane %v1321_v54, 1  ;;  %v1377_v33 = vrot.slane %v1310_v0, 7 }
  0xc4   :  { %v1366_v51 = vsel %vm611_vm3, %v1365_v13, %v1364_v14  ;;  %v1379_v36 = vrot.slane %v1312_v57, 6  ;;  %v1381_v18 = vrot.slane %v1314_v15, 5  ;;  %v1383_v61 = vrot.slane %v1316_v49, 4 }
  0xc5   :  { %v1368_v41 = vsel %vm614_vm4, %v1367_v9, %v1366_v51  ;;  %v1378_v47 = vsel %vm608_vm2, %v1377_v33, %v1308_v8  ;;  %v1385_v46 = vrot.slane %v1318_v56, 3  ;;  %v1387_v58 = vrot.slane %v1320_v16, 2 }
  0xc6   :  { %v1370_v48 = vsel %vm617_vm5, %v1369_v11, %v1368_v41  ;;  %v1380_v5 = vsel %vm611_vm3, %v1379_v36, %v1378_v47  ;;  %v1389_v27 = vrot.slane %v1322_v4, 1  ;;  %v1391_v24 = vrot.slane %v1325_v53, 7 }
  0xc7   :  { %v1372_v40 = vsel %vm620_vm6, %v1371_v55, %v1370_v48  ;;  %v1382_v0 = vsel %vm614_vm4, %v1381_v18, %v1380_v5  ;;  %v1393_v25 = vrot.slane %v1327_v59, 6  ;;  %v1395_v57 = vrot.slane %v1329_v20, 5  ;;  %v2242_v59 = vld [vmem:[%s3443_s1 + $0xa0] sm:$0xff] }
  0xc8   :  { %v1374_v15 = vsel %vm623_vm7, %v1373_v6, %v1372_v40  ;;  %v1384_v49 = vsel %vm617_vm5, %v1383_v61, %v1382_v0  ;;  %v1392_v33 = vsel %vm608_vm2, %v1391_v24, %v1323_v7  ;;  %v1397_v8 = vrot.slane %v1331_v22, 4  ;;  %v2243_v7 = vld [vmem:[%s3443_s1 + $0xa8] sm:$0xff] }
  0xc9   :  { %v1376_v56 = vsel %vm626_vm8, %v1375_v35, %v1374_v15  ;;  %v1386_v16 = vsel %vm620_vm6, %v1385_v46, %v1384_v49  ;;  %v1394_v54 = vsel %vm611_vm3, %v1393_v25, %v1392_v33  ;;  %v1399_v4 = vrot.slane %v1333_v21, 3 }
  0xca   :  { %v1388_v13 = vsel %vm623_vm7, %v1387_v58, %v1386_v16  ;;  %v1396_v18 = vsel %vm614_vm4, %v1395_v57, %v1394_v54  ;;  %v1401_v53 = vrot.slane %v1326_v44, 7  ;;  %v1403_v11 = vrot.slane %v1328_v28, 6 }
  0xcb   :  { %v1390_v6 = vsel %vm626_vm8, %v1389_v27, %v1388_v13  ;;  %v1398_v46 = vsel %vm617_vm5, %v1397_v8, %v1396_v18  ;;  %v1405_v20 = vrot.slane %v1330_v32, 5  ;;  %v1407_v22 = vrot.slane %v1332_v60, 4  ;;  %v2244_v32 = vld [vmem:[%s3443_s1 + $0xb0] sm:$0x3f] }
  0xcc   :  { %v1400_v21 = vsel %vm620_vm6, %v1399_v4, %v1398_v46  ;;  %v1402_v38 = vsel %vm608_vm2, %v1401_v53, %v1324_v3  ;;  %v1409_v44 = vrot.slane %v3066_v12, 3  ;;  %v1415_v28 = vadd.f32 %v1390_v6, %v1376_v56  ;;  %v2245_v12 = vld [vmem:[%s3443_s1 + $0xb8] sm:$0x3f] }
  0xcd   :  { %v1404_v9 = vsel %vm611_vm3, %v1403_v11, %v1402_v38  ;;  %v1416_v55 = vsel %vm667_vm9, %v1400_v21, 0.0  ;;  %v1442_v14 = vrot.slane %v2242_v59, 1  ;;  %v1443_v35 = vrot.slane %v2243_v7, 1 }
  0xce   :  { %v1406_v51 = vsel %vm614_vm4, %v1405_v20, %v1404_v9  ;;  %v1417_v36 = vadd.f32 %v1416_v55, %v1415_v28  ;;  %v1444_v60 = vrot.slane %v2242_v59, 2  ;;  %v1445_v61 = vrot.slane %v2243_v7, 2 }
  0xcf   :  { %v1408_v3 = vsel %vm617_vm5, %v1407_v22, %v1406_v51  ;;  %v1446_v41 = vrot.slane %v2242_v59, 3  ;;  %v1447_v47 = vrot.slane %v2243_v7, 3  ;;  %v1448_v58 = vrot.slane %v2242_v59, 4  ;;  %v3548_v51 = vld [vmem:[#allocation7_spill] sm:$0xff] }
  0xd0   :  { %v1410_v48 = vsel %vm620_vm6, %v1409_v44, %v1408_v3  ;;  %v1449_v5 = vrot.slane %v2243_v7, 4  ;;  %v1450_v27 = vrot.slane %v2242_v59, 5  ;;  %v1451_v24 = vrot.slane %v2243_v7, 5 }
  0xd1   :  { %v1418_v40 = vsel %vm667_vm9, %v1410_v48, 0.0  ;;  %v1452_v0 = vrot.slane %v2242_v59, 6  ;;  %v1453_v25 = vrot.slane %v2243_v7, 6  ;;  %v1454_v57 = vrot.slane %v2242_v59, 7  ;;  %v3551_v48 = vld [vmem:[#allocation15_spill] sm:$0xff] }
  0xd2   :  { %v1419_v15 = vadd.f32 %v1418_v40, %v1417_v36  ;;  %v1455_v49 = vrot.slane %v2243_v7, 7  ;;  %v1456_v33 = vrot.slane %v2244_v32, 1  ;;  %v1457_v8 = vrot.slane %v2245_v12, 1  ;;  %v3549_v36 = vld [vmem:[#allocation9_spill] sm:$0xff]  ;;  %v3552_v40 = vld [vmem:[#allocation18_spill] sm:$0xff] }
  0xd3   :  { %v1458_v56 = vrot.slane %v2244_v32, 2  ;;  %v1459_v16 = vrot.slane %v2245_v12, 2  ;;  %v1460_v54 = vrot.slane %v2244_v32, 3  ;;  %v1461_v4 = vrot.slane %v2245_v12, 3 }
  0xd4   :  { %1420 = vadd.xlane.f32.xlu1 %v1419_v15  ;;  %v1462_v13 = vrot.slane %v2244_v32, 4  ;;  %v1463_v18 = vrot.slane %v2245_v12, 4  ;;  %v1464_v53 = vrot.slane %v2244_v32, 5  ;;  %v1465_v11 = vrot.slane %v2245_v12, 5  ;;  %v3553_v15 = vld [vmem:[#allocation19_spill] sm:$0xff] }
  0xd5   :  { %v1494_v6 = vmul.f32 %v2242_v59, %v3523_v63  ;;  %v1495_v46 = vmul.f32 %v2243_v7, %v2635_v1  ;;  %v1496_v20 = vmul.f32 %v1442_v14, %v2638_v2  ;;  %v1497_v22 = vmul.f32 %v1443_v35, %v2641_v19 }
  0xd6   :  { %v1498_v21 = vmul.f32 %v1444_v60, %v2644_v10  ;;  %v1499_v38 = vmul.f32 %v1445_v61, %v2647_v26  ;;  %v1500_v44 = vmul.f32 %v1446_v41, %v2650_v23  ;;  %v1501_v28 = vmul.f32 %v1447_v47, %v2653_v30  ;;  %v3550_v47 = vld [vmem:[#allocation14_spill] sm:$0xff] }
  0xd7   :  { %v1502_v9 = vmul.f32 %v1448_v58, %v2656_v29  ;;  %v1503_v55 = vmul.f32 %v1449_v5, %v2659_v31  ;;  %v1504_v59 = vmul.f32 %v1450_v27, %v2662_v17  ;;  %v1505_v7 = vmul.f32 %v1451_v24, %v3548_v51 }
  0xd8   :  { %v1506_v14 = vmul.f32 %v1452_v0, %v3531_v52  ;;  %v1507_v35 = vmul.f32 %v1453_v25, %v3549_v36  ;;  %v1508_v60 = vmul.f32 %v1454_v57, %v3541_v37  ;;  %v1509_v61 = vmul.f32 %v1455_v49, %v3532_v34  ;;  %v3554_v36 = vld [vmem:[#allocation21_spill] sm:$0xff] }
  0xd9   :  { %v1510_v3 = vmul.f32 %v2244_v32, %v3517_v50  ;;  %v1511_v41 = vmul.f32 %v2245_v12, %v3542_v45  ;;  %v1512_v58 = vmul.f32 %v1456_v33, %v3550_v47  ;;  %v1513_v5 = vmul.f32 %v1457_v8, %v3551_v48  ;;  %v3555_v50 = vld [vmem:[#allocation24_spill] sm:$0xff] }
  0xda   :  { %v1514_v27 = vmul.f32 %v1458_v56, %v3536_v62  ;;  %v1515_v24 = vmul.f32 %v1459_v16, %v3552_v40  ;;  %v1516_v0 = vmul.f32 %v1460_v54, %v3553_v15  ;;  %v1517_v25 = vmul.f32 %v1461_v4, %v3529_v39 }
  0xdb   :  { %v1518_v57 = vmul.f32 %v1462_v13, %v3554_v36  ;;  %v1519_v49 = vmul.f32 %v1463_v18, %v3539_v42  ;;  %v1520_v32 = vmul.f32 %v1464_v53, %v3530_v43  ;;  %v1521_v12 = vmul.f32 %v1465_v11, %v3555_v50 }
  0xdc   :  { %v1550_v45 = vrot.slane %v1496_v20, 7  ;;  %v1552_v33 = vrot.slane %v1498_v21, 6  ;;  %v1554_v47 = vrot.slane %v1500_v44, 5  ;;  %v1556_v8 = vrot.slane %v1502_v9, 4 }
  0xdd   :  { %v1558_v48 = vrot.slane %v1504_v59, 3  ;;  %v1560_v56 = vrot.slane %v1506_v14, 2  ;;  %v1562_v62 = vrot.slane %v1508_v60, 1  ;;  %v1564_v16 = vrot.slane %v1497_v22, 7 }
  0xde   :  { %v1551_v54 = vsel %vm608_vm2, %v1550_v45, %v1494_v6  ;;  %v1566_v15 = vrot.slane %v1499_v38, 6  ;;  %v1568_v4 = vrot.slane %v1501_v28, 5  ;;  %v1570_v39 = vrot.slane %v1503_v55, 4 }
  0xdf   :  { %v1553_v13 = vsel %vm611_vm3, %v1552_v33, %v1551_v54  ;;  %v1565_v18 = vsel %vm608_vm2, %v1564_v16, %v1495_v46  ;;  %v1572_v53 = vrot.slane %v1505_v7, 3  ;;  %v1574_v43 = vrot.slane %v1507_v35, 2 }
  0xe0   :  { %v1555_v11 = vsel %vm614_vm4, %v1554_v47, %v1553_v13  ;;  %v1567_v20 = vsel %vm611_vm3, %v1566_v15, %v1565_v18  ;;  %v1576_v21 = vrot.slane %v1509_v61, 1  ;;  %v1578_v44 = vrot.slane %v1512_v58, 7 }
  0xe1   :  { %v1557_v9 = vsel %vm617_vm5, %v1556_v8, %v1555_v11  ;;  %v1569_v22 = vsel %vm614_vm4, %v1568_v4, %v1567_v20  ;;  %v1580_v45 = vrot.slane %v1514_v27, 6  ;;  %v1582_v6 = vrot.slane %v1516_v0, 5  ;;  %v2247_v0 = vld [vmem:[%s3443_s1 + $0xc8] sm:$0xff] }
  0xe2   :  { %v1559_v38 = vsel %vm620_vm6, %v1558_v48, %v1557_v9  ;;  %v1571_v28 = vsel %vm617_vm5, %v1570_v39, %v1569_v22  ;;  %v1579_v46 = vsel %vm608_vm2, %v1578_v44, %v1510_v3  ;;  %v1584_v55 = vrot.slane %v1518_v57, 4  ;;  %v2246_v39 = vld [vmem:[%s3443_s1 + $0xc0] sm:$0xff] }
  0xe3   :  { %v1561_v59 = vsel %vm623_vm7, %v1560_v56, %v1559_v38  ;;  %v1573_v7 = vsel %vm620_vm6, %v1572_v53, %v1571_v28  ;;  %v1581_v14 = vsel %vm611_vm3, %v1580_v45, %v1579_v46  ;;  %v1586_v35 = vrot.slane %v1520_v32, 3  ;;  %v2249_v53 = vld [vmem:[%s3443_s1 + $0xd8] sm:$0x3f] }
  0xe4   :  { %v1563_v60 = vsel %vm626_vm8, %v1562_v62, %v1561_v59  ;;  %v1575_v61 = vsel %vm623_vm7, %v1574_v43, %v1573_v7  ;;  %v1583_v47 = vsel %vm614_vm4, %v1582_v6, %v1581_v14  ;;  %v1588_v58 = vrot.slane %v1513_v5, 7 }
  0xe5   :  { %v1577_v3 = vsel %vm626_vm8, %v1576_v21, %v1575_v61  ;;  %v1585_v48 = vsel %vm617_vm5, %v1584_v55, %v1583_v47  ;;  %v1590_v27 = vrot.slane %v1515_v24, 6  ;;  %v1592_v15 = vrot.slane %v1517_v25, 5 }
  0xe6   :  { %v1587_v62 = vsel %vm620_vm6, %v1586_v35, %v1585_v48  ;;  %v1589_v43 = vsel %vm608_vm2, %v1588_v58, %v1511_v41  ;;  %v1594_v57 = vrot.slane %v1519_v49, 4  ;;  %v1596_v5 = vrot.slane %v1521_v12, 3  ;;  %v2248_v41 = vld [vmem:[%s3443_s1 + $0xd0] sm:$0x3f] }
  0xe7   :  { %v1591_v32 = vsel %vm611_vm3, %v1590_v27, %v1589_v43  ;;  %v1602_v33 = vadd.f32 %v1577_v3, %v1563_v60  ;;  %v1603_v8 = vsel %vm667_vm9, %v1587_v62, 0.0  ;;  %v1629_v56 = vrot.slane %v2246_v39, 1 }
  0xe8   :  { %v1593_v16 = vsel %vm614_vm4, %v1592_v15, %v1591_v32  ;;  %v1630_v24 = vrot.slane %v2247_v0, 1  ;;  %v1631_v25 = vrot.slane %v2246_v39, 2  ;;  %v1632_v54 = vrot.slane %v2247_v0, 2 }
  0xe9   :  { %v1595_v4 = vsel %vm617_vm5, %v1594_v57, %v1593_v16  ;;  %v1604_v13 = vadd.f32 %v1603_v8, %v1602_v33  ;;  %v1633_v49 = vrot.slane %v2246_v39, 3  ;;  %v1634_v12 = vrot.slane %v2247_v0, 3 }
  0xea   :  { %v1597_v18 = vsel %vm620_vm6, %v1596_v5, %v1595_v4  ;;  %v1635_v11 = vrot.slane %v2246_v39, 4  ;;  %v1636_v20 = vrot.slane %v2247_v0, 4  ;;  %v1637_v21 = vrot.slane %v2246_v39, 5 }
  0xeb   :  { %v1605_v44 = vsel %vm667_vm9, %v1597_v18, 0.0  ;;  %v1638_v9 = vrot.slane %v2247_v0, 5  ;;  %v1639_v22 = vrot.slane %v2246_v39, 6  ;;  %v1640_v45 = vrot.slane %v2247_v0, 6 }
  0xec   :  { %v1606_v6 = vadd.f32 %v1605_v44, %v1604_v13  ;;  %v1641_v38 = vrot.slane %v2246_v39, 7  ;;  %v1642_v28 = vrot.slane %v2247_v0, 7  ;;  %v1643_v46 = vrot.slane %v2248_v41, 1  ;;  %v3558_v13 = vld [vmem:[#allocation13_spill] sm:$0xff]  ;;  %v3561_v44 = vld [vmem:[#allocation16_spill] sm:$0xff] }
  0xed   :  { %v1644_v55 = vrot.slane %v2249_v53, 1  ;;  %v1645_v59 = vrot.slane %v2248_v41, 2  ;;  %v1646_v7 = vrot.slane %v2249_v53, 2  ;;  %v1647_v14 = vrot.slane %v2248_v41, 3 }
  0xee   :  { %1607 = vadd.xlane.f32.xlu0 %v1606_v6  ;;  %v1648_v35 = vrot.slane %v2249_v53, 3  ;;  %v1649_v60 = vrot.slane %v2248_v41, 4  ;;  %v1650_v61 = vrot.slane %v2249_v53, 4  ;;  %v1651_v47 = vrot.slane %v2248_v41, 5  ;;  %v3562_v6 = vld [vmem:[#allocation19_spill] sm:$0xff] }
  0xef   :  { %v1652_v58 = vrot.slane %v2249_v53, 5  ;;  %v1681_v3 = vmul.f32 %v2246_v39, %v3523_v63  ;;  %v1682_v48 = vmul.f32 %v2247_v0, %v2635_v1  ;;  %v1683_v27 = vmul.f32 %v1629_v56, %v2638_v2  ;;  %v3556_v56 = vld [vmem:[#allocation9_spill] sm:$0xff] }
  0xf0   :  { %v1684_v15 = vmul.f32 %v1630_v24, %v2641_v19  ;;  %v1685_v62 = vmul.f32 %v1631_v25, %v2644_v10  ;;  %v1686_v43 = vmul.f32 %v1632_v54, %v2647_v26  ;;  %v1687_v57 = vmul.f32 %v1633_v49, %v2650_v23  ;;  %v3557_v54 = vld [vmem:[#allocation12_spill] sm:$0xff] }
  0xf1   :  { %v1688_v5 = vmul.f32 %v1634_v12, %v2653_v30  ;;  %v1689_v32 = vmul.f32 %v1635_v11, %v2656_v29  ;;  %v1690_v33 = vmul.f32 %v1636_v20, %v2659_v31  ;;  %v1691_v39 = vmul.f32 %v1637_v21, %v2662_v17  ;;  %v3559_v12 = vld [vmem:[#allocation14_spill] sm:$0xff]  ;;  %v3560_v11 = vld [vmem:[#allocation15_spill] sm:$0xff] }
  0xf2   :  { %v1692_v0 = vmul.f32 %v1638_v9, %v3548_v51  ;;  %v1693_v8 = vmul.f32 %v1639_v22, %v3531_v52  ;;  %v1694_v16 = vmul.f32 %v1640_v45, %v3556_v56  ;;  %v1695_v24 = vmul.f32 %v1641_v38, %v3541_v37  ;;  %v3563_v52 = vld [vmem:[#allocation20_spill] sm:$0xff] }
  0xf3   :  { %v1696_v25 = vmul.f32 %v1642_v28, %v3532_v34  ;;  %v1697_v4 = vmul.f32 %v2248_v41, %v3557_v54  ;;  %v1698_v49 = vmul.f32 %v2249_v53, %v3558_v13  ;;  %v1699_v18 = vmul.f32 %v1643_v46, %v3559_v12  ;;  %v3564_v34 = vld [vmem:[#allocation23_spill] sm:$0xff] }
  0xf4   :  { %v1700_v20 = vmul.f32 %v1644_v55, %v3560_v11  ;;  %v1701_v21 = vmul.f32 %v1645_v59, %v3561_v44  ;;  %v1702_v9 = vmul.f32 %v1646_v7, %v3552_v40  ;;  %v1703_v22 = vmul.f32 %v1647_v14, %v3562_v6 }
  0xf5   :  { %v1704_v45 = vmul.f32 %v1648_v35, %v3563_v52  ;;  %v1705_v38 = vmul.f32 %v1649_v60, %v3554_v36  ;;  %v1706_v28 = vmul.f32 %v1650_v61, %v3539_v42  ;;  %v1707_v41 = vmul.f32 %v1651_v47, %v3564_v34 }
  0xf6   :  { %v1708_v53 = vmul.f32 %v1652_v58, %v3555_v50  ;;  %v1737_v13 = vrot.slane %v1683_v27, 7  ;;  %v1739_v46 = vrot.slane %v1685_v62, 6  ;;  %v1741_v12 = vrot.slane %v1687_v57, 5 }
  0xf7   :  { %v1743_v55 = vrot.slane %v1689_v32, 4  ;;  %v1745_v11 = vrot.slane %v1691_v39, 3  ;;  %v1747_v59 = vrot.slane %v1693_v8, 2  ;;  %v1749_v44 = vrot.slane %v1695_v24, 1 }
  0xf8   :  { %v1738_v7 = vsel %vm608_vm2, %v1737_v13, %v1681_v3  ;;  %v1751_v14 = vrot.slane %v1684_v15, 7  ;;  %v1753_v6 = vrot.slane %v1686_v43, 6  ;;  %v1755_v35 = vrot.slane %v1688_v5, 5 }
  0xf9   :  { %v1740_v60 = vsel %vm611_vm3, %v1739_v46, %v1738_v7  ;;  %v1757_v36 = vrot.slane %v1690_v33, 4  ;;  %v1759_v61 = vrot.slane %v1692_v0, 3  ;;  %v1761_v42 = vrot.slane %v1694_v16, 2 }
  0xfa   :  { %v1742_v47 = vsel %vm614_vm4, %v1741_v12, %v1740_v60  ;;  %v1752_v58 = vsel %vm608_vm2, %v1751_v14, %v1682_v48  ;;  %v1763_v27 = vrot.slane %v1696_v25, 1  ;;  %v1765_v62 = vrot.slane %v1699_v18, 7  ;;  %v2252_v60 = vld [vmem:[%s3443_s1 + $0xf0] sm:$0x3f] }
  0xfb   :  { %v1744_v57 = vsel %vm617_vm5, %v1743_v55, %v1742_v47  ;;  %v1754_v32 = vsel %vm611_vm3, %v1753_v6, %v1752_v58  ;;  %v1767_v39 = vrot.slane %v1701_v21, 6  ;;  %v1769_v3 = vrot.slane %v1703_v22, 5  ;;  %v2251_v6 = vld [vmem:[%s3443_s1 + $0xe8] sm:$0xff] }
  0xfc   :  { %v1746_v15 = vsel %vm620_vm6, %v1745_v11, %v1744_v57  ;;  %v1756_v43 = vsel %vm614_vm4, %v1755_v35, %v1754_v32  ;;  %v1766_v5 = vsel %vm608_vm2, %v1765_v62, %v1697_v4  ;;  %v1771_v33 = vrot.slane %v1705_v38, 4 }
  0xfd   :  { %v1748_v0 = vsel %vm623_vm7, %v1747_v59, %v1746_v15  ;;  %v1758_v8 = vsel %vm617_vm5, %v1757_v36, %v1756_v43  ;;  %v1768_v48 = vsel %vm611_vm3, %v1767_v39, %v1766_v5  ;;  %v1773_v16 = vrot.slane %v1707_v41, 3  ;;  %v2250_v36 = vld [vmem:[%s3443_s1 + $0xe0] sm:$0xff] }
  0xfe   :  { %v1750_v24 = vsel %vm626_vm8, %v1749_v44, %v1748_v0  ;;  %v1760_v25 = vsel %vm620_vm6, %v1759_v61, %v1758_v8  ;;  %v1770_v13 = vsel %vm614_vm4, %v1769_v3, %v1768_v48  ;;  %v1775_v12 = vrot.slane %v1700_v20, 7 }
  0xff   :  { %v1762_v18 = vsel %vm623_vm7, %v1761_v42, %v1760_v25  ;;  %v1772_v11 = vsel %vm617_vm5, %v1771_v33, %v1770_v13  ;;  %v1777_v4 = vrot.slane %v1702_v9, 6  ;;  %v1779_v21 = vrot.slane %v1704_v45, 5 }
 0x100   :  { %v1764_v44 = vsel %vm626_vm8, %v1763_v27, %v1762_v18  ;;  %v1774_v22 = vsel %vm620_vm6, %v1773_v16, %v1772_v11  ;;  %v1776_v20 = vsel %vm608_vm2, %v1775_v12, %v1698_v49  ;;  %v1781_v38 = vrot.slane %v1706_v28, 4 }
 0x101   :  { %v1778_v42 = vsel %vm611_vm3, %v1777_v4, %v1776_v20  ;;  %v1783_v41 = vrot.slane %v1708_v53, 3  ;;  %v1789_v9 = vadd.f32 %v1764_v44, %v1750_v24  ;;  %v1790_v45 = vsel %vm667_vm9, %v1774_v22, 0.0  ;;  %v2253_v53 = vld [vmem:[%s3443_s1 + $0xf8] sm:$0x3f] }
 0x102   :  { %v1780_v46 = vsel %vm614_vm4, %v1779_v21, %v1778_v42  ;;  %v1816_v55 = vrot.slane %v2250_v36, 1  ;;  %v1817_v59 = vrot.slane %v2251_v6, 1  ;;  %v1818_v7 = vrot.slane %v2250_v36, 2 }
 0x103   :  { %v1782_v14 = vsel %vm617_vm5, %v1781_v38, %v1780_v46  ;;  %v1791_v35 = vadd.f32 %v1790_v45, %v1789_v9  ;;  %v1819_v49 = vrot.slane %v2251_v6, 2  ;;  %v1820_v28 = vrot.slane %v2250_v36, 3  ;;  %v3565_v45 = vld [vmem:[#allocation8_spill] sm:$0xff] }
 0x104   :  { %v1784_v61 = vsel %vm620_vm6, %v1783_v41, %v1782_v14  ;;  %v1821_v47 = vrot.slane %v2251_v6, 3  ;;  %v1822_v58 = vrot.slane %v2250_v36, 4  ;;  %v1823_v27 = vrot.slane %v2251_v6, 4 }
 0x105   :  { %v1792_v62 = vsel %vm667_vm9, %v1784_v61, 0.0  ;;  %v1824_v57 = vrot.slane %v2250_v36, 5  ;;  %v1825_v32 = vrot.slane %v2251_v6, 5  ;;  %v1826_v39 = vrot.slane %v2250_v36, 6  ;;  %v3568_v61 = vld [vmem:[#allocation14_spill] sm:$0xff] }
 0x106   :  { %v1793_v3 = vadd.f32 %v1792_v62, %v1791_v35  ;;  %v1827_v15 = vrot.slane %v2251_v6, 6  ;;  %v1828_v43 = vrot.slane %v2250_v36, 7  ;;  %v1829_v5 = vrot.slane %v2251_v6, 7  ;;  %v3570_v62 = vld [vmem:[#allocation16_spill] sm:$0xff] }
 0x107   :  { %v1830_v33 = vrot.slane %v2252_v60, 1  ;;  %v1831_v0 = vrot.slane %v2253_v53, 1  ;;  %v1832_v8 = vrot.slane %v2252_v60, 2  ;;  %v1833_v48 = vrot.slane %v2253_v53, 2 }
 0x108   :  { %1794 = vadd.xlane.f32.xlu1 %v1793_v3  ;;  %v1834_v16 = vrot.slane %v2252_v60, 3  ;;  %v1835_v24 = vrot.slane %v2253_v53, 3  ;;  %v1836_v25 = vrot.slane %v2252_v60, 4  ;;  %v1837_v13 = vrot.slane %v2253_v53, 4  ;;  %v3571_v3 = vld [vmem:[#allocation19_spill] sm:$0xff] }
 0x109   :  { %v1838_v12 = vrot.slane %v2252_v60, 5  ;;  %v1839_v18 = vrot.slane %v2253_v53, 5  ;;  %v1868_v11 = vmul.f32 %v2250_v36, %v3523_v63  ;;  %v1869_v4 = vmul.f32 %v2251_v6, %v2635_v1 }
 0x10a   :  { %v1870_v21 = vmul.f32 %v1816_v55, %v2638_v2  ;;  %v1871_v44 = vmul.f32 %v1817_v59, %v2641_v19  ;;  %v1872_v22 = vmul.f32 %v1818_v7, %v2644_v10  ;;  %v1873_v20 = vmul.f32 %v1819_v49, %v2647_v26  ;;  %v3566_v7 = vld [vmem:[#allocation11_spill] sm:$0xff]  ;;  %v3567_v49 = vld [vmem:[#allocation13_spill] sm:$0xff] }
 0x10b   :  { %v1874_v38 = vmul.f32 %v1820_v28, %v2650_v23  ;;  %v1875_v42 = vmul.f32 %v1821_v47, %v2653_v30  ;;  %v1876_v41 = vmul.f32 %v1822_v58, %v2656_v29  ;;  %v1877_v9 = vmul.f32 %v1823_v27, %v2659_v31  ;;  %v3569_v58 = vld [vmem:[#allocation15_spill] sm:$0xff] }
 0x10c   :  { %v1878_v36 = vmul.f32 %v1824_v57, %v2662_v17  ;;  %v1879_v6 = vmul.f32 %v1825_v32, %v3548_v51  ;;  %v1880_v46 = vmul.f32 %v1826_v39, %v3565_v45  ;;  %v1881_v55 = vmul.f32 %v1827_v15, %v3556_v56  ;;  %v3572_v56 = vld [vmem:[#allocation21_spill] sm:$0xff] }
 0x10d   :  { %v1882_v59 = vmul.f32 %v1828_v43, %v3541_v37  ;;  %v1883_v14 = vmul.f32 %v1829_v5, %v3566_v7  ;;  %v1884_v35 = vmul.f32 %v2252_v60, %v3557_v54  ;;  %v1885_v28 = vmul.f32 %v2253_v53, %v3567_v49  ;;  %v3573_v37 = vld [vmem:[#allocation22_spill] sm:$0xff] }
 0x10e   :  { %v1886_v47 = vmul.f32 %v1830_v33, %v3568_v61  ;;  %v1887_v27 = vmul.f32 %v1831_v0, %v3569_v58  ;;  %v1888_v57 = vmul.f32 %v1832_v8, %v3570_v62  ;;  %v1889_v32 = vmul.f32 %v1833_v48, %v3552_v40 }
 0x10f   :  { %v1890_v39 = vmul.f32 %v1834_v16, %v3571_v3  ;;  %v1891_v15 = vmul.f32 %v1835_v24, %v3563_v52  ;;  %v1892_v43 = vmul.f32 %v1836_v25, %v3572_v56  ;;  %v1893_v5 = vmul.f32 %v1837_v13, %v3573_v37 }
 0x110   :  { %v1894_v60 = vmul.f32 %v1838_v12, %v3564_v34  ;;  %v1895_v53 = vmul.f32 %v1839_v18, %v3555_v50  ;;  %v1924_v49 = vrot.slane %v1870_v21, 7  ;;  %v1926_v33 = vrot.slane %v1872_v22, 6 }
 0x111   :  { %v1928_v61 = vrot.slane %v1874_v38, 5  ;;  %v1930_v0 = vrot.slane %v1876_v41, 4  ;;  %v1932_v58 = vrot.slane %v1878_v36, 3  ;;  %v1934_v8 = vrot.slane %v1880_v46, 2 }
 0x112   :  { %v1925_v48 = vsel %vm608_vm2, %v1924_v49, %v1868_v11  ;;  %v1936_v40 = vrot.slane %v1882_v59, 1  ;;  %v1938_v16 = vrot.slane %v1871_v44, 7  ;;  %v1940_v3 = vrot.slane %v1873_v20, 6 }
 0x113   :  { %v1927_v24 = vsel %vm611_vm3, %v1926_v33, %v1925_v48  ;;  %v1942_v25 = vrot.slane %v1875_v42, 5  ;;  %v1944_v56 = vrot.slane %v1877_v9, 4  ;;  %v1946_v13 = vrot.slane %v1879_v6, 3 }
 0x114   :  { %v1929_v12 = vsel %vm614_vm4, %v1928_v61, %v1927_v24  ;;  %v1939_v18 = vsel %vm608_vm2, %v1938_v16, %v1869_v4  ;;  %v1948_v21 = vrot.slane %v1881_v55, 2  ;;  %v1950_v22 = vrot.slane %v1883_v14, 1 }
 0x115   :  { %v1931_v38 = vsel %vm617_vm5, %v1930_v0, %v1929_v12  ;;  %v1941_v41 = vsel %vm611_vm3, %v1940_v3, %v1939_v18  ;;  %v1952_v36 = vrot.slane %v1886_v47, 7  ;;  %v1954_v11 = vrot.slane %v1888_v57, 6 }
 0x116   :  { %v1933_v44 = vsel %vm620_vm6, %v1932_v58, %v1931_v38  ;;  %v1943_v20 = vsel %vm614_vm4, %v1942_v25, %v1941_v41  ;;  %v1956_v46 = vrot.slane %v1890_v39, 5  ;;  %v1958_v42 = vrot.slane %v1892_v43, 4 }
 0x117   :  { %v1935_v9 = vsel %vm623_vm7, %v1934_v8, %v1933_v44  ;;  %v1945_v6 = vsel %vm617_vm5, %v1944_v56, %v1943_v20  ;;  %v1953_v4 = vsel %vm608_vm2, %v1952_v36, %v1884_v35  ;;  %v1960_v55 = vrot.slane %v1894_v60, 3  ;;  %v2254_v56 = vld [vmem:[%s3443_s1 + $0x100] sm:$0xff]  ;;  %v2255_v35 = vld [vmem:[%s3443_s1 + $0x108] sm:$0xff] }
 0x118   :  { %v1937_v59 = vsel %vm626_vm8, %v1936_v40, %v1935_v9  ;;  %v1947_v14 = vsel %vm620_vm6, %v1946_v13, %v1945_v6  ;;  %v1955_v49 = vsel %vm611_vm3, %v1954_v11, %v1953_v4  ;;  %v1962_v61 = vrot.slane %v1887_v27, 7 }
 0x119   :  { %v1949_v47 = vsel %vm623_vm7, %v1948_v21, %v1947_v14  ;;  %v1957_v58 = vsel %vm614_vm4, %v1956_v46, %v1955_v49  ;;  %v1964_v57 = vrot.slane %v1889_v32, 6  ;;  %v1966_v3 = vrot.slane %v1891_v15, 5 }
 0x11a   :  { %v1951_v40 = vsel %vm626_vm8, %v1950_v22, %v1949_v47  ;;  %v1959_v39 = vsel %vm617_vm5, %v1958_v42, %v1957_v58  ;;  %v1963_v27 = vsel %vm608_vm2, %v1962_v61, %v1885_v28  ;;  %v1968_v43 = vrot.slane %v1893_v5, 4  ;;  %v2256_v28 = vld [vmem:[%s3443_s1 + $0x110] sm:$0x3f] }
 0x11b   :  { %v1961_v60 = vsel %vm620_vm6, %v1960_v55, %v1959_v39  ;;  %v1965_v32 = vsel %vm611_vm3, %v1964_v57, %v1963_v27  ;;  %v1970_v15 = vrot.slane %v1895_v53, 3  ;;  %v1976_v33 = vadd.f32 %v1951_v40, %v1937_v59  ;;  %v2257_v53 = vld [vmem:[%s3443_s1 + $0x118] sm:$0x3f] }
 0x11c   :  { %v1967_v0 = vsel %vm614_vm4, %v1966_v3, %v1965_v32  ;;  %v1977_v8 = vsel %vm667_vm9, %v1961_v60, 0.0  ;;  %v2003_v48 = vrot.slane %v2254_v56, 1  ;;  %v2004_v16 = vrot.slane %v2255_v35, 1  ;;  %v3310_v60 = vpop.xlane.xlu0 %32 }
 0x11d   :  { %v1969_v24 = vsel %vm617_vm5, %v1968_v43, %v1967_v0  ;;  %v1978_v25 = vadd.f32 %v1977_v8, %v1976_v33  ;;  %v2005_v5 = vrot.slane %v2254_v56, 2  ;;  %v2006_v13 = vrot.slane %v2255_v35, 2  ;;  %v3316_v8 = vpop.xlane.xlu1 %66 }
 0x11e   :  { %v1971_v12 = vsel %vm620_vm6, %v1970_v15, %v1969_v24  ;;  %v2007_v18 = vrot.slane %v2254_v56, 3  ;;  %v2008_v21 = vrot.slane %v2255_v35, 3  ;;  %v2009_v22 = vrot.slane %v2254_v56, 4 }
 0x11f   :  { %v1979_v38 = vsel %vm667_vm9, %v1971_v12, 0.0  ;;  %v2010_v41 = vrot.slane %v2255_v35, 4  ;;  %v2011_v36 = vrot.slane %v2254_v56, 5  ;;  %v2012_v11 = vrot.slane %v2255_v35, 5 }
 0x120   :  { %v1980_v44 = vadd.f32 %v1979_v38, %v1978_v25  ;;  %v2013_v20 = vrot.slane %v2254_v56, 6  ;;  %v2014_v46 = vrot.slane %v2255_v35, 6  ;;  %v2015_v42 = vrot.slane %v2254_v56, 7  ;;  %v3578_v25 = vld [vmem:[#allocation15_spill] sm:$0xff] }
 0x121   :  { %v2016_v9 = vrot.slane %v2255_v35, 7  ;;  %v2017_v6 = vrot.slane %v2256_v28, 1  ;;  %v2018_v4 = vrot.slane %v2257_v53, 1  ;;  %v2019_v55 = vrot.slane %v2256_v28, 2 }
 0x122   :  { %1981 = vadd.xlane.f32.xlu0 %v1980_v44  ;;  %v2020_v59 = vrot.slane %v2257_v53, 2  ;;  %v2021_v14 = vrot.slane %v2256_v28, 3  ;;  %v2022_v49 = vrot.slane %v2257_v53, 3  ;;  %v2023_v61 = vrot.slane %v2256_v28, 4 }
 0x123   :  { %v2024_v47 = vrot.slane %v2257_v53, 4  ;;  %v2025_v58 = vrot.slane %v2256_v28, 5  ;;  %v2026_v57 = vrot.slane %v2257_v53, 5  ;;  %v2055_v3 = vmul.f32 %v2254_v56, %v3523_v63  ;;  %v3574_v63 = vld [vmem:[#allocation9_spill] sm:$0xff] }
 0x124   :  { %v2056_v40 = vmul.f32 %v2255_v35, %v2635_v1  ;;  %v2057_v39 = vmul.f32 %v2003_v48, %v2638_v2  ;;  %v2058_v27 = vmul.f32 %v2004_v16, %v2641_v19  ;;  %v2059_v43 = vmul.f32 %v2005_v5, %v2644_v10  ;;  %v3575_v35 = vld [vmem:[#allocation10_spill] sm:$0xff]  ;;  %v3576_v48 = vld [vmem:[#allocation13_spill] sm:$0xff] }
 0x125   :  { %v2060_v32 = vmul.f32 %v2006_v13, %v2647_v26  ;;  %v2061_v15 = vmul.f32 %v2007_v18, %v2650_v23  ;;  %v2062_v33 = vmul.f32 %v2008_v21, %v2653_v30  ;;  %v2063_v0 = vmul.f32 %v2009_v22, %v2656_v29  ;;  %v3577_v16 = vld [vmem:[#allocation14_spill] sm:$0xff]  ;;  %v3580_v13 = vld [vmem:[#allocation19_spill] sm:$0xff]  ;;  %v3581_v18 = vld [vmem:[#allocation21_spill] sm:$0xff]  ;;  %v3341_v22 = vpop.xlane.xlu0 %49 }
 0x126   :  { %v2064_v1 = vmul.f32 %v2010_v41, %v2659_v31  ;;  %v2065_v2 = vmul.f32 %v2011_v36, %v2662_v17  ;;  %v2066_v19 = vmul.f32 %v2012_v11, %v3548_v51  ;;  %v2067_v10 = vmul.f32 %v2013_v20, %v3565_v45  ;;  %v3579_v5 = vld [vmem:[#allocation18_spill] sm:$0xff]  ;;  %v84_v11 = vpop.xlane.xlu1 %83 }
 0x127   :  { %v2068_v56 = vmul.f32 %v2014_v46, %v3574_v63  ;;  %v2069_v26 = vmul.f32 %v2015_v42, %v3575_v35  ;;  %v2070_v23 = vmul.f32 %v2016_v9, %v3566_v7  ;;  %v2071_v30 = vmul.f32 %v2256_v28, %v3557_v54 }
 0x128   :  { %v2072_v29 = vmul.f32 %v2257_v53, %v3576_v48  ;;  %v2073_v24 = vmul.f32 %v2017_v6, %v3577_v16  ;;  %v2074_v31 = vmul.f32 %v2018_v4, %v3578_v25  ;;  %v2075_v17 = vmul.f32 %v2019_v55, %v3570_v62 }
 0x129   :  { %v2076_v51 = vmul.f32 %v2020_v59, %v3579_v5  ;;  %v2077_v45 = vmul.f32 %v2021_v14, %v3580_v13  ;;  %v2078_v12 = vmul.f32 %v2022_v49, %v3563_v52  ;;  %v2079_v21 = vmul.f32 %v2023_v61, %v3581_v18  ;;  %v101_v59 = vpop.xlane.xlu0 %100 }
 0x12a   :  { %v3335_v7 = vmul.f32 %v2024_v47, %v3573_v37  ;;  %v2081_v54 = vmul.f32 %v2025_v58, %v3564_v34  ;;  %v3339_v28 = vmul.f32 %v2026_v57, %v3555_v50  ;;  %v2111_v53 = vrot.slane %v2057_v39, 7 }
 0x12b   :  { %v2113_v62 = vrot.slane %v2059_v43, 6  ;;  %v2115_v38 = vrot.slane %v2061_v15, 5  ;;  %v2117_v41 = vrot.slane %v2063_v0, 4  ;;  %v2119_v36 = vrot.slane %v2065_v2, 3  ;;  %v118_v15 = vpop.xlane.xlu1 %117 }
 0x12c   :  { %v2112_v52 = vsel %vm608_vm2, %v2111_v53, %v2055_v3  ;;  %v2121_v44 = vrot.slane %v2067_v10, 2  ;;  %v2123_v20 = vrot.slane %v2069_v26, 1  ;;  %v2125_v46 = vrot.slane %v2058_v27, 7 }
 0x12d   :  { %v2114_v37 = vsel %vm611_vm3, %v2113_v62, %v2112_v52  ;;  %v2127_v42 = vrot.slane %v2060_v32, 6  ;;  %v2129_v34 = vrot.slane %v2062_v33, 5  ;;  %v2131_v9 = vrot.slane %v2064_v1, 4  ;;  %v135_v48 = vpop.xlane.xlu0 %134 }
 0x12e   :  { %v2116_v50 = vsel %vm614_vm4, %v2115_v38, %v2114_v37  ;;  %v2126_v6 = vsel %vm608_vm2, %v2125_v46, %v2056_v40  ;;  %v2133_v4 = vrot.slane %v2066_v19, 3  ;;  %v2135_v55 = vrot.slane %v2068_v56, 2 }
 0x12f   :  { %v2118_v14 = vsel %vm617_vm5, %v2117_v41, %v2116_v50  ;;  %v2128_v49 = vsel %vm611_vm3, %v2127_v42, %v2126_v6  ;;  %v2137_v61 = vrot.slane %v2070_v23, 1  ;;  %v2139_v47 = vrot.slane %v2073_v24, 7 }
 0x130   :  { %v2120_v58 = vsel %vm620_vm6, %v2119_v36, %v2118_v14  ;;  %v2130_v57 = vsel %vm614_vm4, %v2129_v34, %v2128_v49  ;;  %v2141_v3 = vrot.slane %v2075_v17, 6  ;;  %v2143_v39 = vrot.slane %v2077_v45, 5 }
 0x131   :  { %v2122_v27 = vsel %vm623_vm7, %v2121_v44, %v2120_v58  ;;  %v2132_v43 = vsel %vm617_vm5, %v2131_v9, %v2130_v57  ;;  %v2140_v40 = vsel %vm608_vm2, %v2139_v47, %v2071_v30  ;;  %v2145_v32 = vrot.slane %v2079_v21, 4  ;;  %v169_v37 = vpop.xlane.xlu0 %168 }
 0x132   :  { %v2124_v33 = vsel %vm626_vm8, %v2123_v20, %v2122_v27  ;;  %v2134_v0 = vsel %vm620_vm6, %v2133_v4, %v2132_v43  ;;  %v2142_v1 = vsel %vm611_vm3, %v2141_v3, %v2140_v40  ;;  %v2147_v2 = vrot.slane %v2081_v54, 3 }
 0x133   :  { %v2136_v19 = vsel %vm623_vm7, %v2135_v55, %v2134_v0  ;;  %v2144_v10 = vsel %vm614_vm4, %v2143_v39, %v2142_v1  ;;  %v2149_v63 = vrot.slane %v2074_v31, 7  ;;  %v2151_v56 = vrot.slane %v2076_v51, 6 }
 0x134   :  { %v2138_v35 = vsel %vm626_vm8, %v2137_v61, %v2136_v19  ;;  %v2146_v26 = vsel %vm617_vm5, %v2145_v32, %v2144_v10  ;;  %v2153_v23 = vrot.slane %v2078_v12, 5  ;;  %v2155_v30 = vrot.slane %v3335_v7, 4  ;;  %v152_v7 = vpop.xlane.xlu1 %151 }
 0x135   :  { %v2148_v16 = vsel %vm620_vm6, %v2147_v2, %v2146_v26  ;;  %v2150_v24 = vsel %vm608_vm2, %v2149_v63, %v2072_v29  ;;  %v2157_v25 = vrot.slane %v3339_v28, 3  ;;  %v2163_v17 = vadd.f32 %v2138_v35, %v2124_v33  ;;  %v860_v33 = vpop.xlane.xlu0 %859 }
 0x136   :  { %v2152_v5 = vsel %vm611_vm3, %v2151_v56, %v2150_v24  ;;  %v2164_v31 = vsel %vm667_vm9, %v2148_v16, 0.0  ;;  %v34_v51 = vrot.slane %v3310_v60, 4  ;;  %v68_v13 = vrot.slane %v3316_v8, 4 }
 0x137   :  { %v2154_v45 = vsel %vm614_vm4, %v2153_v23, %v2152_v5  ;;  %v2165_v12 = vadd.f32 %v2164_v31, %v2163_v17  ;;  %v51_v18 = vrot.slane %v3341_v22, 4  ;;  %v85_v21 = vrot.slane %v84_v11, 4 }
 0x138   :  { %v2156_v29 = vsel %vm617_vm5, %v2155_v30, %v2154_v45  ;;  %v35_v54 = vadd.f32 %v34_v51, %v3310_v60  ;;  %v69_v28 = vadd.f32 %v68_v13, %v3316_v8  ;;  %v102_v53 = vrot.slane %v101_v59, 4  ;;  %v673_v60 = vpop.xlane.xlu1 %672 }
 0x139   :  { %v2158_v62 = vsel %vm620_vm6, %v2157_v25, %v2156_v29  ;;  %v52_v38 = vadd.f32 %v51_v18, %v3341_v22  ;;  %v86_v41 = vadd.f32 %v85_v21, %v84_v11  ;;  %v119_v36 = vrot.slane %v118_v15, 4 }
 0x13a   :  { %v2166_v52 = vsel %vm667_vm9, %v2158_v62, 0.0  ;;  %v36_v44 = vrot.slane %v35_v54, 2  ;;  %v70_v20 = vrot.slane %v69_v28, 2  ;;  %v103_v46 = vadd.f32 %v102_v53, %v101_v59 }
 0x13b   :  { %v2167_v42 = vadd.f32 %v2166_v52, %v2165_v12  ;;  %v53_v34 = vrot.slane %v52_v38, 2  ;;  %v87_v9 = vrot.slane %v86_v41, 2  ;;  %v120_v50 = vadd.f32 %v119_v36, %v118_v15 }
 0x13c   :  { %v104_v6 = vrot.slane %v103_v46, 2  ;;  %v136_v8 = vrot.slane %v135_v48, 4  ;;  %v153_v4 = vrot.slane %v152_v7, 4  ;;  %v37_v55 = vadd.f32 %v36_v44, %v35_v54  ;;  %v1047_v10 = vpop.xlane.xlu1 %1046 }
 0x13d   :  { %2168 = vadd.xlane.f32.xlu1 %v2167_v42  ;;  %v121_v14 = vrot.slane %v120_v50, 2  ;;  %v54_v22 = vadd.f32 %v53_v34, %v52_v38  ;;  %v170_v11 = vrot.slane %v169_v37, 4  ;;  %v71_v49 = vadd.f32 %v70_v20, %v69_v28 }
 0x13e   :  { %v137_v61 = vadd.f32 %v136_v8, %v135_v48  ;;  %v154_v47 = vadd.f32 %v153_v4, %v152_v7  ;;  %v38_v58 = vrot.slane %v37_v55, 1  ;;  %v88_v57 = vadd.f32 %v87_v9, %v86_v41 }
 0x13f   :  { %v55_v59 = vrot.slane %v54_v22, 1  ;;  %v171_v3 = vadd.f32 %v170_v11, %v169_v37  ;;  %v72_v39 = vrot.slane %v71_v49, 1  ;;  %v105_v27 = vadd.f32 %v104_v6, %v103_v46 }
 0x140   :  { %v138_v43 = vrot.slane %v137_v61, 2  ;;  %v155_v40 = vrot.slane %v154_v47, 2  ;;  %v39_v32 = vadd.f32 %v38_v58, %v37_v55  ;;  %v89_v15 = vrot.slane %v88_v57, 1 }
 0x141   :  { %v56_v0 = vadd.f32 %v55_v59, %v54_v22  ;;  %v172_v1 = vrot.slane %v171_v3, 2  ;;  %v73_v2 = vadd.f32 %v72_v39, %v71_v49  ;;  %v106_v19 = vrot.slane %v105_v27, 1 }
 0x142   :  { %2258 = vpush %v39_v32  ;;  %v90_v63 = vadd.f32 %v89_v15, %v88_v57  ;;  %v122_v56 = vadd.f32 %v121_v14, %v120_v50  ;;  %v139_v35 = vadd.f32 %v138_v43, %v137_v61  ;;  %v674_v26 = vrot.slane %v673_v60, 4 }
 0x143   :  { %2260 = vpush %v56_v0  ;;  %v107_v23 = vadd.f32 %v106_v19, %v105_v27  ;;  %v861_v30 = vrot.slane %v860_v33, 4  ;;  %v156_v48 = vadd.f32 %v155_v40, %v154_v47  ;;  %v173_v16 = vadd.f32 %v172_v1, %v171_v3 }
 0x144   :  { %2262 = vpush %v73_v2  ;;  %v123_v24 = vrot.slane %v122_v56, 1  ;;  %v140_v25 = vrot.slane %v139_v35, 1  ;;  %v675_v17 = vadd.f32 %v674_v26, %v673_v60  ;;  %v1048_v5 = vrot.slane %v1047_v10, 4 }
 0x145   :  { %2264 = vpush %v90_v63  ;;  %v862_v31 = vadd.f32 %v861_v30, %v860_v33  ;;  %v157_v51 = vrot.slane %v156_v48, 1  ;;  %v174_v13 = vrot.slane %v173_v16, 1  ;;  %v21_v49 = vlaneseq }
 0x146   :  { %2266 = vpush %v107_v23  ;;  %v124_v45 = vadd.f32 %v123_v24, %v122_v56  ;;  %v141_v12 = vadd.f32 %v140_v25, %v139_v35  ;;  %v676_v18 = vrot.slane %v675_v17, 2  ;;  %v1049_v21 = vadd.f32 %v1048_v5, %v1047_v10  ;;  %v1234_v7 = vpop.xlane.xlu0 %1233 }
 0x147   :  { %v863_v29 = vrot.slane %v862_v31, 2  ;;  %v158_v54 = vadd.f32 %v157_v51, %v156_v48  ;;  %v175_v28 = vadd.f32 %v174_v13, %v173_v16  ;;  %v1235_v53 = vrot.slane %v1234_v7, 4 }
 0x148   :  { %2268 = vpush %v124_v45  ;;  %v1050_v62 = vrot.slane %v1049_v21, 2  ;;  %v677_v38 = vadd.f32 %v676_v18, %v675_v17  ;;  %v3377_v47 = vand.u32 127, %v21_v49 }
 0x149   :  { %2270 = vpush %v141_v12  ;;  %v1236_v41 = vadd.f32 %v1235_v53, %v1234_v7  ;;  %v864_v36 = vadd.f32 %v863_v29, %v862_v31 }
 0x14a   :  { %2272 = vpush %v158_v54  ;;  %v678_v52 = vrot.slane %v677_v38, 1  ;;  %v1051_v44 = vadd.f32 %v1050_v62, %v1049_v21  ;;  %vm41_vm10 = vcmp.eq.s32.totalorder %v3377_v47, 0  ;;  %vm58_vm11 = vcmp.eq.s32.totalorder %v3377_v47, 1 }
 0x14b   :  { %2274 = vpush %v175_v28  ;;  %v1237_v20 = vrot.slane %v1236_v41, 2  ;;  %v865_v46 = vrot.slane %v864_v36, 1  ;;  %vm75_vm12 = vcmp.eq.s32.totalorder %v3377_v47, 2  ;;  %vm92_vm13 = vcmp.eq.s32.totalorder %v3377_v47, 3 }
 0x14c   :  { %v679_v37 = vadd.f32 %v678_v52, %v677_v38  ;;  %v1052_v42 = vrot.slane %v1051_v44, 1  ;;  %vm109_vm14 = vcmp.eq.s32.totalorder %v3377_v47, 4  ;;  %vm126_vm15 = vcmp.eq.s32.totalorder %v3377_v47, 5 }
 0x14d   :  { %v866_v34 = vadd.f32 %v865_v46, %v864_v36  ;;  %v1238_v9 = vadd.f32 %v1237_v20, %v1236_v41  ;;  %vm143_vm0 = vcmp.eq.s32.totalorder %v3377_v47, 6  ;;  %vm160_vm2 = vcmp.eq.s32.totalorder %v3377_v47, 7 }
 0x14e   :  { %2276 = vpush %v679_v37  ;;  %v1053_v50 = vadd.f32 %v1052_v42, %v1051_v44  ;;  %vm177_vm3 = vcmp.eq.s32.totalorder %v3377_v47, 8  ;;  %vm2190_vm4 = vcmp.lt.s32.totalorder %v3377_v47, 9 }
 0x14f   :  { %2278 = vpush %v866_v34  ;;  %v1239_v60 = vrot.slane %v1238_v9, 1 }
 0x150   :  { %2280 = vpush %v1053_v50 }
 0x151   :  { %v1240_v6 = vadd.f32 %v1239_v60, %v1238_v9 }
 0x153   :  { %2282 = vpush %v1240_v6 }
 0x161   :  { %v1421_v8 = vpop.xlane.xlu1 %1420 }
 0x162   :  { %v1422_v4 = vrot.slane %v1421_v8, 4 }
 0x164   :  { %v1423_v55 = vadd.f32 %v1422_v4, %v1421_v8 }
 0x166   :  { %v1424_v14 = vrot.slane %v1423_v55, 2 }
 0x168   :  { %v1425_v22 = vadd.f32 %v1424_v14, %v1423_v55 }
 0x16a   :  { %v1426_v11 = vrot.slane %v1425_v22, 1 }
 0x16c   :  { %v1427_v61 = vadd.f32 %v1426_v11, %v1425_v22 }
 0x16e   :  { %2284 = vpush %v1427_v61 }
 0x173   :  { %s2259_s1 = spop %2258 }
 0x174   :  { %v42_v58 = vstv %s2259_s1  ;;  %s2261_s30 = spop %2260 }
 0x175   :  { %v43_v57 = vsel %vm41_vm10, %v42_v58, 0.0  ;;  %v59_v59 = vstv %s2261_s30  ;;  %s2263_s6 = spop %2262 }
 0x176   :  { %v60_v3 = vsel %vm58_vm11, %v59_v59, 0.0  ;;  %v76_v39 = vstv %s2263_s6  ;;  %s2265_s3 = spop %2264 }
 0x177   :  { %v61_v27 = vadd.f32 %v60_v3, %v43_v57  ;;  %v77_v43 = vsel %vm75_vm12, %v76_v39, 0.0  ;;  %v93_v40 = vstv %s2265_s3  ;;  %s2267_s7 = spop %2266 }
 0x178   :  { %v94_v32 = vsel %vm92_vm13, %v93_v40, 0.0  ;;  %v110_v15 = vstv %s2267_s7 }
 0x179   :  { %v78_v33 = vadd.f32 %v77_v43, %v61_v27  ;;  %s2269_s8 = spop %2268  ;;  %v111_v0 = vsel %vm109_vm14, %v110_v15, 0.0 }
 0x17a   :  { %v127_v1 = vstv %s2269_s8  ;;  %s2271_s9 = spop %2270 }
 0x17b   :  { %v1608_v2 = vpop.xlane.xlu0 %1607  ;;  %v95_v19 = vadd.f32 %v94_v32, %v78_v33  ;;  %v144_v10 = vstv %s2271_s9  ;;  %s2273_s10 = spop %2272  ;;  %v128_v56 = vsel %vm126_vm15, %v127_v1, 0.0 }
 0x17c   :  { %v1609_v63 = vrot.slane %v1608_v2, 4  ;;  %s2275_s11 = spop %2274  ;;  %v161_v26 = vstv %s2273_s10  ;;  %v145_v30 = vsel %vm143_vm0, %v144_v10, 0.0 }
 0x17d   :  { %v112_v35 = vadd.f32 %v111_v0, %v95_v19  ;;  %v178_v16 = vstv %s2275_s11  ;;  %v162_v25 = vsel %vm160_vm2, %v161_v26, 0.0  ;;  %v2188_v26 = vld [vmem:[%s3446_s4] sm:$0x1]  ;;  %s2210_s4 = sshll.u32 %s2323_s22, 4  ;;  %s2211_s4 = int_to_ptr.vmem [resolvable:$true] %s2210_s4 }
 0x17e   :  { %v1610_v23 = vadd.f32 %v1609_v63, %v1608_v2  ;;  %v179_v45 = vsel %vm177_vm3, %v178_v16, 0.0  ;;  %s2299_s23 = scalar_lea.vmem %s2211_s4, 16  ;;  %s2303_s24 = scalar_lea.vmem %s2211_s4, 32 }
 0x17f   :  { %v129_v48 = vadd.f32 %v128_v56, %v112_v35  ;;  %s2277_s12 = spop %2276  ;;  %p2300_p0 = scmp.ne.s32.totalorder %s2211_s4, %s2299_s23 }
 0x180   :  { %v1611_v24 = vrot.slane %v1610_v23, 2  ;;  %v682_v17 = vstv %s2277_s12  ;;  %s2279_s13 = spop %2278  ;;  %p2304_p1 = scmp.lt.s32.totalorder %s2211_s4, %s2211_s4 }
 0x181   :  { %v146_v5 = vadd.f32 %v145_v30, %v129_v48  ;;  %v683_v31 = vsel %vm41_vm10, %v682_v17, 0.0  ;;  %v869_v51 = vstv %s2279_s13  ;;  %s2281_s14 = spop %2280  ;;  %p2305_p2 = scmp.lt.s32.totalorder %s2303_s24, %s2299_s23 }
 0x182   :  { %v1612_v13 = vadd.f32 %v1611_v24, %v1610_v23  ;;  %v870_v12 = vsel %vm58_vm11, %v869_v51, 0.0  ;;  %v1056_v18 = vstv %s2281_s14 }
 0x183   :  { %v163_v21 = vadd.f32 %v162_v25, %v146_v5  ;;  %v871_v7 = vadd.f32 %v870_v12, %v683_v31  ;;  %v1057_v29 = vsel %vm75_vm12, %v1056_v18, 0.0  ;;  %p2306_p3 = por %p2305_p2, %p2304_p1 }
 0x184   :  { %v1613_v54 = vrot.slane %v1612_v13, 1  ;;  %s2283_s15 = spop %2282 }
 0x185   :  { %v180_v28 = vadd.f32 %v179_v45, %v163_v21  ;;  %v1058_v53 = vadd.f32 %v1057_v29, %v871_v7  ;;  %v1243_v62 = vstv %s2283_s15  ;;  %p2307_p4 = pnand %p2306_p3, %p2300_p0 }
 0x186   :  { %v1614_v38 = vadd.f32 %v1613_v54, %v1612_v13  ;;  %v1244_v41 = vsel %vm92_vm13, %v1243_v62, 0.0 }
 0x187   :  { %181 = vst [vmem:[#allocation2] sm:$0x1] %v180_v28  ;;  %v1245_v36 = vadd.f32 %v1244_v41, %v1058_v53 }
 0x188   :  { %2286 = vpush %v1614_v38 }
 0x18e   :  { %v2181_v56 = vld [vmem:[#allocation2] sm:$0x1] }
 0x195   :  { %v1795_v52 = vpop.xlane.xlu1 %1794 }
 0x196   :  { %v1796_v44 = vrot.slane %v1795_v52, 4 }
 0x198   :  { %v1797_v20 = vadd.f32 %v1796_v44, %v1795_v52 }
 0x19a   :  { %v1798_v46 = vrot.slane %v1797_v20, 2 }
 0x19c   :  { %v1799_v37 = vadd.f32 %v1798_v46, %v1797_v20 }
 0x19e   :  { %v1800_v42 = vrot.slane %v1799_v37, 1 }
 0x19f   :  { %s2285_s0 = spop %2284 }
 0x1a0   :  { %v1801_v34 = vadd.f32 %v1800_v42, %v1799_v37  ;;  %v1430_v9 = vstv %s2285_s0 }
 0x1a1   :  { %v1431_v50 = vsel %vm109_vm14, %v1430_v9, 0.0 }
 0x1a2   :  { %2288 = vpush %v1801_v34  ;;  %v1432_v60 = vadd.f32 %v1431_v50, %v1245_v36 }
 0x1af   :  { %v1982_v6 = vpop.xlane.xlu0 %1981 }
 0x1b0   :  { %v1983_v8 = vrot.slane %v1982_v6, 4 }
 0x1b2   :  { %v1984_v4 = vadd.f32 %v1983_v8, %v1982_v6 }
 0x1b4   :  { %v1985_v55 = vrot.slane %v1984_v4, 2 }
 0x1b6   :  { %v1986_v14 = vadd.f32 %v1985_v55, %v1984_v4 }
 0x1b8   :  { %v1987_v22 = vrot.slane %v1986_v14, 1 }
 0x1b9   :  { %s2287_s16 = spop %2286 }
 0x1ba   :  { %v1988_v11 = vadd.f32 %v1987_v22, %v1986_v14  ;;  %v1617_v49 = vstv %s2287_s16 }
 0x1bb   :  { %v1618_v61 = vsel %vm126_vm15, %v1617_v49, 0.0 }
 0x1bc   :  { %2290 = vpush %v1988_v11  ;;  %v1619_v58 = vadd.f32 %v1618_v61, %v1432_v60 }
 0x1ca   :  { %v2169_v57 = vpop.xlane.xlu1 %2168 }
 0x1cb   :  { %v2170_v59 = vrot.slane %v2169_v57, 4 }
 0x1cd   :  { %v2171_v3 = vadd.f32 %v2170_v59, %v2169_v57 }
 0x1cf   :  { %v2172_v39 = vrot.slane %v2171_v3, 2 }
 0x1d1   :  { %v2173_v27 = vadd.f32 %v2172_v39, %v2171_v3 }
 0x1d3   :  { %v2174_v43 = vrot.slane %v2173_v27, 1  ;;  %s2289_s17 = spop %2288 }
 0x1d4   :  { %v1804_v32 = vstv %s2289_s17 }
 0x1d5   :  { %v2175_v40 = vadd.f32 %v2174_v43, %v2173_v27  ;;  %v1805_v15 = vsel %vm143_vm0, %v1804_v32, 0.0 }
 0x1d6   :  { %v1806_v33 = vadd.f32 %v1805_v15, %v1619_v58 }
 0x1d7   :  { %2292 = vpush %v2175_v40 }
 0x1ed   :  { %s2291_s18 = spop %2290 }
 0x1ee   :  { %v1991_v0 = vstv %s2291_s18 }
 0x1ef   :  { %v1992_v1 = vsel %vm160_vm2, %v1991_v0, 0.0 }
 0x1f0   :  { %v1993_v2 = vadd.f32 %v1992_v1, %v1806_v33 }
 0x208   :  { %s2293_s19 = spop %2292 }
 0x209   :  { %v2178_v19 = vstv %s2293_s19 }
 0x20a   :  { %v2179_v10 = vsel %vm177_vm3, %v2178_v19, 0.0 }
 0x20b   :  { %v2180_v63 = vadd.f32 %v2179_v10, %v1993_v2 }
 0x20d   :  { %v2182_v35 = vadd.f32 %v2181_v56, %v2180_v63 }
 0x20f   :  { %2183 = vst [vmem:[#allocation2] sm:$0x1] %v2182_v35 }
 0x216   :  { %v2187_v23 = vld [vmem:[#allocation2] sm:$0x1] }
 0x217   :  { %v2189_v30 = vadd.f32 %v2188_v26, %v2187_v23 }
 0x219   :  { %v2191_v48 = vsel %vm2190_vm4, %v2189_v30, -inf }
 0x21a   :  { %v2192_v16 = vsel %vm238_vm1, %v2191_v48, -inf }
 0x21b   :  { %2193 = vmax.xlane.f32.xlu0 %v2192_v16 }
 0x2a8   :  { %v2194_v24 = vpop.xlane.xlu0 %2193 }
 0x2a9   :  { %v2195_v25 = vsub.f32 %v2191_v48, %v2194_v24 }
 0x2ab   :  { %v2196_v17 = vmul.f32 1.442695, %v2195_v25 }
 0x2ad   :  { %2295 = vpow2.f32 %v2196_v17 }
 0x2b7   :  { %v2296_v5 = vpop.eup %2295 }
 0x2b8   :  { %v2198_v31 = vsel %vm238_vm1, %v2296_v5, 0.0 }
 0x2b9   :  { %2199 = vadd.xlane.f32.xlu1 %v2198_v31 }
 0x346   :  { %v2200_v51 = vpop.xlane.xlu1 %2199 }
 0x347   :  { %2297 = vrcp.f32 %v2200_v51 }
 0x351   :  { %v2298_v13 = vpop.eup %2297 }
 0x352   :  { %v2202_v45 = vmul.f32 %v2298_v13, %v2296_v5 }
 0x354   :  { %2203 = vst [vmem:[#allocation3] sm:$0x1] %v2202_v45 }
 0x355   :  { %2310 = shalt.err (!%p2307_p4)
}
 0x356   :  { %s2311_s27 = scalar_lea.hbm %s3447_s5, 16 }
 0x357   :  { %p2312_p5 = scmp.ne.s32.totalorder %s3447_s5, %s2311_s27  ;;  %p2315_p6 = scmp.lt.u32.totalorder %s2311_s27, %s3447_s5 }
 0x359   :  { %p2317_p7 = pnand %p2315_p6, %p2312_p5 }
 0x35b   :  { %2320 = shalt.err (!%p2317_p7)
}
 0x35c   :  { %2213 = dma.vmem_to_hbm [thread:$0]  %s2211_s4, 16, %s3447_s5, [#allocation4]  }
 0x35d   :  { %2321 = dma.done.wait [#allocation4], 16  }
 0x35e   :  { %2322 = vsyncadd [#allocation4], 4294967280 }
 0x35f   :  { %2217 = vsyncpa [#allocation4], 1 }

</bundles_post_ra>
